<compile_context>
chip_gen: v5e
topology: v5e:2x2
jax: 0.10.0
libtpu: 0.0.40
codegen_flags: <defaults>
</compile_context>

<pallas_src>
import functools

import jax
import jax.numpy as jnp
from jax.experimental import pallas as pl
from jax.experimental.pallas import tpu as pltpu


def _round_up(x, m):
    return (x + m - 1) // m * m


def _cdiv(a, b):
    return -(-a // b)


def _vmem_capacity_bytes():
    """Best-effort physical VMEM size; conservative 64 MiB (v7x) fallback."""
    try:
        info = pltpu.get_tpu_info()
        for name in ("vmem_capacity_bytes", "vmem_size_bytes", "vmem_bytes"):
            v = getattr(info, name, None)
            if v:
                return int(v)
    except Exception:
        pass
    try:
        kind = jax.devices()[0].device_kind.lower()
        if "v7" in kind:
            return 64 * 1024 * 1024
        if any(t in kind for t in ("v4", "v5", "v6")):
            return 128 * 1024 * 1024
    except Exception:
        pass
    return 64 * 1024 * 1024


def _make_kernel(offsets, cin, tile_rows, cpad):
    """Kernel for one (batch b, split p, row-tile t) grid step.

    x_ref:     (1, Sp_alloc, Cin) f32  whole padded/flattened input of batch b (VMEM-resident)
    w_ref:     (Kc, Cpad)        bf16  flipped conv-transpose weight matrix
    sq_ref:    (1, 1, 8, Cpad)   f32   per-(b, split) sum-of-squares accumulator (8-sublane folded)
    patch_ref: (tile_rows, Kc)   bf16  VMEM scratch holding the assembled patch tile
    """

    def kernel(x_ref, w_ref, sq_ref, patch_ref):
        t = pl.program_id(2)
        g = pl.program_id(1) * pl.num_programs(2) + t          # global row-tile index
        q0 = pl.multiple_of(g * tile_rows, tile_rows)           # first flattened row of tile

        # In-VMEM im2col: one shifted (tile_rows, Cin) row-slice per kernel tap,
        # cast to bf16 and written into its lane-band of the patch scratch.
        for j, off in enumerate(offsets):
            patch_ref[:, pl.ds(j * cin, cin)] = (
                x_ref[0, pl.ds(q0 + off, tile_rows), :].astype(jnp.bfloat16))

        # Single full-Kc-contraction MXU matmul, f32 accumulation.
        y = jnp.dot(patch_ref[...], w_ref[...], preferred_element_type=jnp.float32)

        # Fold rows down to 8 sublanes (dense (8,128) adds/stores); final 8-row
        # reduce happens in the JAX epilogue.
        sq = jnp.sum((y * y).reshape(tile_rows // 8, 8, cpad), axis=0)

        @pl.when(t == 0)
        def _():
            sq_ref[...] = jnp.zeros_like(sq_ref)

        sq_ref[...] += sq[None, None]

    return kernel


def fused_convtranspose3d_scale_bn_gap(x, weight, bias, gamma, beta, *,
                                       scale_factor, eps=1e-5, momentum=0.1,
                                       tile_rows=None):
    """x: (B, Cin, D, H, W); weight: (Cin, Cout, K, K, K) (PyTorch ConvTranspose3d)."""
    del momentum  # TODO(synk): BN running_mean/running_var updates are not materialized.
    B, Cin, D, H, W = x.shape
    Cin_w, Cout, Kd, Kh, Kw = weight.shape
    assert Cin == Cin_w and Kd == Kh == Kw
    K = Kd
    Do, Ho, Wo = D + K - 1, H + K - 1, W + K - 1
    Dp, Hp, Wp = D + 2 * (K - 1), H + 2 * (K - 1), W + 2 * (K - 1)
    S = Do * Ho * Wo
    Sp = Dp * Hp * Wp
    Kc = K * K * K * Cin
    Cpad = _round_up(Cout, 128)
    lane = 128

    # Flattened "padded-output-strided" row range the kernel must sweep; rows whose
    # (od,oh,ow) fall outside the real output box only ever read zero-pad input, so
    # they contribute exactly 0 to the sum of squares (no in-kernel masking needed).
    qmax = (Do - 1) * Hp * Wp + (Ho - 1) * Wp + Wo
    maxoff = (K - 1) * (Hp * Wp + Wp + 1)                       # qmax + maxoff == Sp

    vmem_cap = _vmem_capacity_bytes()
    cin_lanes = _round_up(Cin, lane)
    kc_lanes = _round_up(Kc, lane)
    w_bytes = _round_up(Kc, 16) * Cpad * 2                      # bf16 weight block
    x_fixed = _round_up(Sp, 8) * cin_lanes * 4                  # f32 per-batch x block (approx)

    # ---- row-tile sizing (generation-aware: big tiles where 128 MiB VMEM allows,
    # conservative under v7x's 64 MiB; f32 y/y^2 temporaries included in the budget).
    if tile_rows is None:
        budget = int(0.9 * vmem_cap) - 2 * x_fixed - 2 * w_bytes - (6 << 20)
        budget = max(2 << 20, min(budget, vmem_cap // 2))
        per_row = kc_lanes * 2 + 2 * Cpad * 4 + 2 * lane * 4
        tile_rows = budget // per_row
    tile_rows = int(min(tile_rows, 8192, _round_up(qmax, 8)))
    tile_rows = max(8, tile_rows // 8 * 8)
    R = tile_rows

    # v7x megacore: if batch can't be split across the 2 TensorCores, split the
    # row-tile range instead (two partial accumulators, combined in the epilogue).
    nsplit = 2 if B == 1 else 1
    T_per = _cdiv(_cdiv(qmax, R), nsplit)
    T_total = T_per * nsplit
    sp_alloc = _round_up(T_total * R + maxoff, 8)               # >= Sp always

    # ---- host glue: O(input) only (no K^3 im2col, no K^3 HBM inflation).
    x_cl = jnp.transpose(x, (0, 2, 3, 4, 1)).astype(jnp.float32)          # (B,D,H,W,Cin)
    x_pad = jnp.pad(x_cl, ((0, 0), (K - 1, K - 1), (K - 1, K - 1),
                           (K - 1, K - 1), (0, 0)))                        # (B,Dp,Hp,Wp,Cin)
    xf = x_pad.reshape(B, Sp, Cin)
    xf = jnp.pad(xf, ((0, 0), (0, sp_alloc - Sp), (0, 0)))                 # tail zero rows

    # Flipped conv-transpose weight as a (Kc, Cpad) bf16 matmul operand
    # (row index = ((kd*K + kh)*K + kw)*Cin + ci, matching the patch column order).
    w_flip = jnp.flip(weight.astype(jnp.float32), axis=(2, 3, 4))
    w_mat = jnp.transpose(w_flip, (2, 3, 4, 0, 1)).reshape(Kc, Cout)
    w_mat = jnp.pad(w_mat, ((0, 0), (0, Cpad - Cout))).astype(jnp.bfloat16)

    offsets = [kd * Hp * Wp + kh * Wp + kw
               for kd in range(K) for kh in range(K) for kw in range(K)]
    kernel = _make_kernel(offsets, Cin, R, Cpad)

    # Constant-index blocks: single-buffer when large so v7x's 64 MiB isn't burned
    # on a redundant second copy (gated by size; small shapes keep the default).
    x_block_bytes = _round_up(sp_alloc, 8) * cin_lanes * 4
    x_single = x_block_bytes > (12 << 20)
    w_single = w_bytes > (4 << 20)

    def _spec(shape, index_map, single_buffer):
        if single_buffer:
            return pl.BlockSpec(shape, index_map, pipeline_mode=pl.Buffered(1))
        return pl.BlockSpec(shape, index_map)

    x_spec = _spec((1, sp_alloc, Cin), lambda b, p, t: (b, 0, 0), x_single)
    w_spec = _spec((Kc, Cpad), lambda b, p, t: (0, 0), w_single)
    out_spec = pl.BlockSpec((1, 1, 8, Cpad), lambda b, p, t: (b, p, 0, 0))

    patch_bytes = _round_up(R, 16) * kc_lanes * 2
    vmem_need = ((1 if x_single else 2) * x_block_bytes
                 + (1 if w_single else 2) * w_bytes
                 + patch_bytes
                 + 2 * R * Cpad * 4            # f32 y and y*y temporaries
                 + 4 * 8 * Cpad * 4            # accumulator blocks
                 + (2 << 20))
    vmem_limit = int(min(max(vmem_need, 16 << 20), int(0.9 * vmem_cap)))

    cost = pl.CostEstimate(
        flops=2 * B * T_total * R * Kc * Cpad,
        transcendentals=0,
        bytes_accessed=xf.size * 4 + w_mat.size * 2 + B * nsplit * 8 * Cpad * 4)

    # TODO(synk): for very large inputs whose per-batch padded slab exceeds VMEM,
    # tile the x block along depth (halo'd manual DMA) instead of whole-batch residency.
    out_sq = pl.pallas_call(
        kernel,
        out_shape=jax.ShapeDtypeStruct((B, nsplit, 8, Cpad), jnp.float32),
        grid_spec=pltpu.PrefetchScalarGridSpec(
            num_scalar_prefetch=0,
            grid=(B, nsplit, T_per),
            in_specs=[x_spec, w_spec],
            out_specs=out_spec,
            scratch_shapes=[pltpu.VMEM((R, Kc), jnp.bfloat16)]),
        compiler_params=pltpu.CompilerParams(
            dimension_semantics=("parallel", "parallel", "arbitrary"),
            vmem_limit_bytes=vmem_limit),
        cost_estimate=cost,
    )(xf, w_mat)

    # ---- tiny O(B*Cout) epilogue in plain JAX.
    sqs = jnp.sum(out_sq[..., :Cout], axis=(1, 2))                    # (B, Cout): sum y0^2
    # Closed-form spatial sums (exact f32): every input element hits all K^3 taps.
    xsum = jnp.sum(x.astype(jnp.float32), axis=(2, 3, 4))             # (B, Cin)
    wsum = jnp.sum(weight.astype(jnp.float32), axis=(2, 3, 4))        # (Cin, Cout)
    sums = xsum @ wsum                                                # (B, Cout): sum y0

    n = B * S
    mean_b = sums / S
    mean_g = jnp.sum(sums, axis=0) / n
    var_g = jnp.maximum(jnp.sum(sqs, axis=0) / n - mean_g * mean_g, 0.0)

    s = jnp.float32(scale_factor)
    inv = gamma.astype(jnp.float32) * s * jax.lax.rsqrt(s * s * var_g + eps)
    out = (mean_b - mean_g[None, :]) * inv[None, :] + beta.astype(jnp.float32)[None, :]
    # Note: the ConvTranspose3d bias cancels inside training-mode BatchNorm, so `bias`
    # does not affect the forward output.
    # TODO(synk): BatchNorm running_mean/running_var (momentum) buffer updates are not
    # materialized; only the training-mode forward output is produced.
    return out.reshape(B, Cout, 1, 1, 1)


def reference(x, weight, bias, gamma, beta, scale_factor, eps=1e-5):
    """Independent pure-JAX f32 reference (scatter form of conv transpose)."""
    B, Cin, D, H, W = x.shape
    _, Cout, K, _, _ = weight.shape
    Do, Ho, Wo = D + K - 1, H + K - 1, W + K - 1
    out = jnp.zeros((B, Cout, Do, Ho, Wo), jnp.float32)
    for kd in range(K):
        for kh in range(K):
            for kw in range(K):
                contrib = jnp.einsum('bcdhw,co->bodhw', x, weight[:, :, kd, kh, kw])
                out = out.at[:, :, kd:kd + D, kh:kh + H, kw:kw + W].add(contrib)
    out = (out + bias[None, :, None, None, None]) * scale_factor
    mean = jnp.mean(out, axis=(0, 2, 3, 4), keepdims=True)
    var = jnp.mean((out - mean) ** 2, axis=(0, 2, 3, 4), keepdims=True)
    out = (out - mean) / jnp.sqrt(var + eps)
    out = out * gamma[None, :, None, None, None] + beta[None, :, None, None, None]
    return jnp.mean(out, axis=(2, 3, 4), keepdims=True)


if __name__ == "__main__":
    key = jax.random.PRNGKey(0)
    k1, k2, k3, k4, k5 = jax.random.split(key, 5)

    B, Cin, Cout, D, H, W, K = 2, 4, 8, 8, 8, 8, 3
    scale_factor = 0.5

    x = jax.random.normal(k1, (B, Cin, D, H, W), jnp.float32)
    weight = 0.1 * jax.random.normal(k2, (Cin, Cout, K, K, K), jnp.float32)
    bias = 0.1 * jax.random.normal(k3, (Cout,), jnp.float32)
    gamma = 1.0 + 0.1 * jax.random.normal(k4, (Cout,), jnp.float32)
    beta = 0.1 * jax.random.normal(k5, (Cout,), jnp.float32)

    # tile_rows=256 so the small test exercises multi-tile accumulation (6 row tiles),
    # the tail zero-padded rows, and the pl.when init path.
    fused = jax.jit(functools.partial(fused_convtranspose3d_scale_bn_gap,
                                      scale_factor=scale_factor, tile_rows=256))
    out = jax.block_until_ready(fused(x, weight, bias, gamma, beta))

    ref = jax.block_until_ready(
        reference(x, weight, bias, gamma, beta, scale_factor))

    assert out.shape == (B, Cout, 1, 1, 1), out.shape
    max_err = float(jnp.max(jnp.abs(out - ref)))
    assert max_err < 5e-3, f"mismatch vs reference: {max_err}"

    print("KERNEL_OK")
</pallas_src>

<mosaic_0001>
module attributes {stable_mosaic.version = 11 : i64} {
  func.func @kernel(%arg0: i32, %arg1: i32, %arg2: i32, %arg3: memref<1x1856x4xf32, #tpu.memory_space<vmem>>, %arg4: memref<108x128xbf16, #tpu.memory_space<vmem>>, %arg5: memref<1x1x8x128xf32, #tpu.memory_space<vmem>>, %arg6: memref<256x108xbf16, #tpu.memory_space<vmem>>) attributes {dimension_semantics = [#tpu.dimension_semantics<parallel>, #tpu.dimension_semantics<parallel>, #tpu.dimension_semantics<arbitrary>], iteration_bounds = array<i64: 2, 1, 6>, scalar_prefetch = 0 : i64, scratch_operands = 1 : i64, tpu.core_type = #tpu.core_type<tc>, window_params = [{transform_indices = @transform_0, window_bounds = array<i64: 1, 1856, 4>}, {pipeline_mode = #tpu.pipeline_mode<synchronous>, transform_indices = @transform_1, window_bounds = array<i64: 108, 128>}, {transform_indices = @transform_2, window_bounds = array<i64: 1, 1, 8, 128>}]} {
    %c6_i32 = arith.constant 6 : i32
    %0 = arith.muli %arg1, %c6_i32 : i32
    %1 = arith.addi %0, %arg2 : i32
    %c256_i32 = arith.constant 256 : i32
    %2 = arith.muli %1, %c256_i32 : i32
    %3 = tpu.assume_multiple %2, 256 : i32
    %c0_i32 = arith.constant 0 : i32
    %4 = arith.addi %3, %c0_i32 : i32
    %c0 = arith.constant 0 : index
    %5 = arith.index_cast %4 : i32 to index
    %c0_0 = arith.constant 0 : index
    %6 = vector.load %arg3[%c0, %5, %c0_0] : memref<1x1856x4xf32, #tpu.memory_space<vmem>>, vector<1x256x4xf32>
    %7 = vector.shape_cast %6 : vector<1x256x4xf32> to vector<256x4xf32>
    %8 = arith.truncf %7 : vector<256x4xf32> to vector<256x4xbf16>
    %c0_1 = arith.constant 0 : index
    %c0_2 = arith.constant 0 : index
    %9 = vector.load %arg6[%c0_1, %c0_2] : memref<256x108xbf16, #tpu.memory_space<vmem>>, vector<256x4xbf16>
    tpu.vector_store %arg6[%c0_1, %c0_2], %8 {strides = array<i32>} : memref<256x108xbf16, #tpu.memory_space<vmem>>, vector<256x4xbf16>,
    %c1_i32 = arith.constant 1 : i32
    %10 = arith.addi %3, %c1_i32 : i32
    %c0_3 = arith.constant 0 : index
    %11 = arith.index_cast %10 : i32 to index
    %c0_4 = arith.constant 0 : index
    %12 = vector.load %arg3[%c0_3, %11, %c0_4] : memref<1x1856x4xf32, #tpu.memory_space<vmem>>, vector<1x256x4xf32>
    %13 = vector.shape_cast %12 : vector<1x256x4xf32> to vector<256x4xf32>
    %14 = arith.truncf %13 : vector<256x4xf32> to vector<256x4xbf16>
    %c0_5 = arith.constant 0 : index
    %c4 = arith.constant 4 : index
    %15 = vector.load %arg6[%c0_5, %c4] : memref<256x108xbf16, #tpu.memory_space<vmem>>, vector<256x4xbf16>
    tpu.vector_store %arg6[%c0_5, %c4], %14 {strides = array<i32>} : memref<256x108xbf16, #tpu.memory_space<vmem>>, vector<256x4xbf16>,
    %c2_i32 = arith.constant 2 : i32
    %16 = arith.addi %3, %c2_i32 : i32
    %c0_6 = arith.constant 0 : index
    %17 = arith.index_cast %16 : i32 to index
    %c0_7 = arith.constant 0 : index
    %18 = vector.load %arg3[%c0_6, %17, %c0_7] : memref<1x1856x4xf32, #tpu.memory_space<vmem>>, vector<1x256x4xf32>
    %19 = vector.shape_cast %18 : vector<1x256x4xf32> to vector<256x4xf32>
    %20 = arith.truncf %19 : vector<256x4xf32> to vector<256x4xbf16>
    %c0_8 = arith.constant 0 : index
    %c8 = arith.constant 8 : index
    %21 = vector.load %arg6[%c0_8, %c8] : memref<256x108xbf16, #tpu.memory_space<vmem>>, vector<256x4xbf16>
    tpu.vector_store %arg6[%c0_8, %c8], %20 {strides = array<i32>} : memref<256x108xbf16, #tpu.memory_space<vmem>>, vector<256x4xbf16>,
    %c12_i32 = arith.constant 12 : i32
    %22 = arith.addi %3, %c12_i32 : i32
    %c0_9 = arith.constant 0 : index
    %23 = arith.index_cast %22 : i32 to index
    %c0_10 = arith.constant 0 : index
    %24 = vector.load %arg3[%c0_9, %23, %c0_10] : memref<1x1856x4xf32, #tpu.memory_space<vmem>>, vector<1x256x4xf32>
    %25 = vector.shape_cast %24 : vector<1x256x4xf32> to vector<256x4xf32>
    %26 = arith.truncf %25 : vector<256x4xf32> to vector<256x4xbf16>
    %c0_11 = arith.constant 0 : index
    %c12 = arith.constant 12 : index
    %27 = vector.load %arg6[%c0_11, %c12] : memref<256x108xbf16, #tpu.memory_space<vmem>>, vector<256x4xbf16>
    tpu.vector_store %arg6[%c0_11, %c12], %26 {strides = array<i32>} : memref<256x108xbf16, #tpu.memory_space<vmem>>, vector<256x4xbf16>,
    %c13_i32 = arith.constant 13 : i32
    %28 = arith.addi %3, %c13_i32 : i32
    %c0_12 = arith.constant 0 : index
    %29 = arith.index_cast %28 : i32 to index
    %c0_13 = arith.constant 0 : index
    %30 = vector.load %arg3[%c0_12, %29, %c0_13] : memref<1x1856x4xf32, #tpu.memory_space<vmem>>, vector<1x256x4xf32>
    %31 = vector.shape_cast %30 : vector<1x256x4xf32> to vector<256x4xf32>
    %32 = arith.truncf %31 : vector<256x4xf32> to vector<256x4xbf16>
    %c0_14 = arith.constant 0 : index
    %c16 = arith.constant 16 : index
    %33 = vector.load %arg6[%c0_14, %c16] : memref<256x108xbf16, #tpu.memory_space<vmem>>, vector<256x4xbf16>
    tpu.vector_store %arg6[%c0_14, %c16], %32 {strides = array<i32>} : memref<256x108xbf16, #tpu.memory_space<vmem>>, vector<256x4xbf16>,
    %c14_i32 = arith.constant 14 : i32
    %34 = arith.addi %3, %c14_i32 : i32
    %c0_15 = arith.constant 0 : index
    %35 = arith.index_cast %34 : i32 to index
    %c0_16 = arith.constant 0 : index
    %36 = vector.load %arg3[%c0_15, %35, %c0_16] : memref<1x1856x4xf32, #tpu.memory_space<vmem>>, vector<1x256x4xf32>
    %37 = vector.shape_cast %36 : vector<1x256x4xf32> to vector<256x4xf32>
    %38 = arith.truncf %37 : vector<256x4xf32> to vector<256x4xbf16>
    %c0_17 = arith.constant 0 : index
    %c20 = arith.constant 20 : index
    %39 = vector.load %arg6[%c0_17, %c20] : memref<256x108xbf16, #tpu.memory_space<vmem>>, vector<256x4xbf16>
    tpu.vector_store %arg6[%c0_17, %c20], %38 {strides = array<i32>} : memref<256x108xbf16, #tpu.memory_space<vmem>>, vector<256x4xbf16>,
    %c24_i32 = arith.constant 24 : i32
    %40 = arith.addi %3, %c24_i32 : i32
    %c0_18 = arith.constant 0 : index
    %41 = arith.index_cast %40 : i32 to index
    %c0_19 = arith.constant 0 : index
    %42 = vector.load %arg3[%c0_18, %41, %c0_19] : memref<1x1856x4xf32, #tpu.memory_space<vmem>>, vector<1x256x4xf32>
    %43 = vector.shape_cast %42 : vector<1x256x4xf32> to vector<256x4xf32>
    %44 = arith.truncf %43 : vector<256x4xf32> to vector<256x4xbf16>
    %c0_20 = arith.constant 0 : index
    %c24 = arith.constant 24 : index
    %45 = vector.load %arg6[%c0_20, %c24] : memref<256x108xbf16, #tpu.memory_space<vmem>>, vector<256x4xbf16>
    tpu.vector_store %arg6[%c0_20, %c24], %44 {strides = array<i32>} : memref<256x108xbf16, #tpu.memory_space<vmem>>, vector<256x4xbf16>,
    %c25_i32 = arith.constant 25 : i32
    %46 = arith.addi %3, %c25_i32 : i32
    %c0_21 = arith.constant 0 : index
    %47 = arith.index_cast %46 : i32 to index
    %c0_22 = arith.constant 0 : index
    %48 = vector.load %arg3[%c0_21, %47, %c0_22] : memref<1x1856x4xf32, #tpu.memory_space<vmem>>, vector<1x256x4xf32>
    %49 = vector.shape_cast %48 : vector<1x256x4xf32> to vector<256x4xf32>
    %50 = arith.truncf %49 : vector<256x4xf32> to vector<256x4xbf16>
    %c0_23 = arith.constant 0 : index
    %c28 = arith.constant 28 : index
    %51 = vector.load %arg6[%c0_23, %c28] : memref<256x108xbf16, #tpu.memory_space<vmem>>, vector<256x4xbf16>
    tpu.vector_store %arg6[%c0_23, %c28], %50 {strides = array<i32>} : memref<256x108xbf16, #tpu.memory_space<vmem>>, vector<256x4xbf16>,
    %c26_i32 = arith.constant 26 : i32
    %52 = arith.addi %3, %c26_i32 : i32
    %c0_24 = arith.constant 0 : index
    %53 = arith.index_cast %52 : i32 to index
    %c0_25 = arith.constant 0 : index
    %54 = vector.load %arg3[%c0_24, %53, %c0_25] : memref<1x1856x4xf32, #tpu.memory_space<vmem>>, vector<1x256x4xf32>
    %55 = vector.shape_cast %54 : vector<1x256x4xf32> to vector<256x4xf32>
    %56 = arith.truncf %55 : vector<256x4xf32> to vector<256x4xbf16>
    %c0_26 = arith.constant 0 : index
    %c32 = arith.constant 32 : index
    %57 = vector.load %arg6[%c0_26, %c32] : memref<256x108xbf16, #tpu.memory_space<vmem>>, vector<256x4xbf16>
    tpu.vector_store %arg6[%c0_26, %c32], %56 {strides = array<i32>} : memref<256x108xbf16, #tpu.memory_space<vmem>>, vector<256x4xbf16>,
    %c144_i32 = arith.constant 144 : i32
    %58 = arith.addi %3, %c144_i32 : i32
    %c0_27 = arith.constant 0 : index
    %59 = arith.index_cast %58 : i32 to index
    %c0_28 = arith.constant 0 : index
    %60 = vector.load %arg3[%c0_27, %59, %c0_28] : memref<1x1856x4xf32, #tpu.memory_space<vmem>>, vector<1x256x4xf32>
    %61 = vector.shape_cast %60 : vector<1x256x4xf32> to vector<256x4xf32>
    %62 = arith.truncf %61 : vector<256x4xf32> to vector<256x4xbf16>
    %c0_29 = arith.constant 0 : index
    %c36 = arith.constant 36 : index
    %63 = vector.load %arg6[%c0_29, %c36] : memref<256x108xbf16, #tpu.memory_space<vmem>>, vector<256x4xbf16>
    tpu.vector_store %arg6[%c0_29, %c36], %62 {strides = array<i32>} : memref<256x108xbf16, #tpu.memory_space<vmem>>, vector<256x4xbf16>,
    %c145_i32 = arith.constant 145 : i32
    %64 = arith.addi %3, %c145_i32 : i32
    %c0_30 = arith.constant 0 : index
    %65 = arith.index_cast %64 : i32 to index
    %c0_31 = arith.constant 0 : index
    %66 = vector.load %arg3[%c0_30, %65, %c0_31] : memref<1x1856x4xf32, #tpu.memory_space<vmem>>, vector<1x256x4xf32>
    %67 = vector.shape_cast %66 : vector<1x256x4xf32> to vector<256x4xf32>
    %68 = arith.truncf %67 : vector<256x4xf32> to vector<256x4xbf16>
    %c0_32 = arith.constant 0 : index
    %c40 = arith.constant 40 : index
    %69 = vector.load %arg6[%c0_32, %c40] : memref<256x108xbf16, #tpu.memory_space<vmem>>, vector<256x4xbf16>
    tpu.vector_store %arg6[%c0_32, %c40], %68 {strides = array<i32>} : memref<256x108xbf16, #tpu.memory_space<vmem>>, vector<256x4xbf16>,
    %c146_i32 = arith.constant 146 : i32
    %70 = arith.addi %3, %c146_i32 : i32
    %c0_33 = arith.constant 0 : index
    %71 = arith.index_cast %70 : i32 to index
    %c0_34 = arith.constant 0 : index
    %72 = vector.load %arg3[%c0_33, %71, %c0_34] : memref<1x1856x4xf32, #tpu.memory_space<vmem>>, vector<1x256x4xf32>
    %73 = vector.shape_cast %72 : vector<1x256x4xf32> to vector<256x4xf32>
    %74 = arith.truncf %73 : vector<256x4xf32> to vector<256x4xbf16>
    %c0_35 = arith.constant 0 : index
    %c44 = arith.constant 44 : index
    %75 = vector.load %arg6[%c0_35, %c44] : memref<256x108xbf16, #tpu.memory_space<vmem>>, vector<256x4xbf16>
    tpu.vector_store %arg6[%c0_35, %c44], %74 {strides = array<i32>} : memref<256x108xbf16, #tpu.memory_space<vmem>>, vector<256x4xbf16>,
    %c156_i32 = arith.constant 156 : i32
    %76 = arith.addi %3, %c156_i32 : i32
    %c0_36 = arith.constant 0 : index
    %77 = arith.index_cast %76 : i32 to index
    %c0_37 = arith.constant 0 : index
    %78 = vector.load %arg3[%c0_36, %77, %c0_37] : memref<1x1856x4xf32, #tpu.memory_space<vmem>>, vector<1x256x4xf32>
    %79 = vector.shape_cast %78 : vector<1x256x4xf32> to vector<256x4xf32>
    %80 = arith.truncf %79 : vector<256x4xf32> to vector<256x4xbf16>
    %c0_38 = arith.constant 0 : index
    %c48 = arith.constant 48 : index
    %81 = vector.load %arg6[%c0_38, %c48] : memref<256x108xbf16, #tpu.memory_space<vmem>>, vector<256x4xbf16>
    tpu.vector_store %arg6[%c0_38, %c48], %80 {strides = array<i32>} : memref<256x108xbf16, #tpu.memory_space<vmem>>, vector<256x4xbf16>,
    %c157_i32 = arith.constant 157 : i32
    %82 = arith.addi %3, %c157_i32 : i32
    %c0_39 = arith.constant 0 : index
    %83 = arith.index_cast %82 : i32 to index
    %c0_40 = arith.constant 0 : index
    %84 = vector.load %arg3[%c0_39, %83, %c0_40] : memref<1x1856x4xf32, #tpu.memory_space<vmem>>, vector<1x256x4xf32>
    %85 = vector.shape_cast %84 : vector<1x256x4xf32> to vector<256x4xf32>
    %86 = arith.truncf %85 : vector<256x4xf32> to vector<256x4xbf16>
    %c0_41 = arith.constant 0 : index
    %c52 = arith.constant 52 : index
    %87 = vector.load %arg6[%c0_41, %c52] : memref<256x108xbf16, #tpu.memory_space<vmem>>, vector<256x4xbf16>
    tpu.vector_store %arg6[%c0_41, %c52], %86 {strides = array<i32>} : memref<256x108xbf16, #tpu.memory_space<vmem>>, vector<256x4xbf16>,
    %c158_i32 = arith.constant 158 : i32
    %88 = arith.addi %3, %c158_i32 : i32
    %c0_42 = arith.constant 0 : index
    %89 = arith.index_cast %88 : i32 to index
    %c0_43 = arith.constant 0 : index
    %90 = vector.load %arg3[%c0_42, %89, %c0_43] : memref<1x1856x4xf32, #tpu.memory_space<vmem>>, vector<1x256x4xf32>
    %91 = vector.shape_cast %90 : vector<1x256x4xf32> to vector<256x4xf32>
    %92 = arith.truncf %91 : vector<256x4xf32> to vector<256x4xbf16>
    %c0_44 = arith.constant 0 : index
    %c56 = arith.constant 56 : index
    %93 = vector.load %arg6[%c0_44, %c56] : memref<256x108xbf16, #tpu.memory_space<vmem>>, vector<256x4xbf16>
    tpu.vector_store %arg6[%c0_44, %c56], %92 {strides = array<i32>} : memref<256x108xbf16, #tpu.memory_space<vmem>>, vector<256x4xbf16>,
    %c168_i32 = arith.constant 168 : i32
    %94 = arith.addi %3, %c168_i32 : i32
    %c0_45 = arith.constant 0 : index
    %95 = arith.index_cast %94 : i32 to index
    %c0_46 = arith.constant 0 : index
    %96 = vector.load %arg3[%c0_45, %95, %c0_46] : memref<1x1856x4xf32, #tpu.memory_space<vmem>>, vector<1x256x4xf32>
    %97 = vector.shape_cast %96 : vector<1x256x4xf32> to vector<256x4xf32>
    %98 = arith.truncf %97 : vector<256x4xf32> to vector<256x4xbf16>
    %c0_47 = arith.constant 0 : index
    %c60 = arith.constant 60 : index
    %99 = vector.load %arg6[%c0_47, %c60] : memref<256x108xbf16, #tpu.memory_space<vmem>>, vector<256x4xbf16>
    tpu.vector_store %arg6[%c0_47, %c60], %98 {strides = array<i32>} : memref<256x108xbf16, #tpu.memory_space<vmem>>, vector<256x4xbf16>,
    %c169_i32 = arith.constant 169 : i32
    %100 = arith.addi %3, %c169_i32 : i32
    %c0_48 = arith.constant 0 : index
    %101 = arith.index_cast %100 : i32 to index
    %c0_49 = arith.constant 0 : index
    %102 = vector.load %arg3[%c0_48, %101, %c0_49] : memref<1x1856x4xf32, #tpu.memory_space<vmem>>, vector<1x256x4xf32>
    %103 = vector.shape_cast %102 : vector<1x256x4xf32> to vector<256x4xf32>
    %104 = arith.truncf %103 : vector<256x4xf32> to vector<256x4xbf16>
    %c0_50 = arith.constant 0 : index
    %c64 = arith.constant 64 : index
    %105 = vector.load %arg6[%c0_50, %c64] : memref<256x108xbf16, #tpu.memory_space<vmem>>, vector<256x4xbf16>
    tpu.vector_store %arg6[%c0_50, %c64], %104 {strides = array<i32>} : memref<256x108xbf16, #tpu.memory_space<vmem>>, vector<256x4xbf16>,
    %c170_i32 = arith.constant 170 : i32
    %106 = arith.addi %3, %c170_i32 : i32
    %c0_51 = arith.constant 0 : index
    %107 = arith.index_cast %106 : i32 to index
    %c0_52 = arith.constant 0 : index
    %108 = vector.load %arg3[%c0_51, %107, %c0_52] : memref<1x1856x4xf32, #tpu.memory_space<vmem>>, vector<1x256x4xf32>
    %109 = vector.shape_cast %108 : vector<1x256x4xf32> to vector<256x4xf32>
    %110 = arith.truncf %109 : vector<256x4xf32> to vector<256x4xbf16>
    %c0_53 = arith.constant 0 : index
    %c68 = arith.constant 68 : index
    %111 = vector.load %arg6[%c0_53, %c68] : memref<256x108xbf16, #tpu.memory_space<vmem>>, vector<256x4xbf16>
    tpu.vector_store %arg6[%c0_53, %c68], %110 {strides = array<i32>} : memref<256x108xbf16, #tpu.memory_space<vmem>>, vector<256x4xbf16>,
    %c288_i32 = arith.constant 288 : i32
    %112 = arith.addi %3, %c288_i32 : i32
    %c0_54 = arith.constant 0 : index
    %113 = arith.index_cast %112 : i32 to index
    %c0_55 = arith.constant 0 : index
    %114 = vector.load %arg3[%c0_54, %113, %c0_55] : memref<1x1856x4xf32, #tpu.memory_space<vmem>>, vector<1x256x4xf32>
    %115 = vector.shape_cast %114 : vector<1x256x4xf32> to vector<256x4xf32>
    %116 = arith.truncf %115 : vector<256x4xf32> to vector<256x4xbf16>
    %c0_56 = arith.constant 0 : index
    %c72 = arith.constant 72 : index
    %117 = vector.load %arg6[%c0_56, %c72] : memref<256x108xbf16, #tpu.memory_space<vmem>>, vector<256x4xbf16>
    tpu.vector_store %arg6[%c0_56, %c72], %116 {strides = array<i32>} : memref<256x108xbf16, #tpu.memory_space<vmem>>, vector<256x4xbf16>,
    %c289_i32 = arith.constant 289 : i32
    %118 = arith.addi %3, %c289_i32 : i32
    %c0_57 = arith.constant 0 : index
    %119 = arith.index_cast %118 : i32 to index
    %c0_58 = arith.constant 0 : index
    %120 = vector.load %arg3[%c0_57, %119, %c0_58] : memref<1x1856x4xf32, #tpu.memory_space<vmem>>, vector<1x256x4xf32>
    %121 = vector.shape_cast %120 : vector<1x256x4xf32> to vector<256x4xf32>
    %122 = arith.truncf %121 : vector<256x4xf32> to vector<256x4xbf16>
    %c0_59 = arith.constant 0 : index
    %c76 = arith.constant 76 : index
    %123 = vector.load %arg6[%c0_59, %c76] : memref<256x108xbf16, #tpu.memory_space<vmem>>, vector<256x4xbf16>
    tpu.vector_store %arg6[%c0_59, %c76], %122 {strides = array<i32>} : memref<256x108xbf16, #tpu.memory_space<vmem>>, vector<256x4xbf16>,
    %c290_i32 = arith.constant 290 : i32
    %124 = arith.addi %3, %c290_i32 : i32
    %c0_60 = arith.constant 0 : index
    %125 = arith.index_cast %124 : i32 to index
    %c0_61 = arith.constant 0 : index
    %126 = vector.load %arg3[%c0_60, %125, %c0_61] : memref<1x1856x4xf32, #tpu.memory_space<vmem>>, vector<1x256x4xf32>
    %127 = vector.shape_cast %126 : vector<1x256x4xf32> to vector<256x4xf32>
    %128 = arith.truncf %127 : vector<256x4xf32> to vector<256x4xbf16>
    %c0_62 = arith.constant 0 : index
    %c80 = arith.constant 80 : index
    %129 = vector.load %arg6[%c0_62, %c80] : memref<256x108xbf16, #tpu.memory_space<vmem>>, vector<256x4xbf16>
    tpu.vector_store %arg6[%c0_62, %c80], %128 {strides = array<i32>} : memref<256x108xbf16, #tpu.memory_space<vmem>>, vector<256x4xbf16>,
    %c300_i32 = arith.constant 300 : i32
    %130 = arith.addi %3, %c300_i32 : i32
    %c0_63 = arith.constant 0 : index
    %131 = arith.index_cast %130 : i32 to index
    %c0_64 = arith.constant 0 : index
    %132 = vector.load %arg3[%c0_63, %131, %c0_64] : memref<1x1856x4xf32, #tpu.memory_space<vmem>>, vector<1x256x4xf32>
    %133 = vector.shape_cast %132 : vector<1x256x4xf32> to vector<256x4xf32>
    %134 = arith.truncf %133 : vector<256x4xf32> to vector<256x4xbf16>
    %c0_65 = arith.constant 0 : index
    %c84 = arith.constant 84 : index
    %135 = vector.load %arg6[%c0_65, %c84] : memref<256x108xbf16, #tpu.memory_space<vmem>>, vector<256x4xbf16>
    tpu.vector_store %arg6[%c0_65, %c84], %134 {strides = array<i32>} : memref<256x108xbf16, #tpu.memory_space<vmem>>, vector<256x4xbf16>,
    %c301_i32 = arith.constant 301 : i32
    %136 = arith.addi %3, %c301_i32 : i32
    %c0_66 = arith.constant 0 : index
    %137 = arith.index_cast %136 : i32 to index
    %c0_67 = arith.constant 0 : index
    %138 = vector.load %arg3[%c0_66, %137, %c0_67] : memref<1x1856x4xf32, #tpu.memory_space<vmem>>, vector<1x256x4xf32>
    %139 = vector.shape_cast %138 : vector<1x256x4xf32> to vector<256x4xf32>
    %140 = arith.truncf %139 : vector<256x4xf32> to vector<256x4xbf16>
    %c0_68 = arith.constant 0 : index
    %c88 = arith.constant 88 : index
    %141 = vector.load %arg6[%c0_68, %c88] : memref<256x108xbf16, #tpu.memory_space<vmem>>, vector<256x4xbf16>
    tpu.vector_store %arg6[%c0_68, %c88], %140 {strides = array<i32>} : memref<256x108xbf16, #tpu.memory_space<vmem>>, vector<256x4xbf16>,
    %c302_i32 = arith.constant 302 : i32
    %142 = arith.addi %3, %c302_i32 : i32
    %c0_69 = arith.constant 0 : index
    %143 = arith.index_cast %142 : i32 to index
    %c0_70 = arith.constant 0 : index
    %144 = vector.load %arg3[%c0_69, %143, %c0_70] : memref<1x1856x4xf32, #tpu.memory_space<vmem>>, vector<1x256x4xf32>
    %145 = vector.shape_cast %144 : vector<1x256x4xf32> to vector<256x4xf32>
    %146 = arith.truncf %145 : vector<256x4xf32> to vector<256x4xbf16>
    %c0_71 = arith.constant 0 : index
    %c92 = arith.constant 92 : index
    %147 = vector.load %arg6[%c0_71, %c92] : memref<256x108xbf16, #tpu.memory_space<vmem>>, vector<256x4xbf16>
    tpu.vector_store %arg6[%c0_71, %c92], %146 {strides = array<i32>} : memref<256x108xbf16, #tpu.memory_space<vmem>>, vector<256x4xbf16>,
    %c312_i32 = arith.constant 312 : i32
    %148 = arith.addi %3, %c312_i32 : i32
    %c0_72 = arith.constant 0 : index
    %149 = arith.index_cast %148 : i32 to index
    %c0_73 = arith.constant 0 : index
    %150 = vector.load %arg3[%c0_72, %149, %c0_73] : memref<1x1856x4xf32, #tpu.memory_space<vmem>>, vector<1x256x4xf32>
    %151 = vector.shape_cast %150 : vector<1x256x4xf32> to vector<256x4xf32>
    %152 = arith.truncf %151 : vector<256x4xf32> to vector<256x4xbf16>
    %c0_74 = arith.constant 0 : index
    %c96 = arith.constant 96 : index
    %153 = vector.load %arg6[%c0_74, %c96] : memref<256x108xbf16, #tpu.memory_space<vmem>>, vector<256x4xbf16>
    tpu.vector_store %arg6[%c0_74, %c96], %152 {strides = array<i32>} : memref<256x108xbf16, #tpu.memory_space<vmem>>, vector<256x4xbf16>,
    %c313_i32 = arith.constant 313 : i32
    %154 = arith.addi %3, %c313_i32 : i32
    %c0_75 = arith.constant 0 : index
    %155 = arith.index_cast %154 : i32 to index
    %c0_76 = arith.constant 0 : index
    %156 = vector.load %arg3[%c0_75, %155, %c0_76] : memref<1x1856x4xf32, #tpu.memory_space<vmem>>, vector<1x256x4xf32>
    %157 = vector.shape_cast %156 : vector<1x256x4xf32> to vector<256x4xf32>
    %158 = arith.truncf %157 : vector<256x4xf32> to vector<256x4xbf16>
    %c0_77 = arith.constant 0 : index
    %c100 = arith.constant 100 : index
    %159 = vector.load %arg6[%c0_77, %c100] : memref<256x108xbf16, #tpu.memory_space<vmem>>, vector<256x4xbf16>
    tpu.vector_store %arg6[%c0_77, %c100], %158 {strides = array<i32>} : memref<256x108xbf16, #tpu.memory_space<vmem>>, vector<256x4xbf16>,
    %c314_i32 = arith.constant 314 : i32
    %160 = arith.addi %3, %c314_i32 : i32
    %c0_78 = arith.constant 0 : index
    %161 = arith.index_cast %160 : i32 to index
    %c0_79 = arith.constant 0 : index
    %162 = vector.load %arg3[%c0_78, %161, %c0_79] : memref<1x1856x4xf32, #tpu.memory_space<vmem>>, vector<1x256x4xf32>
    %163 = vector.shape_cast %162 : vector<1x256x4xf32> to vector<256x4xf32>
    %164 = arith.truncf %163 : vector<256x4xf32> to vector<256x4xbf16>
    %c0_80 = arith.constant 0 : index
    %c104 = arith.constant 104 : index
    %165 = vector.load %arg6[%c0_80, %c104] : memref<256x108xbf16, #tpu.memory_space<vmem>>, vector<256x4xbf16>
    tpu.vector_store %arg6[%c0_80, %c104], %164 {strides = array<i32>} : memref<256x108xbf16, #tpu.memory_space<vmem>>, vector<256x4xbf16>,
    %c0_81 = arith.constant 0 : index
    %c0_82 = arith.constant 0 : index
    %166 = vector.load %arg6[%c0_81, %c0_82] : memref<256x108xbf16, #tpu.memory_space<vmem>>, vector<256x108xbf16>
    %c0_83 = arith.constant 0 : index
    %c0_84 = arith.constant 0 : index
    %167 = vector.load %arg4[%c0_83, %c0_84] : memref<108x128xbf16, #tpu.memory_space<vmem>>, vector<108x128xbf16>
    %cst = arith.constant dense<0.000000e+00> : vector<256x128xf32>
    %168 = tpu.matmul %166, %167, %cst {dimension_numbers = #tpu.dot_dimension_numbers<[1], [0], [0], [1], [0, 0, 1, 1], [], []>} : vector<256x108xbf16>, vector<108x128xbf16>, vector<256x128xf32> -> vector<256x128xf32>
    %169 = arith.mulf %168, %168 : vector<256x128xf32>
    %170 = vector.shape_cast %169 : vector<256x128xf32> to vector<32x8x128xf32>
    %cst_85 = arith.constant dense<0.000000e+00> : vector<8x128xf32>
    %171 = vector.multi_reduction <add>, %170, %cst_85 [0] : vector<32x8x128xf32> to vector<8x128xf32>
    %c0_i32_86 = arith.constant 0 : i32
    %172 = arith.cmpi eq, %arg2, %c0_i32_86 : i32
    %173 = arith.extui %172 : i1 to i32
    %c0_i32_87 = arith.constant 0 : i32
    %174 = arith.cmpi ne, %173, %c0_i32_87 : i32
    scf.if %174 {
      %cst_96 = arith.constant 0.000000e+00 : f32
      %179 = vector.broadcast %cst_96 : f32 to vector<1x1x8x128xf32>
      %c0_97 = arith.constant 0 : index
      %c0_98 = arith.constant 0 : index
      %c0_99 = arith.constant 0 : index
      %c0_100 = arith.constant 0 : index
      %180 = vector.load %arg5[%c0_97, %c0_98, %c0_99, %c0_100] : memref<1x1x8x128xf32, #tpu.memory_space<vmem>>, vector<1x1x8x128xf32>
      tpu.vector_store %arg5[%c0_97, %c0_98, %c0_99, %c0_100], %179 {strides = array<i32>} : memref<1x1x8x128xf32, #tpu.memory_space<vmem>>, vector<1x1x8x128xf32>,
    } else {
    }
    %c0_88 = arith.constant 0 : index
    %c0_89 = arith.constant 0 : index
    %c0_90 = arith.constant 0 : index
    %c0_91 = arith.constant 0 : index
    %175 = vector.load %arg5[%c0_88, %c0_89, %c0_90, %c0_91] : memref<1x1x8x128xf32, #tpu.memory_space<vmem>>, vector<1x1x8x128xf32>
    %176 = vector.shape_cast %171 : vector<8x128xf32> to vector<1x1x8x128xf32>
    %177 = arith.addf %175, %176 : vector<1x1x8x128xf32>
    %c0_92 = arith.constant 0 : index
    %c0_93 = arith.constant 0 : index
    %c0_94 = arith.constant 0 : index
    %c0_95 = arith.constant 0 : index
    %178 = vector.load %arg5[%c0_92, %c0_93, %c0_94, %c0_95] : memref<1x1x8x128xf32, #tpu.memory_space<vmem>>, vector<1x1x8x128xf32>
    tpu.vector_store %arg5[%c0_92, %c0_93, %c0_94, %c0_95], %177 {strides = array<i32>} : memref<1x1x8x128xf32, #tpu.memory_space<vmem>>, vector<1x1x8x128xf32>,
    return
  }
  func.func @transform_0(%arg0: i32, %arg1: i32, %arg2: i32) -> (i32, i32, i32) {
    %c0_i32 = arith.constant 0 : i32
    %c0_i32_0 = arith.constant 0 : i32
    %c0_i32_1 = arith.constant 0 : i32
    return %arg0, %c0_i32, %c0_i32_0 : i32, i32, i32
  }
  func.func @transform_1(%arg0: i32, %arg1: i32, %arg2: i32) -> (i32, i32) {
    %c0_i32 = arith.constant 0 : i32
    %c0_i32_0 = arith.constant 0 : i32
    %c0_i32_1 = arith.constant 0 : i32
    return %c0_i32, %c0_i32_0 : i32, i32
  }
  func.func @transform_2(%arg0: i32, %arg1: i32, %arg2: i32) -> (i32, i32, i32, i32) {
    %c0_i32 = arith.constant 0 : i32
    %c0_i32_0 = arith.constant 0 : i32
    %c0_i32_1 = arith.constant 0 : i32
    return %arg0, %arg1, %c0_i32, %c0_i32_0 : i32, i32, i32, i32
  }
}

</mosaic_0001>

<bundles_post_ra>
// kernel: fused_convtranspose3d_scale_bn_gap.1
= control target key start
LH: loop header
LB: loop body
LE: loop exit
PB: predicated region body
PF: predicated region fallthrough
CT: control target
= control target key end

     0   :  { %s7935_s9 = smov 0   ;;  %s7937_s10 = smov 0   ;;  %s10903_s0 = inlined_call_operand.vmem [shape: f32[2,1856,4], index: 0, kind: input, shape index: {}]   ;;  %s10904_s1 = inlined_call_operand.vmem [shape: bf16[108,128], index: 1, kind: input, shape index: {}]   ;;  %s10905_s2 = inlined_call_operand.vmem [shape: f32[2,1,8,128], index: 2, kind: output, shape index: {}]  }
   0x1   :  { %s7939_s11 = smov 0   ;;  %s7941_s12 = smov 0  }
   0x2   :  { %s7943_s13 = smov 0  }
   0x3 LB: > { %s24_s14 = sadd.s32 1, %s7883_s11  ;;  %s31_s15 = sadd.s32 1, %s7887_s12  ;;  %s7891_s13 = sphi %s7943_s13, %s12_s13   ;;  %s7887_s12 = sphi %s7941_s12, %s10909_s12   ;;  %s7883_s11 = sphi %s7939_s11, %s10908_s11   ;;  %s7879_s10 = sphi %s7937_s10, %s10907_s10   ;;  %s7875_s9 = sphi %s7935_s9, %s10906_s9  }
   0x4   : > { %p25_p0 = scmp.ge.s32.totalorder %s24_s14, 6  ;;  %p6768_p1 = scmp.ge.s32.totalorder %s7891_s13, 1 }
   0x5   : > { %p133_p2 = scmp.lt.s32.totalorder %s7891_s13, 13 }
   0x6   : > { %s10911_s14 = smov (%p25_p0, %s24_s14), 0  ;;  %s10913_s15 = smov (!%p25_p0, %s31_s15), %s7887_s12 }
   0x7   : > { %p134_p3 = pnand %p6768_p1, %p133_p2  ;;  %p33_p4 = scmp.ge.s32.totalorder %s10913_s15, 2 }
   0x8   : > { %p157_p5 = scmp.lt.s32.totalorder (!%p134_p3), %s7879_s10, 1  ;;  %s6771_s16 = sshll.u32 (!%p134_p3), %s7875_s9, 8 }
   0x9   : > { %s10915_s15 = smov (%p33_p4, %s10913_s15), 0  ;;  %137 = sbr.rel (%p134_p3) target bundleno = 2516 (0x9d4), region = 28 }
   0xa   : > { %s7893_s26 = smov (!%p134_p3), 4   ;;  %s7894_s27 = smov (!%p134_p3), 8  }
   0xb   : > { %s7895_s28 = smov (!%p134_p3), 12   ;;  %s7896_s29 = smov (!%p134_p3), 16  }
   0xc   : > { %s7897_s30 = smov (!%p134_p3), 20   ;;  %s7898_s3 = smov (!%p134_p3), 24  }
   0xd   : > { %s7899_s4 = smov (!%p134_p3), 28   ;;  %s7900_s5 = smov (!%p134_p3), 32  }
   0xe   : > { %s10917_s10 = smov (!%p157_p5, %s7879_s10), 1  ;;  %vm238_vm0 = vcmask 27648   ;;  %vm465_vm1 = vcmask 60448   ;;  %vm692_vm2 = vcmask 93248   ;;  %vm919_vm3 = vcmask 126048   ;;  %s7901_s6 = smov 36  }
   0xf   : > { %s7785_s17 = smul.u32 1856, %s10917_s10  ;;  %s6770_s18 = sshll.u32 %s10917_s10, 3  ;;  %vm1146_vm4 = vcmask 158848   ;;  %vm1373_vm5 = vcmask 191648   ;;  %vm1600_vm6 = vcmask 224448   ;;  %vm1827_vm7 = vcmask 257248  }
  0x10   : > { %s7971_s21 = scalar_lea.vmem %s10905_s2, %s6770_s18  ;;  %vm2054_vm8 = vcmask 290048   ;;  %s7902_s7 = smov 40   ;;  %vm2281_vm9 = vcmask 322848   ;;  %vm2508_vm10 = vcmask 355648   ;;  %vm2735_vm11 = vcmask 388448  }
  0x11   : > { %s161_s24 = scalar_lea.vmem %s10903_s0, %s7785_s17  ;;  %s7903_s8 = smov 44   ;;  %vm2962_vm12 = vcmask 421248   ;;  %vm3189_vm13 = vcmask 454048   ;;  %vm3416_vm14 = vcmask 486848   ;;  %vm3643_vm15 = vcmask 519648  }
  0x12   : > { %s7976_s25 = scalar_lea.vmem %s161_s24, %s6771_s16  ;;  %s7904_s10 = smov 48  }
  0x13   : > { %v6775_v0 = vld [vmem:[%s7976_s25 + $0x11] sm:$0xff]  ;;  %v6773_v1 = vld [vmem:[%s7976_s25 + $0x1] sm:$0xff]  ;;  %v6776_v6 = vld [vmem:[%s7976_s25 + $0x19] sm:$0xff]  ;;  %s7905_s16 = smov 52   ;;  %s7906_s17 = smov 56  }
  0x14   : > { %v307_v2 = vpack.c.bf16 %v6775_v0, %v6775_v0  ;;  %v305_v3 = vpack.c.bf16 %v6773_v1, %v6773_v1  ;;  %v6777_v4 = vld [vmem:[%s7976_s25 + $0x21] sm:$0xff]  ;;  %v6774_v7 = vld [vmem:[%s7976_s25 + $0x9] sm:$0xff]  ;;  %v308_v9 = vpack.c.bf16 %v6776_v6, %v6776_v6  ;;  %v6780_v12 = vld [vmem:[%s7976_s25 + $0x39] sm:$0xff]  ;;  %s7907_s18 = smov 60   ;;  %s7908_s19 = smov 64  }
  0x15   : > { %v309_v5 = vpack.c.bf16 %v6777_v4, %v6777_v4  ;;  %v6778_v8 = vld [vmem:[%s7976_s25 + $0x29] sm:$0xff]  ;;  %v306_v10 = vpack.c.bf16 %v6774_v7, %v6774_v7  ;;  %v6779_v13 = vld [vmem:[%s7976_s25 + $0x31] sm:$0xff]  ;;  %v6781_v14 = vld [vmem:[%s7976_s25 + $0x41] sm:$0xff]  ;;  %v312_v15 = vpack.c.bf16 %v6780_v12, %v6780_v12  ;;  %s7909_s20 = smov 68   ;;  %s7910_s22 = smov 72  }
  0x16   : > { %373 = vrot.lane.b32.xlu1 %v307_v2, %s7893_s26  ;;  %369 = vrot.lane.b32.xlu0 %v305_v3, %s7893_s26  ;;  %v310_v11 = vpack.c.bf16 %v6778_v8, %v6778_v8  ;;  %v311_v16 = vpack.c.bf16 %v6779_v13, %v6779_v13  ;;  %v313_v17 = vpack.c.bf16 %v6781_v14, %v6781_v14  ;;  %v6783_v18 = vld [vmem:[%s7976_s25 + $0x51] sm:$0xff]  ;;  %v6782_v19 = vld [vmem:[%s7976_s25 + $0x49] sm:$0xff]  ;;  %s7911_s23 = smov 76   ;;  %s7912_s24 = smov 80  }
  0x17   : > { %377 = vrot.lane.b32.xlu2 %v309_v5, %s7893_s26  ;;  %v6784_v20 = vld [vmem:[%s7976_s25 + $0x59] sm:$0xff]  ;;  %v315_v21 = vpack.c.bf16 %v6783_v18, %v6783_v18  ;;  %v314_v22 = vpack.c.bf16 %v6782_v19, %v6782_v19  ;;  %v6786_v24 = vld [vmem:[%s7976_s25 + $0x69] sm:$0xff]  ;;  %v6785_v25 = vld [vmem:[%s7976_s25 + $0x61] sm:$0xff]  ;;  %p7738_p6 = scmp.ne.s32.totalorder %s7875_s9, 0 }
  0x18   : > { %v316_v23 = vpack.c.bf16 %v6784_v20, %v6784_v20  ;;  %v6787_v26 = vld [vmem:[%s7976_s25 + $0x71] sm:$0xff]  ;;  %v318_v27 = vpack.c.bf16 %v6786_v24, %v6786_v24  ;;  %v317_v28 = vpack.c.bf16 %v6785_v25, %v6785_v25  ;;  %v6789_v30 = vld [vmem:[%s7976_s25 + $0x81] sm:$0xff]  ;;  %v6788_v31 = vld [vmem:[%s7976_s25 + $0x79] sm:$0xff] }
  0x19   : > { %v319_v29 = vpack.c.bf16 %v6787_v26, %v6787_v26  ;;  %v6790_v32 = vld [vmem:[%s7976_s25 + $0x89] sm:$0xff]  ;;  %v321_v33 = vpack.c.bf16 %v6789_v30, %v6789_v30  ;;  %v320_v34 = vpack.c.bf16 %v6788_v31, %v6788_v31  ;;  %v6792_v36 = vld [vmem:[%s7976_s25 + $0x99] sm:$0xff]  ;;  %v6791_v37 = vld [vmem:[%s7976_s25 + $0x91] sm:$0xff] }
  0x1a   : > { %v322_v35 = vpack.c.bf16 %v6790_v32, %v6790_v32  ;;  %v6793_v38 = vld [vmem:[%s7976_s25 + $0xa1] sm:$0xff]  ;;  %v324_v39 = vpack.c.bf16 %v6792_v36, %v6792_v36  ;;  %v323_v40 = vpack.c.bf16 %v6791_v37, %v6791_v37  ;;  %v6795_v42 = vld [vmem:[%s7976_s25 + $0xb1] sm:$0xff]  ;;  %v6794_v43 = vld [vmem:[%s7976_s25 + $0xa9] sm:$0xff] }
  0x1b   : > { %v325_v41 = vpack.c.bf16 %v6793_v38, %v6793_v38  ;;  %v6796_v44 = vld [vmem:[%s7976_s25 + $0xb9] sm:$0xff]  ;;  %v327_v45 = vpack.c.bf16 %v6795_v42, %v6795_v42  ;;  %v326_v46 = vpack.c.bf16 %v6794_v43, %v6794_v43  ;;  %v6798_v48 = vld [vmem:[%s7976_s25 + $0xc9] sm:$0xff]  ;;  %v6797_v49 = vld [vmem:[%s7976_s25 + $0xc1] sm:$0xff] }
  0x1c   : > { %v328_v47 = vpack.c.bf16 %v6796_v44, %v6796_v44  ;;  %v6799_v50 = vld [vmem:[%s7976_s25 + $0xd1] sm:$0xff]  ;;  %v330_v51 = vpack.c.bf16 %v6798_v48, %v6798_v48  ;;  %v329_v52 = vpack.c.bf16 %v6797_v49, %v6797_v49  ;;  %v6801_v54 = vld [vmem:[%s7976_s25 + $0xe1] sm:$0xff]  ;;  %v6800_v55 = vld [vmem:[%s7976_s25 + $0xd9] sm:$0xff] }
  0x1d   : > { %v331_v53 = vpack.c.bf16 %v6799_v50, %v6799_v50  ;;  %v6802_v56 = vld [vmem:[%s7976_s25 + $0xe9] sm:$0xff]  ;;  %v333_v57 = vpack.c.bf16 %v6801_v54, %v6801_v54  ;;  %v332_v58 = vpack.c.bf16 %v6800_v55, %v6800_v55  ;;  %v6804_v60 = vld [vmem:[%s7976_s25 + $0xf9] sm:$0xff]  ;;  %v6803_v61 = vld [vmem:[%s7976_s25 + $0xf1] sm:$0xff] }
  0x1e   : > { %375 = vrot.lane.b32.xlu1 %v308_v9, %s7893_s26  ;;  %371 = vrot.lane.b32.xlu0 %v306_v10, %s7893_s26  ;;  %v334_v59 = vpack.c.bf16 %v6802_v56, %v6802_v56  ;;  %v6806_v62 = vld [vmem:[%s7976_s25 + $0x2] sm:$0xff]  ;;  %v336_v63 = vpack.c.bf16 %v6804_v60, %v6804_v60  ;;  %v335_v0 = vpack.c.bf16 %v6803_v61, %v6803_v61  ;;  %v6808_v4 = vld [vmem:[%s7976_s25 + $0x12] sm:$0xff] }
  0x1f   : > { %379 = vrot.lane.b32.xlu2 %v310_v11, %s7893_s26  ;;  %v532_v1 = vpack.c.bf16 %v6806_v62, %v6806_v62  ;;  %v174_v2 = vld [vmem:[%s7976_s25] sm:$0xff]  ;;  %v6807_v5 = vld [vmem:[%s7976_s25 + $0xa] sm:$0xff]  ;;  %v534_v8 = vpack.c.bf16 %v6808_v4, %v6808_v4  ;;  %v177_v18 = vld [vmem:[%s7976_s25 + $0x18] sm:$0xff] }
  0x20   : > { %v206_v3 = vpack.c.bf16 %v174_v2, %v174_v2  ;;  %v176_v6 = vld [vmem:[%s7976_s25 + $0x10] sm:$0xff]  ;;  %v533_v9 = vpack.c.bf16 %v6807_v5, %v6807_v5  ;;  %v6809_v10 = vld [vmem:[%s7976_s25 + $0x1a] sm:$0xff]  ;;  %v175_v13 = vld [vmem:[%s7976_s25 + $0x8] sm:$0xff]  ;;  %v209_v19 = vpack.c.bf16 %v177_v18, %v177_v18 }
  0x21   : > { %v208_v7 = vpack.c.bf16 %v176_v6, %v176_v6  ;;  %v535_v11 = vpack.c.bf16 %v6809_v10, %v6809_v10  ;;  %v178_v12 = vld [vmem:[%s7976_s25 + $0x20] sm:$0xff]  ;;  %v6811_v14 = vld [vmem:[%s7976_s25 + $0x2a] sm:$0xff]  ;;  %v181_v31 = vld [vmem:[%s7976_s25 + $0x38] sm:$0xff] }
  0x22   : > { %239 = vst.msk [vmem:[#allocation2] sm:$0xf] %vm238_vm0, %v206_v3  ;;  %v537_v20 = vpack.c.bf16 %v6811_v14, %v6811_v14  ;;  %v179_v25 = vld [vmem:[%s7976_s25 + $0x28] sm:$0xff]  ;;  %v180_v26 = vld [vmem:[%s7976_s25 + $0x30] sm:$0xff]  ;;  %v213_v32 = vpack.c.bf16 %v181_v31, %v181_v31  ;;  %v182_v38 = vld [vmem:[%s7976_s25 + $0x40] sm:$0xff] }
  0x23   : > { %241 = vst.msk [vmem:[#allocation2 + $0x8] sm:$0xf] %vm238_vm0, %v208_v7  ;;  %v212_v30 = vpack.c.bf16 %v180_v26, %v180_v26  ;;  %v6815_v36 = vld [vmem:[%s7976_s25 + $0x4a] sm:$0xff]  ;;  %v214_v42 = vpack.c.bf16 %v182_v38, %v182_v38  ;;  %v6818_v49 = vld [vmem:[%s7976_s25 + $0x62] sm:$0xff]  ;;  %v189_v6 = vld [vmem:[%s7976_s25 + $0x78] sm:$0xff] }
  0x24   : > { %242 = vst.msk [vmem:[#allocation2 + $0xc] sm:$0xf] %vm238_vm0, %v209_v19  ;;  %v541_v37 = vpack.c.bf16 %v6815_v36, %v6815_v36  ;;  %v184_v44 = vld [vmem:[%s7976_s25 + $0x50] sm:$0xff]  ;;  %v544_v50 = vpack.c.bf16 %v6818_v49, %v6818_v49  ;;  %v186_v55 = vld [vmem:[%s7976_s25 + $0x60] sm:$0xff]  ;;  %v221_v14 = vpack.c.bf16 %v189_v6, %v189_v6  ;;  %v195_v36 = vld [vmem:[%s7976_s25 + $0xa8] sm:$0xff] }
  0x25   : > { %245 = vst.msk [vmem:[#allocation2 + $0x18] sm:$0xf] %vm238_vm0, %v212_v30  ;;  %v188_v2 = vld [vmem:[%s7976_s25 + $0x70] sm:$0xff]  ;;  %v6822_v4 = vld [vmem:[%s7976_s25 + $0x82] sm:$0xff]  ;;  %v6825_v19 = vld [vmem:[%s7976_s25 + $0x9a] sm:$0xff] }
  0x26   : > { %383 = vrot.lane.b32.xlu1 %v312_v15, %s7893_s26  ;;  %381 = vrot.lane.b32.xlu0 %v311_v16, %s7893_s26  ;;  %v6810_v15 = vld [vmem:[%s7976_s25 + $0x22] sm:$0xff]  ;;  %v210_v16 = vpack.c.bf16 %v178_v12, %v178_v12  ;;  %246 = vst.msk [vmem:[#allocation2 + $0x1c] sm:$0xf] %vm238_vm0, %v213_v32  ;;  %v6823_v3 = vld [vmem:[%s7976_s25 + $0x8a] sm:$0xff]  ;;  %v220_v5 = vpack.c.bf16 %v188_v2, %v188_v2 }
  0x27   : > { %385 = vrot.lane.b32.xlu2 %v313_v17, %s7893_s26  ;;  %v207_v17 = vpack.c.bf16 %v175_v13, %v175_v13  ;;  %247 = vst.msk [vmem:[#allocation2 + $0x20] sm:$0xf] %vm238_vm0, %v214_v42  ;;  %v548_v12 = vpack.c.bf16 %v6822_v4, %v6822_v4  ;;  %v6826_v18 = vld [vmem:[%s7976_s25 + $0xa2] sm:$0xff]  ;;  %v6827_v30 = vld [vmem:[%s7976_s25 + $0xaa] sm:$0xff]  ;;  %v201_v2 = vld [vmem:[%s7976_s25 + $0xd8] sm:$0xff] }
  0x28   : > { %243 = vst.msk [vmem:[#allocation2 + $0x10] sm:$0xf] %vm238_vm0, %v210_v16  ;;  %v552_v26 = vpack.c.bf16 %v6826_v18, %v6826_v18  ;;  %v553_v31 = vpack.c.bf16 %v6827_v30, %v6827_v30  ;;  %v194_v32 = vld [vmem:[%s7976_s25 + $0xa0] sm:$0xff]  ;;  %v6831_v49 = vld [vmem:[%s7976_s25 + $0xca] sm:$0xff] }
  0x29   : > { %240 = vst.msk [vmem:[#allocation2 + $0x4] sm:$0xf] %vm238_vm0, %v207_v17  ;;  %v191_v17 = vld [vmem:[%s7976_s25 + $0x88] sm:$0xff] }
  0x2a   : > { %253 = vst.msk [vmem:[#allocation2 + $0x38] sm:$0xf] %vm238_vm0, %v220_v5  ;;  %v202_v5 = vld [vmem:[%s7976_s25 + $0xe0] sm:$0xff] }
  0x2b   : > { %254 = vst.msk [vmem:[#allocation2 + $0x3c] sm:$0xf] %vm238_vm0, %v221_v14  ;;  %v234_v6 = vpack.c.bf16 %v202_v5, %v202_v5  ;;  %v6839_v14 = vld [vmem:[%s7976_s25 + $0xc] sm:$0xff] }
  0x2d   : > { %267 = vst.msk [vmem:[#allocation2 + $0x70] sm:$0xf] %vm238_vm0, %v234_v6 }
  0x2e   : > { %389 = vrot.lane.b32.xlu1 %v315_v21, %s7893_s26  ;;  %387 = vrot.lane.b32.xlu0 %v314_v22, %s7893_s26  ;;  %v536_v21 = vpack.c.bf16 %v6810_v15, %v6810_v15  ;;  %v6824_v15 = vld [vmem:[%s7976_s25 + $0x92] sm:$0xff] }
  0x2f   : > { %391 = vrot.lane.b32.xlu2 %v316_v23, %s7893_s26  ;;  %v6812_v23 = vld [vmem:[%s7976_s25 + $0x32] sm:$0xff]  ;;  %v550_v16 = vpack.c.bf16 %v6824_v15, %v6824_v15  ;;  %v6837_v15 = vld [vmem:[%s7976_s25 + $0xfa] sm:$0xff] }
  0x30   : > { %v538_v24 = vpack.c.bf16 %v6812_v23, %v6812_v23 }
  0x36   : > { %395 = vrot.lane.b32.xlu1 %v318_v27, %s7893_s26  ;;  %393 = vrot.lane.b32.xlu0 %v317_v28, %s7893_s26  ;;  %v6814_v27 = vld [vmem:[%s7976_s25 + $0x42] sm:$0xff]  ;;  %v6813_v28 = vld [vmem:[%s7976_s25 + $0x3a] sm:$0xff] }
  0x37   : > { %397 = vrot.lane.b32.xlu2 %v319_v29, %s7893_s26  ;;  %v211_v29 = vpack.c.bf16 %v179_v25, %v179_v25 }
  0x39   : > { %244 = vst.msk [vmem:[#allocation2 + $0x14] sm:$0xf] %vm238_vm0, %v211_v29 }
  0x3e   : > { %401 = vrot.lane.b32.xlu1 %v321_v33, %s7893_s26  ;;  %399 = vrot.lane.b32.xlu0 %v320_v34, %s7893_s26  ;;  %v540_v33 = vpack.c.bf16 %v6814_v27, %v6814_v27  ;;  %v539_v34 = vpack.c.bf16 %v6813_v28, %v6813_v28  ;;  %v551_v27 = vpack.c.bf16 %v6825_v19, %v6825_v19 }
  0x3f   : > { %403 = vrot.lane.b32.xlu2 %v322_v35, %s7893_s26 }
  0x46   : > { %407 = vrot.lane.b32.xlu1 %v324_v39, %s7893_s26  ;;  %405 = vrot.lane.b32.xlu0 %v323_v40, %s7893_s26  ;;  %v183_v39 = vld [vmem:[%s7976_s25 + $0x48] sm:$0xff]  ;;  %v6817_v40 = vld [vmem:[%s7976_s25 + $0x5a] sm:$0xff] }
  0x47   : > { %409 = vrot.lane.b32.xlu2 %v325_v41, %s7893_s26  ;;  %v6816_v41 = vld [vmem:[%s7976_s25 + $0x52] sm:$0xff]  ;;  %v215_v43 = vpack.c.bf16 %v183_v39, %v183_v39 }
  0x48   : > { %v196_v39 = vld [vmem:[%s7976_s25 + $0xb0] sm:$0xff] }
  0x49   : > { %248 = vst.msk [vmem:[#allocation2 + $0x24] sm:$0xf] %vm238_vm0, %v215_v43 }
  0x4e   : > { %413 = vrot.lane.b32.xlu1 %v327_v45, %s7893_s26  ;;  %411 = vrot.lane.b32.xlu0 %v326_v46, %s7893_s26  ;;  %v216_v45 = vpack.c.bf16 %v184_v44, %v184_v44  ;;  %v543_v46 = vpack.c.bf16 %v6817_v40, %v6817_v40  ;;  %v228_v40 = vpack.c.bf16 %v196_v39, %v196_v39 }
  0x4f   : > { %415 = vrot.lane.b32.xlu2 %v328_v47, %s7893_s26  ;;  %v542_v47 = vpack.c.bf16 %v6816_v41, %v6816_v41  ;;  %v227_v44 = vpack.c.bf16 %v195_v36, %v195_v36 }
  0x50   : > { %249 = vst.msk [vmem:[#allocation2 + $0x28] sm:$0xf] %vm238_vm0, %v216_v45  ;;  %v6830_v45 = vld [vmem:[%s7976_s25 + $0xc2] sm:$0xff] }
  0x51   : > { %261 = vst.msk [vmem:[#allocation2 + $0x58] sm:$0xf] %vm238_vm0, %v228_v40 }
  0x52   : > { %260 = vst.msk [vmem:[#allocation2 + $0x54] sm:$0xf] %vm238_vm0, %v227_v44  ;;  %v6846_v44 = vld [vmem:[%s7976_s25 + $0x44] sm:$0xff] }
  0x56   : > { %419 = vrot.lane.b32.xlu1 %v330_v51, %s7893_s26  ;;  %417 = vrot.lane.b32.xlu0 %v329_v52, %s7893_s26  ;;  %v185_v51 = vld [vmem:[%s7976_s25 + $0x58] sm:$0xff] }
  0x57   : > { %421 = vrot.lane.b32.xlu2 %v331_v53, %s7893_s26  ;;  %v6820_v52 = vld [vmem:[%s7976_s25 + $0x72] sm:$0xff]  ;;  %v6819_v53 = vld [vmem:[%s7976_s25 + $0x6a] sm:$0xff]  ;;  %v217_v54 = vpack.c.bf16 %v185_v51, %v185_v51  ;;  %v198_v51 = vld [vmem:[%s7976_s25 + $0xc0] sm:$0xff] }
  0x58   : > { %v546_v60 = vpack.c.bf16 %v6820_v52, %v6820_v52  ;;  %v545_v61 = vpack.c.bf16 %v6819_v53, %v6819_v53 }
  0x59   : > { %250 = vst.msk [vmem:[#allocation2 + $0x2c] sm:$0xf] %vm238_vm0, %v217_v54  ;;  %v199_v54 = vld [vmem:[%s7976_s25 + $0xc8] sm:$0xff] }
  0x5e   : > { %425 = vrot.lane.b32.xlu1 %v333_v57, %s7893_s26  ;;  %423 = vrot.lane.b32.xlu0 %v332_v58, %s7893_s26  ;;  %v187_v58 = vld [vmem:[%s7976_s25 + $0x68] sm:$0xff] }
  0x5f   : > { %427 = vrot.lane.b32.xlu2 %v334_v59, %s7893_s26  ;;  %v219_v59 = vpack.c.bf16 %v187_v58, %v187_v58 }
  0x61   : > { %252 = vst.msk [vmem:[#allocation2 + $0x34] sm:$0xf] %vm238_vm0, %v219_v59  ;;  %v230_v59 = vpack.c.bf16 %v198_v51, %v198_v51 }
  0x63   : > { %263 = vst.msk [vmem:[#allocation2 + $0x60] sm:$0xf] %vm238_vm0, %v230_v59 }
  0x66   : > { %431 = vrot.lane.b32.xlu1 %v336_v63, %s7893_s26  ;;  %429 = vrot.lane.b32.xlu0 %v335_v0, %s7893_s26  ;;  %v218_v63 = vpack.c.bf16 %v186_v55, %v186_v55  ;;  %v6821_v0 = vld [vmem:[%s7976_s25 + $0x7a] sm:$0xff]  ;;  %v231_v55 = vpack.c.bf16 %v199_v54, %v199_v54  ;;  %s7913_s26 = smov 84  }
  0x67   : > { %596 = vrot.lane.b32.xlu2 %v532_v1, %s7894_s27  ;;  %v547_v1 = vpack.c.bf16 %v6821_v0, %v6821_v0  ;;  %v6834_v0 = vld [vmem:[%s7976_s25 + $0xe2] sm:$0xff] }
  0x68   : > { %251 = vst.msk [vmem:[#allocation2 + $0x30] sm:$0xf] %vm238_vm0, %v218_v63  ;;  %v6835_v63 = vld [vmem:[%s7976_s25 + $0xea] sm:$0xff] }
  0x69   : > { %264 = vst.msk [vmem:[#allocation2 + $0x64] sm:$0xf] %vm238_vm0, %v231_v55  ;;  %v6851_v55 = vld [vmem:[%s7976_s25 + $0x6c] sm:$0xff] }
  0x6a   : > { %v771_v59 = vpack.c.bf16 %v6851_v55, %v6851_v55  ;;  %v6872_v55 = vld [vmem:[%s7976_s25 + $0xd] sm:$0xff] }
  0x6e   : > { %600 = vrot.lane.b32.xlu1 %v534_v8, %s7894_s27  ;;  %598 = vrot.lane.b32.xlu0 %v533_v9, %s7894_s27  ;;  %v190_v9 = vld [vmem:[%s7976_s25 + $0x80] sm:$0xff] }
  0x6f   : > { %602 = vrot.lane.b32.xlu2 %v535_v11, %s7894_s27  ;;  %v222_v10 = vpack.c.bf16 %v190_v9, %v190_v9  ;;  %v549_v11 = vpack.c.bf16 %v6823_v3, %v6823_v3 }
  0x71   : > { %v378_v22 = vpop.permute.xlu2 %377  ;;  %255 = vst.msk [vmem:[#allocation2 + $0x40] sm:$0xf] %vm238_vm0, %v222_v10  ;;  %v233_v10 = vpack.c.bf16 %v201_v2, %v201_v2 }
  0x72   : > { %470 = vst.msk [vmem:[#allocation2 + $0x10] sm:$0xf] %vm465_vm1, %v378_v22 }
  0x73   : > { %266 = vst.msk [vmem:[#allocation2 + $0x6c] sm:$0xf] %vm238_vm0, %v233_v10  ;;  %v6856_v10 = vld [vmem:[%s7976_s25 + $0x94] sm:$0xff] }
  0x76   : > { %606 = vrot.lane.b32.xlu1 %v537_v20, %s7894_s27  ;;  %604 = vrot.lane.b32.xlu0 %v536_v21, %s7894_s27  ;;  %v223_v20 = vpack.c.bf16 %v191_v17, %v191_v17  ;;  %v192_v21 = vld [vmem:[%s7976_s25 + $0x90] sm:$0xff] }
  0x77   : > { %608 = vrot.lane.b32.xlu2 %v538_v24, %s7894_s27  ;;  %v193_v24 = vld [vmem:[%s7976_s25 + $0x98] sm:$0xff]  ;;  %v224_v29 = vpack.c.bf16 %v192_v21, %v192_v21  ;;  %v204_v17 = vld [vmem:[%s7976_s25 + $0xf0] sm:$0xff] }
  0x78   : > { %v225_v25 = vpack.c.bf16 %v193_v24, %v193_v24  ;;  %256 = vst.msk [vmem:[#allocation2 + $0x44] sm:$0xf] %vm238_vm0, %v223_v20  ;;  %v205_v20 = vld [vmem:[%s7976_s25 + $0xf8] sm:$0xff] }
  0x79   : > { %v380_v35 = vpop.permute.xlu2 %379  ;;  %257 = vst.msk [vmem:[#allocation2 + $0x48] sm:$0xf] %vm238_vm0, %v224_v29  ;;  %v237_v21 = vpack.c.bf16 %v205_v20, %v205_v20  ;;  %v6841_v29 = vld [vmem:[%s7976_s25 + $0x1c] sm:$0xff] }
  0x7a   : > { %471 = vst.msk [vmem:[#allocation2 + $0x14] sm:$0xf] %vm465_vm1, %v380_v35  ;;  %v226_v35 = vpack.c.bf16 %v194_v32, %v194_v32 }
  0x7b   : > { %258 = vst.msk [vmem:[#allocation2 + $0x4c] sm:$0xf] %vm238_vm0, %v225_v25  ;;  %v236_v25 = vpack.c.bf16 %v204_v17, %v204_v17 }
  0x7c   : > { %259 = vst.msk [vmem:[#allocation2 + $0x50] sm:$0xf] %vm238_vm0, %v226_v35  ;;  %v6843_v35 = vld [vmem:[%s7976_s25 + $0x2c] sm:$0xff] }
  0x7d   : > { %270 = vst.msk [vmem:[#allocation2 + $0x7c] sm:$0xf] %vm238_vm0, %v237_v21  ;;  %v763_v36 = vpack.c.bf16 %v6843_v35, %v6843_v35 }
  0x7e   : > { %612 = vrot.lane.b32.xlu1 %v540_v33, %s7894_s27  ;;  %610 = vrot.lane.b32.xlu0 %v539_v34, %s7894_s27  ;;  %v6829_v33 = vld [vmem:[%s7976_s25 + $0xba] sm:$0xff]  ;;  %v6828_v34 = vld [vmem:[%s7976_s25 + $0xb2] sm:$0xff]  ;;  %269 = vst.msk [vmem:[#allocation2 + $0x78] sm:$0xf] %vm238_vm0, %v236_v25 }
  0x7f   : > { %614 = vrot.lane.b32.xlu2 %v541_v37, %s7894_s27  ;;  %v555_v41 = vpack.c.bf16 %v6829_v33, %v6829_v33  ;;  %v554_v42 = vpack.c.bf16 %v6828_v34, %v6828_v34  ;;  %v761_v33 = vpack.c.bf16 %v6841_v29, %v6841_v29  ;;  %v6861_v25 = vld [vmem:[%s7976_s25 + $0xbc] sm:$0xff] }
  0x81   : > { %v386_v48 = vpop.permute.xlu2 %385 }
  0x82   : > { %474 = vst.msk [vmem:[#allocation2 + $0x20] sm:$0xf] %vm465_vm1, %v386_v48  ;;  %v6832_v48 = vld [vmem:[%s7976_s25 + $0xd2] sm:$0xff] }
  0x86   : > { %618 = vrot.lane.b32.xlu1 %v543_v46, %s7894_s27  ;;  %616 = vrot.lane.b32.xlu0 %v542_v47, %s7894_s27  ;;  %v556_v46 = vpack.c.bf16 %v6830_v45, %v6830_v45  ;;  %v197_v47 = vld [vmem:[%s7976_s25 + $0xb8] sm:$0xff]  ;;  %v766_v45 = vpack.c.bf16 %v6846_v44, %v6846_v44 }
  0x87   : > { %620 = vrot.lane.b32.xlu2 %v544_v50, %s7894_s27  ;;  %v229_v50 = vpack.c.bf16 %v197_v47, %v197_v47  ;;  %v6847_v47 = vld [vmem:[%s7976_s25 + $0x4c] sm:$0xff] }
  0x88   : > { %v374_v56 = vpop.permute.xlu1 %373  ;;  %v370_v57 = vpop.permute.xlu0 %369  ;;  %v767_v51 = vpack.c.bf16 %v6847_v47, %v6847_v47 }
  0x89   : > { %468 = vst.msk [vmem:[#allocation2 + $0x8] sm:$0xf] %vm465_vm1, %v374_v56  ;;  %v392_v62 = vpop.permute.xlu2 %391  ;;  %v558_v56 = vpack.c.bf16 %v6832_v48, %v6832_v48 }
  0x8a   : > { %466 = vst.msk [vmem:[#allocation2] sm:$0xf] %vm465_vm1, %v370_v57  ;;  %v557_v57 = vpack.c.bf16 %v6831_v49, %v6831_v49 }
  0x8b   : > { %477 = vst.msk [vmem:[#allocation2 + $0x2c] sm:$0xf] %vm465_vm1, %v392_v62  ;;  %v200_v62 = vld [vmem:[%s7976_s25 + $0xd0] sm:$0xff] }
  0x8c   : > { %262 = vst.msk [vmem:[#allocation2 + $0x5c] sm:$0xf] %vm238_vm0, %v229_v50 }
  0x8e   : > { %624 = vrot.lane.b32.xlu1 %v546_v60, %s7894_s27  ;;  %622 = vrot.lane.b32.xlu0 %v545_v61, %s7894_s27  ;;  %v6833_v60 = vld [vmem:[%s7976_s25 + $0xda] sm:$0xff] }
  0x8f   : > { %626 = vrot.lane.b32.xlu2 %v547_v1, %s7894_s27  ;;  %v559_v61 = vpack.c.bf16 %v6833_v60, %v6833_v60  ;;  %v232_v1 = vpack.c.bf16 %v200_v62, %v200_v62  ;;  %v6852_v62 = vld [vmem:[%s7976_s25 + $0x74] sm:$0xff] }
  0x90   : > { %v376_v7 = vpop.permute.xlu1 %375  ;;  %v372_v8 = vpop.permute.xlu0 %371 }
  0x91   : > { %469 = vst.msk [vmem:[#allocation2 + $0xc] sm:$0xf] %vm465_vm1, %v376_v7  ;;  %v398_v13 = vpop.permute.xlu2 %397  ;;  %v561_v7 = vpack.c.bf16 %v6835_v63, %v6835_v63  ;;  %v772_v63 = vpack.c.bf16 %v6852_v62, %v6852_v62 }
  0x92   : > { %467 = vst.msk [vmem:[#allocation2 + $0x4] sm:$0xf] %vm465_vm1, %v372_v8  ;;  %v560_v8 = vpack.c.bf16 %v6834_v0, %v6834_v0  ;;  %v6854_v0 = vld [vmem:[%s7976_s25 + $0x84] sm:$0xff] }
  0x93   : > { %480 = vst.msk [vmem:[#allocation2 + $0x38] sm:$0xf] %vm465_vm1, %v398_v13  ;;  %v203_v13 = vld [vmem:[%s7976_s25 + $0xe8] sm:$0xff] }
  0x94   : > { %265 = vst.msk [vmem:[#allocation2 + $0x68] sm:$0xf] %vm238_vm0, %v232_v1  ;;  %v6853_v1 = vld [vmem:[%s7976_s25 + $0x7c] sm:$0xff] }
  0x95   : > { %v773_v5 = vpack.c.bf16 %v6853_v1, %v6853_v1 }
  0x96   : > { %630 = vrot.lane.b32.xlu1 %v549_v11, %s7894_s27  ;;  %628 = vrot.lane.b32.xlu0 %v548_v12, %s7894_s27  ;;  %v6836_v11 = vld [vmem:[%s7976_s25 + $0xf2] sm:$0xff] }
  0x97   : > { %632 = vrot.lane.b32.xlu2 %v550_v16, %s7894_s27  ;;  %v562_v12 = vpack.c.bf16 %v6836_v11, %v6836_v11  ;;  %v235_v16 = vpack.c.bf16 %v203_v13, %v203_v13 }
  0x98   : > { %v384_v22 = vpop.permute.xlu1 %383  ;;  %v382_v23 = vpop.permute.xlu0 %381 }
  0x99   : > { %473 = vst.msk [vmem:[#allocation2 + $0x1c] sm:$0xf] %vm465_vm1, %v384_v22  ;;  %v404_v28 = vpop.permute.xlu2 %403  ;;  %v759_v22 = vpack.c.bf16 %v6839_v14, %v6839_v14  ;;  %v776_v14 = vpack.c.bf16 %v6856_v10, %v6856_v10 }
  0x9a   : > { %472 = vst.msk [vmem:[#allocation2 + $0x18] sm:$0xf] %vm465_vm1, %v382_v23  ;;  %v563_v23 = vpack.c.bf16 %v6837_v15, %v6837_v15 }
  0x9b   : > { %483 = vst.msk [vmem:[#allocation2 + $0x44] sm:$0xf] %vm465_vm1, %v404_v28  ;;  %v6842_v28 = vld [vmem:[%s7976_s25 + $0x24] sm:$0xff] }
  0x9c   : > { %268 = vst.msk [vmem:[#allocation2 + $0x74] sm:$0xf] %vm238_vm0, %v235_v16  ;;  %v762_v32 = vpack.c.bf16 %v6842_v28, %v6842_v28  ;;  %v6858_v16 = vld [vmem:[%s7976_s25 + $0xa4] sm:$0xff]  ;;  %vm3870_vm0 = vcmask 552448  }
  0x9d   : > { %v778_v17 = vpack.c.bf16 %v6858_v16, %v6858_v16  ;;  %v6862_v28 = vld [vmem:[%s7976_s25 + $0xc4] sm:$0xff] }
  0x9e   : > { %636 = vrot.lane.b32.xlu1 %v552_v26, %s7894_s27  ;;  %634 = vrot.lane.b32.xlu0 %v551_v27, %s7894_s27  ;;  %v6840_v26 = vld [vmem:[%s7976_s25 + $0x14] sm:$0xff] }
  0x9f   : > { %638 = vrot.lane.b32.xlu2 %v553_v31, %s7894_s27  ;;  %v760_v27 = vpack.c.bf16 %v6840_v26, %v6840_v26  ;;  %v781_v26 = vpack.c.bf16 %v6861_v25, %v6861_v25 }
  0xa0   : > { %v390_v37 = vpop.permute.xlu1 %389  ;;  %v388_v38 = vpop.permute.xlu0 %387 }
  0xa1   : > { %476 = vst.msk [vmem:[#allocation2 + $0x28] sm:$0xf] %vm465_vm1, %v390_v37  ;;  %v410_v43 = vpop.permute.xlu2 %409  ;;  %v6845_v37 = vld [vmem:[%s7976_s25 + $0x3c] sm:$0xff] }
  0xa2   : > { %475 = vst.msk [vmem:[#allocation2 + $0x24] sm:$0xf] %vm465_vm1, %v388_v38  ;;  %v6844_v38 = vld [vmem:[%s7976_s25 + $0x34] sm:$0xff] }
  0xa3   : > { %486 = vst.msk [vmem:[#allocation2 + $0x50] sm:$0xf] %vm465_vm1, %v410_v43 }
  0xa6   : > { %642 = vrot.lane.b32.xlu1 %v555_v41, %s7894_s27  ;;  %640 = vrot.lane.b32.xlu0 %v554_v42, %s7894_s27  ;;  %v765_v41 = vpack.c.bf16 %v6845_v37, %v6845_v37  ;;  %v764_v42 = vpack.c.bf16 %v6844_v38, %v6844_v38  ;;  %v6865_v37 = vld [vmem:[%s7976_s25 + $0xdc] sm:$0xff] }
  0xa7   : > { %644 = vrot.lane.b32.xlu2 %v556_v46, %s7894_s27  ;;  %v6848_v46 = vld [vmem:[%s7976_s25 + $0x54] sm:$0xff] }
  0xa8   : > { %v396_v52 = vpop.permute.xlu1 %395  ;;  %v394_v53 = vpop.permute.xlu0 %393  ;;  %v768_v50 = vpack.c.bf16 %v6848_v46, %v6848_v46  ;;  %v6868_v46 = vld [vmem:[%s7976_s25 + $0xf4] sm:$0xff] }
  0xa9   : > { %479 = vst.msk [vmem:[#allocation2 + $0x34] sm:$0xf] %vm465_vm1, %v396_v52  ;;  %v416_v58 = vpop.permute.xlu2 %415 }
  0xaa   : > { %478 = vst.msk [vmem:[#allocation2 + $0x30] sm:$0xf] %vm465_vm1, %v394_v53  ;;  %v6849_v53 = vld [vmem:[%s7976_s25 + $0x5c] sm:$0xff] }
  0xab   : > { %489 = vst.msk [vmem:[#allocation2 + $0x5c] sm:$0xf] %vm465_vm1, %v416_v58  ;;  %v769_v54 = vpack.c.bf16 %v6849_v53, %v6849_v53 }
  0xae   : > { %648 = vrot.lane.b32.xlu1 %v558_v56, %s7894_s27  ;;  %646 = vrot.lane.b32.xlu0 %v557_v57, %s7894_s27  ;;  %v6850_v56 = vld [vmem:[%s7976_s25 + $0x64] sm:$0xff] }
  0xaf   : > { %650 = vrot.lane.b32.xlu2 %v559_v61, %s7894_s27  ;;  %v770_v60 = vpack.c.bf16 %v6850_v56, %v6850_v56 }
  0xb0   : > { %v402_v3 = vpop.permute.xlu1 %401  ;;  %v400_v4 = vpop.permute.xlu0 %399 }
  0xb1   : > { %482 = vst.msk [vmem:[#allocation2 + $0x40] sm:$0xf] %vm465_vm1, %v402_v3  ;;  %v422_v9 = vpop.permute.xlu2 %421 }
  0xb2   : > { %481 = vst.msk [vmem:[#allocation2 + $0x3c] sm:$0xf] %vm465_vm1, %v400_v4  ;;  %v774_v4 = vpack.c.bf16 %v6854_v0, %v6854_v0  ;;  %v6875_v0 = vld [vmem:[%s7976_s25 + $0x25] sm:$0xff] }
  0xb3   : > { %492 = vst.msk [vmem:[#allocation2 + $0x68] sm:$0xf] %vm465_vm1, %v422_v9  ;;  %v6857_v9 = vld [vmem:[%s7976_s25 + $0x9c] sm:$0xff] }
  0xb4   : > { %v777_v13 = vpack.c.bf16 %v6857_v9, %v6857_v9  ;;  %v6878_v9 = vld [vmem:[%s7976_s25 + $0x3d] sm:$0xff] }
  0xb6   : > { %654 = vrot.lane.b32.xlu1 %v561_v7, %s7894_s27  ;;  %652 = vrot.lane.b32.xlu0 %v560_v8, %s7894_s27  ;;  %v6855_v7 = vld [vmem:[%s7976_s25 + $0x8c] sm:$0xff] }
  0xb7   : > { %656 = vrot.lane.b32.xlu2 %v562_v12, %s7894_s27  ;;  %v775_v8 = vpack.c.bf16 %v6855_v7, %v6855_v7 }
  0xb8   : > { %v408_v18 = vpop.permute.xlu1 %407  ;;  %v406_v19 = vpop.permute.xlu0 %405 }
  0xb9   : > { %485 = vst.msk [vmem:[#allocation2 + $0x4c] sm:$0xf] %vm465_vm1, %v408_v18  ;;  %v428_v24 = vpop.permute.xlu2 %427  ;;  %v6860_v18 = vld [vmem:[%s7976_s25 + $0xb4] sm:$0xff] }
  0xba   : > { %484 = vst.msk [vmem:[#allocation2 + $0x48] sm:$0xf] %vm465_vm1, %v406_v19  ;;  %v6859_v19 = vld [vmem:[%s7976_s25 + $0xac] sm:$0xff] }
  0xbb   : > { %495 = vst.msk [vmem:[#allocation2 + $0x74] sm:$0xf] %vm465_vm1, %v428_v24 }
  0xbe   : > { %823 = vrot.lane.b32.xlu1 %v759_v22, %s7895_s28  ;;  %658 = vrot.lane.b32.xlu0 %v563_v23, %s7894_s27  ;;  %v780_v22 = vpack.c.bf16 %v6860_v18, %v6860_v18  ;;  %v779_v23 = vpack.c.bf16 %v6859_v19, %v6859_v19  ;;  %v6881_v18 = vld [vmem:[%s7976_s25 + $0x55] sm:$0xff]  ;;  %s7914_s27 = smov 88  }
  0xbf   : > { %825 = vrot.lane.b32.xlu2 %v760_v27, %s7895_s28  ;;  %v6863_v27 = vld [vmem:[%s7976_s25 + $0xcc] sm:$0xff] }
  0xc0   : > { %v414_v30 = vpop.permute.xlu1 %413  ;;  %v412_v31 = vpop.permute.xlu0 %411 }
  0xc1   : > { %488 = vst.msk [vmem:[#allocation2 + $0x58] sm:$0xf] %vm465_vm1, %v414_v30  ;;  %v597_v34 = vpop.permute.xlu2 %596 }
  0xc2   : > { %487 = vst.msk [vmem:[#allocation2 + $0x54] sm:$0xf] %vm465_vm1, %v412_v31  ;;  %v783_v31 = vpack.c.bf16 %v6863_v27, %v6863_v27  ;;  %v6884_v27 = vld [vmem:[%s7976_s25 + $0x6d] sm:$0xff] }
  0xc3   : > { %693 = vst.msk [vmem:[#allocation2] sm:$0xf] %vm692_vm2, %v597_v34  ;;  %v6864_v34 = vld [vmem:[%s7976_s25 + $0xd4] sm:$0xff] }
  0xc4   : > { %v784_v35 = vpack.c.bf16 %v6864_v34, %v6864_v34 }
  0xc6   : > { %829 = vrot.lane.b32.xlu1 %v762_v32, %s7895_s28  ;;  %827 = vrot.lane.b32.xlu0 %v761_v33, %s7895_s28  ;;  %v782_v32 = vpack.c.bf16 %v6862_v28, %v6862_v28 }
  0xc7   : > { %831 = vrot.lane.b32.xlu2 %v763_v36, %s7895_s28  ;;  %v6866_v36 = vld [vmem:[%s7976_s25 + $0xe4] sm:$0xff] }
  0xc8   : > { %v420_v39 = vpop.permute.xlu1 %419  ;;  %v418_v40 = vpop.permute.xlu0 %417 }
  0xc9   : > { %491 = vst.msk [vmem:[#allocation2 + $0x64] sm:$0xf] %vm465_vm1, %v420_v39  ;;  %v603_v43 = vpop.permute.xlu2 %602 }
  0xca   : > { %490 = vst.msk [vmem:[#allocation2 + $0x60] sm:$0xf] %vm465_vm1, %v418_v40  ;;  %v786_v40 = vpack.c.bf16 %v6866_v36, %v6866_v36  ;;  %v6887_v36 = vld [vmem:[%s7976_s25 + $0x85] sm:$0xff] }
  0xcb   : > { %696 = vst.msk [vmem:[#allocation2 + $0xc] sm:$0xf] %vm692_vm2, %v603_v43  ;;  %v6867_v43 = vld [vmem:[%s7976_s25 + $0xec] sm:$0xff] }
  0xcc   : > { %v787_v44 = vpack.c.bf16 %v6867_v43, %v6867_v43 }
  0xce   : > { %835 = vrot.lane.b32.xlu1 %v765_v41, %s7895_s28  ;;  %833 = vrot.lane.b32.xlu0 %v764_v42, %s7895_s28  ;;  %v785_v41 = vpack.c.bf16 %v6865_v37, %v6865_v37 }
  0xcf   : > { %837 = vrot.lane.b32.xlu2 %v766_v45, %s7895_s28  ;;  %v6869_v45 = vld [vmem:[%s7976_s25 + $0xfc] sm:$0xff] }
  0xd0   : > { %v426_v48 = vpop.permute.xlu1 %425  ;;  %v424_v49 = vpop.permute.xlu0 %423 }
  0xd1   : > { %494 = vst.msk [vmem:[#allocation2 + $0x70] sm:$0xf] %vm465_vm1, %v426_v48  ;;  %v609_v52 = vpop.permute.xlu2 %608 }
  0xd2   : > { %493 = vst.msk [vmem:[#allocation2 + $0x6c] sm:$0xf] %vm465_vm1, %v424_v49  ;;  %v789_v49 = vpack.c.bf16 %v6869_v45, %v6869_v45  ;;  %v6890_v45 = vld [vmem:[%s7976_s25 + $0x9d] sm:$0xff] }
  0xd3   : > { %699 = vst.msk [vmem:[#allocation2 + $0x18] sm:$0xf] %vm692_vm2, %v609_v52  ;;  %v6870_v52 = vld [vmem:[%s7976_s25 + $0x104] sm:$0xff] }
  0xd4   : > { %v790_v53 = vpack.c.bf16 %v6870_v52, %v6870_v52 }
  0xd6   : > { %841 = vrot.lane.b32.xlu1 %v768_v50, %s7895_s28  ;;  %839 = vrot.lane.b32.xlu0 %v767_v51, %s7895_s28  ;;  %v788_v50 = vpack.c.bf16 %v6868_v46, %v6868_v46 }
  0xd7   : > { %843 = vrot.lane.b32.xlu2 %v769_v54, %s7895_s28  ;;  %v6873_v54 = vld [vmem:[%s7976_s25 + $0x15] sm:$0xff] }
  0xd8   : > { %v432_v57 = vpop.permute.xlu1 %431  ;;  %v430_v58 = vpop.permute.xlu0 %429 }
  0xd9   : > { %497 = vst.msk [vmem:[#allocation2 + $0x7c] sm:$0xf] %vm465_vm1, %v432_v57  ;;  %v615_v61 = vpop.permute.xlu2 %614 }
  0xda   : > { %496 = vst.msk [vmem:[#allocation2 + $0x78] sm:$0xf] %vm465_vm1, %v430_v58  ;;  %v987_v58 = vpack.c.bf16 %v6873_v54, %v6873_v54  ;;  %v6893_v54 = vld [vmem:[%s7976_s25 + $0xb5] sm:$0xff]  ;;  %vm4097_vm1 = vcmask 585248  }
  0xdb   : > { %702 = vst.msk [vmem:[#allocation2 + $0x24] sm:$0xf] %vm692_vm2, %v615_v61  ;;  %v6874_v61 = vld [vmem:[%s7976_s25 + $0x1d] sm:$0xff] }
  0xdc   : > { %v988_v62 = vpack.c.bf16 %v6874_v61, %v6874_v61 }
  0xde   : > { %847 = vrot.lane.b32.xlu1 %v771_v59, %s7895_s28  ;;  %845 = vrot.lane.b32.xlu0 %v770_v60, %s7895_s28  ;;  %v986_v59 = vpack.c.bf16 %v6872_v55, %v6872_v55 }
  0xdf   : > { %849 = vrot.lane.b32.xlu2 %v772_v63, %s7895_s28  ;;  %v6876_v63 = vld [vmem:[%s7976_s25 + $0x2d] sm:$0xff] }
  0xe0   : > { %v601_v2 = vpop.permute.xlu1 %600  ;;  %v599_v3 = vpop.permute.xlu0 %598 }
  0xe1   : > { %695 = vst.msk [vmem:[#allocation2 + $0x8] sm:$0xf] %vm692_vm2, %v601_v2  ;;  %v621_v6 = vpop.permute.xlu2 %620 }
  0xe2   : > { %694 = vst.msk [vmem:[#allocation2 + $0x4] sm:$0xf] %vm692_vm2, %v599_v3  ;;  %v990_v3 = vpack.c.bf16 %v6876_v63, %v6876_v63  ;;  %v6896_v63 = vld [vmem:[%s7976_s25 + $0xcd] sm:$0xff] }
  0xe3   : > { %705 = vst.msk [vmem:[#allocation2 + $0x30] sm:$0xf] %vm692_vm2, %v621_v6  ;;  %v6877_v6 = vld [vmem:[%s7976_s25 + $0x35] sm:$0xff] }
  0xe4   : > { %v991_v7 = vpack.c.bf16 %v6877_v6, %v6877_v6 }
  0xe6   : > { %853 = vrot.lane.b32.xlu1 %v774_v4, %s7895_s28  ;;  %851 = vrot.lane.b32.xlu0 %v773_v5, %s7895_s28  ;;  %v989_v4 = vpack.c.bf16 %v6875_v0, %v6875_v0 }
  0xe7   : > { %855 = vrot.lane.b32.xlu2 %v775_v8, %s7895_s28  ;;  %v6879_v8 = vld [vmem:[%s7976_s25 + $0x45] sm:$0xff] }
  0xe8   : > { %v607_v11 = vpop.permute.xlu1 %606  ;;  %v605_v12 = vpop.permute.xlu0 %604 }
  0xe9   : > { %698 = vst.msk [vmem:[#allocation2 + $0x14] sm:$0xf] %vm692_vm2, %v607_v11  ;;  %v627_v15 = vpop.permute.xlu2 %626 }
  0xea   : > { %697 = vst.msk [vmem:[#allocation2 + $0x10] sm:$0xf] %vm692_vm2, %v605_v12  ;;  %v993_v12 = vpack.c.bf16 %v6879_v8, %v6879_v8  ;;  %v6899_v8 = vld [vmem:[%s7976_s25 + $0xe5] sm:$0xff] }
  0xeb   : > { %708 = vst.msk [vmem:[#allocation2 + $0x3c] sm:$0xf] %vm692_vm2, %v627_v15  ;;  %v6880_v15 = vld [vmem:[%s7976_s25 + $0x4d] sm:$0xff] }
  0xec   : > { %v994_v16 = vpack.c.bf16 %v6880_v15, %v6880_v15 }
  0xee   : > { %859 = vrot.lane.b32.xlu1 %v777_v13, %s7895_s28  ;;  %857 = vrot.lane.b32.xlu0 %v776_v14, %s7895_s28  ;;  %v992_v13 = vpack.c.bf16 %v6878_v9, %v6878_v9 }
  0xef   : > { %861 = vrot.lane.b32.xlu2 %v778_v17, %s7895_s28  ;;  %v6882_v17 = vld [vmem:[%s7976_s25 + $0x5d] sm:$0xff] }
  0xf0   : > { %v613_v20 = vpop.permute.xlu1 %612  ;;  %v611_v21 = vpop.permute.xlu0 %610 }
  0xf1   : > { %701 = vst.msk [vmem:[#allocation2 + $0x20] sm:$0xf] %vm692_vm2, %v613_v20  ;;  %v633_v24 = vpop.permute.xlu2 %632 }
  0xf2   : > { %700 = vst.msk [vmem:[#allocation2 + $0x1c] sm:$0xf] %vm692_vm2, %v611_v21  ;;  %v996_v21 = vpack.c.bf16 %v6882_v17, %v6882_v17  ;;  %v6902_v17 = vld [vmem:[%s7976_s25 + $0xfd] sm:$0xff] }
  0xf3   : > { %711 = vst.msk [vmem:[#allocation2 + $0x48] sm:$0xf] %vm692_vm2, %v633_v24  ;;  %v6883_v24 = vld [vmem:[%s7976_s25 + $0x65] sm:$0xff] }
  0xf4   : > { %v997_v25 = vpack.c.bf16 %v6883_v24, %v6883_v24 }
  0xf6   : > { %865 = vrot.lane.b32.xlu1 %v780_v22, %s7895_s28  ;;  %863 = vrot.lane.b32.xlu0 %v779_v23, %s7895_s28  ;;  %v995_v22 = vpack.c.bf16 %v6881_v18, %v6881_v18 }
  0xf7   : > { %867 = vrot.lane.b32.xlu2 %v781_v26, %s7895_s28  ;;  %v6885_v26 = vld [vmem:[%s7976_s25 + $0x75] sm:$0xff] }
  0xf8   : > { %v619_v29 = vpop.permute.xlu1 %618  ;;  %v617_v30 = vpop.permute.xlu0 %616 }
  0xf9   : > { %704 = vst.msk [vmem:[#allocation2 + $0x2c] sm:$0xf] %vm692_vm2, %v619_v29  ;;  %v639_v33 = vpop.permute.xlu2 %638 }
  0xfa   : > { %703 = vst.msk [vmem:[#allocation2 + $0x28] sm:$0xf] %vm692_vm2, %v617_v30  ;;  %v999_v30 = vpack.c.bf16 %v6885_v26, %v6885_v26  ;;  %v6906_v26 = vld [vmem:[%s7976_s25 + $0x16] sm:$0xff] }
  0xfb   : > { %714 = vst.msk [vmem:[#allocation2 + $0x54] sm:$0xf] %vm692_vm2, %v639_v33  ;;  %v6886_v33 = vld [vmem:[%s7976_s25 + $0x7d] sm:$0xff] }
  0xfc   : > { %v1000_v34 = vpack.c.bf16 %v6886_v33, %v6886_v33 }
  0xfe   : > { %871 = vrot.lane.b32.xlu1 %v783_v31, %s7895_s28  ;;  %869 = vrot.lane.b32.xlu0 %v782_v32, %s7895_s28  ;;  %v998_v31 = vpack.c.bf16 %v6884_v27, %v6884_v27 }
  0xff   : > { %873 = vrot.lane.b32.xlu2 %v784_v35, %s7895_s28  ;;  %v6888_v35 = vld [vmem:[%s7976_s25 + $0x8d] sm:$0xff] }
 0x100   : > { %v625_v38 = vpop.permute.xlu1 %624  ;;  %v623_v39 = vpop.permute.xlu0 %622 }
 0x101   : > { %707 = vst.msk [vmem:[#allocation2 + $0x38] sm:$0xf] %vm692_vm2, %v625_v38  ;;  %v645_v42 = vpop.permute.xlu2 %644 }
 0x102   : > { %706 = vst.msk [vmem:[#allocation2 + $0x34] sm:$0xf] %vm692_vm2, %v623_v39  ;;  %v1002_v39 = vpack.c.bf16 %v6888_v35, %v6888_v35  ;;  %v6909_v35 = vld [vmem:[%s7976_s25 + $0x2e] sm:$0xff] }
 0x103   : > { %717 = vst.msk [vmem:[#allocation2 + $0x60] sm:$0xf] %vm692_vm2, %v645_v42  ;;  %v6889_v42 = vld [vmem:[%s7976_s25 + $0x95] sm:$0xff] }
 0x104   : > { %v1003_v43 = vpack.c.bf16 %v6889_v42, %v6889_v42 }
 0x106   : > { %877 = vrot.lane.b32.xlu1 %v786_v40, %s7895_s28  ;;  %875 = vrot.lane.b32.xlu0 %v785_v41, %s7895_s28  ;;  %v1001_v40 = vpack.c.bf16 %v6887_v36, %v6887_v36 }
 0x107   : > { %879 = vrot.lane.b32.xlu2 %v787_v44, %s7895_s28  ;;  %v6891_v44 = vld [vmem:[%s7976_s25 + $0xa5] sm:$0xff] }
 0x108   : > { %v631_v47 = vpop.permute.xlu1 %630  ;;  %v629_v48 = vpop.permute.xlu0 %628 }
 0x109   : > { %710 = vst.msk [vmem:[#allocation2 + $0x44] sm:$0xf] %vm692_vm2, %v631_v47  ;;  %v651_v51 = vpop.permute.xlu2 %650 }
 0x10a   : > { %709 = vst.msk [vmem:[#allocation2 + $0x40] sm:$0xf] %vm692_vm2, %v629_v48  ;;  %v1005_v48 = vpack.c.bf16 %v6891_v44, %v6891_v44  ;;  %v6912_v44 = vld [vmem:[%s7976_s25 + $0x46] sm:$0xff] }
 0x10b   : > { %720 = vst.msk [vmem:[#allocation2 + $0x6c] sm:$0xf] %vm692_vm2, %v651_v51  ;;  %v6892_v51 = vld [vmem:[%s7976_s25 + $0xad] sm:$0xff] }
 0x10c   : > { %v1006_v52 = vpack.c.bf16 %v6892_v51, %v6892_v51 }
 0x10e   : > { %883 = vrot.lane.b32.xlu1 %v789_v49, %s7895_s28  ;;  %881 = vrot.lane.b32.xlu0 %v788_v50, %s7895_s28  ;;  %v1004_v49 = vpack.c.bf16 %v6890_v45, %v6890_v45 }
 0x10f   : > { %885 = vrot.lane.b32.xlu2 %v790_v53, %s7895_s28  ;;  %v6894_v53 = vld [vmem:[%s7976_s25 + $0xbd] sm:$0xff]  ;;  %s7915_s28 = smov 92  }
 0x110   : > { %v637_v56 = vpop.permute.xlu1 %636  ;;  %v635_v57 = vpop.permute.xlu0 %634 }
 0x111   : > { %713 = vst.msk [vmem:[#allocation2 + $0x50] sm:$0xf] %vm692_vm2, %v637_v56  ;;  %v657_v60 = vpop.permute.xlu2 %656 }
 0x112   : > { %712 = vst.msk [vmem:[#allocation2 + $0x4c] sm:$0xf] %vm692_vm2, %v635_v57  ;;  %v1008_v57 = vpack.c.bf16 %v6894_v53, %v6894_v53  ;;  %v6915_v53 = vld [vmem:[%s7976_s25 + $0x5e] sm:$0xff] }
 0x113   : > { %723 = vst.msk [vmem:[#allocation2 + $0x78] sm:$0xf] %vm692_vm2, %v657_v60  ;;  %v6895_v60 = vld [vmem:[%s7976_s25 + $0xc5] sm:$0xff] }
 0x114   : > { %v1009_v61 = vpack.c.bf16 %v6895_v60, %v6895_v60 }
 0x116   : > { %1052 = vrot.lane.b32.xlu1 %v987_v58, %s7896_s29  ;;  %1050 = vrot.lane.b32.xlu0 %v986_v59, %s7896_s29  ;;  %v1007_v58 = vpack.c.bf16 %v6893_v54, %v6893_v54 }
 0x117   : > { %1054 = vrot.lane.b32.xlu2 %v988_v62, %s7896_s29  ;;  %v6897_v62 = vld [vmem:[%s7976_s25 + $0xd5] sm:$0xff] }
 0x118   : > { %v643_v1 = vpop.permute.xlu1 %642  ;;  %v641_v2 = vpop.permute.xlu0 %640 }
 0x119   : > { %716 = vst.msk [vmem:[#allocation2 + $0x5c] sm:$0xf] %vm692_vm2, %v643_v1  ;;  %v826_v5 = vpop.permute.xlu2 %825 }
 0x11a   : > { %715 = vst.msk [vmem:[#allocation2 + $0x58] sm:$0xf] %vm692_vm2, %v641_v2  ;;  %v1011_v2 = vpack.c.bf16 %v6897_v62, %v6897_v62  ;;  %v6918_v62 = vld [vmem:[%s7976_s25 + $0x76] sm:$0xff] }
 0x11b   : > { %921 = vst.msk [vmem:[#allocation2 + $0x4] sm:$0xf] %vm919_vm3, %v826_v5  ;;  %v6898_v5 = vld [vmem:[%s7976_s25 + $0xdd] sm:$0xff] }
 0x11c   : > { %v1012_v6 = vpack.c.bf16 %v6898_v5, %v6898_v5 }
 0x11e   : > { %1058 = vrot.lane.b32.xlu1 %v990_v3, %s7896_s29  ;;  %1056 = vrot.lane.b32.xlu0 %v989_v4, %s7896_s29  ;;  %v1010_v3 = vpack.c.bf16 %v6896_v63, %v6896_v63 }
 0x11f   : > { %1060 = vrot.lane.b32.xlu2 %v991_v7, %s7896_s29  ;;  %v6900_v7 = vld [vmem:[%s7976_s25 + $0xed] sm:$0xff] }
 0x120   : > { %v649_v10 = vpop.permute.xlu1 %648  ;;  %v647_v11 = vpop.permute.xlu0 %646 }
 0x121   : > { %719 = vst.msk [vmem:[#allocation2 + $0x68] sm:$0xf] %vm692_vm2, %v649_v10  ;;  %v832_v14 = vpop.permute.xlu2 %831 }
 0x122   : > { %718 = vst.msk [vmem:[#allocation2 + $0x64] sm:$0xf] %vm692_vm2, %v647_v11  ;;  %v1014_v11 = vpack.c.bf16 %v6900_v7, %v6900_v7  ;;  %v6921_v7 = vld [vmem:[%s7976_s25 + $0x8e] sm:$0xff] }
 0x123   : > { %924 = vst.msk [vmem:[#allocation2 + $0x10] sm:$0xf] %vm919_vm3, %v832_v14  ;;  %v6901_v14 = vld [vmem:[%s7976_s25 + $0xf5] sm:$0xff] }
 0x124   : > { %v1015_v15 = vpack.c.bf16 %v6901_v14, %v6901_v14 }
 0x126   : > { %1064 = vrot.lane.b32.xlu1 %v993_v12, %s7896_s29  ;;  %1062 = vrot.lane.b32.xlu0 %v992_v13, %s7896_s29  ;;  %v1013_v12 = vpack.c.bf16 %v6899_v8, %v6899_v8 }
 0x127   : > { %1066 = vrot.lane.b32.xlu2 %v994_v16, %s7896_s29  ;;  %v6903_v16 = vld [vmem:[%s7976_s25 + $0x105] sm:$0xff] }
 0x128   : > { %v655_v19 = vpop.permute.xlu1 %654  ;;  %v653_v20 = vpop.permute.xlu0 %652 }
 0x129   : > { %722 = vst.msk [vmem:[#allocation2 + $0x74] sm:$0xf] %vm692_vm2, %v655_v19  ;;  %v838_v23 = vpop.permute.xlu2 %837 }
 0x12a   : > { %721 = vst.msk [vmem:[#allocation2 + $0x70] sm:$0xf] %vm692_vm2, %v653_v20  ;;  %v1017_v20 = vpack.c.bf16 %v6903_v16, %v6903_v16  ;;  %v6924_v16 = vld [vmem:[%s7976_s25 + $0xa6] sm:$0xff] }
 0x12b   : > { %927 = vst.msk [vmem:[#allocation2 + $0x1c] sm:$0xf] %vm919_vm3, %v838_v23  ;;  %v6905_v23 = vld [vmem:[%s7976_s25 + $0xe] sm:$0xff] }
 0x12c   : > { %v1213_v24 = vpack.c.bf16 %v6905_v23, %v6905_v23 }
 0x12e   : > { %1070 = vrot.lane.b32.xlu1 %v996_v21, %s7896_s29  ;;  %1068 = vrot.lane.b32.xlu0 %v995_v22, %s7896_s29  ;;  %v1016_v21 = vpack.c.bf16 %v6902_v17, %v6902_v17 }
 0x12f   : > { %1072 = vrot.lane.b32.xlu2 %v997_v25, %s7896_s29  ;;  %v6907_v25 = vld [vmem:[%s7976_s25 + $0x1e] sm:$0xff] }
 0x130   : > { %v824_v28 = vpop.permute.xlu1 %823  ;;  %v659_v29 = vpop.permute.xlu0 %658 }
 0x131   : > { %920 = vst.msk [vmem:[#allocation2] sm:$0xf] %vm919_vm3, %v824_v28  ;;  %v844_v32 = vpop.permute.xlu2 %843 }
 0x132   : > { %724 = vst.msk [vmem:[#allocation2 + $0x7c] sm:$0xf] %vm692_vm2, %v659_v29  ;;  %v1215_v29 = vpack.c.bf16 %v6907_v25, %v6907_v25  ;;  %v6927_v25 = vld [vmem:[%s7976_s25 + $0xbe] sm:$0xff]  ;;  %vm4324_vm2 = vcmask 618048  }
 0x133   : > { %930 = vst.msk [vmem:[#allocation2 + $0x28] sm:$0xf] %vm919_vm3, %v844_v32  ;;  %v6908_v32 = vld [vmem:[%s7976_s25 + $0x26] sm:$0xff] }
 0x134   : > { %v1216_v33 = vpack.c.bf16 %v6908_v32, %v6908_v32 }
 0x136   : > { %1076 = vrot.lane.b32.xlu1 %v999_v30, %s7896_s29  ;;  %1074 = vrot.lane.b32.xlu0 %v998_v31, %s7896_s29  ;;  %v1214_v30 = vpack.c.bf16 %v6906_v26, %v6906_v26 }
 0x137   : > { %1078 = vrot.lane.b32.xlu2 %v1000_v34, %s7896_s29  ;;  %v6910_v34 = vld [vmem:[%s7976_s25 + $0x36] sm:$0xff] }
 0x138   : > { %v830_v37 = vpop.permute.xlu1 %829  ;;  %v828_v38 = vpop.permute.xlu0 %827 }
 0x139   : > { %923 = vst.msk [vmem:[#allocation2 + $0xc] sm:$0xf] %vm919_vm3, %v830_v37  ;;  %v850_v41 = vpop.permute.xlu2 %849 }
 0x13a   : > { %922 = vst.msk [vmem:[#allocation2 + $0x8] sm:$0xf] %vm919_vm3, %v828_v38  ;;  %v1218_v38 = vpack.c.bf16 %v6910_v34, %v6910_v34  ;;  %v6930_v34 = vld [vmem:[%s7976_s25 + $0xd6] sm:$0xff] }
 0x13b   : > { %933 = vst.msk [vmem:[#allocation2 + $0x34] sm:$0xf] %vm919_vm3, %v850_v41  ;;  %v6911_v41 = vld [vmem:[%s7976_s25 + $0x3e] sm:$0xff] }
 0x13c   : > { %v1219_v42 = vpack.c.bf16 %v6911_v41, %v6911_v41 }
 0x13e   : > { %1082 = vrot.lane.b32.xlu1 %v1002_v39, %s7896_s29  ;;  %1080 = vrot.lane.b32.xlu0 %v1001_v40, %s7896_s29  ;;  %v1217_v39 = vpack.c.bf16 %v6909_v35, %v6909_v35 }
 0x13f   : > { %1084 = vrot.lane.b32.xlu2 %v1003_v43, %s7896_s29  ;;  %v6913_v43 = vld [vmem:[%s7976_s25 + $0x4e] sm:$0xff] }
 0x140   : > { %v836_v46 = vpop.permute.xlu1 %835  ;;  %v834_v47 = vpop.permute.xlu0 %833 }
 0x141   : > { %926 = vst.msk [vmem:[#allocation2 + $0x18] sm:$0xf] %vm919_vm3, %v836_v46  ;;  %v856_v50 = vpop.permute.xlu2 %855 }
 0x142   : > { %925 = vst.msk [vmem:[#allocation2 + $0x14] sm:$0xf] %vm919_vm3, %v834_v47  ;;  %v1221_v47 = vpack.c.bf16 %v6913_v43, %v6913_v43  ;;  %v6933_v43 = vld [vmem:[%s7976_s25 + $0xee] sm:$0xff] }
 0x143   : > { %936 = vst.msk [vmem:[#allocation2 + $0x40] sm:$0xf] %vm919_vm3, %v856_v50  ;;  %v6914_v50 = vld [vmem:[%s7976_s25 + $0x56] sm:$0xff] }
 0x144   : > { %v1222_v51 = vpack.c.bf16 %v6914_v50, %v6914_v50 }
 0x146   : > { %1088 = vrot.lane.b32.xlu1 %v1005_v48, %s7896_s29  ;;  %1086 = vrot.lane.b32.xlu0 %v1004_v49, %s7896_s29  ;;  %v1220_v48 = vpack.c.bf16 %v6912_v44, %v6912_v44 }
 0x147   : > { %1090 = vrot.lane.b32.xlu2 %v1006_v52, %s7896_s29  ;;  %v6916_v52 = vld [vmem:[%s7976_s25 + $0x66] sm:$0xff] }
 0x148   : > { %v842_v55 = vpop.permute.xlu1 %841  ;;  %v840_v56 = vpop.permute.xlu0 %839 }
 0x149   : > { %929 = vst.msk [vmem:[#allocation2 + $0x24] sm:$0xf] %vm919_vm3, %v842_v55  ;;  %v862_v59 = vpop.permute.xlu2 %861 }
 0x14a   : > { %928 = vst.msk [vmem:[#allocation2 + $0x20] sm:$0xf] %vm919_vm3, %v840_v56  ;;  %v1224_v56 = vpack.c.bf16 %v6916_v52, %v6916_v52  ;;  %v6936_v52 = vld [vmem:[%s7976_s25 + $0x106] sm:$0xff] }
 0x14b   : > { %939 = vst.msk [vmem:[#allocation2 + $0x4c] sm:$0xf] %vm919_vm3, %v862_v59  ;;  %v6917_v59 = vld [vmem:[%s7976_s25 + $0x6e] sm:$0xff] }
 0x14c   : > { %v1225_v60 = vpack.c.bf16 %v6917_v59, %v6917_v59 }
 0x14e   : > { %1094 = vrot.lane.b32.xlu1 %v1008_v57, %s7896_s29  ;;  %1092 = vrot.lane.b32.xlu0 %v1007_v58, %s7896_s29  ;;  %v1223_v57 = vpack.c.bf16 %v6915_v53, %v6915_v53 }
 0x14f   : > { %1096 = vrot.lane.b32.xlu2 %v1009_v61, %s7896_s29  ;;  %v6919_v61 = vld [vmem:[%s7976_s25 + $0x7e] sm:$0xff] }
 0x150   : > { %v848_v0 = vpop.permute.xlu1 %847  ;;  %v846_v1 = vpop.permute.xlu0 %845 }
 0x151   : > { %932 = vst.msk [vmem:[#allocation2 + $0x30] sm:$0xf] %vm919_vm3, %v848_v0  ;;  %v868_v4 = vpop.permute.xlu2 %867 }
 0x152   : > { %931 = vst.msk [vmem:[#allocation2 + $0x2c] sm:$0xf] %vm919_vm3, %v846_v1  ;;  %v1227_v1 = vpack.c.bf16 %v6919_v61, %v6919_v61  ;;  %v6940_v61 = vld [vmem:[%s7976_s25 + $0x28] sm:$0xff] }
 0x153   : > { %942 = vst.msk [vmem:[#allocation2 + $0x58] sm:$0xf] %vm919_vm3, %v868_v4  ;;  %v6920_v4 = vld [vmem:[%s7976_s25 + $0x86] sm:$0xff] }
 0x154   : > { %v1228_v5 = vpack.c.bf16 %v6920_v4, %v6920_v4 }
 0x156   : > { %1100 = vrot.lane.b32.xlu1 %v1011_v2, %s7896_s29  ;;  %1098 = vrot.lane.b32.xlu0 %v1010_v3, %s7896_s29  ;;  %v1226_v2 = vpack.c.bf16 %v6918_v62, %v6918_v62 }
 0x157   : > { %1102 = vrot.lane.b32.xlu2 %v1012_v6, %s7896_s29  ;;  %v6922_v6 = vld [vmem:[%s7976_s25 + $0x96] sm:$0xff] }
 0x158   : > { %v854_v9 = vpop.permute.xlu1 %853  ;;  %v852_v10 = vpop.permute.xlu0 %851 }
 0x159   : > { %935 = vst.msk [vmem:[#allocation2 + $0x3c] sm:$0xf] %vm919_vm3, %v854_v9  ;;  %v874_v13 = vpop.permute.xlu2 %873 }
 0x15a   : > { %934 = vst.msk [vmem:[#allocation2 + $0x38] sm:$0xf] %vm919_vm3, %v852_v10  ;;  %v1230_v10 = vpack.c.bf16 %v6922_v6, %v6922_v6  ;;  %v6943_v6 = vld [vmem:[%s7976_s25 + $0x40] sm:$0xff] }
 0x15b   : > { %945 = vst.msk [vmem:[#allocation2 + $0x64] sm:$0xf] %vm919_vm3, %v874_v13  ;;  %v6923_v13 = vld [vmem:[%s7976_s25 + $0x9e] sm:$0xff] }
 0x15c   : > { %v1231_v14 = vpack.c.bf16 %v6923_v13, %v6923_v13 }
 0x15e   : > { %1106 = vrot.lane.b32.xlu1 %v1014_v11, %s7896_s29  ;;  %1104 = vrot.lane.b32.xlu0 %v1013_v12, %s7896_s29  ;;  %v1229_v11 = vpack.c.bf16 %v6921_v7, %v6921_v7 }
 0x15f   : > { %1108 = vrot.lane.b32.xlu2 %v1015_v15, %s7896_s29  ;;  %v6925_v15 = vld [vmem:[%s7976_s25 + $0xae] sm:$0xff] }
 0x160   : > { %v860_v18 = vpop.permute.xlu1 %859  ;;  %v858_v19 = vpop.permute.xlu0 %857 }
 0x161   : > { %938 = vst.msk [vmem:[#allocation2 + $0x48] sm:$0xf] %vm919_vm3, %v860_v18  ;;  %v880_v22 = vpop.permute.xlu2 %879 }
 0x162   : > { %937 = vst.msk [vmem:[#allocation2 + $0x44] sm:$0xf] %vm919_vm3, %v858_v19  ;;  %v1233_v19 = vpack.c.bf16 %v6925_v15, %v6925_v15  ;;  %v6946_v15 = vld [vmem:[%s7976_s25 + $0x58] sm:$0xff] }
 0x163   : > { %948 = vst.msk [vmem:[#allocation2 + $0x70] sm:$0xf] %vm919_vm3, %v880_v22  ;;  %v6926_v22 = vld [vmem:[%s7976_s25 + $0xb6] sm:$0xff] }
 0x164   : > { %v1234_v23 = vpack.c.bf16 %v6926_v22, %v6926_v22 }
 0x166   : > { %1112 = vrot.lane.b32.xlu1 %v1017_v20, %s7896_s29  ;;  %1110 = vrot.lane.b32.xlu0 %v1016_v21, %s7896_s29  ;;  %v1232_v20 = vpack.c.bf16 %v6924_v16, %v6924_v16  ;;  %s7916_s29 = smov 96  }
 0x167   : > { %1277 = vrot.lane.b32.xlu2 %v1213_v24, %s7897_s30  ;;  %v6928_v24 = vld [vmem:[%s7976_s25 + $0xc6] sm:$0xff] }
 0x168   : > { %v866_v27 = vpop.permute.xlu1 %865  ;;  %v864_v28 = vpop.permute.xlu0 %863 }
 0x169   : > { %941 = vst.msk [vmem:[#allocation2 + $0x54] sm:$0xf] %vm919_vm3, %v866_v27  ;;  %v886_v31 = vpop.permute.xlu2 %885 }
 0x16a   : > { %940 = vst.msk [vmem:[#allocation2 + $0x50] sm:$0xf] %vm919_vm3, %v864_v28  ;;  %v1236_v28 = vpack.c.bf16 %v6928_v24, %v6928_v24  ;;  %v6949_v24 = vld [vmem:[%s7976_s25 + $0x70] sm:$0xff] }
 0x16b   : > { %951 = vst.msk [vmem:[#allocation2 + $0x7c] sm:$0xf] %vm919_vm3, %v886_v31  ;;  %v6929_v31 = vld [vmem:[%s7976_s25 + $0xce] sm:$0xff] }
 0x16c   : > { %v1237_v32 = vpack.c.bf16 %v6929_v31, %v6929_v31 }
 0x16e   : > { %1281 = vrot.lane.b32.xlu1 %v1215_v29, %s7897_s30  ;;  %1279 = vrot.lane.b32.xlu0 %v1214_v30, %s7897_s30  ;;  %v1235_v29 = vpack.c.bf16 %v6927_v25, %v6927_v25 }
 0x16f   : > { %1283 = vrot.lane.b32.xlu2 %v1216_v33, %s7897_s30  ;;  %v6931_v33 = vld [vmem:[%s7976_s25 + $0xde] sm:$0xff] }
 0x170   : > { %v872_v36 = vpop.permute.xlu1 %871  ;;  %v870_v37 = vpop.permute.xlu0 %869 }
 0x171   : > { %944 = vst.msk [vmem:[#allocation2 + $0x60] sm:$0xf] %vm919_vm3, %v872_v36  ;;  %v1055_v40 = vpop.permute.xlu2 %1054 }
 0x172   : > { %943 = vst.msk [vmem:[#allocation2 + $0x5c] sm:$0xf] %vm919_vm3, %v870_v37  ;;  %v1239_v37 = vpack.c.bf16 %v6931_v33, %v6931_v33  ;;  %v6952_v33 = vld [vmem:[%s7976_s25 + $0x88] sm:$0xff] }
 0x173   : > { %1149 = vst.msk [vmem:[#allocation2 + $0x8] sm:$0xf] %vm1146_vm4, %v1055_v40  ;;  %v6932_v40 = vld [vmem:[%s7976_s25 + $0xe6] sm:$0xff] }
 0x174   : > { %v1240_v41 = vpack.c.bf16 %v6932_v40, %v6932_v40 }
 0x176   : > { %1287 = vrot.lane.b32.xlu1 %v1218_v38, %s7897_s30  ;;  %1285 = vrot.lane.b32.xlu0 %v1217_v39, %s7897_s30  ;;  %v1238_v38 = vpack.c.bf16 %v6930_v34, %v6930_v34 }
 0x177   : > { %1289 = vrot.lane.b32.xlu2 %v1219_v42, %s7897_s30  ;;  %v6934_v42 = vld [vmem:[%s7976_s25 + $0xf6] sm:$0xff] }
 0x178   : > { %v878_v45 = vpop.permute.xlu1 %877  ;;  %v876_v46 = vpop.permute.xlu0 %875 }
 0x179   : > { %947 = vst.msk [vmem:[#allocation2 + $0x6c] sm:$0xf] %vm919_vm3, %v878_v45  ;;  %v1061_v49 = vpop.permute.xlu2 %1060 }
 0x17a   : > { %946 = vst.msk [vmem:[#allocation2 + $0x68] sm:$0xf] %vm919_vm3, %v876_v46  ;;  %v1242_v46 = vpack.c.bf16 %v6934_v42, %v6934_v42  ;;  %v6955_v42 = vld [vmem:[%s7976_s25 + $0xa0] sm:$0xff] }
 0x17b   : > { %1152 = vst.msk [vmem:[#allocation2 + $0x14] sm:$0xf] %vm1146_vm4, %v1061_v49  ;;  %v6935_v49 = vld [vmem:[%s7976_s25 + $0xfe] sm:$0xff] }
 0x17c   : > { %v1243_v50 = vpack.c.bf16 %v6935_v49, %v6935_v49 }
 0x17e   : > { %1293 = vrot.lane.b32.xlu1 %v1221_v47, %s7897_s30  ;;  %1291 = vrot.lane.b32.xlu0 %v1220_v48, %s7897_s30  ;;  %v1241_v47 = vpack.c.bf16 %v6933_v43, %v6933_v43 }
 0x17f   : > { %1295 = vrot.lane.b32.xlu2 %v1222_v51, %s7897_s30  ;;  %v6938_v51 = vld [vmem:[%s7976_s25 + $0x18] sm:$0xff] }
 0x180   : > { %v884_v54 = vpop.permute.xlu1 %883  ;;  %v882_v55 = vpop.permute.xlu0 %881 }
 0x181   : > { %950 = vst.msk [vmem:[#allocation2 + $0x78] sm:$0xf] %vm919_vm3, %v884_v54  ;;  %v1067_v58 = vpop.permute.xlu2 %1066 }
 0x182   : > { %949 = vst.msk [vmem:[#allocation2 + $0x74] sm:$0xf] %vm919_vm3, %v882_v55  ;;  %v1440_v55 = vpack.c.bf16 %v6938_v51, %v6938_v51  ;;  %v6958_v51 = vld [vmem:[%s7976_s25 + $0xb8] sm:$0xff]  ;;  %vm4551_vm3 = vcmask 650848  }
 0x183   : > { %1155 = vst.msk [vmem:[#allocation2 + $0x20] sm:$0xf] %vm1146_vm4, %v1067_v58  ;;  %v6939_v58 = vld [vmem:[%s7976_s25 + $0x20] sm:$0xff] }
 0x184   : > { %v1441_v59 = vpack.c.bf16 %v6939_v58, %v6939_v58 }
 0x186   : > { %1299 = vrot.lane.b32.xlu1 %v1224_v56, %s7897_s30  ;;  %1297 = vrot.lane.b32.xlu0 %v1223_v57, %s7897_s30  ;;  %v1244_v56 = vpack.c.bf16 %v6936_v52, %v6936_v52 }
 0x187   : > { %1301 = vrot.lane.b32.xlu2 %v1225_v60, %s7897_s30  ;;  %v6941_v60 = vld [vmem:[%s7976_s25 + $0x30] sm:$0xff] }
 0x188   : > { %v1053_v63 = vpop.permute.xlu1 %1052  ;;  %v1051_v0 = vpop.permute.xlu0 %1050 }
 0x189   : > { %1148 = vst.msk [vmem:[#allocation2 + $0x4] sm:$0xf] %vm1146_vm4, %v1053_v63  ;;  %v1073_v3 = vpop.permute.xlu2 %1072 }
 0x18a   : > { %1147 = vst.msk [vmem:[#allocation2] sm:$0xf] %vm1146_vm4, %v1051_v0  ;;  %v1443_v0 = vpack.c.bf16 %v6941_v60, %v6941_v60  ;;  %v6961_v60 = vld [vmem:[%s7976_s25 + $0xd0] sm:$0xff] }
 0x18b   : > { %1158 = vst.msk [vmem:[#allocation2 + $0x2c] sm:$0xf] %vm1146_vm4, %v1073_v3  ;;  %v6942_v3 = vld [vmem:[%s7976_s25 + $0x38] sm:$0xff] }
 0x18c   : > { %v1444_v4 = vpack.c.bf16 %v6942_v3, %v6942_v3 }
 0x18e   : > { %1305 = vrot.lane.b32.xlu1 %v1227_v1, %s7897_s30  ;;  %1303 = vrot.lane.b32.xlu0 %v1226_v2, %s7897_s30  ;;  %v1442_v1 = vpack.c.bf16 %v6940_v61, %v6940_v61 }
 0x18f   : > { %1307 = vrot.lane.b32.xlu2 %v1228_v5, %s7897_s30  ;;  %v6944_v5 = vld [vmem:[%s7976_s25 + $0x48] sm:$0xff] }
 0x190   : > { %v1059_v8 = vpop.permute.xlu1 %1058  ;;  %v1057_v9 = vpop.permute.xlu0 %1056 }
 0x191   : > { %1151 = vst.msk [vmem:[#allocation2 + $0x10] sm:$0xf] %vm1146_vm4, %v1059_v8  ;;  %v1079_v12 = vpop.permute.xlu2 %1078 }
 0x192   : > { %1150 = vst.msk [vmem:[#allocation2 + $0xc] sm:$0xf] %vm1146_vm4, %v1057_v9  ;;  %v1446_v9 = vpack.c.bf16 %v6944_v5, %v6944_v5  ;;  %v6964_v5 = vld [vmem:[%s7976_s25 + $0xe8] sm:$0xff] }
 0x193   : > { %1161 = vst.msk [vmem:[#allocation2 + $0x38] sm:$0xf] %vm1146_vm4, %v1079_v12  ;;  %v6945_v12 = vld [vmem:[%s7976_s25 + $0x50] sm:$0xff] }
 0x194   : > { %v1447_v13 = vpack.c.bf16 %v6945_v12, %v6945_v12 }
 0x196   : > { %1311 = vrot.lane.b32.xlu1 %v1230_v10, %s7897_s30  ;;  %1309 = vrot.lane.b32.xlu0 %v1229_v11, %s7897_s30  ;;  %v1445_v10 = vpack.c.bf16 %v6943_v6, %v6943_v6 }
 0x197   : > { %1313 = vrot.lane.b32.xlu2 %v1231_v14, %s7897_s30  ;;  %v6947_v14 = vld [vmem:[%s7976_s25 + $0x60] sm:$0xff] }
 0x198   : > { %v1065_v17 = vpop.permute.xlu1 %1064  ;;  %v1063_v18 = vpop.permute.xlu0 %1062 }
 0x199   : > { %1154 = vst.msk [vmem:[#allocation2 + $0x1c] sm:$0xf] %vm1146_vm4, %v1065_v17  ;;  %v1085_v21 = vpop.permute.xlu2 %1084 }
 0x19a   : > { %1153 = vst.msk [vmem:[#allocation2 + $0x18] sm:$0xf] %vm1146_vm4, %v1063_v18  ;;  %v1449_v18 = vpack.c.bf16 %v6947_v14, %v6947_v14  ;;  %v6967_v14 = vld [vmem:[%s7976_s25 + $0x100] sm:$0xff] }
 0x19b   : > { %1164 = vst.msk [vmem:[#allocation2 + $0x44] sm:$0xf] %vm1146_vm4, %v1085_v21  ;;  %v6948_v21 = vld [vmem:[%s7976_s25 + $0x68] sm:$0xff] }
 0x19c   : > { %v1450_v22 = vpack.c.bf16 %v6948_v21, %v6948_v21 }
 0x19e   : > { %1317 = vrot.lane.b32.xlu1 %v1233_v19, %s7897_s30  ;;  %1315 = vrot.lane.b32.xlu0 %v1232_v20, %s7897_s30  ;;  %v1448_v19 = vpack.c.bf16 %v6946_v15, %v6946_v15 }
 0x19f   : > { %1319 = vrot.lane.b32.xlu2 %v1234_v23, %s7897_s30  ;;  %v6950_v23 = vld [vmem:[%s7976_s25 + $0x78] sm:$0xff] }
 0x1a0   : > { %v1071_v26 = vpop.permute.xlu1 %1070  ;;  %v1069_v27 = vpop.permute.xlu0 %1068 }
 0x1a1   : > { %1157 = vst.msk [vmem:[#allocation2 + $0x28] sm:$0xf] %vm1146_vm4, %v1071_v26  ;;  %v1091_v30 = vpop.permute.xlu2 %1090 }
 0x1a2   : > { %1156 = vst.msk [vmem:[#allocation2 + $0x24] sm:$0xf] %vm1146_vm4, %v1069_v27  ;;  %v1452_v27 = vpack.c.bf16 %v6950_v23, %v6950_v23  ;;  %v6971_v23 = vld [vmem:[%s7976_s25 + $0x19] sm:$0xff] }
 0x1a3   : > { %1167 = vst.msk [vmem:[#allocation2 + $0x50] sm:$0xf] %vm1146_vm4, %v1091_v30  ;;  %v6951_v30 = vld [vmem:[%s7976_s25 + $0x80] sm:$0xff] }
 0x1a4   : > { %v1453_v31 = vpack.c.bf16 %v6951_v30, %v6951_v30 }
 0x1a6   : > { %1323 = vrot.lane.b32.xlu1 %v1236_v28, %s7897_s30  ;;  %1321 = vrot.lane.b32.xlu0 %v1235_v29, %s7897_s30  ;;  %v1451_v28 = vpack.c.bf16 %v6949_v24, %v6949_v24 }
 0x1a7   : > { %1325 = vrot.lane.b32.xlu2 %v1237_v32, %s7897_s30  ;;  %v6953_v32 = vld [vmem:[%s7976_s25 + $0x90] sm:$0xff] }
 0x1a8   : > { %v1077_v35 = vpop.permute.xlu1 %1076  ;;  %v1075_v36 = vpop.permute.xlu0 %1074 }
 0x1a9   : > { %1160 = vst.msk [vmem:[#allocation2 + $0x34] sm:$0xf] %vm1146_vm4, %v1077_v35  ;;  %v1097_v39 = vpop.permute.xlu2 %1096 }
 0x1aa   : > { %1159 = vst.msk [vmem:[#allocation2 + $0x30] sm:$0xf] %vm1146_vm4, %v1075_v36  ;;  %v8526_v36 = vpack.c.bf16 %v6953_v32, %v6953_v32  ;;  %v6974_v32 = vld [vmem:[%s7976_s25 + $0x31] sm:$0xff] }
 0x1ab   : > { %1170 = vst.msk [vmem:[#allocation2 + $0x5c] sm:$0xf] %vm1146_vm4, %v1097_v39  ;;  %v6954_v39 = vld [vmem:[%s7976_s25 + $0x98] sm:$0xff] }
 0x1ac   : > { %v8530_v40 = vpack.c.bf16 %v6954_v39, %v6954_v39  ;;  %v6976_v39 = vld [vmem:[%s7976_s25 + $0x41] sm:$0xff] }
 0x1ae   : > { %1329 = vrot.lane.b32.xlu1 %v1239_v37, %s7897_s30  ;;  %1327 = vrot.lane.b32.xlu0 %v1238_v38, %s7897_s30  ;;  %v1454_v37 = vpack.c.bf16 %v6952_v33, %v6952_v33 }
 0x1af   : > { %1331 = vrot.lane.b32.xlu2 %v1240_v41, %s7897_s30  ;;  %v6956_v41 = vld [vmem:[%s7976_s25 + $0xa8] sm:$0xff] }
 0x1b0   : > { %v1083_v44 = vpop.permute.xlu1 %1082  ;;  %v1081_v45 = vpop.permute.xlu0 %1080 }
 0x1b1   : > { %1163 = vst.msk [vmem:[#allocation2 + $0x40] sm:$0xf] %vm1146_vm4, %v1083_v44  ;;  %v1103_v48 = vpop.permute.xlu2 %1102 }
 0x1b2   : > { %1162 = vst.msk [vmem:[#allocation2 + $0x3c] sm:$0xf] %vm1146_vm4, %v1081_v45  ;;  %v8541_v45 = vpack.c.bf16 %v6956_v41, %v6956_v41  ;;  %v1672_v41 = vpack.c.bf16 %v6976_v39, %v6976_v39  ;;  %v6993_v39 = vld [vmem:[%s7976_s25 + $0xc9] sm:$0xff] }
 0x1b3   : > { %1173 = vst.msk [vmem:[#allocation2 + $0x68] sm:$0xf] %vm1146_vm4, %v1103_v48  ;;  %v6957_v48 = vld [vmem:[%s7976_s25 + $0xb0] sm:$0xff] }
 0x1b4   : > { %v8547_v49 = vpack.c.bf16 %v6957_v48, %v6957_v48 }
 0x1b6   : > { %1335 = vrot.lane.b32.xlu1 %v1242_v46, %s7897_s30  ;;  %1333 = vrot.lane.b32.xlu0 %v1241_v47, %s7897_s30  ;;  %v8543_v46 = vpack.c.bf16 %v6955_v42, %v6955_v42  ;;  %v6978_v42 = vld [vmem:[%s7976_s25 + $0x51] sm:$0xff] }
 0x1b7   : > { %1337 = vrot.lane.b32.xlu2 %v1243_v50, %s7897_s30  ;;  %v6959_v50 = vld [vmem:[%s7976_s25 + $0xc0] sm:$0xff]  ;;  %v1674_v48 = vpack.c.bf16 %v6978_v42, %v6978_v42 }
 0x1b8   : > { %v1089_v53 = vpop.permute.xlu1 %1088  ;;  %v1087_v54 = vpop.permute.xlu0 %1086 }
 0x1b9   : > { %1166 = vst.msk [vmem:[#allocation2 + $0x4c] sm:$0xf] %vm1146_vm4, %v1089_v53  ;;  %v1109_v57 = vpop.permute.xlu2 %1108 }
 0x1ba   : > { %1165 = vst.msk [vmem:[#allocation2 + $0x48] sm:$0xf] %vm1146_vm4, %v1087_v54  ;;  %v8559_v54 = vpack.c.bf16 %v6959_v50, %v6959_v50 }
 0x1bb   : > { %1176 = vst.msk [vmem:[#allocation2 + $0x74] sm:$0xf] %vm1146_vm4, %v1109_v57  ;;  %v6960_v57 = vld [vmem:[%s7976_s25 + $0xc8] sm:$0xff] }
 0x1bc   : > { %v8565_v58 = vpack.c.bf16 %v6960_v57, %v6960_v57  ;;  %v6980_v57 = vld [vmem:[%s7976_s25 + $0x61] sm:$0xff] }
 0x1be   : > { %1504 = vrot.lane.b32.xlu1 %v1440_v55, %s7898_s3  ;;  %1339 = vrot.lane.b32.xlu0 %v1244_v56, %s7897_s30  ;;  %v8561_v55 = vpack.c.bf16 %v6958_v51, %v6958_v51  ;;  %s7917_s30 = smov 100  }
 0x1bf   : > { %1506 = vrot.lane.b32.xlu2 %v1441_v59, %s7898_s3  ;;  %v6962_v59 = vld [vmem:[%s7976_s25 + $0xd8] sm:$0xff] }
 0x1c0   : > { %v1095_v62 = vpop.permute.xlu1 %1094  ;;  %v1093_v63 = vpop.permute.xlu0 %1092 }
 0x1c1   : > { %1169 = vst.msk [vmem:[#allocation2 + $0x58] sm:$0xf] %vm1146_vm4, %v1095_v62  ;;  %v1278_v2 = vpop.permute.xlu2 %1277 }
 0x1c2   : > { %1168 = vst.msk [vmem:[#allocation2 + $0x54] sm:$0xf] %vm1146_vm4, %v1093_v63  ;;  %v8577_v63 = vpack.c.bf16 %v6962_v59, %v6962_v59 }
 0x1c3   : > { %1374 = vst.msk [vmem:[#allocation2] sm:$0xf] %vm1373_vm5, %v1278_v2  ;;  %v6963_v2 = vld [vmem:[%s7976_s25 + $0xe0] sm:$0xff] }
 0x1c4   : > { %v8583_v3 = vpack.c.bf16 %v6963_v2, %v6963_v2  ;;  %v6982_v2 = vld [vmem:[%s7976_s25 + $0x71] sm:$0xff] }
 0x1c6   : > { %1510 = vrot.lane.b32.xlu1 %v1443_v0, %s7898_s3  ;;  %1508 = vrot.lane.b32.xlu0 %v1442_v1, %s7898_s3  ;;  %v8579_v0 = vpack.c.bf16 %v6961_v60, %v6961_v60 }
 0x1c7   : > { %1512 = vrot.lane.b32.xlu2 %v1444_v4, %s7898_s3  ;;  %v6965_v4 = vld [vmem:[%s7976_s25 + $0xf0] sm:$0xff] }
 0x1c8   : > { %v1101_v7 = vpop.permute.xlu1 %1100  ;;  %v1099_v8 = vpop.permute.xlu0 %1098 }
 0x1c9   : > { %1172 = vst.msk [vmem:[#allocation2 + $0x64] sm:$0xf] %vm1146_vm4, %v1101_v7  ;;  %v1284_v11 = vpop.permute.xlu2 %1283 }
 0x1ca   : > { %1171 = vst.msk [vmem:[#allocation2 + $0x60] sm:$0xf] %vm1146_vm4, %v1099_v8  ;;  %v8595_v8 = vpack.c.bf16 %v6965_v4, %v6965_v4  ;;  %v1678_v4 = vpack.c.bf16 %v6982_v2, %v6982_v2  ;;  %v6999_v2 = vld [vmem:[%s7976_s25 + $0xf9] sm:$0xff] }
 0x1cb   : > { %1377 = vst.msk [vmem:[#allocation2 + $0xc] sm:$0xf] %vm1373_vm5, %v1284_v11  ;;  %v6966_v11 = vld [vmem:[%s7976_s25 + $0xf8] sm:$0xff] }
 0x1cc   : > { %v8601_v12 = vpack.c.bf16 %v6966_v11, %v6966_v11 }
 0x1ce   : > { %1516 = vrot.lane.b32.xlu1 %v1446_v9, %s7898_s3  ;;  %1514 = vrot.lane.b32.xlu0 %v1445_v10, %s7898_s3  ;;  %v8597_v9 = vpack.c.bf16 %v6964_v5, %v6964_v5  ;;  %v6984_v5 = vld [vmem:[%s7976_s25 + $0x81] sm:$0xff] }
 0x1cf   : > { %1518 = vrot.lane.b32.xlu2 %v1447_v13, %s7898_s3  ;;  %v6968_v13 = vld [vmem:[%s7976_s25 + $0x108] sm:$0xff]  ;;  %v1680_v11 = vpack.c.bf16 %v6984_v5, %v6984_v5 }
 0x1d0   : > { %v1107_v16 = vpop.permute.xlu1 %1106  ;;  %v1105_v17 = vpop.permute.xlu0 %1104 }
 0x1d1   : > { %1175 = vst.msk [vmem:[#allocation2 + $0x70] sm:$0xf] %vm1146_vm4, %v1107_v16  ;;  %v1290_v20 = vpop.permute.xlu2 %1289 }
 0x1d2   : > { %1174 = vst.msk [vmem:[#allocation2 + $0x6c] sm:$0xf] %vm1146_vm4, %v1105_v17  ;;  %v8613_v17 = vpack.c.bf16 %v6968_v13, %v6968_v13 }
 0x1d3   : > { %1380 = vst.msk [vmem:[#allocation2 + $0x18] sm:$0xf] %vm1373_vm5, %v1290_v20  ;;  %v6969_v20 = vld [vmem:[%s7976_s25 + $0x110] sm:$0xff] }
 0x1d4   : > { %v8619_v21 = vpack.c.bf16 %v6969_v20, %v6969_v20  ;;  %v6986_v20 = vld [vmem:[%s7976_s25 + $0x91] sm:$0xff] }
 0x1d6   : > { %1522 = vrot.lane.b32.xlu1 %v1449_v18, %s7898_s3  ;;  %1520 = vrot.lane.b32.xlu0 %v1448_v19, %s7898_s3  ;;  %v8615_v18 = vpack.c.bf16 %v6967_v14, %v6967_v14 }
 0x1d7   : > { %1524 = vrot.lane.b32.xlu2 %v1450_v22, %s7898_s3  ;;  %v6972_v22 = vld [vmem:[%s7976_s25 + $0x21] sm:$0xff] }
 0x1d8   : > { %v1113_v25 = vpop.permute.xlu1 %1112  ;;  %v1111_v26 = vpop.permute.xlu0 %1110 }
 0x1d9   : > { %1178 = vst.msk [vmem:[#allocation2 + $0x7c] sm:$0xf] %vm1146_vm4, %v1113_v25  ;;  %v1296_v29 = vpop.permute.xlu2 %1295 }
 0x1da   : > { %1177 = vst.msk [vmem:[#allocation2 + $0x78] sm:$0xf] %vm1146_vm4, %v1111_v26  ;;  %v1668_v26 = vpack.c.bf16 %v6972_v22, %v6972_v22  ;;  %vm4778_vm4 = vcmask 683648  }
 0x1db   : > { %1383 = vst.msk [vmem:[#allocation2 + $0x24] sm:$0xf] %vm1373_vm5, %v1296_v29  ;;  %v6973_v29 = vld [vmem:[%s7976_s25 + $0x29] sm:$0xff] }
 0x1dc   : > { %v1669_v30 = vpack.c.bf16 %v6973_v29, %v6973_v29  ;;  %v6990_v29 = vld [vmem:[%s7976_s25 + $0xb1] sm:$0xff] }
 0x1de   : > { %1528 = vrot.lane.b32.xlu1 %v1452_v27, %s7898_s3  ;;  %1526 = vrot.lane.b32.xlu0 %v1451_v28, %s7898_s3  ;;  %v1667_v27 = vpack.c.bf16 %v6971_v23, %v6971_v23 }
 0x1df   : > { %1530 = vrot.lane.b32.xlu2 %v1453_v31, %s7898_s3  ;;  %v6975_v31 = vld [vmem:[%s7976_s25 + $0x39] sm:$0xff] }
 0x1e0   : > { %v1282_v34 = vpop.permute.xlu1 %1281  ;;  %v1280_v35 = vpop.permute.xlu0 %1279 }
 0x1e1   : > { %1376 = vst.msk [vmem:[#allocation2 + $0x8] sm:$0xf] %vm1373_vm5, %v1282_v34  ;;  %v1302_v38 = vpop.permute.xlu2 %1301 }
 0x1e2   : > { %1375 = vst.msk [vmem:[#allocation2 + $0x4] sm:$0xf] %vm1373_vm5, %v1280_v35  ;;  %v1671_v35 = vpack.c.bf16 %v6975_v31, %v6975_v31 }
 0x1e3   : > { %1386 = vst.msk [vmem:[#allocation2 + $0x30] sm:$0xf] %vm1373_vm5, %v1302_v38 }
 0x1e6   : > { %1534 = vrot.lane.b32.xlu1 %v8526_v36, %s7898_s3  ;;  %1532 = vrot.lane.b32.xlu0 %v1454_v37, %s7898_s3  ;;  %v1670_v37 = vpack.c.bf16 %v6974_v32, %v6974_v32 }
 0x1e7   : > { %1536 = vrot.lane.b32.xlu2 %v8530_v40, %s7898_s3 }
 0x1e8   : > { %v1288_v43 = vpop.permute.xlu1 %1287  ;;  %v1286_v44 = vpop.permute.xlu0 %1285 }
 0x1e9   : > { %1379 = vst.msk [vmem:[#allocation2 + $0x14] sm:$0xf] %vm1373_vm5, %v1288_v43  ;;  %v1308_v47 = vpop.permute.xlu2 %1307  ;;  %v6977_v43 = vld [vmem:[%s7976_s25 + $0x49] sm:$0xff] }
 0x1ea   : > { %1378 = vst.msk [vmem:[#allocation2 + $0x10] sm:$0xf] %vm1373_vm5, %v1286_v44  ;;  %v1673_v50 = vpack.c.bf16 %v6977_v43, %v6977_v43 }
 0x1eb   : > { %1389 = vst.msk [vmem:[#allocation2 + $0x3c] sm:$0xf] %vm1373_vm5, %v1308_v47 }
 0x1ee   : > { %1540 = vrot.lane.b32.xlu1 %v8541_v45, %s7898_s3  ;;  %1538 = vrot.lane.b32.xlu0 %v8543_v46, %s7898_s3 }
 0x1ef   : > { %1542 = vrot.lane.b32.xlu2 %v8547_v49, %s7898_s3 }
 0x1f0   : > { %v1294_v52 = vpop.permute.xlu1 %1293  ;;  %v1292_v53 = vpop.permute.xlu0 %1291 }
 0x1f1   : > { %1382 = vst.msk [vmem:[#allocation2 + $0x20] sm:$0xf] %vm1373_vm5, %v1294_v52  ;;  %v1314_v56 = vpop.permute.xlu2 %1313  ;;  %v6979_v52 = vld [vmem:[%s7976_s25 + $0x59] sm:$0xff] }
 0x1f2   : > { %1381 = vst.msk [vmem:[#allocation2 + $0x1c] sm:$0xf] %vm1373_vm5, %v1292_v53  ;;  %v1675_v53 = vpack.c.bf16 %v6979_v52, %v6979_v52  ;;  %v6996_v52 = vld [vmem:[%s7976_s25 + $0xe1] sm:$0xff] }
 0x1f3   : > { %1392 = vst.msk [vmem:[#allocation2 + $0x48] sm:$0xf] %vm1373_vm5, %v1314_v56  ;;  %v6981_v56 = vld [vmem:[%s7976_s25 + $0x69] sm:$0xff] }
 0x1f6   : > { %1546 = vrot.lane.b32.xlu1 %v8559_v54, %s7898_s3  ;;  %1544 = vrot.lane.b32.xlu0 %v8561_v55, %s7898_s3 }
 0x1f7   : > { %1548 = vrot.lane.b32.xlu2 %v8565_v58, %s7898_s3 }
 0x1f8   : > { %v1300_v61 = vpop.permute.xlu1 %1299  ;;  %v1298_v62 = vpop.permute.xlu0 %1297 }
 0x1f9   : > { %1385 = vst.msk [vmem:[#allocation2 + $0x2c] sm:$0xf] %vm1373_vm5, %v1300_v61  ;;  %v1320_v1 = vpop.permute.xlu2 %1319  ;;  %v1677_v61 = vpack.c.bf16 %v6981_v56, %v6981_v56 }
 0x1fa   : > { %1384 = vst.msk [vmem:[#allocation2 + $0x28] sm:$0xf] %vm1373_vm5, %v1298_v62  ;;  %v1676_v62 = vpack.c.bf16 %v6980_v57, %v6980_v57 }
 0x1fb   : > { %1395 = vst.msk [vmem:[#allocation2 + $0x54] sm:$0xf] %vm1373_vm5, %v1320_v1 }
 0x1fe   : > { %1552 = vrot.lane.b32.xlu1 %v8577_v63, %s7898_s3  ;;  %1550 = vrot.lane.b32.xlu0 %v8579_v0, %s7898_s3 }
 0x1ff   : > { %1554 = vrot.lane.b32.xlu2 %v8583_v3, %s7898_s3 }
 0x200   : > { %v1306_v6 = vpop.permute.xlu1 %1305  ;;  %v1304_v7 = vpop.permute.xlu0 %1303 }
 0x201   : > { %1388 = vst.msk [vmem:[#allocation2 + $0x38] sm:$0xf] %vm1373_vm5, %v1306_v6  ;;  %v1326_v10 = vpop.permute.xlu2 %1325  ;;  %v6983_v6 = vld [vmem:[%s7976_s25 + $0x79] sm:$0xff] }
 0x202   : > { %1387 = vst.msk [vmem:[#allocation2 + $0x34] sm:$0xf] %vm1373_vm5, %v1304_v7  ;;  %v1679_v13 = vpack.c.bf16 %v6983_v6, %v6983_v6 }
 0x203   : > { %1398 = vst.msk [vmem:[#allocation2 + $0x60] sm:$0xf] %vm1373_vm5, %v1326_v10 }
 0x206   : > { %1558 = vrot.lane.b32.xlu1 %v8595_v8, %s7898_s3  ;;  %1556 = vrot.lane.b32.xlu0 %v8597_v9, %s7898_s3 }
 0x207   : > { %1560 = vrot.lane.b32.xlu2 %v8601_v12, %s7898_s3 }
 0x208   : > { %v1312_v15 = vpop.permute.xlu1 %1311  ;;  %v1310_v16 = vpop.permute.xlu0 %1309 }
 0x209   : > { %1391 = vst.msk [vmem:[#allocation2 + $0x44] sm:$0xf] %vm1373_vm5, %v1312_v15  ;;  %v1332_v19 = vpop.permute.xlu2 %1331  ;;  %v6985_v15 = vld [vmem:[%s7976_s25 + $0x89] sm:$0xff] }
 0x20a   : > { %1390 = vst.msk [vmem:[#allocation2 + $0x40] sm:$0xf] %vm1373_vm5, %v1310_v16  ;;  %v1681_v16 = vpack.c.bf16 %v6985_v15, %v6985_v15  ;;  %v7002_v15 = vld [vmem:[%s7976_s25 + $0x111] sm:$0xff] }
 0x20b   : > { %1401 = vst.msk [vmem:[#allocation2 + $0x6c] sm:$0xf] %vm1373_vm5, %v1332_v19  ;;  %v6987_v19 = vld [vmem:[%s7976_s25 + $0x99] sm:$0xff] }
 0x20e   : > { %1564 = vrot.lane.b32.xlu1 %v8613_v17, %s7898_s3  ;;  %1562 = vrot.lane.b32.xlu0 %v8615_v18, %s7898_s3 }
 0x20f   : > { %1566 = vrot.lane.b32.xlu2 %v8619_v21, %s7898_s3  ;;  %s7918_s3 = smov 104  }
 0x210   : > { %v1318_v24 = vpop.permute.xlu1 %1317  ;;  %v1316_v25 = vpop.permute.xlu0 %1315 }
 0x211   : > { %1394 = vst.msk [vmem:[#allocation2 + $0x50] sm:$0xf] %vm1373_vm5, %v1318_v24  ;;  %v1338_v28 = vpop.permute.xlu2 %1337  ;;  %v8676_v24 = vpack.c.bf16 %v6987_v19, %v6987_v19 }
 0x212   : > { %1393 = vst.msk [vmem:[#allocation2 + $0x4c] sm:$0xf] %vm1373_vm5, %v1316_v25  ;;  %v8678_v25 = vpack.c.bf16 %v6986_v20, %v6986_v20 }
 0x213   : > { %1404 = vst.msk [vmem:[#allocation2 + $0x78] sm:$0xf] %vm1373_vm5, %v1338_v28 }
 0x216   : > { %1733 = vrot.lane.b32.xlu1 %v1668_v26, %s7899_s4  ;;  %1731 = vrot.lane.b32.xlu0 %v1667_v27, %s7899_s4  ;;  %v6988_v27 = vld [vmem:[%s7976_s25 + $0xa1] sm:$0xff] }
 0x217   : > { %1735 = vrot.lane.b32.xlu2 %v1669_v30, %s7899_s4  ;;  %v8682_v28 = vpack.c.bf16 %v6988_v27, %v6988_v27  ;;  %v6989_v30 = vld [vmem:[%s7976_s25 + $0xa9] sm:$0xff]  ;;  %v7004_v27 = vld [vmem:[%s7976_s25 + $0x1a] sm:$0xff] }
 0x218   : > { %v1324_v33 = vpop.permute.xlu1 %1323  ;;  %v1322_v34 = vpop.permute.xlu0 %1321 }
 0x219   : > { %1397 = vst.msk [vmem:[#allocation2 + $0x5c] sm:$0xf] %vm1373_vm5, %v1324_v33  ;;  %v1507_v38 = vpop.permute.xlu2 %1506  ;;  %v8694_v33 = vpack.c.bf16 %v6990_v29, %v6990_v29  ;;  %v1894_v29 = vpack.c.bf16 %v7004_v27, %v7004_v27  ;;  %v7014_v27 = vld [vmem:[%s7976_s25 + $0x6a] sm:$0xff] }
 0x21a   : > { %1396 = vst.msk [vmem:[#allocation2 + $0x58] sm:$0xf] %vm1373_vm5, %v1322_v34  ;;  %v8696_v34 = vpack.c.bf16 %v6989_v30, %v6989_v30  ;;  %v7006_v30 = vld [vmem:[%s7976_s25 + $0x2a] sm:$0xff] }
 0x21b   : > { %1602 = vst.msk [vmem:[#allocation2 + $0x4] sm:$0xf] %vm1600_vm6, %v1507_v38 }
 0x21e   : > { %1739 = vrot.lane.b32.xlu1 %v1671_v35, %s7899_s4  ;;  %1737 = vrot.lane.b32.xlu0 %v1670_v37, %s7899_s4  ;;  %v6991_v37 = vld [vmem:[%s7976_s25 + $0xb9] sm:$0xff] }
 0x21f   : > { %1741 = vrot.lane.b32.xlu2 %v1672_v41, %s7899_s4  ;;  %v8700_v38 = vpack.c.bf16 %v6991_v37, %v6991_v37  ;;  %v6992_v41 = vld [vmem:[%s7976_s25 + $0xc1] sm:$0xff]  ;;  %v1896_v37 = vpack.c.bf16 %v7006_v30, %v7006_v30 }
 0x220   : > { %v1330_v44 = vpop.permute.xlu1 %1329  ;;  %v1328_v47 = vpop.permute.xlu0 %1327 }
 0x221   : > { %1400 = vst.msk [vmem:[#allocation2 + $0x68] sm:$0xf] %vm1373_vm5, %v1330_v44  ;;  %v1513_v51 = vpop.permute.xlu2 %1512  ;;  %v8712_v44 = vpack.c.bf16 %v6993_v39, %v6993_v39 }
 0x222   : > { %1399 = vst.msk [vmem:[#allocation2 + $0x64] sm:$0xf] %vm1373_vm5, %v1328_v47  ;;  %v8714_v47 = vpack.c.bf16 %v6992_v41, %v6992_v41 }
 0x223   : > { %1605 = vst.msk [vmem:[#allocation2 + $0x10] sm:$0xf] %vm1600_vm6, %v1513_v51 }
 0x226   : > { %1745 = vrot.lane.b32.xlu1 %v1674_v48, %s7899_s4  ;;  %1743 = vrot.lane.b32.xlu0 %v1673_v50, %s7899_s4  ;;  %v6994_v50 = vld [vmem:[%s7976_s25 + $0xd1] sm:$0xff] }
 0x227   : > { %1747 = vrot.lane.b32.xlu2 %v1675_v53, %s7899_s4  ;;  %v8718_v51 = vpack.c.bf16 %v6994_v50, %v6994_v50  ;;  %v6995_v53 = vld [vmem:[%s7976_s25 + $0xd9] sm:$0xff] }
 0x228   : > { %v1336_v59 = vpop.permute.xlu1 %1335  ;;  %v1334_v60 = vpop.permute.xlu0 %1333  ;;  %v7008_v50 = vld [vmem:[%s7976_s25 + $0x3a] sm:$0xff] }
 0x229   : > { %1403 = vst.msk [vmem:[#allocation2 + $0x74] sm:$0xf] %vm1373_vm5, %v1336_v59  ;;  %v1519_v1 = vpop.permute.xlu2 %1518  ;;  %v8730_v59 = vpack.c.bf16 %v6996_v52, %v6996_v52 }
 0x22a   : > { %1402 = vst.msk [vmem:[#allocation2 + $0x70] sm:$0xf] %vm1373_vm5, %v1334_v60  ;;  %v8732_v60 = vpack.c.bf16 %v6995_v53, %v6995_v53 }
 0x22b   : > { %1608 = vst.msk [vmem:[#allocation2 + $0x1c] sm:$0xf] %vm1600_vm6, %v1519_v1 }
 0x22e   : > { %1751 = vrot.lane.b32.xlu1 %v1677_v61, %s7899_s4  ;;  %1749 = vrot.lane.b32.xlu0 %v1676_v62, %s7899_s4  ;;  %v6997_v62 = vld [vmem:[%s7976_s25 + $0xe9] sm:$0xff] }
 0x22f   : > { %1753 = vrot.lane.b32.xlu2 %v1678_v4, %s7899_s4  ;;  %v8736_v1 = vpack.c.bf16 %v6997_v62, %v6997_v62  ;;  %v6998_v4 = vld [vmem:[%s7976_s25 + $0xf1] sm:$0xff] }
 0x230   : > { %v1505_v7 = vpop.permute.xlu1 %1504  ;;  %v1340_v10 = vpop.permute.xlu0 %1339  ;;  %v7010_v62 = vld [vmem:[%s7976_s25 + $0x4a] sm:$0xff] }
 0x231   : > { %1601 = vst.msk [vmem:[#allocation2] sm:$0xf] %vm1600_vm6, %v1505_v7  ;;  %v1525_v14 = vpop.permute.xlu2 %1524  ;;  %v8748_v7 = vpack.c.bf16 %v6999_v2, %v6999_v2  ;;  %v1900_v2 = vpack.c.bf16 %v7010_v62, %v7010_v62  ;;  %v7020_v62 = vld [vmem:[%s7976_s25 + $0x9a] sm:$0xff] }
 0x232   : > { %1405 = vst.msk [vmem:[#allocation2 + $0x7c] sm:$0xf] %vm1373_vm5, %v1340_v10  ;;  %v8750_v10 = vpack.c.bf16 %v6998_v4, %v6998_v4  ;;  %v7012_v4 = vld [vmem:[%s7976_s25 + $0x5a] sm:$0xff]  ;;  %vm5005_vm5 = vcmask 716448  }
 0x233   : > { %1611 = vst.msk [vmem:[#allocation2 + $0x28] sm:$0xf] %vm1600_vm6, %v1525_v14 }
 0x236   : > { %1757 = vrot.lane.b32.xlu1 %v1680_v11, %s7899_s4  ;;  %1755 = vrot.lane.b32.xlu0 %v1679_v13, %s7899_s4  ;;  %v7000_v13 = vld [vmem:[%s7976_s25 + $0x101] sm:$0xff] }
 0x237   : > { %1759 = vrot.lane.b32.xlu2 %v1681_v16, %s7899_s4  ;;  %v8754_v14 = vpack.c.bf16 %v7000_v13, %v7000_v13  ;;  %v7001_v16 = vld [vmem:[%s7976_s25 + $0x109] sm:$0xff]  ;;  %v1902_v13 = vpack.c.bf16 %v7012_v4, %v7012_v4 }
 0x238   : > { %v1511_v22 = vpop.permute.xlu1 %1510  ;;  %v1509_v23 = vpop.permute.xlu0 %1508 }
 0x239   : > { %1604 = vst.msk [vmem:[#allocation2 + $0xc] sm:$0xf] %vm1600_vm6, %v1511_v22  ;;  %v1531_v26 = vpop.permute.xlu2 %1530  ;;  %v8766_v22 = vpack.c.bf16 %v7002_v15, %v7002_v15 }
 0x23a   : > { %1603 = vst.msk [vmem:[#allocation2 + $0x8] sm:$0xf] %vm1600_vm6, %v1509_v23  ;;  %v8768_v23 = vpack.c.bf16 %v7001_v16, %v7001_v16 }
 0x23b   : > { %1614 = vst.msk [vmem:[#allocation2 + $0x34] sm:$0xf] %vm1600_vm6, %v1531_v26 }
 0x23e   : > { %1763 = vrot.lane.b32.xlu1 %v8676_v24, %s7899_s4  ;;  %1761 = vrot.lane.b32.xlu0 %v8678_v25, %s7899_s4 }
 0x23f   : > { %1765 = vrot.lane.b32.xlu2 %v8682_v28, %s7899_s4 }
 0x240   : > { %v1517_v31 = vpop.permute.xlu1 %1516  ;;  %v1515_v32 = vpop.permute.xlu0 %1514 }
 0x241   : > { %1607 = vst.msk [vmem:[#allocation2 + $0x18] sm:$0xf] %vm1600_vm6, %v1517_v31  ;;  %v1537_v35 = vpop.permute.xlu2 %1536  ;;  %v7005_v31 = vld [vmem:[%s7976_s25 + $0x22] sm:$0xff] }
 0x242   : > { %1606 = vst.msk [vmem:[#allocation2 + $0x14] sm:$0xf] %vm1600_vm6, %v1515_v32  ;;  %v1895_v39 = vpack.c.bf16 %v7005_v31, %v7005_v31 }
 0x243   : > { %1617 = vst.msk [vmem:[#allocation2 + $0x40] sm:$0xf] %vm1600_vm6, %v1537_v35 }
 0x246   : > { %1769 = vrot.lane.b32.xlu1 %v8694_v33, %s7899_s4  ;;  %1767 = vrot.lane.b32.xlu0 %v8696_v34, %s7899_s4 }
 0x247   : > { %1771 = vrot.lane.b32.xlu2 %v8700_v38, %s7899_s4 }
 0x248   : > { %v1523_v42 = vpop.permute.xlu1 %1522  ;;  %v1521_v43 = vpop.permute.xlu0 %1520 }
 0x249   : > { %1610 = vst.msk [vmem:[#allocation2 + $0x24] sm:$0xf] %vm1600_vm6, %v1523_v42  ;;  %v1543_v48 = vpop.permute.xlu2 %1542  ;;  %v7007_v42 = vld [vmem:[%s7976_s25 + $0x32] sm:$0xff] }
 0x24a   : > { %1609 = vst.msk [vmem:[#allocation2 + $0x20] sm:$0xf] %vm1600_vm6, %v1521_v43  ;;  %v1897_v43 = vpack.c.bf16 %v7007_v42, %v7007_v42  ;;  %v7017_v42 = vld [vmem:[%s7976_s25 + $0x82] sm:$0xff] }
 0x24b   : > { %1620 = vst.msk [vmem:[#allocation2 + $0x4c] sm:$0xf] %vm1600_vm6, %v1543_v48  ;;  %v7009_v48 = vld [vmem:[%s7976_s25 + $0x42] sm:$0xff] }
 0x24e   : > { %1775 = vrot.lane.b32.xlu1 %v8712_v44, %s7899_s4  ;;  %1773 = vrot.lane.b32.xlu0 %v8714_v47, %s7899_s4 }
 0x24f   : > { %1777 = vrot.lane.b32.xlu2 %v8718_v51, %s7899_s4 }
 0x250   : > { %v1529_v56 = vpop.permute.xlu1 %1528  ;;  %v1527_v57 = vpop.permute.xlu0 %1526 }
 0x251   : > { %1613 = vst.msk [vmem:[#allocation2 + $0x30] sm:$0xf] %vm1600_vm6, %v1529_v56  ;;  %v1549_v61 = vpop.permute.xlu2 %1548  ;;  %v1899_v56 = vpack.c.bf16 %v7009_v48, %v7009_v48 }
 0x252   : > { %1612 = vst.msk [vmem:[#allocation2 + $0x2c] sm:$0xf] %vm1600_vm6, %v1527_v57  ;;  %v1898_v57 = vpack.c.bf16 %v7008_v50, %v7008_v50 }
 0x253   : > { %1623 = vst.msk [vmem:[#allocation2 + $0x58] sm:$0xf] %vm1600_vm6, %v1549_v61 }
 0x256   : > { %1781 = vrot.lane.b32.xlu1 %v8730_v59, %s7899_s4  ;;  %1779 = vrot.lane.b32.xlu0 %v8732_v60, %s7899_s4 }
 0x257   : > { %1783 = vrot.lane.b32.xlu2 %v8736_v1, %s7899_s4 }
 0x258   : > { %v1535_v5 = vpop.permute.xlu1 %1534  ;;  %v1533_v6 = vpop.permute.xlu0 %1532 }
 0x259   : > { %1616 = vst.msk [vmem:[#allocation2 + $0x3c] sm:$0xf] %vm1600_vm6, %v1535_v5  ;;  %v1555_v11 = vpop.permute.xlu2 %1554  ;;  %v7011_v5 = vld [vmem:[%s7976_s25 + $0x52] sm:$0xff] }
 0x25a   : > { %1615 = vst.msk [vmem:[#allocation2 + $0x38] sm:$0xf] %vm1600_vm6, %v1533_v6  ;;  %v1901_v15 = vpack.c.bf16 %v7011_v5, %v7011_v5 }
 0x25b   : > { %1626 = vst.msk [vmem:[#allocation2 + $0x64] sm:$0xf] %vm1600_vm6, %v1555_v11 }
 0x25e   : > { %1787 = vrot.lane.b32.xlu1 %v8748_v7, %s7899_s4  ;;  %1785 = vrot.lane.b32.xlu0 %v8750_v10, %s7899_s4 }
 0x25f   : > { %1789 = vrot.lane.b32.xlu2 %v8754_v14, %s7899_s4 }
 0x260   : > { %v1541_v19 = vpop.permute.xlu1 %1540  ;;  %v1539_v20 = vpop.permute.xlu0 %1538 }
 0x261   : > { %1619 = vst.msk [vmem:[#allocation2 + $0x48] sm:$0xf] %vm1600_vm6, %v1541_v19  ;;  %v1561_v26 = vpop.permute.xlu2 %1560  ;;  %v7013_v19 = vld [vmem:[%s7976_s25 + $0x62] sm:$0xff] }
 0x262   : > { %1618 = vst.msk [vmem:[#allocation2 + $0x44] sm:$0xf] %vm1600_vm6, %v1539_v20  ;;  %v1903_v20 = vpack.c.bf16 %v7013_v19, %v7013_v19  ;;  %v7023_v19 = vld [vmem:[%s7976_s25 + $0xb2] sm:$0xff] }
 0x263   : > { %1629 = vst.msk [vmem:[#allocation2 + $0x70] sm:$0xf] %vm1600_vm6, %v1561_v26  ;;  %v7015_v26 = vld [vmem:[%s7976_s25 + $0x72] sm:$0xff] }
 0x264   : > { %v1905_v31 = vpack.c.bf16 %v7015_v26, %v7015_v26 }
 0x266   : > { %1793 = vrot.lane.b32.xlu1 %v8766_v22, %s7899_s4  ;;  %1791 = vrot.lane.b32.xlu0 %v8768_v23, %s7899_s4 }
 0x267   : > { %1958 = vrot.lane.b32.xlu2 %v1894_v29, %s7900_s5 }
 0x268   : > { %v1547_v32 = vpop.permute.xlu1 %1546  ;;  %v1545_v35 = vpop.permute.xlu0 %1544 }
 0x269   : > { %1622 = vst.msk [vmem:[#allocation2 + $0x54] sm:$0xf] %vm1600_vm6, %v1547_v32  ;;  %v1567_v41 = vpop.permute.xlu2 %1566  ;;  %v1904_v32 = vpack.c.bf16 %v7014_v27, %v7014_v27 }
 0x26a   : > { %1621 = vst.msk [vmem:[#allocation2 + $0x50] sm:$0xf] %vm1600_vm6, %v1545_v35 }
 0x26b   : > { %1632 = vst.msk [vmem:[#allocation2 + $0x7c] sm:$0xf] %vm1600_vm6, %v1567_v41  ;;  %v7018_v41 = vld [vmem:[%s7976_s25 + $0x8a] sm:$0xff] }
 0x26c   : > { %v1908_v50 = vpack.c.bf16 %v7018_v41, %v7018_v41 }
 0x26e   : > { %1962 = vrot.lane.b32.xlu1 %v1896_v37, %s7900_s5  ;;  %1960 = vrot.lane.b32.xlu0 %v1895_v39, %s7900_s5  ;;  %v7016_v37 = vld [vmem:[%s7976_s25 + $0x7a] sm:$0xff] }
 0x26f   : > { %1964 = vrot.lane.b32.xlu2 %v1897_v43, %s7900_s5  ;;  %v1906_v39 = vpack.c.bf16 %v7016_v37, %v7016_v37  ;;  %v7026_v37 = vld [vmem:[%s7976_s25 + $0xca] sm:$0xff] }
 0x270   : > { %v1553_v52 = vpop.permute.xlu1 %1552  ;;  %v1551_v53 = vpop.permute.xlu0 %1550 }
 0x271   : > { %1625 = vst.msk [vmem:[#allocation2 + $0x60] sm:$0xf] %vm1600_vm6, %v1553_v52  ;;  %v1736_v61 = vpop.permute.xlu2 %1735  ;;  %v1907_v52 = vpack.c.bf16 %v7017_v42, %v7017_v42 }
 0x272   : > { %1624 = vst.msk [vmem:[#allocation2 + $0x5c] sm:$0xf] %vm1600_vm6, %v1551_v53 }
 0x273   : > { %1830 = vst.msk [vmem:[#allocation2 + $0x8] sm:$0xf] %vm1827_vm7, %v1736_v61  ;;  %v7021_v61 = vld [vmem:[%s7976_s25 + $0xa2] sm:$0xff] }
 0x274   : > { %v8829_v5 = vpack.c.bf16 %v7021_v61, %v7021_v61 }
 0x276   : > { %1968 = vrot.lane.b32.xlu1 %v1899_v56, %s7900_s5  ;;  %1966 = vrot.lane.b32.xlu0 %v1898_v57, %s7900_s5  ;;  %v7019_v56 = vld [vmem:[%s7976_s25 + $0x92] sm:$0xff] }
 0x277   : > { %1970 = vrot.lane.b32.xlu2 %v1900_v2, %s7900_s5  ;;  %v8819_v57 = vpack.c.bf16 %v7019_v56, %v7019_v56  ;;  %v7029_v56 = vld [vmem:[%s7976_s25 + $0xe2] sm:$0xff] }
 0x278   : > { %v1559_v6 = vpop.permute.xlu1 %1558  ;;  %v1557_v11 = vpop.permute.xlu0 %1556 }
 0x279   : > { %1628 = vst.msk [vmem:[#allocation2 + $0x6c] sm:$0xf] %vm1600_vm6, %v1559_v6  ;;  %v1742_v16 = vpop.permute.xlu2 %1741  ;;  %v8831_v6 = vpack.c.bf16 %v7020_v62, %v7020_v62 }
 0x27a   : > { %1627 = vst.msk [vmem:[#allocation2 + $0x68] sm:$0xf] %vm1600_vm6, %v1557_v11 }
 0x27b   : > { %1833 = vst.msk [vmem:[#allocation2 + $0x14] sm:$0xf] %vm1827_vm7, %v1742_v16  ;;  %v7024_v16 = vld [vmem:[%s7976_s25 + $0xba] sm:$0xff] }
 0x27c   : > { %v8847_v27 = vpack.c.bf16 %v7024_v16, %v7024_v16 }
 0x27e   : > { %1974 = vrot.lane.b32.xlu1 %v1902_v13, %s7900_s5  ;;  %1972 = vrot.lane.b32.xlu0 %v1901_v15, %s7900_s5  ;;  %v7022_v13 = vld [vmem:[%s7976_s25 + $0xaa] sm:$0xff] }
 0x27f   : > { %1976 = vrot.lane.b32.xlu2 %v1903_v20, %s7900_s5  ;;  %v8835_v15 = vpack.c.bf16 %v7022_v13, %v7022_v13  ;;  %v7031_v13 = vld [vmem:[%s7976_s25 + $0xf2] sm:$0xff] }
 0x280   : > { %v1565_v29 = vpop.permute.xlu1 %1564  ;;  %v1563_v30 = vpop.permute.xlu0 %1562  ;;  %v8889_v16 = vpack.c.bf16 %v7031_v13, %v7031_v13 }
 0x281   : > { %1631 = vst.msk [vmem:[#allocation2 + $0x78] sm:$0xf] %vm1600_vm6, %v1565_v29  ;;  %v1748_v35 = vpop.permute.xlu2 %1747  ;;  %v8849_v29 = vpack.c.bf16 %v7023_v19, %v7023_v19  ;;  %v7033_v19 = vld [vmem:[%s7976_s25 + $0x102] sm:$0xff] }
 0x282   : > { %1630 = vst.msk [vmem:[#allocation2 + $0x74] sm:$0xf] %vm1600_vm6, %v1563_v30  ;;  %vm5232_vm6 = vcmask 749248  }
 0x283   : > { %1836 = vst.msk [vmem:[#allocation2 + $0x20] sm:$0xf] %vm1827_vm7, %v1748_v35  ;;  %v7027_v35 = vld [vmem:[%s7976_s25 + $0xd2] sm:$0xff] }
 0x284   : > { %v8865_v42 = vpack.c.bf16 %v7027_v35, %v7027_v35 }
 0x286   : > { %1980 = vrot.lane.b32.xlu1 %v1905_v31, %s7900_s5  ;;  %1978 = vrot.lane.b32.xlu0 %v1904_v32, %s7900_s5  ;;  %v7025_v31 = vld [vmem:[%s7976_s25 + $0xc2] sm:$0xff] }
 0x287   : > { %1982 = vrot.lane.b32.xlu2 %v1906_v39, %s7900_s5  ;;  %v8853_v32 = vpack.c.bf16 %v7025_v31, %v7025_v31  ;;  %v8901_v31 = vpack.c.bf16 %v7033_v19, %v7033_v19 }
 0x288   : > { %v1734_v43 = vpop.permute.xlu1 %1733  ;;  %v1732_v48 = vpop.permute.xlu0 %1731 }
 0x289   : > { %1829 = vst.msk [vmem:[#allocation2 + $0x4] sm:$0xf] %vm1827_vm7, %v1734_v43  ;;  %v1754_v53 = vpop.permute.xlu2 %1753  ;;  %v8867_v43 = vpack.c.bf16 %v7026_v37, %v7026_v37 }
 0x28a   : > { %1828 = vst.msk [vmem:[#allocation2] sm:$0xf] %vm1827_vm7, %v1732_v48 }
 0x28b   : > { %1839 = vst.msk [vmem:[#allocation2 + $0x2c] sm:$0xf] %vm1827_vm7, %v1754_v53  ;;  %v7030_v53 = vld [vmem:[%s7976_s25 + $0xea] sm:$0xff] }
 0x28e   : > { %1986 = vrot.lane.b32.xlu1 %v1908_v50, %s7900_s5  ;;  %1984 = vrot.lane.b32.xlu0 %v1907_v52, %s7900_s5  ;;  %v7028_v50 = vld [vmem:[%s7976_s25 + $0xda] sm:$0xff] }
 0x28f   : > { %1988 = vrot.lane.b32.xlu2 %v8819_v57, %s7900_s5  ;;  %v8871_v52 = vpack.c.bf16 %v7028_v50, %v7028_v50 }
 0x290   : > { %v1740_v2 = vpop.permute.xlu1 %1739  ;;  %v1738_v4 = vpop.permute.xlu0 %1737 }
 0x291   : > { %1832 = vst.msk [vmem:[#allocation2 + $0x10] sm:$0xf] %vm1827_vm7, %v1740_v2  ;;  %v1760_v11 = vpop.permute.xlu2 %1759  ;;  %v8883_v2 = vpack.c.bf16 %v7030_v53, %v7030_v53 }
 0x292   : > { %1831 = vst.msk [vmem:[#allocation2 + $0xc] sm:$0xf] %vm1827_vm7, %v1738_v4  ;;  %v8885_v4 = vpack.c.bf16 %v7029_v56, %v7029_v56 }
 0x293   : > { %1842 = vst.msk [vmem:[#allocation2 + $0x38] sm:$0xf] %vm1827_vm7, %v1760_v11 }
 0x296   : > { %1992 = vrot.lane.b32.xlu1 %v8829_v5, %s7900_s5  ;;  %1990 = vrot.lane.b32.xlu0 %v8831_v6, %s7900_s5 }
 0x297   : > { %1994 = vrot.lane.b32.xlu2 %v8835_v15, %s7900_s5 }
 0x298   : > { %v1746_v20 = vpop.permute.xlu1 %1745  ;;  %v1744_v26 = vpop.permute.xlu0 %1743 }
 0x299   : > { %1835 = vst.msk [vmem:[#allocation2 + $0x1c] sm:$0xf] %vm1827_vm7, %v1746_v20  ;;  %v1766_v30 = vpop.permute.xlu2 %1765  ;;  %v7032_v20 = vld [vmem:[%s7976_s25 + $0xfa] sm:$0xff] }
 0x29a   : > { %1834 = vst.msk [vmem:[#allocation2 + $0x18] sm:$0xf] %vm1827_vm7, %v1744_v26  ;;  %v8903_v35 = vpack.c.bf16 %v7032_v20, %v7032_v20 }
 0x29b   : > { %1845 = vst.msk [vmem:[#allocation2 + $0x44] sm:$0xf] %vm1827_vm7, %v1766_v30 }
 0x29e   : > { %1998 = vrot.lane.b32.xlu1 %v8847_v27, %s7900_s5  ;;  %1996 = vrot.lane.b32.xlu0 %v8849_v29, %s7900_s5 }
 0x29f   : > { %2000 = vrot.lane.b32.xlu2 %v8853_v32, %s7900_s5 }
 0x2a0   : > { %v1752_v39 = vpop.permute.xlu1 %1751  ;;  %v1750_v41 = vpop.permute.xlu0 %1749 }
 0x2a1   : > { %1838 = vst.msk [vmem:[#allocation2 + $0x28] sm:$0xf] %vm1827_vm7, %v1752_v39  ;;  %v1772_v48 = vpop.permute.xlu2 %1771  ;;  %v7034_v39 = vld [vmem:[%s7976_s25 + $0x10a] sm:$0xff] }
 0x2a2   : > { %1837 = vst.msk [vmem:[#allocation2 + $0x24] sm:$0xf] %vm1827_vm7, %v1750_v41  ;;  %v8907_v41 = vpack.c.bf16 %v7034_v39, %v7034_v39  ;;  %v7058_v39 = vld [vmem:[%s7976_s25 + $0x138] sm:$0xff] }
 0x2a3   : > { %1848 = vst.msk [vmem:[#allocation2 + $0x50] sm:$0xf] %vm1827_vm7, %v1772_v48  ;;  %v7035_v48 = vld [vmem:[%s7976_s25 + $0x112] sm:$0xff] }
 0x2a4   : > { %v8918_v56 = vpack.c.bf16 %v7035_v48, %v7035_v48 }
 0x2a6   : > { %2004 = vrot.lane.b32.xlu1 %v8865_v42, %s7900_s5  ;;  %2002 = vrot.lane.b32.xlu0 %v8867_v43, %s7900_s5 }
 0x2a7   : > { %2006 = vrot.lane.b32.xlu2 %v8871_v52, %s7900_s5 }
 0x2a8   : > { %v1758_v61 = vpop.permute.xlu1 %1757  ;;  %v1756_v62 = vpop.permute.xlu0 %1755 }
 0x2a9   : > { %1841 = vst.msk [vmem:[#allocation2 + $0x34] sm:$0xf] %vm1827_vm7, %v1758_v61  ;;  %v1778_v11 = vpop.permute.xlu2 %1777 }
 0x2aa   : > { %1840 = vst.msk [vmem:[#allocation2 + $0x30] sm:$0xf] %vm1827_vm7, %v1756_v62 }
 0x2ab   : > { %1851 = vst.msk [vmem:[#allocation2 + $0x5c] sm:$0xf] %vm1827_vm7, %v1778_v11 }
 0x2ae   : > { %2010 = vrot.lane.b32.xlu1 %v8883_v2, %s7900_s5  ;;  %2008 = vrot.lane.b32.xlu0 %v8885_v4, %s7900_s5 }
 0x2af   : > { %2012 = vrot.lane.b32.xlu2 %v8889_v16, %s7900_s5 }
 0x2b0   : > { %v1764_v26 = vpop.permute.xlu1 %1763  ;;  %v1762_v30 = vpop.permute.xlu0 %1761 }
 0x2b1   : > { %1844 = vst.msk [vmem:[#allocation2 + $0x40] sm:$0xf] %vm1827_vm7, %v1764_v26  ;;  %v1784_v37 = vpop.permute.xlu2 %1783 }
 0x2b2   : > { %1843 = vst.msk [vmem:[#allocation2 + $0x3c] sm:$0xf] %vm1827_vm7, %v1762_v30 }
 0x2b3   : > { %1854 = vst.msk [vmem:[#allocation2 + $0x68] sm:$0xf] %vm1827_vm7, %v1784_v37 }
 0x2b6   : > { %2016 = vrot.lane.b32.xlu1 %v8901_v31, %s7900_s5  ;;  %2014 = vrot.lane.b32.xlu0 %v8903_v35, %s7900_s5 }
 0x2b7   : > { %2018 = vrot.lane.b32.xlu2 %v8907_v41, %s7900_s5 }
 0x2b8   : > { %v1770_v50 = vpop.permute.xlu1 %1769  ;;  %v1768_v53 = vpop.permute.xlu0 %1767 }
 0x2b9   : > { %1847 = vst.msk [vmem:[#allocation2 + $0x4c] sm:$0xf] %vm1827_vm7, %v1770_v50  ;;  %v1790_v61 = vpop.permute.xlu2 %1789 }
 0x2ba   : > { %1846 = vst.msk [vmem:[#allocation2 + $0x48] sm:$0xf] %vm1827_vm7, %v1768_v53  ;;  %v2142_v53 = vpack.c.bf16 %v7058_v39, %v7058_v39 }
 0x2bb   : > { %1857 = vst.msk [vmem:[#allocation2 + $0x74] sm:$0xf] %vm1827_vm7, %v1790_v61 }
 0x2be   : > { %2185 = vrot.lane.b32.xlu1 %v8526_v36, %s7901_s6  ;;  %2020 = vrot.lane.b32.xlu0 %v8918_v56, %s7900_s5 }
 0x2bf   : > { %2187 = vrot.lane.b32.xlu2 %v8530_v40, %s7901_s6 }
 0x2c0   : > { %v1776_v62 = vpop.permute.xlu1 %1775  ;;  %v1774_v11 = vpop.permute.xlu0 %1773 }
 0x2c1   : > { %1850 = vst.msk [vmem:[#allocation2 + $0x58] sm:$0xf] %vm1827_vm7, %v1776_v62  ;;  %v1959_v13 = vpop.permute.xlu2 %1958 }
 0x2c2   : > { %1849 = vst.msk [vmem:[#allocation2 + $0x54] sm:$0xf] %vm1827_vm7, %v1774_v11  ;;  %v7059_v11 = vld [vmem:[%s7976_s25 + $0x140] sm:$0xff] }
 0x2c3   : > { %2055 = vst.msk [vmem:[#allocation2] sm:$0xf] %vm2054_vm8, %v1959_v13  ;;  %v2143_v13 = vpack.c.bf16 %v7059_v11, %v7059_v11 }
 0x2c6   : > { %2191 = vrot.lane.b32.xlu1 %v8541_v45, %s7901_s6  ;;  %2189 = vrot.lane.b32.xlu0 %v8543_v46, %s7901_s6 }
 0x2c7   : > { %2193 = vrot.lane.b32.xlu2 %v8547_v49, %s7901_s6 }
 0x2c8   : > { %v1782_v36 = vpop.permute.xlu1 %1781  ;;  %v1780_v19 = vpop.permute.xlu0 %1779 }
 0x2c9   : > { %1853 = vst.msk [vmem:[#allocation2 + $0x64] sm:$0xf] %vm1827_vm7, %v1782_v36  ;;  %v1965_v40 = vpop.permute.xlu2 %1964  ;;  %v7061_v36 = vld [vmem:[%s7976_s25 + $0x150] sm:$0xff] }
 0x2ca   : > { %1852 = vst.msk [vmem:[#allocation2 + $0x60] sm:$0xf] %vm1827_vm7, %v1780_v19  ;;  %v7060_v19 = vld [vmem:[%s7976_s25 + $0x148] sm:$0xff] }
 0x2cb   : > { %2058 = vst.msk [vmem:[#allocation2 + $0xc] sm:$0xf] %vm2054_vm8, %v1965_v40 }
 0x2ce   : > { %2197 = vrot.lane.b32.xlu1 %v8559_v54, %s7901_s6  ;;  %2195 = vrot.lane.b32.xlu0 %v8561_v55, %s7901_s6 }
 0x2cf   : > { %2199 = vrot.lane.b32.xlu2 %v8565_v58, %s7901_s6 }
 0x2d0   : > { %v1788_v45 = vpop.permute.xlu1 %1787  ;;  %v1786_v46 = vpop.permute.xlu0 %1785 }
 0x2d1   : > { %1856 = vst.msk [vmem:[#allocation2 + $0x70] sm:$0xf] %vm1827_vm7, %v1788_v45  ;;  %v1971_v49 = vpop.permute.xlu2 %1970 }
 0x2d2   : > { %1855 = vst.msk [vmem:[#allocation2 + $0x6c] sm:$0xf] %vm1827_vm7, %v1786_v46  ;;  %v2145_v46 = vpack.c.bf16 %v7061_v36, %v7061_v36 }
 0x2d3   : > { %2061 = vst.msk [vmem:[#allocation2 + $0x18] sm:$0xf] %vm2054_vm8, %v1971_v49  ;;  %v2144_v49 = vpack.c.bf16 %v7060_v19, %v7060_v19 }
 0x2d6   : > { %2203 = vrot.lane.b32.xlu1 %v8577_v63, %s7901_s6  ;;  %2201 = vrot.lane.b32.xlu0 %v8579_v0, %s7901_s6 }
 0x2d7   : > { %2205 = vrot.lane.b32.xlu2 %v8583_v3, %s7901_s6 }
 0x2d8   : > { %v1794_v54 = vpop.permute.xlu1 %1793  ;;  %v1792_v55 = vpop.permute.xlu0 %1791 }
 0x2d9   : > { %1859 = vst.msk [vmem:[#allocation2 + $0x7c] sm:$0xf] %vm1827_vm7, %v1794_v54  ;;  %v1977_v58 = vpop.permute.xlu2 %1976 }
 0x2da   : > { %1858 = vst.msk [vmem:[#allocation2 + $0x78] sm:$0xf] %vm1827_vm7, %v1792_v55  ;;  %v7062_v55 = vld [vmem:[%s7976_s25 + $0x158] sm:$0xff]  ;;  %vm5459_vm7 = vcmask 782048  }
 0x2db   : > { %2064 = vst.msk [vmem:[#allocation2 + $0x24] sm:$0xf] %vm2054_vm8, %v1977_v58  ;;  %v2146_v58 = vpack.c.bf16 %v7062_v55, %v7062_v55 }
 0x2de   : > { %2209 = vrot.lane.b32.xlu1 %v8595_v8, %s7901_s6  ;;  %2207 = vrot.lane.b32.xlu0 %v8597_v9, %s7901_s6  ;;  %v7055_v8 = vld [vmem:[%s7976_s25 + $0x120] sm:$0xff]  ;;  %v7054_v9 = vld [vmem:[%s7976_s25 + $0x118] sm:$0xff] }
 0x2df   : > { %2211 = vrot.lane.b32.xlu2 %v8601_v12, %s7901_s6  ;;  %v2139_v26 = vpack.c.bf16 %v7055_v8, %v7055_v8  ;;  %v2138_v30 = vpack.c.bf16 %v7054_v9, %v7054_v9 }
 0x2e0   : > { %v1963_v63 = vpop.permute.xlu1 %1962  ;;  %v1961_v0 = vpop.permute.xlu0 %1960 }
 0x2e1   : > { %2057 = vst.msk [vmem:[#allocation2 + $0x8] sm:$0xf] %vm2054_vm8, %v1963_v63  ;;  %v1983_v3 = vpop.permute.xlu2 %1982  ;;  %v7064_v63 = vld [vmem:[%s7976_s25 + $0x168] sm:$0xff] }
 0x2e2   : > { %2056 = vst.msk [vmem:[#allocation2 + $0x4] sm:$0xf] %vm2054_vm8, %v1961_v0  ;;  %v7063_v0 = vld [vmem:[%s7976_s25 + $0x160] sm:$0xff]  ;;  %v2148_v9 = vpack.c.bf16 %v7064_v63, %v7064_v63 }
 0x2e3   : > { %2067 = vst.msk [vmem:[#allocation2 + $0x30] sm:$0xf] %vm2054_vm8, %v1983_v3  ;;  %v7092_v63 = vld [vmem:[%s7976_s25 + $0x141] sm:$0xff] }
 0x2e6   : > { %2215 = vrot.lane.b32.xlu1 %v8613_v17, %s7901_s6  ;;  %2213 = vrot.lane.b32.xlu0 %v8615_v18, %s7901_s6  ;;  %v7056_v17 = vld [vmem:[%s7976_s25 + $0x128] sm:$0xff] }
 0x2e7   : > { %2217 = vrot.lane.b32.xlu2 %v8619_v21, %s7901_s6  ;;  %v2140_v18 = vpack.c.bf16 %v7056_v17, %v7056_v17  ;;  %v7057_v21 = vld [vmem:[%s7976_s25 + $0x130] sm:$0xff]  ;;  %v7066_v17 = vld [vmem:[%s7976_s25 + $0x178] sm:$0xff] }
 0x2e8   : > { %v1969_v20 = vpop.permute.xlu1 %1968  ;;  %v1967_v12 = vpop.permute.xlu0 %1966  ;;  %v2141_v61 = vpack.c.bf16 %v7057_v21, %v7057_v21 }
 0x2e9   : > { %2060 = vst.msk [vmem:[#allocation2 + $0x14] sm:$0xf] %vm2054_vm8, %v1969_v20  ;;  %v1989_v37 = vpop.permute.xlu2 %1988  ;;  %v2147_v20 = vpack.c.bf16 %v7063_v0, %v7063_v0  ;;  %v7091_v0 = vld [vmem:[%s7976_s25 + $0x139] sm:$0xff] }
 0x2ea   : > { %2059 = vst.msk [vmem:[#allocation2 + $0x10] sm:$0xf] %vm2054_vm8, %v1967_v12 }
 0x2eb   : > { %2070 = vst.msk [vmem:[#allocation2 + $0x3c] sm:$0xf] %vm2054_vm8, %v1989_v37  ;;  %v7067_v37 = vld [vmem:[%s7976_s25 + $0x180] sm:$0xff] }
 0x2ec   : > { %v2151_v21 = vpack.c.bf16 %v7067_v37, %v7067_v37  ;;  %v7095_v37 = vld [vmem:[%s7976_s25 + $0x159] sm:$0xff] }
 0x2ee   : > { %2221 = vrot.lane.b32.xlu1 %v2139_v26, %s7901_s6  ;;  %2219 = vrot.lane.b32.xlu0 %v2138_v30, %s7901_s6  ;;  %v7065_v26 = vld [vmem:[%s7976_s25 + $0x170] sm:$0xff] }
 0x2ef   : > { %2223 = vrot.lane.b32.xlu2 %v2140_v18, %s7901_s6  ;;  %v2149_v30 = vpack.c.bf16 %v7065_v26, %v7065_v26  ;;  %v7093_v26 = vld [vmem:[%s7976_s25 + $0x149] sm:$0xff] }
 0x2f0   : > { %v1975_v48 = vpop.permute.xlu1 %1974  ;;  %v1973_v50 = vpop.permute.xlu0 %1972 }
 0x2f1   : > { %2063 = vst.msk [vmem:[#allocation2 + $0x20] sm:$0xf] %vm2054_vm8, %v1975_v48  ;;  %v1995_v62 = vpop.permute.xlu2 %1994  ;;  %v2150_v48 = vpack.c.bf16 %v7066_v17, %v7066_v17  ;;  %v7094_v17 = vld [vmem:[%s7976_s25 + $0x151] sm:$0xff] }
 0x2f2   : > { %2062 = vst.msk [vmem:[#allocation2 + $0x1c] sm:$0xf] %vm2054_vm8, %v1973_v50 }
 0x2f3   : > { %2073 = vst.msk [vmem:[#allocation2 + $0x48] sm:$0xf] %vm2054_vm8, %v1995_v62 }
 0x2f6   : > { %2227 = vrot.lane.b32.xlu1 %v2142_v53, %s7901_s6  ;;  %2225 = vrot.lane.b32.xlu0 %v2141_v61, %s7901_s6  ;;  %v7068_v53 = vld [vmem:[%s7976_s25 + $0x188] sm:$0xff] }
 0x2f7   : > { %2229 = vrot.lane.b32.xlu2 %v2143_v13, %s7901_s6  ;;  %v2152_v61 = vpack.c.bf16 %v7068_v53, %v7068_v53  ;;  %v7096_v53 = vld [vmem:[%s7976_s25 + $0x161] sm:$0xff] }
 0x2f8   : > { %v1981_v40 = vpop.permute.xlu1 %1980  ;;  %v1979_v45 = vpop.permute.xlu0 %1978 }
 0x2f9   : > { %2066 = vst.msk [vmem:[#allocation2 + $0x2c] sm:$0xf] %vm2054_vm8, %v1981_v40  ;;  %v2001_v54 = vpop.permute.xlu2 %2000 }
 0x2fa   : > { %2065 = vst.msk [vmem:[#allocation2 + $0x28] sm:$0xf] %vm2054_vm8, %v1979_v45  ;;  %v7087_v45 = vld [vmem:[%s7976_s25 + $0x119] sm:$0xff] }
 0x2fb   : > { %2076 = vst.msk [vmem:[#allocation2 + $0x54] sm:$0xf] %vm2054_vm8, %v2001_v54 }
 0x2fe   : > { %2233 = vrot.lane.b32.xlu1 %v2145_v46, %s7901_s6  ;;  %2231 = vrot.lane.b32.xlu0 %v2144_v49, %s7901_s6  ;;  %v2365_v46 = vpack.c.bf16 %v7087_v45, %v7087_v45 }
 0x2ff   : > { %2235 = vrot.lane.b32.xlu2 %v2146_v58, %s7901_s6 }
 0x300   : > { %v1987_v3 = vpop.permute.xlu1 %1986  ;;  %v1985_v8 = vpop.permute.xlu0 %1984 }
 0x301   : > { %2069 = vst.msk [vmem:[#allocation2 + $0x38] sm:$0xf] %vm2054_vm8, %v1987_v3  ;;  %v2007_v12 = vpop.permute.xlu2 %2006 }
 0x302   : > { %2068 = vst.msk [vmem:[#allocation2 + $0x34] sm:$0xf] %vm2054_vm8, %v1985_v8 }
 0x303   : > { %2079 = vst.msk [vmem:[#allocation2 + $0x60] sm:$0xf] %vm2054_vm8, %v2007_v12 }
 0x306   : > { %2239 = vrot.lane.b32.xlu1 %v2148_v9, %s7901_s6  ;;  %2237 = vrot.lane.b32.xlu0 %v2147_v20, %s7901_s6  ;;  %v2370_v9 = vpack.c.bf16 %v7092_v63, %v7092_v63  ;;  %v2369_v20 = vpack.c.bf16 %v7091_v0, %v7091_v0  ;;  %v7124_v63 = vld [vmem:[%s7976_s25 + $0x13a] sm:$0xff]  ;;  %v7126_v0 = vld [vmem:[%s7976_s25 + $0x14a] sm:$0xff] }
 0x307   : > { %2241 = vrot.lane.b32.xlu2 %v2149_v30, %s7901_s6  ;;  %v2371_v30 = vpack.c.bf16 %v7093_v26, %v7093_v26 }
 0x308   : > { %v1993_v18 = vpop.permute.xlu1 %1992  ;;  %v1991_v39 = vpop.permute.xlu0 %1990 }
 0x309   : > { %2072 = vst.msk [vmem:[#allocation2 + $0x44] sm:$0xf] %vm2054_vm8, %v1993_v18  ;;  %v2013_v50 = vpop.permute.xlu2 %2012 }
 0x30a   : > { %2071 = vst.msk [vmem:[#allocation2 + $0x40] sm:$0xf] %vm2054_vm8, %v1991_v39 }
 0x30b   : > { %2082 = vst.msk [vmem:[#allocation2 + $0x6c] sm:$0xf] %vm2054_vm8, %v2013_v50 }
 0x30e   : > { %2245 = vrot.lane.b32.xlu1 %v2151_v21, %s7901_s6  ;;  %2243 = vrot.lane.b32.xlu0 %v2150_v48, %s7901_s6  ;;  %v2373_v21 = vpack.c.bf16 %v7095_v37, %v7095_v37  ;;  %v2372_v48 = vpack.c.bf16 %v7094_v17, %v7094_v17  ;;  %v7129_v17 = vld [vmem:[%s7976_s25 + $0x162] sm:$0xff] }
 0x30f   : > { %2247 = vrot.lane.b32.xlu2 %v2152_v61, %s7901_s6  ;;  %v2374_v61 = vpack.c.bf16 %v7096_v53, %v7096_v53 }
 0x310   : > { %v1999_v62 = vpop.permute.xlu1 %1998  ;;  %v1997_v11 = vpop.permute.xlu0 %1996 }
 0x311   : > { %2075 = vst.msk [vmem:[#allocation2 + $0x50] sm:$0xf] %vm2054_vm8, %v1999_v62  ;;  %v2019_v13 = vpop.permute.xlu2 %2018  ;;  %v7098_v62 = vld [vmem:[%s7976_s25 + $0x171] sm:$0xff] }
 0x312   : > { %2074 = vst.msk [vmem:[#allocation2 + $0x4c] sm:$0xf] %vm2054_vm8, %v1997_v11  ;;  %v7097_v11 = vld [vmem:[%s7976_s25 + $0x169] sm:$0xff] }
 0x313   : > { %2085 = vst.msk [vmem:[#allocation2 + $0x78] sm:$0xf] %vm2054_vm8, %v2019_v13 }
 0x316   : > { %2414 = vrot.lane.b32.xlu1 %v8676_v24, %s7902_s7  ;;  %2412 = vrot.lane.b32.xlu0 %v8678_v25, %s7902_s7 }
 0x317   : > { %2416 = vrot.lane.b32.xlu2 %v8682_v28, %s7902_s7 }
 0x318   : > { %v2005_v36 = vpop.permute.xlu1 %2004  ;;  %v2003_v19 = vpop.permute.xlu0 %2002 }
 0x319   : > { %2078 = vst.msk [vmem:[#allocation2 + $0x5c] sm:$0xf] %vm2054_vm8, %v2005_v36  ;;  %v2188_v40 = vpop.permute.xlu2 %2187 }
 0x31a   : > { %2077 = vst.msk [vmem:[#allocation2 + $0x58] sm:$0xf] %vm2054_vm8, %v2003_v19  ;;  %v2376_v19 = vpack.c.bf16 %v7098_v62, %v7098_v62 }
 0x31b   : > { %2283 = vst.msk [vmem:[#allocation2 + $0x4] sm:$0xf] %vm2281_vm9, %v2188_v40  ;;  %v2375_v40 = vpack.c.bf16 %v7097_v11, %v7097_v11  ;;  %v7132_v11 = vld [vmem:[%s7976_s25 + $0x17a] sm:$0xff] }
 0x31e   : > { %2420 = vrot.lane.b32.xlu1 %v8694_v33, %s7902_s7  ;;  %2418 = vrot.lane.b32.xlu0 %v8696_v34, %s7902_s7 }
 0x31f   : > { %2422 = vrot.lane.b32.xlu2 %v8700_v38, %s7902_s7 }
 0x320   : > { %v2011_v24 = vpop.permute.xlu1 %2010  ;;  %v2009_v25 = vpop.permute.xlu0 %2008 }
 0x321   : > { %2081 = vst.msk [vmem:[#allocation2 + $0x68] sm:$0xf] %vm2054_vm8, %v2011_v24  ;;  %v2194_v28 = vpop.permute.xlu2 %2193 }
 0x322   : > { %2080 = vst.msk [vmem:[#allocation2 + $0x64] sm:$0xf] %vm2054_vm8, %v2009_v25  ;;  %v7099_v25 = vld [vmem:[%s7976_s25 + $0x179] sm:$0xff] }
 0x323   : > { %2286 = vst.msk [vmem:[#allocation2 + $0x10] sm:$0xf] %vm2281_vm9, %v2194_v28  ;;  %v2377_v28 = vpack.c.bf16 %v7099_v25, %v7099_v25 }
 0x326   : > { %2426 = vrot.lane.b32.xlu1 %v8712_v44, %s7902_s7  ;;  %2424 = vrot.lane.b32.xlu0 %v8714_v47, %s7902_s7 }
 0x327   : > { %2428 = vrot.lane.b32.xlu2 %v8718_v51, %s7902_s7 }
 0x328   : > { %v2017_v33 = vpop.permute.xlu1 %2016  ;;  %v2015_v34 = vpop.permute.xlu0 %2014 }
 0x329   : > { %2084 = vst.msk [vmem:[#allocation2 + $0x74] sm:$0xf] %vm2054_vm8, %v2017_v33  ;;  %v2200_v38 = vpop.permute.xlu2 %2199  ;;  %v7101_v33 = vld [vmem:[%s7976_s25 + $0x189] sm:$0xff] }
 0x32a   : > { %2083 = vst.msk [vmem:[#allocation2 + $0x70] sm:$0xf] %vm2054_vm8, %v2015_v34  ;;  %v7100_v34 = vld [vmem:[%s7976_s25 + $0x181] sm:$0xff] }
 0x32b   : > { %2289 = vst.msk [vmem:[#allocation2 + $0x1c] sm:$0xf] %vm2281_vm9, %v2200_v38 }
 0x32e   : > { %2432 = vrot.lane.b32.xlu1 %v8730_v59, %s7902_s7  ;;  %2430 = vrot.lane.b32.xlu0 %v8732_v60, %s7902_s7 }
 0x32f   : > { %2434 = vrot.lane.b32.xlu2 %v8736_v1, %s7902_s7 }
 0x330   : > { %v2186_v44 = vpop.permute.xlu1 %2185  ;;  %v2021_v47 = vpop.permute.xlu0 %2020 }
 0x331   : > { %2282 = vst.msk [vmem:[#allocation2] sm:$0xf] %vm2281_vm9, %v2186_v44  ;;  %v2206_v51 = vpop.permute.xlu2 %2205 }
 0x332   : > { %2086 = vst.msk [vmem:[#allocation2 + $0x7c] sm:$0xf] %vm2054_vm8, %v2021_v47  ;;  %v2379_v47 = vpack.c.bf16 %v7101_v33, %v7101_v33  ;;  %vm6389_vm8 = vcmask 1045504  }
 0x333   : > { %2292 = vst.msk [vmem:[#allocation2 + $0x28] sm:$0xf] %vm2281_vm9, %v2206_v51  ;;  %v2378_v51 = vpack.c.bf16 %v7100_v34, %v7100_v34  ;;  %v7136_v34 = vld [vmem:[%s7976_s25 + $0x9c] sm:$0xff] }
 0x336   : > { %2438 = vrot.lane.b32.xlu1 %v8748_v7, %s7902_s7  ;;  %2436 = vrot.lane.b32.xlu0 %v8750_v10, %s7902_s7  ;;  %v7089_v7 = vld [vmem:[%s7976_s25 + $0x129] sm:$0xff]  ;;  %v7088_v10 = vld [vmem:[%s7976_s25 + $0x121] sm:$0xff] }
 0x337   : > { %2440 = vrot.lane.b32.xlu2 %v8754_v14, %s7902_s7  ;;  %v2367_v54 = vpack.c.bf16 %v7089_v7, %v7089_v7  ;;  %v2366_v55 = vpack.c.bf16 %v7088_v10, %v7088_v10 }
 0x338   : > { %v2192_v59 = vpop.permute.xlu1 %2191  ;;  %v2190_v60 = vpop.permute.xlu0 %2189 }
 0x339   : > { %2285 = vst.msk [vmem:[#allocation2 + $0xc] sm:$0xf] %vm2281_vm9, %v2192_v59  ;;  %v2212_v1 = vpop.permute.xlu2 %2211 }
 0x33a   : > { %2284 = vst.msk [vmem:[#allocation2 + $0x8] sm:$0xf] %vm2281_vm9, %v2190_v60 }
 0x33b   : > { %2295 = vst.msk [vmem:[#allocation2 + $0x34] sm:$0xf] %vm2281_vm9, %v2212_v1 }
 0x33e   : > { %2444 = vrot.lane.b32.xlu1 %v8766_v22, %s7902_s7  ;;  %2442 = vrot.lane.b32.xlu0 %v8768_v23, %s7902_s7  ;;  %v7090_v22 = vld [vmem:[%s7976_s25 + $0x131] sm:$0xff] }
 0x33f   : > { %2446 = vrot.lane.b32.xlu2 %v2365_v46, %s7902_s7  ;;  %v2368_v23 = vpack.c.bf16 %v7090_v22, %v7090_v22 }
 0x340   : > { %v2198_v14 = vpop.permute.xlu1 %2197  ;;  %v2196_v49 = vpop.permute.xlu0 %2195 }
 0x341   : > { %2288 = vst.msk [vmem:[#allocation2 + $0x18] sm:$0xf] %vm2281_vm9, %v2198_v14  ;;  %v2218_v58 = vpop.permute.xlu2 %2217 }
 0x342   : > { %2287 = vst.msk [vmem:[#allocation2 + $0x14] sm:$0xf] %vm2281_vm9, %v2196_v49  ;;  %v7121_v49 = vld [vmem:[%s7976_s25 + $0x122] sm:$0xff] }
 0x343   : > { %2298 = vst.msk [vmem:[#allocation2 + $0x40] sm:$0xf] %vm2281_vm9, %v2218_v58 }
 0x346   : > { %2450 = vrot.lane.b32.xlu1 %v2367_v54, %s7902_s7  ;;  %2448 = vrot.lane.b32.xlu0 %v2366_v55, %s7902_s7 }
 0x347   : > { %2452 = vrot.lane.b32.xlu2 %v2368_v23, %s7902_s7 }
 0x348   : > { %v2204_v3 = vpop.permute.xlu1 %2203  ;;  %v2202_v8 = vpop.permute.xlu0 %2201 }
 0x349   : > { %2291 = vst.msk [vmem:[#allocation2 + $0x24] sm:$0xf] %vm2281_vm9, %v2204_v3  ;;  %v2224_v12 = vpop.permute.xlu2 %2223  ;;  %v7125_v3 = vld [vmem:[%s7976_s25 + $0x142] sm:$0xff] }
 0x34a   : > { %2290 = vst.msk [vmem:[#allocation2 + $0x20] sm:$0xf] %vm2281_vm9, %v2202_v8 }
 0x34b   : > { %2301 = vst.msk [vmem:[#allocation2 + $0x4c] sm:$0xf] %vm2281_vm9, %v2224_v12  ;;  %v2597_v12 = vpack.c.bf16 %v7125_v3, %v7125_v3 }
 0x34e   : > { %2456 = vrot.lane.b32.xlu1 %v2370_v9, %s7902_s7  ;;  %2454 = vrot.lane.b32.xlu0 %v2369_v20, %s7902_s7  ;;  %v2598_v20 = vpack.c.bf16 %v7126_v0, %v7126_v0  ;;  %v7147_v0 = vld [vmem:[%s7976_s25 + $0xf4] sm:$0xff] }
 0x34f   : > { %2458 = vrot.lane.b32.xlu2 %v2371_v30, %s7902_s7  ;;  %v7127_v30 = vld [vmem:[%s7976_s25 + $0x152] sm:$0xff] }
 0x350   : > { %v2210_v18 = vpop.permute.xlu1 %2209  ;;  %v2208_v39 = vpop.permute.xlu0 %2207  ;;  %v2599_v37 = vpack.c.bf16 %v7127_v30, %v7127_v30 }
 0x351   : > { %2294 = vst.msk [vmem:[#allocation2 + $0x30] sm:$0xf] %vm2281_vm9, %v2210_v18  ;;  %v2230_v50 = vpop.permute.xlu2 %2229  ;;  %v7128_v18 = vld [vmem:[%s7976_s25 + $0x15a] sm:$0xff] }
 0x352   : > { %2293 = vst.msk [vmem:[#allocation2 + $0x2c] sm:$0xf] %vm2281_vm9, %v2208_v39 }
 0x353   : > { %2304 = vst.msk [vmem:[#allocation2 + $0x58] sm:$0xf] %vm2281_vm9, %v2230_v50  ;;  %v2600_v50 = vpack.c.bf16 %v7128_v18, %v7128_v18 }
 0x356   : > { %2462 = vrot.lane.b32.xlu1 %v2373_v21, %s7902_s7  ;;  %2460 = vrot.lane.b32.xlu0 %v2372_v48, %s7902_s7  ;;  %v2601_v48 = vpack.c.bf16 %v7129_v17, %v7129_v17  ;;  %v7150_v17 = vld [vmem:[%s7976_s25 + $0x10c] sm:$0xff] }
 0x357   : > { %2464 = vrot.lane.b32.xlu2 %v2374_v61, %s7902_s7  ;;  %v7130_v61 = vld [vmem:[%s7976_s25 + $0x16a] sm:$0xff] }
 0x358   : > { %v2216_v13 = vpop.permute.xlu1 %2215  ;;  %v2214_v36 = vpop.permute.xlu0 %2213  ;;  %v2602_v62 = vpack.c.bf16 %v7130_v61, %v7130_v61 }
 0x359   : > { %2297 = vst.msk [vmem:[#allocation2 + $0x3c] sm:$0xf] %vm2281_vm9, %v2216_v13  ;;  %v2236_v24 = vpop.permute.xlu2 %2235  ;;  %v7131_v13 = vld [vmem:[%s7976_s25 + $0x172] sm:$0xff] }
 0x35a   : > { %2296 = vst.msk [vmem:[#allocation2 + $0x38] sm:$0xf] %vm2281_vm9, %v2214_v36 }
 0x35b   : > { %2307 = vst.msk [vmem:[#allocation2 + $0x64] sm:$0xf] %vm2281_vm9, %v2236_v24  ;;  %v2603_v24 = vpack.c.bf16 %v7131_v13, %v7131_v13 }
 0x35e   : > { %2468 = vrot.lane.b32.xlu1 %v2376_v19, %s7902_s7  ;;  %2466 = vrot.lane.b32.xlu0 %v2375_v40, %s7902_s7  ;;  %v2604_v40 = vpack.c.bf16 %v7132_v11, %v7132_v11  ;;  %v7153_v11 = vld [vmem:[%s7976_s25 + $0x124] sm:$0xff] }
 0x35f   : > { %2470 = vrot.lane.b32.xlu2 %v2377_v28, %s7902_s7  ;;  %v7133_v28 = vld [vmem:[%s7976_s25 + $0x182] sm:$0xff] }
 0x360   : > { %v2222_v38 = vpop.permute.xlu1 %2221  ;;  %v2220_v44 = vpop.permute.xlu0 %2219  ;;  %v2605_v33 = vpack.c.bf16 %v7133_v28, %v7133_v28 }
 0x361   : > { %2300 = vst.msk [vmem:[#allocation2 + $0x48] sm:$0xf] %vm2281_vm9, %v2222_v38  ;;  %v2242_v59 = vpop.permute.xlu2 %2241  ;;  %v7134_v38 = vld [vmem:[%s7976_s25 + $0x18a] sm:$0xff] }
 0x362   : > { %2299 = vst.msk [vmem:[#allocation2 + $0x44] sm:$0xf] %vm2281_vm9, %v2220_v44 }
 0x363   : > { %2310 = vst.msk [vmem:[#allocation2 + $0x70] sm:$0xf] %vm2281_vm9, %v2242_v59  ;;  %v2606_v59 = vpack.c.bf16 %v7134_v38, %v7134_v38 }
 0x366   : > { %2474 = vrot.lane.b32.xlu1 %v2379_v47, %s7902_s7  ;;  %2472 = vrot.lane.b32.xlu0 %v2378_v51, %s7902_s7  ;;  %v2802_v51 = vpack.c.bf16 %v7136_v34, %v7136_v34  ;;  %v7156_v34 = vld [vmem:[%s7976_s25 + $0x13c] sm:$0xff] }
 0x367   : > { %2639 = vrot.lane.b32.xlu2 %v8819_v57, %s7903_s8 }
 0x368   : > { %v2228_v60 = vpop.permute.xlu1 %2227  ;;  %v2226_v1 = vpop.permute.xlu0 %2225 }
 0x369   : > { %2303 = vst.msk [vmem:[#allocation2 + $0x54] sm:$0xf] %vm2281_vm9, %v2228_v60  ;;  %v2248_v45 = vpop.permute.xlu2 %2247 }
 0x36a   : > { %2302 = vst.msk [vmem:[#allocation2 + $0x50] sm:$0xf] %vm2281_vm9, %v2226_v1  ;;  %v7137_v1 = vld [vmem:[%s7976_s25 + $0xa4] sm:$0xff] }
 0x36b   : > { %2313 = vst.msk [vmem:[#allocation2 + $0x7c] sm:$0xf] %vm2281_vm9, %v2248_v45  ;;  %v2803_v45 = vpack.c.bf16 %v7137_v1, %v7137_v1 }
 0x36e   : > { %2643 = vrot.lane.b32.xlu1 %v8829_v5, %s7903_s8  ;;  %2641 = vrot.lane.b32.xlu0 %v8831_v6, %s7903_s8 }
 0x36f   : > { %2645 = vrot.lane.b32.xlu2 %v8835_v15, %s7903_s8 }
 0x370   : > { %v2234_v46 = vpop.permute.xlu1 %2233  ;;  %v2232_v7 = vpop.permute.xlu0 %2231 }
 0x371   : > { %2306 = vst.msk [vmem:[#allocation2 + $0x60] sm:$0xf] %vm2281_vm9, %v2234_v46  ;;  %v2417_v57 = vpop.permute.xlu2 %2416  ;;  %v7139_v46 = vld [vmem:[%s7976_s25 + $0xb4] sm:$0xff] }
 0x372   : > { %2305 = vst.msk [vmem:[#allocation2 + $0x5c] sm:$0xf] %vm2281_vm9, %v2232_v7  ;;  %v7138_v7 = vld [vmem:[%s7976_s25 + $0xac] sm:$0xff] }
 0x373   : > { %2511 = vst.msk [vmem:[#allocation2 + $0x8] sm:$0xf] %vm2508_vm10, %v2417_v57 }
 0x376   : > { %2649 = vrot.lane.b32.xlu1 %v8847_v27, %s7903_s8  ;;  %2647 = vrot.lane.b32.xlu0 %v8849_v29, %s7903_s8 }
 0x377   : > { %2651 = vrot.lane.b32.xlu2 %v8853_v32, %s7903_s8 }
 0x378   : > { %v2240_v5 = vpop.permute.xlu1 %2239  ;;  %v2238_v6 = vpop.permute.xlu0 %2237 }
 0x379   : > { %2309 = vst.msk [vmem:[#allocation2 + $0x6c] sm:$0xf] %vm2281_vm9, %v2240_v5  ;;  %v2423_v15 = vpop.permute.xlu2 %2422 }
 0x37a   : > { %2308 = vst.msk [vmem:[#allocation2 + $0x68] sm:$0xf] %vm2281_vm9, %v2238_v6  ;;  %v2805_v6 = vpack.c.bf16 %v7139_v46, %v7139_v46  ;;  %v7159_v46 = vld [vmem:[%s7976_s25 + $0x154] sm:$0xff] }
 0x37b   : > { %2514 = vst.msk [vmem:[#allocation2 + $0x14] sm:$0xf] %vm2508_vm10, %v2423_v15  ;;  %v2804_v15 = vpack.c.bf16 %v7138_v7, %v7138_v7 }
 0x37e   : > { %2655 = vrot.lane.b32.xlu1 %v8865_v42, %s7903_s8  ;;  %2653 = vrot.lane.b32.xlu0 %v8867_v43, %s7903_s8 }
 0x37f   : > { %2657 = vrot.lane.b32.xlu2 %v8871_v52, %s7903_s8 }
 0x380   : > { %v2246_v27 = vpop.permute.xlu1 %2245  ;;  %v2244_v29 = vpop.permute.xlu0 %2243 }
 0x381   : > { %2312 = vst.msk [vmem:[#allocation2 + $0x78] sm:$0xf] %vm2281_vm9, %v2246_v27  ;;  %v2429_v32 = vpop.permute.xlu2 %2428 }
 0x382   : > { %2311 = vst.msk [vmem:[#allocation2 + $0x74] sm:$0xf] %vm2281_vm9, %v2244_v29  ;;  %v7140_v29 = vld [vmem:[%s7976_s25 + $0xbc] sm:$0xff]  ;;  %vm5686_vm9 = vcmask 814848  }
 0x383   : > { %2517 = vst.msk [vmem:[#allocation2 + $0x20] sm:$0xf] %vm2508_vm10, %v2429_v32  ;;  %v2806_v32 = vpack.c.bf16 %v7140_v29, %v7140_v29 }
 0x386   : > { %2661 = vrot.lane.b32.xlu1 %v8883_v2, %s7903_s8  ;;  %2659 = vrot.lane.b32.xlu0 %v8885_v4, %s7903_s8  ;;  %v7120_v2 = vld [vmem:[%s7976_s25 + $0x11a] sm:$0xff] }
 0x387   : > { %2663 = vrot.lane.b32.xlu2 %v8889_v16, %s7903_s8  ;;  %v2592_v16 = vpack.c.bf16 %v7120_v2, %v7120_v2 }
 0x388   : > { %v2415_v42 = vpop.permute.xlu1 %2414  ;;  %v2413_v43 = vpop.permute.xlu0 %2412 }
 0x389   : > { %2510 = vst.msk [vmem:[#allocation2 + $0x4] sm:$0xf] %vm2508_vm10, %v2415_v42  ;;  %v2435_v52 = vpop.permute.xlu2 %2434  ;;  %v7142_v42 = vld [vmem:[%s7976_s25 + $0xcc] sm:$0xff] }
 0x38a   : > { %2509 = vst.msk [vmem:[#allocation2] sm:$0xf] %vm2508_vm10, %v2413_v43  ;;  %v7141_v43 = vld [vmem:[%s7976_s25 + $0xc4] sm:$0xff] }
 0x38b   : > { %2520 = vst.msk [vmem:[#allocation2 + $0x2c] sm:$0xf] %vm2508_vm10, %v2435_v52 }
 0x38e   : > { %2667 = vrot.lane.b32.xlu1 %v8901_v31, %s7903_s8  ;;  %2665 = vrot.lane.b32.xlu0 %v8903_v35, %s7903_s8  ;;  %v2593_v31 = vpack.c.bf16 %v7121_v49, %v7121_v49  ;;  %v7123_v35 = vld [vmem:[%s7976_s25 + $0x132] sm:$0xff] }
 0x38f   : > { %2669 = vrot.lane.b32.xlu2 %v8907_v41, %s7903_s8  ;;  %v7122_v41 = vld [vmem:[%s7976_s25 + $0x12a] sm:$0xff]  ;;  %v2595_v58 = vpack.c.bf16 %v7123_v35, %v7123_v35  ;;  %v7144_v35 = vld [vmem:[%s7976_s25 + $0xdc] sm:$0xff] }
 0x390   : > { %v2421_v4 = vpop.permute.xlu1 %2420  ;;  %v2419_v10 = vpop.permute.xlu0 %2418  ;;  %v2594_v22 = vpack.c.bf16 %v7122_v41, %v7122_v41 }
 0x391   : > { %2513 = vst.msk [vmem:[#allocation2 + $0x10] sm:$0xf] %vm2508_vm10, %v2421_v4  ;;  %v2441_v14 = vpop.permute.xlu2 %2440  ;;  %v2808_v4 = vpack.c.bf16 %v7142_v42, %v7142_v42  ;;  %v7162_v42 = vld [vmem:[%s7976_s25 + $0x16c] sm:$0xff] }
 0x392   : > { %2512 = vst.msk [vmem:[#allocation2 + $0xc] sm:$0xf] %vm2508_vm10, %v2419_v10  ;;  %v2807_v10 = vpack.c.bf16 %v7141_v43, %v7141_v43 }
 0x393   : > { %2523 = vst.msk [vmem:[#allocation2 + $0x38] sm:$0xf] %vm2508_vm10, %v2441_v14  ;;  %v7143_v14 = vld [vmem:[%s7976_s25 + $0xd4] sm:$0xff] }
 0x394   : > { %v2809_v49 = vpack.c.bf16 %v7143_v14, %v7143_v14 }
 0x396   : > { %2673 = vrot.lane.b32.xlu1 %v2592_v16, %s7903_s8  ;;  %2671 = vrot.lane.b32.xlu0 %v8918_v56, %s7903_s8  ;;  %v2596_v56 = vpack.c.bf16 %v7124_v63, %v7124_v63 }
 0x397   : > { %2675 = vrot.lane.b32.xlu2 %v2593_v31, %s7903_s8  ;;  %v7145_v31 = vld [vmem:[%s7976_s25 + $0xe4] sm:$0xff] }
 0x398   : > { %v2427_v54 = vpop.permute.xlu1 %2426  ;;  %v2425_v55 = vpop.permute.xlu0 %2424 }
 0x399   : > { %2516 = vst.msk [vmem:[#allocation2 + $0x1c] sm:$0xf] %vm2508_vm10, %v2427_v54  ;;  %v2447_v23 = vpop.permute.xlu2 %2446 }
 0x39a   : > { %2515 = vst.msk [vmem:[#allocation2 + $0x18] sm:$0xf] %vm2508_vm10, %v2425_v55  ;;  %v2811_v55 = vpack.c.bf16 %v7145_v31, %v7145_v31  ;;  %v7165_v31 = vld [vmem:[%s7976_s25 + $0x184] sm:$0xff] }
 0x39b   : > { %2526 = vst.msk [vmem:[#allocation2 + $0x44] sm:$0xf] %vm2508_vm10, %v2447_v23  ;;  %v7146_v23 = vld [vmem:[%s7976_s25 + $0xec] sm:$0xff] }
 0x39c   : > { %v2812_v63 = vpack.c.bf16 %v7146_v23, %v7146_v23 }
 0x39e   : > { %2679 = vrot.lane.b32.xlu1 %v2595_v58, %s7903_s8  ;;  %2677 = vrot.lane.b32.xlu0 %v2594_v22, %s7903_s8  ;;  %v2810_v58 = vpack.c.bf16 %v7144_v35, %v7144_v35 }
 0x39f   : > { %2681 = vrot.lane.b32.xlu2 %v2596_v56, %s7903_s8  ;;  %v7148_v56 = vld [vmem:[%s7976_s25 + $0xfc] sm:$0xff] }
 0x3a0   : > { %v2433_v8 = vpop.permute.xlu1 %2432  ;;  %v2431_v9 = vpop.permute.xlu0 %2430 }
 0x3a1   : > { %2519 = vst.msk [vmem:[#allocation2 + $0x28] sm:$0xf] %vm2508_vm10, %v2433_v8  ;;  %v2453_v26 = vpop.permute.xlu2 %2452 }
 0x3a2   : > { %2518 = vst.msk [vmem:[#allocation2 + $0x24] sm:$0xf] %vm2508_vm10, %v2431_v9  ;;  %v2814_v9 = vpack.c.bf16 %v7148_v56, %v7148_v56  ;;  %v7169_v56 = vld [vmem:[%s7976_s25 + $0x9d] sm:$0xff] }
 0x3a3   : > { %2529 = vst.msk [vmem:[#allocation2 + $0x50] sm:$0xf] %vm2508_vm10, %v2453_v26  ;;  %v7149_v26 = vld [vmem:[%s7976_s25 + $0x104] sm:$0xff] }
 0x3a4   : > { %v2815_v30 = vpack.c.bf16 %v7149_v26, %v7149_v26 }
 0x3a6   : > { %2685 = vrot.lane.b32.xlu1 %v2598_v20, %s7903_s8  ;;  %2683 = vrot.lane.b32.xlu0 %v2597_v12, %s7903_s8  ;;  %v2813_v20 = vpack.c.bf16 %v7147_v0, %v7147_v0 }
 0x3a7   : > { %2687 = vrot.lane.b32.xlu2 %v2599_v37, %s7903_s8  ;;  %v7151_v37 = vld [vmem:[%s7976_s25 + $0x114] sm:$0xff] }
 0x3a8   : > { %v2439_v39 = vpop.permute.xlu1 %2438  ;;  %v2437_v21 = vpop.permute.xlu0 %2436 }
 0x3a9   : > { %2522 = vst.msk [vmem:[#allocation2 + $0x34] sm:$0xf] %vm2508_vm10, %v2439_v39  ;;  %v2459_v53 = vpop.permute.xlu2 %2458 }
 0x3aa   : > { %2521 = vst.msk [vmem:[#allocation2 + $0x30] sm:$0xf] %vm2508_vm10, %v2437_v21  ;;  %v2817_v21 = vpack.c.bf16 %v7151_v37, %v7151_v37  ;;  %v7172_v37 = vld [vmem:[%s7976_s25 + $0xb5] sm:$0xff] }
 0x3ab   : > { %2532 = vst.msk [vmem:[#allocation2 + $0x5c] sm:$0xf] %vm2508_vm10, %v2459_v53  ;;  %v7152_v53 = vld [vmem:[%s7976_s25 + $0x11c] sm:$0xff] }
 0x3ac   : > { %v2818_v61 = vpack.c.bf16 %v7152_v53, %v7152_v53 }
 0x3ae   : > { %2691 = vrot.lane.b32.xlu1 %v2601_v48, %s7903_s8  ;;  %2689 = vrot.lane.b32.xlu0 %v2600_v50, %s7903_s8  ;;  %v2816_v48 = vpack.c.bf16 %v7150_v17, %v7150_v17 }
 0x3af   : > { %2693 = vrot.lane.b32.xlu2 %v2602_v62, %s7903_s8  ;;  %v7154_v62 = vld [vmem:[%s7976_s25 + $0x12c] sm:$0xff] }
 0x3b0   : > { %v2445_v36 = vpop.permute.xlu1 %2444  ;;  %v2443_v19 = vpop.permute.xlu0 %2442 }
 0x3b1   : > { %2525 = vst.msk [vmem:[#allocation2 + $0x40] sm:$0xf] %vm2508_vm10, %v2445_v36  ;;  %v2465_v25 = vpop.permute.xlu2 %2464 }
 0x3b2   : > { %2524 = vst.msk [vmem:[#allocation2 + $0x3c] sm:$0xf] %vm2508_vm10, %v2443_v19  ;;  %v2820_v19 = vpack.c.bf16 %v7154_v62, %v7154_v62  ;;  %v7175_v62 = vld [vmem:[%s7976_s25 + $0xcd] sm:$0xff] }
 0x3b3   : > { %2535 = vst.msk [vmem:[#allocation2 + $0x68] sm:$0xf] %vm2508_vm10, %v2465_v25  ;;  %v7155_v25 = vld [vmem:[%s7976_s25 + $0x134] sm:$0xff] }
 0x3b4   : > { %v2821_v28 = vpack.c.bf16 %v7155_v25, %v7155_v25 }
 0x3b6   : > { %2697 = vrot.lane.b32.xlu1 %v2604_v40, %s7903_s8  ;;  %2695 = vrot.lane.b32.xlu0 %v2603_v24, %s7903_s8  ;;  %v2819_v40 = vpack.c.bf16 %v7153_v11, %v7153_v11 }
 0x3b7   : > { %2699 = vrot.lane.b32.xlu2 %v2605_v33, %s7903_s8  ;;  %v7157_v33 = vld [vmem:[%s7976_s25 + $0x144] sm:$0xff] }
 0x3b8   : > { %v2451_v44 = vpop.permute.xlu1 %2450  ;;  %v2449_v47 = vpop.permute.xlu0 %2448 }
 0x3b9   : > { %2528 = vst.msk [vmem:[#allocation2 + $0x4c] sm:$0xf] %vm2508_vm10, %v2451_v44  ;;  %v2471_v60 = vpop.permute.xlu2 %2470 }
 0x3ba   : > { %2527 = vst.msk [vmem:[#allocation2 + $0x48] sm:$0xf] %vm2508_vm10, %v2449_v47  ;;  %v2823_v47 = vpack.c.bf16 %v7157_v33, %v7157_v33  ;;  %v7178_v33 = vld [vmem:[%s7976_s25 + $0xe5] sm:$0xff] }
 0x3bb   : > { %2538 = vst.msk [vmem:[#allocation2 + $0x74] sm:$0xf] %vm2508_vm10, %v2471_v60  ;;  %v7158_v60 = vld [vmem:[%s7976_s25 + $0x14c] sm:$0xff] }
 0x3bc   : > { %v2824_v1 = vpack.c.bf16 %v7158_v60, %v7158_v60 }
 0x3be   : > { %2866 = vrot.lane.b32.xlu1 %v2802_v51, %s7904_s10  ;;  %2701 = vrot.lane.b32.xlu0 %v2606_v59, %s7903_s8  ;;  %v2822_v51 = vpack.c.bf16 %v7156_v34, %v7156_v34 }
 0x3bf   : > { %2868 = vrot.lane.b32.xlu2 %v2803_v45, %s7904_s10  ;;  %v7160_v45 = vld [vmem:[%s7976_s25 + $0x15c] sm:$0xff] }
 0x3c0   : > { %v2457_v57 = vpop.permute.xlu1 %2456  ;;  %v2455_v5 = vpop.permute.xlu0 %2454 }
 0x3c1   : > { %2531 = vst.msk [vmem:[#allocation2 + $0x58] sm:$0xf] %vm2508_vm10, %v2457_v57  ;;  %v2640_v27 = vpop.permute.xlu2 %2639 }
 0x3c2   : > { %2530 = vst.msk [vmem:[#allocation2 + $0x54] sm:$0xf] %vm2508_vm10, %v2455_v5  ;;  %v2826_v5 = vpack.c.bf16 %v7160_v45, %v7160_v45  ;;  %v7181_v45 = vld [vmem:[%s7976_s25 + $0xfd] sm:$0xff] }
 0x3c3   : > { %2736 = vst.msk [vmem:[#allocation2] sm:$0xf] %vm2735_vm11, %v2640_v27  ;;  %v7161_v27 = vld [vmem:[%s7976_s25 + $0x164] sm:$0xff] }
 0x3c4   : > { %v2827_v29 = vpack.c.bf16 %v7161_v27, %v7161_v27 }
 0x3c6   : > { %2872 = vrot.lane.b32.xlu1 %v2805_v6, %s7904_s10  ;;  %2870 = vrot.lane.b32.xlu0 %v2804_v15, %s7904_s10  ;;  %v2825_v6 = vpack.c.bf16 %v7159_v46, %v7159_v46 }
 0x3c7   : > { %2874 = vrot.lane.b32.xlu2 %v2806_v32, %s7904_s10  ;;  %v7163_v32 = vld [vmem:[%s7976_s25 + $0x174] sm:$0xff] }
 0x3c8   : > { %v2463_v52 = vpop.permute.xlu1 %2462  ;;  %v2461_v2 = vpop.permute.xlu0 %2460 }
 0x3c9   : > { %2534 = vst.msk [vmem:[#allocation2 + $0x64] sm:$0xf] %vm2508_vm10, %v2463_v52  ;;  %v2646_v16 = vpop.permute.xlu2 %2645 }
 0x3ca   : > { %2533 = vst.msk [vmem:[#allocation2 + $0x60] sm:$0xf] %vm2508_vm10, %v2461_v2  ;;  %v2829_v2 = vpack.c.bf16 %v7163_v32, %v7163_v32  ;;  %v7184_v32 = vld [vmem:[%s7976_s25 + $0x115] sm:$0xff] }
 0x3cb   : > { %2739 = vst.msk [vmem:[#allocation2 + $0xc] sm:$0xf] %vm2735_vm11, %v2646_v16  ;;  %v7164_v16 = vld [vmem:[%s7976_s25 + $0x17c] sm:$0xff] }
 0x3cc   : > { %v2830_v14 = vpack.c.bf16 %v7164_v16, %v7164_v16 }
 0x3ce   : > { %2878 = vrot.lane.b32.xlu1 %v2808_v4, %s7904_s10  ;;  %2876 = vrot.lane.b32.xlu0 %v2807_v10, %s7904_s10  ;;  %v2828_v4 = vpack.c.bf16 %v7162_v42, %v7162_v42 }
 0x3cf   : > { %2880 = vrot.lane.b32.xlu2 %v2809_v49, %s7904_s10  ;;  %v7166_v49 = vld [vmem:[%s7976_s25 + $0x18c] sm:$0xff] }
 0x3d0   : > { %v2469_v41 = vpop.permute.xlu1 %2468  ;;  %v2467_v54 = vpop.permute.xlu0 %2466 }
 0x3d1   : > { %2537 = vst.msk [vmem:[#allocation2 + $0x70] sm:$0xf] %vm2508_vm10, %v2469_v41  ;;  %v2652_v22 = vpop.permute.xlu2 %2651 }
 0x3d2   : > { %2536 = vst.msk [vmem:[#allocation2 + $0x6c] sm:$0xf] %vm2508_vm10, %v2467_v54  ;;  %v2832_v54 = vpack.c.bf16 %v7166_v49, %v7166_v49  ;;  %v7187_v49 = vld [vmem:[%s7976_s25 + $0x12d] sm:$0xff] }
 0x3d3   : > { %2742 = vst.msk [vmem:[#allocation2 + $0x18] sm:$0xf] %vm2735_vm11, %v2652_v22  ;;  %v7167_v22 = vld [vmem:[%s7976_s25 + $0x194] sm:$0xff] }
 0x3d4   : > { %v2833_v23 = vpack.c.bf16 %v7167_v22, %v7167_v22 }
 0x3d6   : > { %2884 = vrot.lane.b32.xlu1 %v2811_v55, %s7904_s10  ;;  %2882 = vrot.lane.b32.xlu0 %v2810_v58, %s7904_s10  ;;  %v2831_v55 = vpack.c.bf16 %v7165_v31, %v7165_v31 }
 0x3d7   : > { %2886 = vrot.lane.b32.xlu2 %v2812_v63, %s7904_s10  ;;  %v7170_v63 = vld [vmem:[%s7976_s25 + $0xa5] sm:$0xff] }
 0x3d8   : > { %v2475_v3 = vpop.permute.xlu1 %2474  ;;  %v2473_v8 = vpop.permute.xlu0 %2472 }
 0x3d9   : > { %2540 = vst.msk [vmem:[#allocation2 + $0x7c] sm:$0xf] %vm2508_vm10, %v2475_v3  ;;  %v2658_v12 = vpop.permute.xlu2 %2657 }
 0x3da   : > { %2539 = vst.msk [vmem:[#allocation2 + $0x78] sm:$0xf] %vm2508_vm10, %v2473_v8  ;;  %v3030_v8 = vpack.c.bf16 %v7170_v63, %v7170_v63  ;;  %v7190_v63 = vld [vmem:[%s7976_s25 + $0x145] sm:$0xff]  ;;  %vm5913_vm10 = vcmask 847648  }
 0x3db   : > { %2745 = vst.msk [vmem:[#allocation2 + $0x24] sm:$0xf] %vm2735_vm11, %v2658_v12  ;;  %v7171_v12 = vld [vmem:[%s7976_s25 + $0xad] sm:$0xff] }
 0x3dc   : > { %v3031_v26 = vpack.c.bf16 %v7171_v12, %v7171_v12 }
 0x3de   : > { %2890 = vrot.lane.b32.xlu1 %v2814_v9, %s7904_s10  ;;  %2888 = vrot.lane.b32.xlu0 %v2813_v20, %s7904_s10  ;;  %v3029_v9 = vpack.c.bf16 %v7169_v56, %v7169_v56 }
 0x3df   : > { %2892 = vrot.lane.b32.xlu2 %v2815_v30, %s7904_s10  ;;  %v7173_v30 = vld [vmem:[%s7976_s25 + $0xbd] sm:$0xff] }
 0x3e0   : > { %v2644_v18 = vpop.permute.xlu1 %2643  ;;  %v2642_v39 = vpop.permute.xlu0 %2641 }
 0x3e1   : > { %2738 = vst.msk [vmem:[#allocation2 + $0x8] sm:$0xf] %vm2735_vm11, %v2644_v18  ;;  %v2664_v50 = vpop.permute.xlu2 %2663 }
 0x3e2   : > { %2737 = vst.msk [vmem:[#allocation2 + $0x4] sm:$0xf] %vm2735_vm11, %v2642_v39  ;;  %v3033_v39 = vpack.c.bf16 %v7173_v30, %v7173_v30  ;;  %v7193_v30 = vld [vmem:[%s7976_s25 + $0x15d] sm:$0xff] }
 0x3e3   : > { %2748 = vst.msk [vmem:[#allocation2 + $0x30] sm:$0xf] %vm2735_vm11, %v2664_v50  ;;  %v7174_v50 = vld [vmem:[%s7976_s25 + $0xc5] sm:$0xff] }
 0x3e4   : > { %v3034_v53 = vpack.c.bf16 %v7174_v50, %v7174_v50 }
 0x3e6   : > { %2896 = vrot.lane.b32.xlu1 %v2817_v21, %s7904_s10  ;;  %2894 = vrot.lane.b32.xlu0 %v2816_v48, %s7904_s10  ;;  %v3032_v21 = vpack.c.bf16 %v7172_v37, %v7172_v37 }
 0x3e7   : > { %2898 = vrot.lane.b32.xlu2 %v2818_v61, %s7904_s10  ;;  %v7176_v61 = vld [vmem:[%s7976_s25 + $0xd5] sm:$0xff] }
 0x3e8   : > { %v2650_v13 = vpop.permute.xlu1 %2649  ;;  %v2648_v36 = vpop.permute.xlu0 %2647 }
 0x3e9   : > { %2741 = vst.msk [vmem:[#allocation2 + $0x14] sm:$0xf] %vm2735_vm11, %v2650_v13  ;;  %v2670_v24 = vpop.permute.xlu2 %2669 }
 0x3ea   : > { %2740 = vst.msk [vmem:[#allocation2 + $0x10] sm:$0xf] %vm2735_vm11, %v2648_v36  ;;  %v3036_v36 = vpack.c.bf16 %v7176_v61, %v7176_v61  ;;  %v7196_v61 = vld [vmem:[%s7976_s25 + $0x175] sm:$0xff] }
 0x3eb   : > { %2751 = vst.msk [vmem:[#allocation2 + $0x3c] sm:$0xf] %vm2735_vm11, %v2670_v24  ;;  %v7177_v24 = vld [vmem:[%s7976_s25 + $0xdd] sm:$0xff] }
 0x3ec   : > { %v3037_v25 = vpack.c.bf16 %v7177_v24, %v7177_v24 }
 0x3ee   : > { %2902 = vrot.lane.b32.xlu1 %v2820_v19, %s7904_s10  ;;  %2900 = vrot.lane.b32.xlu0 %v2819_v40, %s7904_s10  ;;  %v3035_v19 = vpack.c.bf16 %v7175_v62, %v7175_v62 }
 0x3ef   : > { %2904 = vrot.lane.b32.xlu2 %v2821_v28, %s7904_s10  ;;  %v7179_v28 = vld [vmem:[%s7976_s25 + $0xed] sm:$0xff] }
 0x3f0   : > { %v2656_v38 = vpop.permute.xlu1 %2655  ;;  %v2654_v44 = vpop.permute.xlu0 %2653 }
 0x3f1   : > { %2744 = vst.msk [vmem:[#allocation2 + $0x20] sm:$0xf] %vm2735_vm11, %v2656_v38  ;;  %v2676_v59 = vpop.permute.xlu2 %2675 }
 0x3f2   : > { %2743 = vst.msk [vmem:[#allocation2 + $0x1c] sm:$0xf] %vm2735_vm11, %v2654_v44  ;;  %v3039_v44 = vpack.c.bf16 %v7179_v28, %v7179_v28  ;;  %v7199_v28 = vld [vmem:[%s7976_s25 + $0x18d] sm:$0xff] }
 0x3f3   : > { %2754 = vst.msk [vmem:[#allocation2 + $0x48] sm:$0xf] %vm2735_vm11, %v2676_v59  ;;  %v7180_v59 = vld [vmem:[%s7976_s25 + $0xf5] sm:$0xff] }
 0x3f4   : > { %v3040_v60 = vpack.c.bf16 %v7180_v59, %v7180_v59 }
 0x3f6   : > { %2908 = vrot.lane.b32.xlu1 %v2823_v47, %s7904_s10  ;;  %2906 = vrot.lane.b32.xlu0 %v2822_v51, %s7904_s10  ;;  %v3038_v47 = vpack.c.bf16 %v7178_v33, %v7178_v33 }
 0x3f7   : > { %2910 = vrot.lane.b32.xlu2 %v2824_v1, %s7904_s10  ;;  %v7182_v1 = vld [vmem:[%s7976_s25 + $0x105] sm:$0xff] }
 0x3f8   : > { %v2662_v7 = vpop.permute.xlu1 %2661  ;;  %v2660_v57 = vpop.permute.xlu0 %2659 }
 0x3f9   : > { %2747 = vst.msk [vmem:[#allocation2 + $0x2c] sm:$0xf] %vm2735_vm11, %v2662_v7  ;;  %v2682_v15 = vpop.permute.xlu2 %2681 }
 0x3fa   : > { %2746 = vst.msk [vmem:[#allocation2 + $0x28] sm:$0xf] %vm2735_vm11, %v2660_v57  ;;  %v3042_v57 = vpack.c.bf16 %v7182_v1, %v7182_v1  ;;  %v7203_v1 = vld [vmem:[%s7976_s25 + $0xa6] sm:$0xff] }
 0x3fb   : > { %2757 = vst.msk [vmem:[#allocation2 + $0x54] sm:$0xf] %vm2735_vm11, %v2682_v15  ;;  %v7183_v15 = vld [vmem:[%s7976_s25 + $0x10d] sm:$0xff] }
 0x3fc   : > { %v3043_v27 = vpack.c.bf16 %v7183_v15, %v7183_v15 }
 0x3fe   : > { %2914 = vrot.lane.b32.xlu1 %v2826_v5, %s7904_s10  ;;  %2912 = vrot.lane.b32.xlu0 %v2825_v6, %s7904_s10  ;;  %v3041_v5 = vpack.c.bf16 %v7181_v45, %v7181_v45 }
 0x3ff   : > { %2916 = vrot.lane.b32.xlu2 %v2827_v29, %s7904_s10  ;;  %v7185_v29 = vld [vmem:[%s7976_s25 + $0x11d] sm:$0xff] }
 0x400   : > { %v2668_v43 = vpop.permute.xlu1 %2667  ;;  %v2666_v52 = vpop.permute.xlu0 %2665 }
 0x401   : > { %2750 = vst.msk [vmem:[#allocation2 + $0x38] sm:$0xf] %vm2735_vm11, %v2668_v43  ;;  %v2688_v10 = vpop.permute.xlu2 %2687 }
 0x402   : > { %2749 = vst.msk [vmem:[#allocation2 + $0x34] sm:$0xf] %vm2735_vm11, %v2666_v52  ;;  %v3045_v52 = vpack.c.bf16 %v7185_v29, %v7185_v29  ;;  %v7206_v29 = vld [vmem:[%s7976_s25 + $0xbe] sm:$0xff] }
 0x403   : > { %2760 = vst.msk [vmem:[#allocation2 + $0x60] sm:$0xf] %vm2735_vm11, %v2688_v10  ;;  %v7186_v10 = vld [vmem:[%s7976_s25 + $0x125] sm:$0xff] }
 0x404   : > { %v3046_v16 = vpack.c.bf16 %v7186_v10, %v7186_v10 }
 0x406   : > { %2920 = vrot.lane.b32.xlu1 %v2829_v2, %s7904_s10  ;;  %2918 = vrot.lane.b32.xlu0 %v2828_v4, %s7904_s10  ;;  %v3044_v2 = vpack.c.bf16 %v7184_v32, %v7184_v32 }
 0x407   : > { %2922 = vrot.lane.b32.xlu2 %v2830_v14, %s7904_s10  ;;  %v7188_v14 = vld [vmem:[%s7976_s25 + $0x135] sm:$0xff] }
 0x408   : > { %v2674_v35 = vpop.permute.xlu1 %2673  ;;  %v2672_v41 = vpop.permute.xlu0 %2671 }
 0x409   : > { %2753 = vst.msk [vmem:[#allocation2 + $0x44] sm:$0xf] %vm2735_vm11, %v2674_v35  ;;  %v2694_v58 = vpop.permute.xlu2 %2693 }
 0x40a   : > { %2752 = vst.msk [vmem:[#allocation2 + $0x40] sm:$0xf] %vm2735_vm11, %v2672_v41  ;;  %v3048_v41 = vpack.c.bf16 %v7188_v14, %v7188_v14  ;;  %v7209_v14 = vld [vmem:[%s7976_s25 + $0xd6] sm:$0xff] }
 0x40b   : > { %2763 = vst.msk [vmem:[#allocation2 + $0x6c] sm:$0xf] %vm2735_vm11, %v2694_v58  ;;  %v7189_v58 = vld [vmem:[%s7976_s25 + $0x13d] sm:$0xff] }
 0x40c   : > { %v3049_v22 = vpack.c.bf16 %v7189_v58, %v7189_v58 }
 0x40e   : > { %2926 = vrot.lane.b32.xlu1 %v2832_v54, %s7904_s10  ;;  %2924 = vrot.lane.b32.xlu0 %v2831_v55, %s7904_s10  ;;  %v3047_v54 = vpack.c.bf16 %v7187_v49, %v7187_v49 }
 0x40f   : > { %2928 = vrot.lane.b32.xlu2 %v2833_v23, %s7904_s10  ;;  %v7191_v23 = vld [vmem:[%s7976_s25 + $0x14d] sm:$0xff] }
 0x410   : > { %v2680_v0 = vpop.permute.xlu1 %2679  ;;  %v2678_v3 = vpop.permute.xlu0 %2677 }
 0x411   : > { %2756 = vst.msk [vmem:[#allocation2 + $0x50] sm:$0xf] %vm2735_vm11, %v2680_v0  ;;  %v2700_v20 = vpop.permute.xlu2 %2699 }
 0x412   : > { %2755 = vst.msk [vmem:[#allocation2 + $0x4c] sm:$0xf] %vm2735_vm11, %v2678_v3  ;;  %v3051_v3 = vpack.c.bf16 %v7191_v23, %v7191_v23  ;;  %v7212_v23 = vld [vmem:[%s7976_s25 + $0xee] sm:$0xff] }
 0x413   : > { %2766 = vst.msk [vmem:[#allocation2 + $0x78] sm:$0xf] %vm2735_vm11, %v2700_v20  ;;  %v7192_v20 = vld [vmem:[%s7976_s25 + $0x155] sm:$0xff] }
 0x414   : > { %v3052_v12 = vpack.c.bf16 %v7192_v20, %v7192_v20 }
 0x416   : > { %3095 = vrot.lane.b32.xlu1 %v3030_v8, %s7905_s16  ;;  %3093 = vrot.lane.b32.xlu0 %v3029_v9, %s7905_s16  ;;  %v3050_v8 = vpack.c.bf16 %v7190_v63, %v7190_v63 }
 0x417   : > { %3097 = vrot.lane.b32.xlu2 %v3031_v26, %s7905_s16  ;;  %v7194_v26 = vld [vmem:[%s7976_s25 + $0x165] sm:$0xff] }
 0x418   : > { %v2686_v17 = vpop.permute.xlu1 %2685  ;;  %v2684_v18 = vpop.permute.xlu0 %2683 }
 0x419   : > { %2759 = vst.msk [vmem:[#allocation2 + $0x5c] sm:$0xf] %vm2735_vm11, %v2686_v17  ;;  %v2869_v48 = vpop.permute.xlu2 %2868 }
 0x41a   : > { %2758 = vst.msk [vmem:[#allocation2 + $0x58] sm:$0xf] %vm2735_vm11, %v2684_v18  ;;  %v3054_v18 = vpack.c.bf16 %v7194_v26, %v7194_v26  ;;  %v7215_v26 = vld [vmem:[%s7976_s25 + $0x106] sm:$0xff] }
 0x41b   : > { %2964 = vst.msk [vmem:[#allocation2 + $0x4] sm:$0xf] %vm2962_vm12, %v2869_v48  ;;  %v7195_v48 = vld [vmem:[%s7976_s25 + $0x16d] sm:$0xff] }
 0x41c   : > { %v3055_v50 = vpack.c.bf16 %v7195_v48, %v7195_v48 }
 0x41e   : > { %3101 = vrot.lane.b32.xlu1 %v3033_v39, %s7905_s16  ;;  %3099 = vrot.lane.b32.xlu0 %v3032_v21, %s7905_s16  ;;  %v3053_v39 = vpack.c.bf16 %v7193_v30, %v7193_v30 }
 0x41f   : > { %3103 = vrot.lane.b32.xlu2 %v3034_v53, %s7905_s16  ;;  %v7197_v53 = vld [vmem:[%s7976_s25 + $0x17d] sm:$0xff] }
 0x420   : > { %v2692_v11 = vpop.permute.xlu1 %2691  ;;  %v2690_v13 = vpop.permute.xlu0 %2689 }
 0x421   : > { %2762 = vst.msk [vmem:[#allocation2 + $0x68] sm:$0xf] %vm2735_vm11, %v2692_v11  ;;  %v2875_v40 = vpop.permute.xlu2 %2874 }
 0x422   : > { %2761 = vst.msk [vmem:[#allocation2 + $0x64] sm:$0xf] %vm2735_vm11, %v2690_v13  ;;  %v3057_v13 = vpack.c.bf16 %v7197_v53, %v7197_v53  ;;  %v7218_v53 = vld [vmem:[%s7976_s25 + $0x11e] sm:$0xff] }
 0x423   : > { %2967 = vst.msk [vmem:[#allocation2 + $0x10] sm:$0xf] %vm2962_vm12, %v2875_v40  ;;  %v7198_v40 = vld [vmem:[%s7976_s25 + $0x185] sm:$0xff] }
 0x424   : > { %v3058_v24 = vpack.c.bf16 %v7198_v40, %v7198_v40 }
 0x426   : > { %3107 = vrot.lane.b32.xlu1 %v3036_v36, %s7905_s16  ;;  %3105 = vrot.lane.b32.xlu0 %v3035_v19, %s7905_s16  ;;  %v3056_v36 = vpack.c.bf16 %v7196_v61, %v7196_v61 }
 0x427   : > { %3109 = vrot.lane.b32.xlu2 %v3037_v25, %s7905_s16  ;;  %v7200_v25 = vld [vmem:[%s7976_s25 + $0x195] sm:$0xff] }
 0x428   : > { %v2698_v34 = vpop.permute.xlu1 %2697  ;;  %v2696_v38 = vpop.permute.xlu0 %2695 }
 0x429   : > { %2765 = vst.msk [vmem:[#allocation2 + $0x74] sm:$0xf] %vm2735_vm11, %v2698_v34  ;;  %v2881_v51 = vpop.permute.xlu2 %2880 }
 0x42a   : > { %2764 = vst.msk [vmem:[#allocation2 + $0x70] sm:$0xf] %vm2735_vm11, %v2696_v38  ;;  %v3060_v38 = vpack.c.bf16 %v7200_v25, %v7200_v25  ;;  %v7221_v25 = vld [vmem:[%s7976_s25 + $0x136] sm:$0xff] }
 0x42b   : > { %2970 = vst.msk [vmem:[#allocation2 + $0x1c] sm:$0xf] %vm2962_vm12, %v2881_v51  ;;  %v7202_v51 = vld [vmem:[%s7976_s25 + $0x9e] sm:$0xff] }
 0x42c   : > { %v3256_v59 = vpack.c.bf16 %v7202_v51, %v7202_v51 }
 0x42e   : > { %3113 = vrot.lane.b32.xlu1 %v3039_v44, %s7905_s16  ;;  %3111 = vrot.lane.b32.xlu0 %v3038_v47, %s7905_s16  ;;  %v3059_v44 = vpack.c.bf16 %v7199_v28, %v7199_v28 }
 0x42f   : > { %3115 = vrot.lane.b32.xlu2 %v3040_v60, %s7905_s16  ;;  %v7204_v60 = vld [vmem:[%s7976_s25 + $0xae] sm:$0xff] }
 0x430   : > { %v2867_v46 = vpop.permute.xlu1 %2866  ;;  %v2702_v7 = vpop.permute.xlu0 %2701 }
 0x431   : > { %2963 = vst.msk [vmem:[#allocation2] sm:$0xf] %vm2962_vm12, %v2867_v46  ;;  %v2887_v6 = vpop.permute.xlu2 %2886 }
 0x432   : > { %2767 = vst.msk [vmem:[#allocation2 + $0x7c] sm:$0xf] %vm2735_vm11, %v2702_v7  ;;  %v3258_v7 = vpack.c.bf16 %v7204_v60, %v7204_v60  ;;  %v7224_v60 = vld [vmem:[%s7976_s25 + $0x14e] sm:$0xff]  ;;  %vm6140_vm11 = vcmask 880448  }
 0x433   : > { %2973 = vst.msk [vmem:[#allocation2 + $0x28] sm:$0xf] %vm2962_vm12, %v2887_v6  ;;  %v7205_v6 = vld [vmem:[%s7976_s25 + $0xb6] sm:$0xff] }
 0x434   : > { %v3259_v15 = vpack.c.bf16 %v7205_v6, %v7205_v6 }
 0x436   : > { %3119 = vrot.lane.b32.xlu1 %v3042_v57, %s7905_s16  ;;  %3117 = vrot.lane.b32.xlu0 %v3041_v5, %s7905_s16  ;;  %v3257_v57 = vpack.c.bf16 %v7203_v1, %v7203_v1 }
 0x437   : > { %3121 = vrot.lane.b32.xlu2 %v3043_v27, %s7905_s16  ;;  %v7207_v27 = vld [vmem:[%s7976_s25 + $0xc6] sm:$0xff] }
 0x438   : > { %v2873_v42 = vpop.permute.xlu1 %2872  ;;  %v2871_v43 = vpop.permute.xlu0 %2870 }
 0x439   : > { %2966 = vst.msk [vmem:[#allocation2 + $0xc] sm:$0xf] %vm2962_vm12, %v2873_v42  ;;  %v2893_v4 = vpop.permute.xlu2 %2892 }
 0x43a   : > { %2965 = vst.msk [vmem:[#allocation2 + $0x8] sm:$0xf] %vm2962_vm12, %v2871_v43  ;;  %v3261_v43 = vpack.c.bf16 %v7207_v27, %v7207_v27  ;;  %v7227_v27 = vld [vmem:[%s7976_s25 + $0x166] sm:$0xff] }
 0x43b   : > { %2976 = vst.msk [vmem:[#allocation2 + $0x34] sm:$0xf] %vm2962_vm12, %v2893_v4  ;;  %v7208_v4 = vld [vmem:[%s7976_s25 + $0xce] sm:$0xff] }
 0x43c   : > { %v3262_v10 = vpack.c.bf16 %v7208_v4, %v7208_v4 }
 0x43e   : > { %3125 = vrot.lane.b32.xlu1 %v3045_v52, %s7905_s16  ;;  %3123 = vrot.lane.b32.xlu0 %v3044_v2, %s7905_s16  ;;  %v3260_v52 = vpack.c.bf16 %v7206_v29, %v7206_v29 }
 0x43f   : > { %3127 = vrot.lane.b32.xlu2 %v3046_v16, %s7905_s16  ;;  %v7210_v16 = vld [vmem:[%s7976_s25 + $0xde] sm:$0xff] }
 0x440   : > { %v2879_v31 = vpop.permute.xlu1 %2878  ;;  %v2877_v35 = vpop.permute.xlu0 %2876 }
 0x441   : > { %2969 = vst.msk [vmem:[#allocation2 + $0x18] sm:$0xf] %vm2962_vm12, %v2879_v31  ;;  %v2899_v55 = vpop.permute.xlu2 %2898 }
 0x442   : > { %2968 = vst.msk [vmem:[#allocation2 + $0x14] sm:$0xf] %vm2962_vm12, %v2877_v35  ;;  %v3264_v35 = vpack.c.bf16 %v7210_v16, %v7210_v16  ;;  %v7230_v16 = vld [vmem:[%s7976_s25 + $0x17e] sm:$0xff] }
 0x443   : > { %2979 = vst.msk [vmem:[#allocation2 + $0x40] sm:$0xf] %vm2962_vm12, %v2899_v55  ;;  %v7211_v55 = vld [vmem:[%s7976_s25 + $0xe6] sm:$0xff] }
 0x444   : > { %v3265_v58 = vpack.c.bf16 %v7211_v55, %v7211_v55 }
 0x446   : > { %3131 = vrot.lane.b32.xlu1 %v3048_v41, %s7905_s16  ;;  %3129 = vrot.lane.b32.xlu0 %v3047_v54, %s7905_s16  ;;  %v3263_v41 = vpack.c.bf16 %v7209_v14, %v7209_v14 }
 0x447   : > { %3133 = vrot.lane.b32.xlu2 %v3049_v22, %s7905_s16  ;;  %v7213_v22 = vld [vmem:[%s7976_s25 + $0xf6] sm:$0xff] }
 0x448   : > { %v2885_v56 = vpop.permute.xlu1 %2884  ;;  %v2883_v0 = vpop.permute.xlu0 %2882 }
 0x449   : > { %2972 = vst.msk [vmem:[#allocation2 + $0x24] sm:$0xf] %vm2962_vm12, %v2885_v56  ;;  %v2905_v9 = vpop.permute.xlu2 %2904 }
 0x44a   : > { %2971 = vst.msk [vmem:[#allocation2 + $0x20] sm:$0xf] %vm2962_vm12, %v2883_v0  ;;  %v3267_v0 = vpack.c.bf16 %v7213_v22, %v7213_v22  ;;  %v7233_v22 = vld [vmem:[%s7976_s25 + $0x196] sm:$0xff] }
 0x44b   : > { %2982 = vst.msk [vmem:[#allocation2 + $0x4c] sm:$0xf] %vm2962_vm12, %v2905_v9  ;;  %v7214_v9 = vld [vmem:[%s7976_s25 + $0xfe] sm:$0xff] }
 0x44c   : > { %v3268_v20 = vpack.c.bf16 %v7214_v9, %v7214_v9 }
 0x44e   : > { %3137 = vrot.lane.b32.xlu1 %v3051_v3, %s7905_s16  ;;  %3135 = vrot.lane.b32.xlu0 %v3050_v8, %s7905_s16  ;;  %v3266_v3 = vpack.c.bf16 %v7212_v23, %v7212_v23 }
 0x44f   : > { %3139 = vrot.lane.b32.xlu2 %v3052_v12, %s7905_s16  ;;  %v7216_v12 = vld [vmem:[%s7976_s25 + $0x10e] sm:$0xff] }
 0x450   : > { %v2891_v37 = vpop.permute.xlu1 %2890  ;;  %v2889_v17 = vpop.permute.xlu0 %2888 }
 0x451   : > { %2975 = vst.msk [vmem:[#allocation2 + $0x30] sm:$0xf] %vm2962_vm12, %v2891_v37  ;;  %v2911_v21 = vpop.permute.xlu2 %2910 }
 0x452   : > { %2974 = vst.msk [vmem:[#allocation2 + $0x2c] sm:$0xf] %vm2962_vm12, %v2889_v17  ;;  %v3270_v17 = vpack.c.bf16 %v7216_v12, %v7216_v12  ;;  %v7237_v12 = vld [vmem:[%s7976_s25 + $0xb8] sm:$0xff] }
 0x453   : > { %2985 = vst.msk [vmem:[#allocation2 + $0x58] sm:$0xf] %vm2962_vm12, %v2911_v21  ;;  %v7217_v21 = vld [vmem:[%s7976_s25 + $0x116] sm:$0xff] }
 0x454   : > { %v3271_v48 = vpack.c.bf16 %v7217_v21, %v7217_v21 }
 0x456   : > { %3143 = vrot.lane.b32.xlu1 %v3054_v18, %s7905_s16  ;;  %3141 = vrot.lane.b32.xlu0 %v3053_v39, %s7905_s16  ;;  %v3269_v18 = vpack.c.bf16 %v7215_v26, %v7215_v26 }
 0x457   : > { %3145 = vrot.lane.b32.xlu2 %v3055_v50, %s7905_s16  ;;  %v7219_v50 = vld [vmem:[%s7976_s25 + $0x126] sm:$0xff] }
 0x458   : > { %v2897_v62 = vpop.permute.xlu1 %2896  ;;  %v2895_v11 = vpop.permute.xlu0 %2894 }
 0x459   : > { %2978 = vst.msk [vmem:[#allocation2 + $0x3c] sm:$0xf] %vm2962_vm12, %v2897_v62  ;;  %v2917_v19 = vpop.permute.xlu2 %2916 }
 0x45a   : > { %2977 = vst.msk [vmem:[#allocation2 + $0x38] sm:$0xf] %vm2962_vm12, %v2895_v11  ;;  %v3273_v11 = vpack.c.bf16 %v7219_v50, %v7219_v50  ;;  %v7240_v50 = vld [vmem:[%s7976_s25 + $0xd0] sm:$0xff] }
 0x45b   : > { %2988 = vst.msk [vmem:[#allocation2 + $0x64] sm:$0xf] %vm2962_vm12, %v2917_v19  ;;  %v7220_v19 = vld [vmem:[%s7976_s25 + $0x12e] sm:$0xff] }
 0x45c   : > { %v3274_v40 = vpack.c.bf16 %v7220_v19, %v7220_v19 }
 0x45e   : > { %3149 = vrot.lane.b32.xlu1 %v3057_v13, %s7905_s16  ;;  %3147 = vrot.lane.b32.xlu0 %v3056_v36, %s7905_s16  ;;  %v3272_v13 = vpack.c.bf16 %v7218_v53, %v7218_v53 }
 0x45f   : > { %3151 = vrot.lane.b32.xlu2 %v3058_v24, %s7905_s16  ;;  %v7222_v24 = vld [vmem:[%s7976_s25 + $0x13e] sm:$0xff] }
 0x460   : > { %v2903_v33 = vpop.permute.xlu1 %2902  ;;  %v2901_v34 = vpop.permute.xlu0 %2900 }
 0x461   : > { %2981 = vst.msk [vmem:[#allocation2 + $0x48] sm:$0xf] %vm2962_vm12, %v2903_v33  ;;  %v2923_v47 = vpop.permute.xlu2 %2922 }
 0x462   : > { %2980 = vst.msk [vmem:[#allocation2 + $0x44] sm:$0xf] %vm2962_vm12, %v2901_v34  ;;  %v3276_v34 = vpack.c.bf16 %v7222_v24, %v7222_v24  ;;  %v7243_v24 = vld [vmem:[%s7976_s25 + $0xe8] sm:$0xff] }
 0x463   : > { %2991 = vst.msk [vmem:[#allocation2 + $0x70] sm:$0xf] %vm2962_vm12, %v2923_v47  ;;  %v7223_v47 = vld [vmem:[%s7976_s25 + $0x146] sm:$0xff] }
 0x464   : > { %v3277_v51 = vpack.c.bf16 %v7223_v47, %v7223_v47 }
 0x466   : > { %3155 = vrot.lane.b32.xlu1 %v3060_v38, %s7905_s16  ;;  %3153 = vrot.lane.b32.xlu0 %v3059_v44, %s7905_s16  ;;  %v3275_v38 = vpack.c.bf16 %v7221_v25, %v7221_v25 }
 0x467   : > { %3320 = vrot.lane.b32.xlu2 %v3256_v59, %s7906_s17  ;;  %v7225_v59 = vld [vmem:[%s7976_s25 + $0x156] sm:$0xff] }
 0x468   : > { %v2909_v45 = vpop.permute.xlu1 %2908  ;;  %v2907_v46 = vpop.permute.xlu0 %2906 }
 0x469   : > { %2984 = vst.msk [vmem:[#allocation2 + $0x54] sm:$0xf] %vm2962_vm12, %v2909_v45  ;;  %v2929_v5 = vpop.permute.xlu2 %2928 }
 0x46a   : > { %2983 = vst.msk [vmem:[#allocation2 + $0x50] sm:$0xf] %vm2962_vm12, %v2907_v46  ;;  %v3279_v46 = vpack.c.bf16 %v7225_v59, %v7225_v59  ;;  %v7246_v59 = vld [vmem:[%s7976_s25 + $0x100] sm:$0xff] }
 0x46b   : > { %2994 = vst.msk [vmem:[#allocation2 + $0x7c] sm:$0xf] %vm2962_vm12, %v2929_v5  ;;  %v7226_v5 = vld [vmem:[%s7976_s25 + $0x15e] sm:$0xff] }
 0x46c   : > { %v3280_v6 = vpack.c.bf16 %v7226_v5, %v7226_v5 }
 0x46e   : > { %3324 = vrot.lane.b32.xlu1 %v3258_v7, %s7906_s17  ;;  %3322 = vrot.lane.b32.xlu0 %v3257_v57, %s7906_s17  ;;  %v3278_v7 = vpack.c.bf16 %v7224_v60, %v7224_v60 }
 0x46f   : > { %3326 = vrot.lane.b32.xlu2 %v3259_v15, %s7906_s17  ;;  %v7228_v15 = vld [vmem:[%s7976_s25 + $0x16e] sm:$0xff] }
 0x470   : > { %v2915_v32 = vpop.permute.xlu1 %2914  ;;  %v2913_v42 = vpop.permute.xlu0 %2912 }
 0x471   : > { %2987 = vst.msk [vmem:[#allocation2 + $0x60] sm:$0xf] %vm2962_vm12, %v2915_v32  ;;  %v3098_v2 = vpop.permute.xlu2 %3097 }
 0x472   : > { %2986 = vst.msk [vmem:[#allocation2 + $0x5c] sm:$0xf] %vm2962_vm12, %v2913_v42  ;;  %v3282_v42 = vpack.c.bf16 %v7228_v15, %v7228_v15  ;;  %v7249_v15 = vld [vmem:[%s7976_s25 + $0x118] sm:$0xff] }
 0x473   : > { %3192 = vst.msk [vmem:[#allocation2 + $0x8] sm:$0xf] %vm3189_vm13, %v3098_v2  ;;  %v7229_v2 = vld [vmem:[%s7976_s25 + $0x176] sm:$0xff] }
 0x474   : > { %v3283_v4 = vpack.c.bf16 %v7229_v2, %v7229_v2 }
 0x476   : > { %3330 = vrot.lane.b32.xlu1 %v3261_v43, %s7906_s17  ;;  %3328 = vrot.lane.b32.xlu0 %v3260_v52, %s7906_s17  ;;  %v3281_v43 = vpack.c.bf16 %v7227_v27, %v7227_v27 }
 0x477   : > { %3332 = vrot.lane.b32.xlu2 %v3262_v10, %s7906_s17  ;;  %v7231_v10 = vld [vmem:[%s7976_s25 + $0x186] sm:$0xff] }
 0x478   : > { %v2921_v49 = vpop.permute.xlu1 %2920  ;;  %v2919_v31 = vpop.permute.xlu0 %2918 }
 0x479   : > { %2990 = vst.msk [vmem:[#allocation2 + $0x6c] sm:$0xf] %vm2962_vm12, %v2921_v49  ;;  %v3104_v54 = vpop.permute.xlu2 %3103 }
 0x47a   : > { %2989 = vst.msk [vmem:[#allocation2 + $0x68] sm:$0xf] %vm2962_vm12, %v2919_v31  ;;  %v3285_v31 = vpack.c.bf16 %v7231_v10, %v7231_v10  ;;  %v7252_v10 = vld [vmem:[%s7976_s25 + $0x130] sm:$0xff] }
 0x47b   : > { %3195 = vst.msk [vmem:[#allocation2 + $0x14] sm:$0xf] %vm3189_vm13, %v3104_v54  ;;  %v7232_v54 = vld [vmem:[%s7976_s25 + $0x18e] sm:$0xff] }
 0x47c   : > { %v3286_v55 = vpack.c.bf16 %v7232_v54, %v7232_v54 }
 0x47e   : > { %3336 = vrot.lane.b32.xlu1 %v3264_v35, %s7906_s17  ;;  %3334 = vrot.lane.b32.xlu0 %v3263_v41, %s7906_s17  ;;  %v3284_v35 = vpack.c.bf16 %v7230_v16, %v7230_v16 }
 0x47f   : > { %3338 = vrot.lane.b32.xlu2 %v3265_v58, %s7906_s17  ;;  %v7235_v58 = vld [vmem:[%s7976_s25 + $0xa8] sm:$0xff] }
 0x480   : > { %v2927_v63 = vpop.permute.xlu1 %2926  ;;  %v2925_v56 = vpop.permute.xlu0 %2924 }
 0x481   : > { %2993 = vst.msk [vmem:[#allocation2 + $0x78] sm:$0xf] %vm2962_vm12, %v2927_v63  ;;  %v3110_v8 = vpop.permute.xlu2 %3109 }
 0x482   : > { %2992 = vst.msk [vmem:[#allocation2 + $0x74] sm:$0xf] %vm2962_vm12, %v2925_v56  ;;  %v3483_v56 = vpack.c.bf16 %v7235_v58, %v7235_v58  ;;  %v7255_v58 = vld [vmem:[%s7976_s25 + $0x148] sm:$0xff]  ;;  %vm6340_vm12 = vcmask 883712  }
 0x483   : > { %3198 = vst.msk [vmem:[#allocation2 + $0x20] sm:$0xf] %vm3189_vm13, %v3110_v8  ;;  %v7236_v8 = vld [vmem:[%s7976_s25 + $0xb0] sm:$0xff] }
 0x484   : > { %v3484_v9 = vpack.c.bf16 %v7236_v8, %v7236_v8 }
 0x486   : > { %3342 = vrot.lane.b32.xlu1 %v3267_v0, %s7906_s17  ;;  %3340 = vrot.lane.b32.xlu0 %v3266_v3, %s7906_s17  ;;  %v3287_v0 = vpack.c.bf16 %v7233_v22, %v7233_v22 }
 0x487   : > { %3344 = vrot.lane.b32.xlu2 %v3268_v20, %s7906_s17  ;;  %v7238_v20 = vld [vmem:[%s7976_s25 + $0xc0] sm:$0xff] }
 0x488   : > { %v3096_v30 = vpop.permute.xlu1 %3095  ;;  %v3094_v37 = vpop.permute.xlu0 %3093 }
 0x489   : > { %3191 = vst.msk [vmem:[#allocation2 + $0x4] sm:$0xf] %vm3189_vm13, %v3096_v30  ;;  %v3116_v39 = vpop.permute.xlu2 %3115 }
 0x48a   : > { %3190 = vst.msk [vmem:[#allocation2] sm:$0xf] %vm3189_vm13, %v3094_v37  ;;  %v3486_v37 = vpack.c.bf16 %v7238_v20, %v7238_v20  ;;  %v7258_v20 = vld [vmem:[%s7976_s25 + $0x160] sm:$0xff] }
 0x48b   : > { %3201 = vst.msk [vmem:[#allocation2 + $0x2c] sm:$0xf] %vm3189_vm13, %v3116_v39  ;;  %v7239_v39 = vld [vmem:[%s7976_s25 + $0xc8] sm:$0xff] }
 0x48c   : > { %v3487_v21 = vpack.c.bf16 %v7239_v39, %v7239_v39 }
 0x48e   : > { %3348 = vrot.lane.b32.xlu1 %v3270_v17, %s7906_s17  ;;  %3346 = vrot.lane.b32.xlu0 %v3269_v18, %s7906_s17  ;;  %v3485_v17 = vpack.c.bf16 %v7237_v12, %v7237_v12 }
 0x48f   : > { %3350 = vrot.lane.b32.xlu2 %v3271_v48, %s7906_s17  ;;  %v7241_v48 = vld [vmem:[%s7976_s25 + $0xd8] sm:$0xff] }
 0x490   : > { %v3102_v61 = vpop.permute.xlu1 %3101  ;;  %v3100_v62 = vpop.permute.xlu0 %3099 }
 0x491   : > { %3194 = vst.msk [vmem:[#allocation2 + $0x10] sm:$0xf] %vm3189_vm13, %v3102_v61  ;;  %v3122_v36 = vpop.permute.xlu2 %3121 }
 0x492   : > { %3193 = vst.msk [vmem:[#allocation2 + $0xc] sm:$0xf] %vm3189_vm13, %v3100_v62  ;;  %v3489_v62 = vpack.c.bf16 %v7241_v48, %v7241_v48  ;;  %v7261_v48 = vld [vmem:[%s7976_s25 + $0x178] sm:$0xff] }
 0x493   : > { %3204 = vst.msk [vmem:[#allocation2 + $0x38] sm:$0xf] %vm3189_vm13, %v3122_v36  ;;  %v7242_v36 = vld [vmem:[%s7976_s25 + $0xe0] sm:$0xff] }
 0x494   : > { %v3490_v19 = vpack.c.bf16 %v7242_v36, %v7242_v36 }
 0x496   : > { %3354 = vrot.lane.b32.xlu1 %v3273_v11, %s7906_s17  ;;  %3352 = vrot.lane.b32.xlu0 %v3272_v13, %s7906_s17  ;;  %v3488_v11 = vpack.c.bf16 %v7240_v50, %v7240_v50 }
 0x497   : > { %3356 = vrot.lane.b32.xlu2 %v3274_v40, %s7906_s17  ;;  %v7244_v40 = vld [vmem:[%s7976_s25 + $0xf0] sm:$0xff] }
 0x498   : > { %v3108_v28 = vpop.permute.xlu1 %3107  ;;  %v3106_v33 = vpop.permute.xlu0 %3105 }
 0x499   : > { %3197 = vst.msk [vmem:[#allocation2 + $0x1c] sm:$0xf] %vm3189_vm13, %v3108_v28  ;;  %v3128_v44 = vpop.permute.xlu2 %3127 }
 0x49a   : > { %3196 = vst.msk [vmem:[#allocation2 + $0x18] sm:$0xf] %vm3189_vm13, %v3106_v33  ;;  %v3492_v33 = vpack.c.bf16 %v7244_v40, %v7244_v40  ;;  %v7264_v40 = vld [vmem:[%s7976_s25 + $0x190] sm:$0xff] }
 0x49b   : > { %3207 = vst.msk [vmem:[#allocation2 + $0x44] sm:$0xf] %vm3189_vm13, %v3128_v44  ;;  %v7245_v44 = vld [vmem:[%s7976_s25 + $0xf8] sm:$0xff] }
 0x49c   : > { %v3493_v47 = vpack.c.bf16 %v7245_v44, %v7245_v44 }
 0x49e   : > { %3360 = vrot.lane.b32.xlu1 %v3276_v34, %s7906_s17  ;;  %3358 = vrot.lane.b32.xlu0 %v3275_v38, %s7906_s17  ;;  %v3491_v34 = vpack.c.bf16 %v7243_v24, %v7243_v24 }
 0x49f   : > { %3362 = vrot.lane.b32.xlu2 %v3277_v51, %s7906_s17  ;;  %v7247_v51 = vld [vmem:[%s7976_s25 + $0x108] sm:$0xff] }
 0x4a0   : > { %v3114_v1 = vpop.permute.xlu1 %3113  ;;  %v3112_v45 = vpop.permute.xlu0 %3111 }
 0x4a1   : > { %3200 = vst.msk [vmem:[#allocation2 + $0x28] sm:$0xf] %vm3189_vm13, %v3114_v1  ;;  %v3134_v57 = vpop.permute.xlu2 %3133 }
 0x4a2   : > { %3199 = vst.msk [vmem:[#allocation2 + $0x24] sm:$0xf] %vm3189_vm13, %v3112_v45  ;;  %v3495_v45 = vpack.c.bf16 %v7247_v51, %v7247_v51  ;;  %v7268_v51 = vld [vmem:[%s7976_s25 + $0xa9] sm:$0xff] }
 0x4a3   : > { %3210 = vst.msk [vmem:[#allocation2 + $0x50] sm:$0xf] %vm3189_vm13, %v3134_v57  ;;  %v7248_v57 = vld [vmem:[%s7976_s25 + $0x110] sm:$0xff] }
 0x4a4   : > { %v3496_v5 = vpack.c.bf16 %v7248_v57, %v7248_v57 }
 0x4a6   : > { %3366 = vrot.lane.b32.xlu1 %v3279_v46, %s7906_s17  ;;  %3364 = vrot.lane.b32.xlu0 %v3278_v7, %s7906_s17  ;;  %v3494_v46 = vpack.c.bf16 %v7246_v59, %v7246_v59 }
 0x4a7   : > { %3368 = vrot.lane.b32.xlu2 %v3280_v6, %s7906_s17  ;;  %v7250_v6 = vld [vmem:[%s7976_s25 + $0x120] sm:$0xff] }
 0x4a8   : > { %v3120_v29 = vpop.permute.xlu1 %3119  ;;  %v3118_v32 = vpop.permute.xlu0 %3117 }
 0x4a9   : > { %3203 = vst.msk [vmem:[#allocation2 + $0x34] sm:$0xf] %vm3189_vm13, %v3120_v29  ;;  %v3140_v52 = vpop.permute.xlu2 %3139 }
 0x4aa   : > { %3202 = vst.msk [vmem:[#allocation2 + $0x30] sm:$0xf] %vm3189_vm13, %v3118_v32  ;;  %v9543_v32 = vpack.c.bf16 %v7250_v6, %v7250_v6  ;;  %v7271_v6 = vld [vmem:[%s7976_s25 + $0xc1] sm:$0xff] }
 0x4ab   : > { %3213 = vst.msk [vmem:[#allocation2 + $0x5c] sm:$0xf] %vm3189_vm13, %v3140_v52  ;;  %v7251_v52 = vld [vmem:[%s7976_s25 + $0x128] sm:$0xff] }
 0x4ac   : > { %v9547_v2 = vpack.c.bf16 %v7251_v52, %v7251_v52  ;;  %v7273_v52 = vld [vmem:[%s7976_s25 + $0xd1] sm:$0xff] }
 0x4ae   : > { %3372 = vrot.lane.b32.xlu1 %v3282_v42, %s7906_s17  ;;  %3370 = vrot.lane.b32.xlu0 %v3281_v43, %s7906_s17  ;;  %v3497_v42 = vpack.c.bf16 %v7249_v15, %v7249_v15 }
 0x4af   : > { %3374 = vrot.lane.b32.xlu2 %v3283_v4, %s7906_s17  ;;  %v7253_v4 = vld [vmem:[%s7976_s25 + $0x138] sm:$0xff] }
 0x4b0   : > { %v3126_v14 = vpop.permute.xlu1 %3125  ;;  %v3124_v49 = vpop.permute.xlu0 %3123 }
 0x4b1   : > { %3206 = vst.msk [vmem:[#allocation2 + $0x40] sm:$0xf] %vm3189_vm13, %v3126_v14  ;;  %v3146_v41 = vpop.permute.xlu2 %3145 }
 0x4b2   : > { %3205 = vst.msk [vmem:[#allocation2 + $0x3c] sm:$0xf] %vm3189_vm13, %v3124_v49  ;;  %v9558_v49 = vpack.c.bf16 %v7253_v4, %v7253_v4  ;;  %v3715_v4 = vpack.c.bf16 %v7273_v52, %v7273_v52  ;;  %v7290_v52 = vld [vmem:[%s7976_s25 + $0x159] sm:$0xff] }
 0x4b3   : > { %3216 = vst.msk [vmem:[#allocation2 + $0x68] sm:$0xf] %vm3189_vm13, %v3146_v41  ;;  %v7254_v41 = vld [vmem:[%s7976_s25 + $0x140] sm:$0xff] }
 0x4b4   : > { %v9564_v54 = vpack.c.bf16 %v7254_v41, %v7254_v41 }
 0x4b6   : > { %3378 = vrot.lane.b32.xlu1 %v3285_v31, %s7906_s17  ;;  %3376 = vrot.lane.b32.xlu0 %v3284_v35, %s7906_s17  ;;  %v9560_v31 = vpack.c.bf16 %v7252_v10, %v7252_v10  ;;  %v7275_v10 = vld [vmem:[%s7976_s25 + $0xe1] sm:$0xff] }
 0x4b7   : > { %3380 = vrot.lane.b32.xlu2 %v3286_v55, %s7906_s17  ;;  %v7256_v55 = vld [vmem:[%s7976_s25 + $0x150] sm:$0xff]  ;;  %v3717_v41 = vpack.c.bf16 %v7275_v10, %v7275_v10 }
 0x4b8   : > { %v3132_v23 = vpop.permute.xlu1 %3131  ;;  %v3130_v63 = vpop.permute.xlu0 %3129 }
 0x4b9   : > { %3209 = vst.msk [vmem:[#allocation2 + $0x4c] sm:$0xf] %vm3189_vm13, %v3132_v23  ;;  %v3152_v3 = vpop.permute.xlu2 %3151 }
 0x4ba   : > { %3208 = vst.msk [vmem:[#allocation2 + $0x48] sm:$0xf] %vm3189_vm13, %v3130_v63  ;;  %v9576_v63 = vpack.c.bf16 %v7256_v55, %v7256_v55 }
 0x4bb   : > { %3219 = vst.msk [vmem:[#allocation2 + $0x74] sm:$0xf] %vm3189_vm13, %v3152_v3  ;;  %v7257_v3 = vld [vmem:[%s7976_s25 + $0x158] sm:$0xff] }
 0x4bc   : > { %v9582_v8 = vpack.c.bf16 %v7257_v3, %v7257_v3  ;;  %v7277_v3 = vld [vmem:[%s7976_s25 + $0xf1] sm:$0xff] }
 0x4be   : > { %3547 = vrot.lane.b32.xlu1 %v3483_v56, %s7907_s18  ;;  %3382 = vrot.lane.b32.xlu0 %v3287_v0, %s7906_s17  ;;  %v9578_v56 = vpack.c.bf16 %v7255_v58, %v7255_v58 }
 0x4bf   : > { %3549 = vrot.lane.b32.xlu2 %v3484_v9, %s7907_s18  ;;  %v7259_v9 = vld [vmem:[%s7976_s25 + $0x168] sm:$0xff] }
 0x4c0   : > { %v3138_v26 = vpop.permute.xlu1 %3137  ;;  %v3136_v30 = vpop.permute.xlu0 %3135 }
 0x4c1   : > { %3212 = vst.msk [vmem:[#allocation2 + $0x58] sm:$0xf] %vm3189_vm13, %v3138_v26  ;;  %v3321_v18 = vpop.permute.xlu2 %3320 }
 0x4c2   : > { %3211 = vst.msk [vmem:[#allocation2 + $0x54] sm:$0xf] %vm3189_vm13, %v3136_v30  ;;  %v9594_v30 = vpack.c.bf16 %v7259_v9, %v7259_v9 }
 0x4c3   : > { %3417 = vst.msk [vmem:[#allocation2] sm:$0xf] %vm3416_vm14, %v3321_v18  ;;  %v7260_v18 = vld [vmem:[%s7976_s25 + $0x170] sm:$0xff] }
 0x4c4   : > { %v9600_v39 = vpack.c.bf16 %v7260_v18, %v7260_v18  ;;  %v7279_v18 = vld [vmem:[%s7976_s25 + $0x101] sm:$0xff] }
 0x4c6   : > { %3553 = vrot.lane.b32.xlu1 %v3486_v37, %s7907_s18  ;;  %3551 = vrot.lane.b32.xlu0 %v3485_v17, %s7907_s18  ;;  %v9596_v37 = vpack.c.bf16 %v7258_v20, %v7258_v20 }
 0x4c7   : > { %3555 = vrot.lane.b32.xlu2 %v3487_v21, %s7907_s18  ;;  %v7262_v21 = vld [vmem:[%s7976_s25 + $0x180] sm:$0xff] }
 0x4c8   : > { %v3144_v53 = vpop.permute.xlu1 %3143  ;;  %v3142_v61 = vpop.permute.xlu0 %3141 }
 0x4c9   : > { %3215 = vst.msk [vmem:[#allocation2 + $0x64] sm:$0xf] %vm3189_vm13, %v3144_v53  ;;  %v3327_v13 = vpop.permute.xlu2 %3326 }
 0x4ca   : > { %3214 = vst.msk [vmem:[#allocation2 + $0x60] sm:$0xf] %vm3189_vm13, %v3142_v61  ;;  %v9612_v61 = vpack.c.bf16 %v7262_v21, %v7262_v21  ;;  %v3721_v21 = vpack.c.bf16 %v7279_v18, %v7279_v18  ;;  %v7296_v18 = vld [vmem:[%s7976_s25 + $0x189] sm:$0xff] }
 0x4cb   : > { %3420 = vst.msk [vmem:[#allocation2 + $0xc] sm:$0xf] %vm3416_vm14, %v3327_v13  ;;  %v7263_v13 = vld [vmem:[%s7976_s25 + $0x188] sm:$0xff] }
 0x4cc   : > { %v9618_v36 = vpack.c.bf16 %v7263_v13, %v7263_v13 }
 0x4ce   : > { %3559 = vrot.lane.b32.xlu1 %v3489_v62, %s7907_s18  ;;  %3557 = vrot.lane.b32.xlu0 %v3488_v11, %s7907_s18  ;;  %v9614_v62 = vpack.c.bf16 %v7261_v48, %v7261_v48  ;;  %v7281_v48 = vld [vmem:[%s7976_s25 + $0x111] sm:$0xff] }
 0x4cf   : > { %3561 = vrot.lane.b32.xlu2 %v3490_v19, %s7907_s18  ;;  %v7265_v19 = vld [vmem:[%s7976_s25 + $0x198] sm:$0xff]  ;;  %v3723_v13 = vpack.c.bf16 %v7281_v48, %v7281_v48 }
 0x4d0   : > { %v3150_v25 = vpop.permute.xlu1 %3149  ;;  %v3148_v28 = vpop.permute.xlu0 %3147 }
 0x4d1   : > { %3218 = vst.msk [vmem:[#allocation2 + $0x70] sm:$0xf] %vm3189_vm13, %v3150_v25  ;;  %v3333_v38 = vpop.permute.xlu2 %3332 }
 0x4d2   : > { %3217 = vst.msk [vmem:[#allocation2 + $0x6c] sm:$0xf] %vm3189_vm13, %v3148_v28  ;;  %v9630_v28 = vpack.c.bf16 %v7265_v19, %v7265_v19 }
 0x4d3   : > { %3423 = vst.msk [vmem:[#allocation2 + $0x18] sm:$0xf] %vm3416_vm14, %v3333_v38  ;;  %v7266_v38 = vld [vmem:[%s7976_s25 + $0x1a0] sm:$0xff] }
 0x4d4   : > { %v9636_v44 = vpack.c.bf16 %v7266_v38, %v7266_v38  ;;  %v7283_v38 = vld [vmem:[%s7976_s25 + $0x121] sm:$0xff] }
 0x4d6   : > { %3565 = vrot.lane.b32.xlu1 %v3492_v33, %s7907_s18  ;;  %3563 = vrot.lane.b32.xlu0 %v3491_v34, %s7907_s18  ;;  %v9632_v33 = vpack.c.bf16 %v7264_v40, %v7264_v40 }
 0x4d7   : > { %3567 = vrot.lane.b32.xlu2 %v3493_v47, %s7907_s18  ;;  %v7269_v47 = vld [vmem:[%s7976_s25 + $0xb1] sm:$0xff] }
 0x4d8   : > { %v3156_v60 = vpop.permute.xlu1 %3155  ;;  %v3154_v1 = vpop.permute.xlu0 %3153 }
 0x4d9   : > { %3221 = vst.msk [vmem:[#allocation2 + $0x7c] sm:$0xf] %vm3189_vm13, %v3156_v60  ;;  %v3339_v7 = vpop.permute.xlu2 %3338 }
 0x4da   : > { %3220 = vst.msk [vmem:[#allocation2 + $0x78] sm:$0xf] %vm3189_vm13, %v3154_v1  ;;  %v3711_v1 = vpack.c.bf16 %v7269_v47, %v7269_v47 }
 0x4db   : > { %3426 = vst.msk [vmem:[#allocation2 + $0x24] sm:$0xf] %vm3416_vm14, %v3339_v7  ;;  %v7270_v7 = vld [vmem:[%s7976_s25 + $0xb9] sm:$0xff] }
 0x4dc   : > { %v3712_v57 = vpack.c.bf16 %v7270_v7, %v7270_v7  ;;  %v7287_v7 = vld [vmem:[%s7976_s25 + $0x141] sm:$0xff] }
 0x4de   : > { %3571 = vrot.lane.b32.xlu1 %v3495_v45, %s7907_s18  ;;  %3569 = vrot.lane.b32.xlu0 %v3494_v46, %s7907_s18  ;;  %v3710_v45 = vpack.c.bf16 %v7268_v51, %v7268_v51 }
 0x4df   : > { %3573 = vrot.lane.b32.xlu2 %v3496_v5, %s7907_s18  ;;  %v7272_v5 = vld [vmem:[%s7976_s25 + $0xc9] sm:$0xff] }
 0x4e0   : > { %v3325_v27 = vpop.permute.xlu1 %3324  ;;  %v3323_v29 = vpop.permute.xlu0 %3322 }
 0x4e1   : > { %3419 = vst.msk [vmem:[#allocation2 + $0x8] sm:$0xf] %vm3416_vm14, %v3325_v27  ;;  %v3345_v43 = vpop.permute.xlu2 %3344 }
 0x4e2   : > { %3418 = vst.msk [vmem:[#allocation2 + $0x4] sm:$0xf] %vm3416_vm14, %v3323_v29  ;;  %v3714_v29 = vpack.c.bf16 %v7272_v5, %v7272_v5 }
 0x4e3   : > { %3429 = vst.msk [vmem:[#allocation2 + $0x30] sm:$0xf] %vm3416_vm14, %v3345_v43 }
 0x4e6   : > { %3577 = vrot.lane.b32.xlu1 %v9543_v32, %s7907_s18  ;;  %3575 = vrot.lane.b32.xlu0 %v3497_v42, %s7907_s18  ;;  %v3713_v42 = vpack.c.bf16 %v7271_v6, %v7271_v6 }
 0x4e7   : > { %3579 = vrot.lane.b32.xlu2 %v9547_v2, %s7907_s18 }
 0x4e8   : > { %v3331_v16 = vpop.permute.xlu1 %3330  ;;  %v3329_v14 = vpop.permute.xlu0 %3328 }
 0x4e9   : > { %3422 = vst.msk [vmem:[#allocation2 + $0x14] sm:$0xf] %vm3416_vm14, %v3331_v16  ;;  %v3351_v35 = vpop.permute.xlu2 %3350  ;;  %v7274_v16 = vld [vmem:[%s7976_s25 + $0xd9] sm:$0xff] }
 0x4ea   : > { %3421 = vst.msk [vmem:[#allocation2 + $0x10] sm:$0xf] %vm3416_vm14, %v3329_v14  ;;  %v3716_v55 = vpack.c.bf16 %v7274_v16, %v7274_v16 }
 0x4eb   : > { %3432 = vst.msk [vmem:[#allocation2 + $0x3c] sm:$0xf] %vm3416_vm14, %v3351_v35 }
 0x4ee   : > { %3583 = vrot.lane.b32.xlu1 %v9558_v49, %s7907_s18  ;;  %3581 = vrot.lane.b32.xlu0 %v9560_v31, %s7907_s18 }
 0x4ef   : > { %3585 = vrot.lane.b32.xlu2 %v9564_v54, %s7907_s18 }
 0x4f0   : > { %v3337_v22 = vpop.permute.xlu1 %3336  ;;  %v3335_v23 = vpop.permute.xlu0 %3334 }
 0x4f1   : > { %3425 = vst.msk [vmem:[#allocation2 + $0x20] sm:$0xf] %vm3416_vm14, %v3337_v22  ;;  %v3357_v0 = vpop.permute.xlu2 %3356  ;;  %v7276_v22 = vld [vmem:[%s7976_s25 + $0xe9] sm:$0xff] }
 0x4f2   : > { %3424 = vst.msk [vmem:[#allocation2 + $0x1c] sm:$0xf] %vm3416_vm14, %v3335_v23  ;;  %v3718_v23 = vpack.c.bf16 %v7276_v22, %v7276_v22  ;;  %v7293_v22 = vld [vmem:[%s7976_s25 + $0x171] sm:$0xff] }
 0x4f3   : > { %3435 = vst.msk [vmem:[#allocation2 + $0x48] sm:$0xf] %vm3416_vm14, %v3357_v0  ;;  %v7278_v0 = vld [vmem:[%s7976_s25 + $0xf9] sm:$0xff] }
 0x4f6   : > { %3589 = vrot.lane.b32.xlu1 %v9576_v63, %s7907_s18  ;;  %3587 = vrot.lane.b32.xlu0 %v9578_v56, %s7907_s18 }
 0x4f7   : > { %3591 = vrot.lane.b32.xlu2 %v9582_v8, %s7907_s18 }
 0x4f8   : > { %v3343_v12 = vpop.permute.xlu1 %3342  ;;  %v3341_v26 = vpop.permute.xlu0 %3340 }
 0x4f9   : > { %3428 = vst.msk [vmem:[#allocation2 + $0x2c] sm:$0xf] %vm3416_vm14, %v3343_v12  ;;  %v3363_v17 = vpop.permute.xlu2 %3362  ;;  %v3720_v12 = vpack.c.bf16 %v7278_v0, %v7278_v0 }
 0x4fa   : > { %3427 = vst.msk [vmem:[#allocation2 + $0x28] sm:$0xf] %vm3416_vm14, %v3341_v26  ;;  %v3719_v26 = vpack.c.bf16 %v7277_v3, %v7277_v3 }
 0x4fb   : > { %3438 = vst.msk [vmem:[#allocation2 + $0x54] sm:$0xf] %vm3416_vm14, %v3363_v17 }
 0x4fe   : > { %3595 = vrot.lane.b32.xlu1 %v9594_v30, %s7907_s18  ;;  %3593 = vrot.lane.b32.xlu0 %v9596_v37, %s7907_s18 }
 0x4ff   : > { %3597 = vrot.lane.b32.xlu2 %v9600_v39, %s7907_s18 }
 0x500   : > { %v3349_v50 = vpop.permute.xlu1 %3348  ;;  %v3347_v53 = vpop.permute.xlu0 %3346 }
 0x501   : > { %3431 = vst.msk [vmem:[#allocation2 + $0x38] sm:$0xf] %vm3416_vm14, %v3349_v50  ;;  %v3369_v11 = vpop.permute.xlu2 %3368  ;;  %v7280_v50 = vld [vmem:[%s7976_s25 + $0x109] sm:$0xff] }
 0x502   : > { %3430 = vst.msk [vmem:[#allocation2 + $0x34] sm:$0xf] %vm3416_vm14, %v3347_v53  ;;  %v3722_v19 = vpack.c.bf16 %v7280_v50, %v7280_v50 }
 0x503   : > { %3441 = vst.msk [vmem:[#allocation2 + $0x60] sm:$0xf] %vm3416_vm14, %v3369_v11 }
 0x506   : > { %3601 = vrot.lane.b32.xlu1 %v9612_v61, %s7907_s18  ;;  %3599 = vrot.lane.b32.xlu0 %v9614_v62, %s7907_s18 }
 0x507   : > { %3603 = vrot.lane.b32.xlu2 %v9618_v36, %s7907_s18 }
 0x508   : > { %v3355_v24 = vpop.permute.xlu1 %3354  ;;  %v3353_v25 = vpop.permute.xlu0 %3352 }
 0x509   : > { %3434 = vst.msk [vmem:[#allocation2 + $0x44] sm:$0xf] %vm3416_vm14, %v3355_v24  ;;  %v3375_v34 = vpop.permute.xlu2 %3374  ;;  %v7282_v24 = vld [vmem:[%s7976_s25 + $0x119] sm:$0xff] }
 0x50a   : > { %3433 = vst.msk [vmem:[#allocation2 + $0x40] sm:$0xf] %vm3416_vm14, %v3353_v25  ;;  %v3724_v25 = vpack.c.bf16 %v7282_v24, %v7282_v24  ;;  %v7299_v24 = vld [vmem:[%s7976_s25 + $0x1a1] sm:$0xff] }
 0x50b   : > { %3444 = vst.msk [vmem:[#allocation2 + $0x6c] sm:$0xf] %vm3416_vm14, %v3375_v34  ;;  %v7284_v34 = vld [vmem:[%s7976_s25 + $0x129] sm:$0xff] }
 0x50e   : > { %3607 = vrot.lane.b32.xlu1 %v9630_v28, %s7907_s18  ;;  %3605 = vrot.lane.b32.xlu0 %v9632_v33, %s7907_s18 }
 0x50f   : > { %3609 = vrot.lane.b32.xlu2 %v9636_v44, %s7907_s18 }
 0x510   : > { %v3361_v59 = vpop.permute.xlu1 %3360  ;;  %v3359_v60 = vpop.permute.xlu0 %3358 }
 0x511   : > { %3437 = vst.msk [vmem:[#allocation2 + $0x50] sm:$0xf] %vm3416_vm14, %v3361_v59  ;;  %v3381_v46 = vpop.permute.xlu2 %3380  ;;  %v9693_v59 = vpack.c.bf16 %v7284_v34, %v7284_v34 }
 0x512   : > { %3436 = vst.msk [vmem:[#allocation2 + $0x4c] sm:$0xf] %vm3416_vm14, %v3359_v60  ;;  %v9695_v60 = vpack.c.bf16 %v7283_v38, %v7283_v38 }
 0x513   : > { %3447 = vst.msk [vmem:[#allocation2 + $0x78] sm:$0xf] %vm3416_vm14, %v3381_v46 }
 0x516   : > { %3776 = vrot.lane.b32.xlu1 %v3711_v1, %s7908_s19  ;;  %3774 = vrot.lane.b32.xlu0 %v3710_v45, %s7908_s19  ;;  %v7285_v45 = vld [vmem:[%s7976_s25 + $0x131] sm:$0xff] }
 0x517   : > { %3778 = vrot.lane.b32.xlu2 %v3712_v57, %s7908_s19  ;;  %v9699_v46 = vpack.c.bf16 %v7285_v45, %v7285_v45  ;;  %v7286_v57 = vld [vmem:[%s7976_s25 + $0x139] sm:$0xff]  ;;  %v7301_v45 = vld [vmem:[%s7976_s25 + $0xaa] sm:$0xff] }
 0x518   : > { %v3367_v15 = vpop.permute.xlu1 %3366  ;;  %v3365_v27 = vpop.permute.xlu0 %3364 }
 0x519   : > { %3440 = vst.msk [vmem:[#allocation2 + $0x5c] sm:$0xf] %vm3416_vm14, %v3367_v15  ;;  %v3550_v43 = vpop.permute.xlu2 %3549  ;;  %v9711_v15 = vpack.c.bf16 %v7287_v7, %v7287_v7  ;;  %v3937_v7 = vpack.c.bf16 %v7301_v45, %v7301_v45  ;;  %v7311_v45 = vld [vmem:[%s7976_s25 + $0xfa] sm:$0xff] }
 0x51a   : > { %3439 = vst.msk [vmem:[#allocation2 + $0x58] sm:$0xf] %vm3416_vm14, %v3365_v27  ;;  %v9713_v27 = vpack.c.bf16 %v7286_v57, %v7286_v57  ;;  %v7303_v57 = vld [vmem:[%s7976_s25 + $0xba] sm:$0xff] }
 0x51b   : > { %3645 = vst.msk [vmem:[#allocation2 + $0x4] sm:$0xf] %vm3643_vm15, %v3550_v43 }
 0x51e   : > { %3782 = vrot.lane.b32.xlu1 %v3714_v29, %s7908_s19  ;;  %3780 = vrot.lane.b32.xlu0 %v3713_v42, %s7908_s19  ;;  %v7288_v42 = vld [vmem:[%s7976_s25 + $0x149] sm:$0xff] }
 0x51f   : > { %3784 = vrot.lane.b32.xlu2 %v3715_v4, %s7908_s19  ;;  %v9717_v43 = vpack.c.bf16 %v7288_v42, %v7288_v42  ;;  %v7289_v4 = vld [vmem:[%s7976_s25 + $0x151] sm:$0xff]  ;;  %v3939_v42 = vpack.c.bf16 %v7303_v57, %v7303_v57 }
 0x520   : > { %v3373_v14 = vpop.permute.xlu1 %3372  ;;  %v3371_v35 = vpop.permute.xlu0 %3370 }
 0x521   : > { %3443 = vst.msk [vmem:[#allocation2 + $0x68] sm:$0xf] %vm3416_vm14, %v3373_v14  ;;  %v3556_v58 = vpop.permute.xlu2 %3555  ;;  %v9729_v14 = vpack.c.bf16 %v7290_v52, %v7290_v52 }
 0x522   : > { %3442 = vst.msk [vmem:[#allocation2 + $0x64] sm:$0xf] %vm3416_vm14, %v3371_v35  ;;  %v9731_v35 = vpack.c.bf16 %v7289_v4, %v7289_v4 }
 0x523   : > { %3648 = vst.msk [vmem:[#allocation2 + $0x10] sm:$0xf] %vm3643_vm15, %v3556_v58 }
 0x526   : > { %3788 = vrot.lane.b32.xlu1 %v3717_v41, %s7908_s19  ;;  %3786 = vrot.lane.b32.xlu0 %v3716_v55, %s7908_s19  ;;  %v7291_v55 = vld [vmem:[%s7976_s25 + $0x161] sm:$0xff] }
 0x527   : > { %3790 = vrot.lane.b32.xlu2 %v3718_v23, %s7908_s19  ;;  %v9735_v58 = vpack.c.bf16 %v7291_v55, %v7291_v55  ;;  %v7292_v23 = vld [vmem:[%s7976_s25 + $0x169] sm:$0xff] }
 0x528   : > { %v3379_v9 = vpop.permute.xlu1 %3378  ;;  %v3377_v20 = vpop.permute.xlu0 %3376  ;;  %v7305_v55 = vld [vmem:[%s7976_s25 + $0xca] sm:$0xff] }
 0x529   : > { %3446 = vst.msk [vmem:[#allocation2 + $0x74] sm:$0xf] %vm3416_vm14, %v3379_v9  ;;  %v3562_v17 = vpop.permute.xlu2 %3561  ;;  %v9747_v9 = vpack.c.bf16 %v7293_v22, %v7293_v22 }
 0x52a   : > { %3445 = vst.msk [vmem:[#allocation2 + $0x70] sm:$0xf] %vm3416_vm14, %v3377_v20  ;;  %v9749_v20 = vpack.c.bf16 %v7292_v23, %v7292_v23 }
 0x52b   : > { %3651 = vst.msk [vmem:[#allocation2 + $0x1c] sm:$0xf] %vm3643_vm15, %v3562_v17 }
 0x52e   : > { %3794 = vrot.lane.b32.xlu1 %v3720_v12, %s7908_s19  ;;  %3792 = vrot.lane.b32.xlu0 %v3719_v26, %s7908_s19  ;;  %v7294_v26 = vld [vmem:[%s7976_s25 + $0x179] sm:$0xff] }
 0x52f   : > { %3796 = vrot.lane.b32.xlu2 %v3721_v21, %s7908_s19  ;;  %v9753_v17 = vpack.c.bf16 %v7294_v26, %v7294_v26  ;;  %v7295_v21 = vld [vmem:[%s7976_s25 + $0x181] sm:$0xff] }
 0x530   : > { %v3548_v53 = vpop.permute.xlu1 %3547  ;;  %v3383_v11 = vpop.permute.xlu0 %3382  ;;  %v7307_v26 = vld [vmem:[%s7976_s25 + $0xda] sm:$0xff] }
 0x531   : > { %3644 = vst.msk [vmem:[#allocation2] sm:$0xf] %vm3643_vm15, %v3548_v53  ;;  %v3568_v40 = vpop.permute.xlu2 %3567  ;;  %v9765_v53 = vpack.c.bf16 %v7296_v18, %v7296_v18  ;;  %v3943_v18 = vpack.c.bf16 %v7307_v26, %v7307_v26  ;;  %v7317_v26 = vld [vmem:[%s7976_s25 + $0x12a] sm:$0xff] }
 0x532   : > { %3448 = vst.msk [vmem:[#allocation2 + $0x7c] sm:$0xf] %vm3416_vm14, %v3383_v11  ;;  %v9767_v11 = vpack.c.bf16 %v7295_v21, %v7295_v21  ;;  %v7309_v21 = vld [vmem:[%s7976_s25 + $0xea] sm:$0xff] }
 0x533   : > { %3654 = vst.msk [vmem:[#allocation2 + $0x28] sm:$0xf] %vm3643_vm15, %v3568_v40 }
 0x536   : > { %3800 = vrot.lane.b32.xlu1 %v3723_v13, %s7908_s19  ;;  %3798 = vrot.lane.b32.xlu0 %v3722_v19, %s7908_s19  ;;  %v7297_v19 = vld [vmem:[%s7976_s25 + $0x191] sm:$0xff] }
 0x537   : > { %3802 = vrot.lane.b32.xlu2 %v3724_v25, %s7908_s19  ;;  %v9771_v40 = vpack.c.bf16 %v7297_v19, %v7297_v19  ;;  %v7298_v25 = vld [vmem:[%s7976_s25 + $0x199] sm:$0xff]  ;;  %v3945_v19 = vpack.c.bf16 %v7309_v21, %v7309_v21 }
 0x538   : > { %v3554_v47 = vpop.permute.xlu1 %3553  ;;  %v3552_v51 = vpop.permute.xlu0 %3551 }
 0x539   : > { %3647 = vst.msk [vmem:[#allocation2 + $0xc] sm:$0xf] %vm3643_vm15, %v3554_v47  ;;  %v3574_v1 = vpop.permute.xlu2 %3573  ;;  %v9783_v47 = vpack.c.bf16 %v7299_v24, %v7299_v24 }
 0x53a   : > { %3646 = vst.msk [vmem:[#allocation2 + $0x8] sm:$0xf] %vm3643_vm15, %v3552_v51  ;;  %v9785_v51 = vpack.c.bf16 %v7298_v25, %v7298_v25 }
 0x53b   : > { %3657 = vst.msk [vmem:[#allocation2 + $0x34] sm:$0xf] %vm3643_vm15, %v3574_v1 }
 0x53e   : > { %3806 = vrot.lane.b32.xlu1 %v9693_v59, %s7908_s19  ;;  %3804 = vrot.lane.b32.xlu0 %v9695_v60, %s7908_s19 }
 0x53f   : > { %3808 = vrot.lane.b32.xlu2 %v9699_v46, %s7908_s19 }
 0x540   : > { %v3560_v5 = vpop.permute.xlu1 %3559  ;;  %v3558_v6 = vpop.permute.xlu0 %3557 }
 0x541   : > { %3650 = vst.msk [vmem:[#allocation2 + $0x18] sm:$0xf] %vm3643_vm15, %v3560_v5  ;;  %v3580_v29 = vpop.permute.xlu2 %3579  ;;  %v7302_v5 = vld [vmem:[%s7976_s25 + $0xb2] sm:$0xff] }
 0x542   : > { %3649 = vst.msk [vmem:[#allocation2 + $0x14] sm:$0xf] %vm3643_vm15, %v3558_v6  ;;  %v3938_v52 = vpack.c.bf16 %v7302_v5, %v7302_v5 }
 0x543   : > { %3660 = vst.msk [vmem:[#allocation2 + $0x40] sm:$0xf] %vm3643_vm15, %v3580_v29 }
 0x546   : > { %3812 = vrot.lane.b32.xlu1 %v9711_v15, %s7908_s19  ;;  %3810 = vrot.lane.b32.xlu0 %v9713_v27, %s7908_s19 }
 0x547   : > { %3814 = vrot.lane.b32.xlu2 %v9717_v43, %s7908_s19 }
 0x548   : > { %v3566_v10 = vpop.permute.xlu1 %3565  ;;  %v3564_v16 = vpop.permute.xlu0 %3563 }
 0x549   : > { %3653 = vst.msk [vmem:[#allocation2 + $0x24] sm:$0xf] %vm3643_vm15, %v3566_v10  ;;  %v3586_v41 = vpop.permute.xlu2 %3585  ;;  %v7304_v10 = vld [vmem:[%s7976_s25 + $0xc2] sm:$0xff] }
 0x54a   : > { %3652 = vst.msk [vmem:[#allocation2 + $0x20] sm:$0xf] %vm3643_vm15, %v3564_v16  ;;  %v3940_v16 = vpack.c.bf16 %v7304_v10, %v7304_v10  ;;  %v7314_v10 = vld [vmem:[%s7976_s25 + $0x112] sm:$0xff] }
 0x54b   : > { %3663 = vst.msk [vmem:[#allocation2 + $0x4c] sm:$0xf] %vm3643_vm15, %v3586_v41  ;;  %v7306_v41 = vld [vmem:[%s7976_s25 + $0xd2] sm:$0xff] }
 0x54e   : > { %3818 = vrot.lane.b32.xlu1 %v9729_v14, %s7908_s19  ;;  %3816 = vrot.lane.b32.xlu0 %v9731_v35, %s7908_s19 }
 0x54f   : > { %3820 = vrot.lane.b32.xlu2 %v9735_v58, %s7908_s19 }
 0x550   : > { %v3572_v0 = vpop.permute.xlu1 %3571  ;;  %v3570_v3 = vpop.permute.xlu0 %3569 }
 0x551   : > { %3656 = vst.msk [vmem:[#allocation2 + $0x30] sm:$0xf] %vm3643_vm15, %v3572_v0  ;;  %v3592_v12 = vpop.permute.xlu2 %3591  ;;  %v3942_v0 = vpack.c.bf16 %v7306_v41, %v7306_v41 }
 0x552   : > { %3655 = vst.msk [vmem:[#allocation2 + $0x2c] sm:$0xf] %vm3643_vm15, %v3570_v3  ;;  %v3941_v3 = vpack.c.bf16 %v7305_v55, %v7305_v55 }
 0x553   : > { %3666 = vst.msk [vmem:[#allocation2 + $0x58] sm:$0xf] %vm3643_vm15, %v3592_v12 }
 0x556   : > { %3824 = vrot.lane.b32.xlu1 %v9747_v9, %s7908_s19  ;;  %3822 = vrot.lane.b32.xlu0 %v9749_v20, %s7908_s19 }
 0x557   : > { %3826 = vrot.lane.b32.xlu2 %v9753_v17, %s7908_s19 }
 0x558   : > { %v3578_v48 = vpop.permute.xlu1 %3577  ;;  %v3576_v50 = vpop.permute.xlu0 %3575 }
 0x559   : > { %3659 = vst.msk [vmem:[#allocation2 + $0x3c] sm:$0xf] %vm3643_vm15, %v3578_v48  ;;  %v3598_v13 = vpop.permute.xlu2 %3597  ;;  %v7308_v48 = vld [vmem:[%s7976_s25 + $0xe2] sm:$0xff] }
 0x55a   : > { %3658 = vst.msk [vmem:[#allocation2 + $0x38] sm:$0xf] %vm3643_vm15, %v3576_v50  ;;  %v3944_v24 = vpack.c.bf16 %v7308_v48, %v7308_v48 }
 0x55b   : > { %3669 = vst.msk [vmem:[#allocation2 + $0x64] sm:$0xf] %vm3643_vm15, %v3598_v13 }
 0x55e   : > { %3830 = vrot.lane.b32.xlu1 %v9765_v53, %s7908_s19  ;;  %3828 = vrot.lane.b32.xlu0 %v9767_v11, %s7908_s19 }
 0x55f   : > { %3832 = vrot.lane.b32.xlu2 %v9771_v40, %s7908_s19 }
 0x560   : > { %v3584_v34 = vpop.permute.xlu1 %3583  ;;  %v3582_v38 = vpop.permute.xlu0 %3581 }
 0x561   : > { %3662 = vst.msk [vmem:[#allocation2 + $0x48] sm:$0xf] %vm3643_vm15, %v3584_v34  ;;  %v3604_v1 = vpop.permute.xlu2 %3603  ;;  %v7310_v34 = vld [vmem:[%s7976_s25 + $0xf2] sm:$0xff] }
 0x562   : > { %3661 = vst.msk [vmem:[#allocation2 + $0x44] sm:$0xf] %vm3643_vm15, %v3582_v38  ;;  %v3946_v38 = vpack.c.bf16 %v7310_v34, %v7310_v34  ;;  %v7320_v34 = vld [vmem:[%s7976_s25 + $0x142] sm:$0xff] }
 0x563   : > { %3672 = vst.msk [vmem:[#allocation2 + $0x70] sm:$0xf] %vm3643_vm15, %v3604_v1  ;;  %v7312_v1 = vld [vmem:[%s7976_s25 + $0x102] sm:$0xff] }
 0x564   : > { %v3948_v5 = vpack.c.bf16 %v7312_v1, %v7312_v1 }
 0x566   : > { %3836 = vrot.lane.b32.xlu1 %v9783_v47, %s7908_s19  ;;  %3834 = vrot.lane.b32.xlu0 %v9785_v51, %s7908_s19 }
 0x567   : > { %4001 = vrot.lane.b32.xlu2 %v3937_v7, %s7909_s20 }
 0x568   : > { %v3590_v6 = vpop.permute.xlu1 %3589  ;;  %v3588_v29 = vpop.permute.xlu0 %3587 }
 0x569   : > { %3665 = vst.msk [vmem:[#allocation2 + $0x54] sm:$0xf] %vm3643_vm15, %v3590_v6  ;;  %v3610_v4 = vpop.permute.xlu2 %3609  ;;  %v3947_v6 = vpack.c.bf16 %v7311_v45, %v7311_v45 }
 0x56a   : > { %3664 = vst.msk [vmem:[#allocation2 + $0x50] sm:$0xf] %vm3643_vm15, %v3588_v29 }
 0x56b   : > { %3675 = vst.msk [vmem:[#allocation2 + $0x7c] sm:$0xf] %vm3643_vm15, %v3610_v4  ;;  %v7315_v4 = vld [vmem:[%s7976_s25 + $0x11a] sm:$0xff] }
 0x56c   : > { %v3951_v55 = vpack.c.bf16 %v7315_v4, %v7315_v4 }
 0x56e   : > { %4005 = vrot.lane.b32.xlu1 %v3939_v42, %s7909_s20  ;;  %4003 = vrot.lane.b32.xlu0 %v3938_v52, %s7909_s20  ;;  %v7313_v42 = vld [vmem:[%s7976_s25 + $0x10a] sm:$0xff] }
 0x56f   : > { %4007 = vrot.lane.b32.xlu2 %v3940_v16, %s7909_s20  ;;  %v3949_v52 = vpack.c.bf16 %v7313_v42, %v7313_v42  ;;  %v7323_v42 = vld [vmem:[%s7976_s25 + $0x15a] sm:$0xff] }
 0x570   : > { %v3596_v22 = vpop.permute.xlu1 %3595  ;;  %v3594_v23 = vpop.permute.xlu0 %3593 }
 0x571   : > { %3668 = vst.msk [vmem:[#allocation2 + $0x60] sm:$0xf] %vm3643_vm15, %v3596_v22  ;;  %v3779_v12 = vpop.permute.xlu2 %3778  ;;  %v3950_v22 = vpack.c.bf16 %v7314_v10, %v7314_v10 }
 0x572   : > { %3667 = vst.msk [vmem:[#allocation2 + $0x5c] sm:$0xf] %vm3643_vm15, %v3594_v23 }
 0x573   : > { %3873 = vst.msk [vmem:[#allocation2 + $0x8] sm:$0xf] %vm3870_vm0, %v3779_v12  ;;  %v7318_v12 = vld [vmem:[%s7976_s25 + $0x132] sm:$0xff] }
 0x574   : > { %v9846_v48 = vpack.c.bf16 %v7318_v12, %v7318_v12 }
 0x576   : > { %4011 = vrot.lane.b32.xlu1 %v3942_v0, %s7909_s20  ;;  %4009 = vrot.lane.b32.xlu0 %v3941_v3, %s7909_s20  ;;  %v7316_v0 = vld [vmem:[%s7976_s25 + $0x122] sm:$0xff] }
 0x577   : > { %4013 = vrot.lane.b32.xlu2 %v3943_v18, %s7909_s20  ;;  %v9836_v3 = vpack.c.bf16 %v7316_v0, %v7316_v0  ;;  %v7326_v0 = vld [vmem:[%s7976_s25 + $0x172] sm:$0xff] }
 0x578   : > { %v3602_v50 = vpop.permute.xlu1 %3601  ;;  %v3600_v13 = vpop.permute.xlu0 %3599 }
 0x579   : > { %3671 = vst.msk [vmem:[#allocation2 + $0x6c] sm:$0xf] %vm3643_vm15, %v3602_v50  ;;  %v3785_v25 = vpop.permute.xlu2 %3784  ;;  %v9848_v50 = vpack.c.bf16 %v7317_v26, %v7317_v26 }
 0x57a   : > { %3670 = vst.msk [vmem:[#allocation2 + $0x68] sm:$0xf] %vm3643_vm15, %v3600_v13 }
 0x57b   : > { %3876 = vst.msk [vmem:[#allocation2 + $0x14] sm:$0xf] %vm3870_vm0, %v3785_v25  ;;  %v7321_v25 = vld [vmem:[%s7976_s25 + $0x14a] sm:$0xff] }
 0x57c   : > { %v9864_v45 = vpack.c.bf16 %v7321_v25, %v7321_v25 }
 0x57e   : > { %4017 = vrot.lane.b32.xlu1 %v3945_v19, %s7909_s20  ;;  %4015 = vrot.lane.b32.xlu0 %v3944_v24, %s7909_s20  ;;  %v7319_v19 = vld [vmem:[%s7976_s25 + $0x13a] sm:$0xff] }
 0x57f   : > { %4019 = vrot.lane.b32.xlu2 %v3946_v38, %s7909_s20  ;;  %v9852_v24 = vpack.c.bf16 %v7319_v19, %v7319_v19  ;;  %v7328_v19 = vld [vmem:[%s7976_s25 + $0x182] sm:$0xff] }
 0x580   : > { %v3608_v7 = vpop.permute.xlu1 %3607  ;;  %v3606_v57 = vpop.permute.xlu0 %3605  ;;  %v9906_v25 = vpack.c.bf16 %v7328_v19, %v7328_v19 }
 0x581   : > { %3674 = vst.msk [vmem:[#allocation2 + $0x78] sm:$0xf] %vm3643_vm15, %v3608_v7  ;;  %v3791_v29 = vpop.permute.xlu2 %3790  ;;  %v9866_v7 = vpack.c.bf16 %v7320_v34, %v7320_v34  ;;  %v7330_v34 = vld [vmem:[%s7976_s25 + $0x192] sm:$0xff] }
 0x582   : > { %3673 = vst.msk [vmem:[#allocation2 + $0x74] sm:$0xf] %vm3643_vm15, %v3606_v57 }
 0x583   : > { %3879 = vst.msk [vmem:[#allocation2 + $0x20] sm:$0xf] %vm3870_vm0, %v3791_v29  ;;  %v7324_v29 = vld [vmem:[%s7976_s25 + $0x162] sm:$0xff] }
 0x584   : > { %v9882_v10 = vpack.c.bf16 %v7324_v29, %v7324_v29 }
 0x586   : > { %4023 = vrot.lane.b32.xlu1 %v3948_v5, %s7909_s20  ;;  %4021 = vrot.lane.b32.xlu0 %v3947_v6, %s7909_s20  ;;  %v7322_v5 = vld [vmem:[%s7976_s25 + $0x152] sm:$0xff] }
 0x587   : > { %4025 = vrot.lane.b32.xlu2 %v3949_v52, %s7909_s20  ;;  %v9870_v6 = vpack.c.bf16 %v7322_v5, %v7322_v5  ;;  %v9918_v5 = vpack.c.bf16 %v7330_v34, %v7330_v34 }
 0x588   : > { %v3777_v16 = vpop.permute.xlu1 %3776  ;;  %v3775_v41 = vpop.permute.xlu0 %3774 }
 0x589   : > { %3872 = vst.msk [vmem:[#allocation2 + $0x4] sm:$0xf] %vm3870_vm0, %v3777_v16  ;;  %v3797_v23 = vpop.permute.xlu2 %3796  ;;  %v9884_v16 = vpack.c.bf16 %v7323_v42, %v7323_v42 }
 0x58a   : > { %3871 = vst.msk [vmem:[#allocation2] sm:$0xf] %vm3870_vm0, %v3775_v41 }
 0x58b   : > { %3882 = vst.msk [vmem:[#allocation2 + $0x2c] sm:$0xf] %vm3870_vm0, %v3797_v23  ;;  %v7327_v23 = vld [vmem:[%s7976_s25 + $0x17a] sm:$0xff] }
 0x58e   : > { %4029 = vrot.lane.b32.xlu1 %v3951_v55, %s7909_s20  ;;  %4027 = vrot.lane.b32.xlu0 %v3950_v22, %s7909_s20  ;;  %v7325_v55 = vld [vmem:[%s7976_s25 + $0x16a] sm:$0xff] }
 0x58f   : > { %4031 = vrot.lane.b32.xlu2 %v9836_v3, %s7909_s20  ;;  %v9888_v22 = vpack.c.bf16 %v7325_v55, %v7325_v55 }
 0x590   : > { %v3783_v18 = vpop.permute.xlu1 %3782  ;;  %v3781_v21 = vpop.permute.xlu0 %3780 }
 0x591   : > { %3875 = vst.msk [vmem:[#allocation2 + $0x10] sm:$0xf] %vm3870_vm0, %v3783_v18  ;;  %v3803_v13 = vpop.permute.xlu2 %3802  ;;  %v9900_v18 = vpack.c.bf16 %v7327_v23, %v7327_v23 }
 0x592   : > { %3874 = vst.msk [vmem:[#allocation2 + $0xc] sm:$0xf] %vm3870_vm0, %v3781_v21  ;;  %v9902_v21 = vpack.c.bf16 %v7326_v0, %v7326_v0 }
 0x593   : > { %3885 = vst.msk [vmem:[#allocation2 + $0x38] sm:$0xf] %vm3870_vm0, %v3803_v13 }
 0x596   : > { %4035 = vrot.lane.b32.xlu1 %v9846_v48, %s7909_s20  ;;  %4033 = vrot.lane.b32.xlu0 %v9848_v50, %s7909_s20 }
 0x597   : > { %4037 = vrot.lane.b32.xlu2 %v9852_v24, %s7909_s20 }
 0x598   : > { %v3789_v38 = vpop.permute.xlu1 %3788  ;;  %v3787_v1 = vpop.permute.xlu0 %3786 }
 0x599   : > { %3878 = vst.msk [vmem:[#allocation2 + $0x1c] sm:$0xf] %vm3870_vm0, %v3789_v38  ;;  %v3809_v57 = vpop.permute.xlu2 %3808  ;;  %v7329_v38 = vld [vmem:[%s7976_s25 + $0x18a] sm:$0xff] }
 0x59a   : > { %3877 = vst.msk [vmem:[#allocation2 + $0x18] sm:$0xf] %vm3870_vm0, %v3787_v1  ;;  %v9920_v29 = vpack.c.bf16 %v7329_v38, %v7329_v38 }
 0x59b   : > { %3888 = vst.msk [vmem:[#allocation2 + $0x44] sm:$0xf] %vm3870_vm0, %v3809_v57 }
 0x59e   : > { %4041 = vrot.lane.b32.xlu1 %v9864_v45, %s7909_s20  ;;  %4039 = vrot.lane.b32.xlu0 %v9866_v7, %s7909_s20 }
 0x59f   : > { %4043 = vrot.lane.b32.xlu2 %v9870_v6, %s7909_s20 }
 0x5a0   : > { %v3795_v52 = vpop.permute.xlu1 %3794  ;;  %v3793_v4 = vpop.permute.xlu0 %3792 }
 0x5a1   : > { %3881 = vst.msk [vmem:[#allocation2 + $0x28] sm:$0xf] %vm3870_vm0, %v3795_v52  ;;  %v3815_v41 = vpop.permute.xlu2 %3814  ;;  %v7331_v52 = vld [vmem:[%s7976_s25 + $0x19a] sm:$0xff] }
 0x5a2   : > { %3880 = vst.msk [vmem:[#allocation2 + $0x24] sm:$0xf] %vm3870_vm0, %v3793_v4  ;;  %v9924_v4 = vpack.c.bf16 %v7331_v52, %v7331_v52  ;;  %v7355_v52 = vld [vmem:[%s7976_s25 + $0x1c8] sm:$0xff] }
 0x5a3   : > { %3891 = vst.msk [vmem:[#allocation2 + $0x50] sm:$0xf] %vm3870_vm0, %v3815_v41  ;;  %v7332_v41 = vld [vmem:[%s7976_s25 + $0x1a2] sm:$0xff] }
 0x5a4   : > { %v9935_v0 = vpack.c.bf16 %v7332_v41, %v7332_v41 }
 0x5a6   : > { %4047 = vrot.lane.b32.xlu1 %v9882_v10, %s7909_s20  ;;  %4045 = vrot.lane.b32.xlu0 %v9884_v16, %s7909_s20 }
 0x5a7   : > { %4049 = vrot.lane.b32.xlu2 %v9888_v22, %s7909_s20 }
 0x5a8   : > { %v3801_v12 = vpop.permute.xlu1 %3800  ;;  %v3799_v26 = vpop.permute.xlu0 %3798 }
 0x5a9   : > { %3884 = vst.msk [vmem:[#allocation2 + $0x34] sm:$0xf] %vm3870_vm0, %v3801_v12  ;;  %v3821_v13 = vpop.permute.xlu2 %3820 }
 0x5aa   : > { %3883 = vst.msk [vmem:[#allocation2 + $0x30] sm:$0xf] %vm3870_vm0, %v3799_v26 }
 0x5ab   : > { %3894 = vst.msk [vmem:[#allocation2 + $0x5c] sm:$0xf] %vm3870_vm0, %v3821_v13 }
 0x5ae   : > { %4053 = vrot.lane.b32.xlu1 %v9900_v18, %s7909_s20  ;;  %4051 = vrot.lane.b32.xlu0 %v9902_v21, %s7909_s20 }
 0x5af   : > { %4055 = vrot.lane.b32.xlu2 %v9906_v25, %s7909_s20 }
 0x5b0   : > { %v3807_v1 = vpop.permute.xlu1 %3806  ;;  %v3805_v57 = vpop.permute.xlu0 %3804 }
 0x5b1   : > { %3887 = vst.msk [vmem:[#allocation2 + $0x40] sm:$0xf] %vm3870_vm0, %v3807_v1  ;;  %v3827_v42 = vpop.permute.xlu2 %3826 }
 0x5b2   : > { %3886 = vst.msk [vmem:[#allocation2 + $0x3c] sm:$0xf] %vm3870_vm0, %v3805_v57 }
 0x5b3   : > { %3897 = vst.msk [vmem:[#allocation2 + $0x68] sm:$0xf] %vm3870_vm0, %v3827_v42 }
 0x5b6   : > { %4059 = vrot.lane.b32.xlu1 %v9918_v5, %s7909_s20  ;;  %4057 = vrot.lane.b32.xlu0 %v9920_v29, %s7909_s20 }
 0x5b7   : > { %4061 = vrot.lane.b32.xlu2 %v9924_v4, %s7909_s20 }
 0x5b8   : > { %v3813_v55 = vpop.permute.xlu1 %3812  ;;  %v3811_v23 = vpop.permute.xlu0 %3810 }
 0x5b9   : > { %3890 = vst.msk [vmem:[#allocation2 + $0x4c] sm:$0xf] %vm3870_vm0, %v3813_v55  ;;  %v3833_v12 = vpop.permute.xlu2 %3832 }
 0x5ba   : > { %3889 = vst.msk [vmem:[#allocation2 + $0x48] sm:$0xf] %vm3870_vm0, %v3811_v23  ;;  %v4185_v23 = vpack.c.bf16 %v7355_v52, %v7355_v52 }
 0x5bb   : > { %3900 = vst.msk [vmem:[#allocation2 + $0x74] sm:$0xf] %vm3870_vm0, %v3833_v12 }
 0x5be   : > { %4228 = vrot.lane.b32.xlu1 %v9543_v32, %s7910_s22  ;;  %4063 = vrot.lane.b32.xlu0 %v9935_v0, %s7909_s20 }
 0x5bf   : > { %4230 = vrot.lane.b32.xlu2 %v9547_v2, %s7910_s22 }
 0x5c0   : > { %v3819_v26 = vpop.permute.xlu1 %3818  ;;  %v3817_v13 = vpop.permute.xlu0 %3816 }
 0x5c1   : > { %3893 = vst.msk [vmem:[#allocation2 + $0x58] sm:$0xf] %vm3870_vm0, %v3819_v26  ;;  %v4002_v19 = vpop.permute.xlu2 %4001 }
 0x5c2   : > { %3892 = vst.msk [vmem:[#allocation2 + $0x54] sm:$0xf] %vm3870_vm0, %v3817_v13  ;;  %v7356_v13 = vld [vmem:[%s7976_s25 + $0x1d0] sm:$0xff] }
 0x5c3   : > { %4098 = vst.msk [vmem:[#allocation2] sm:$0xf] %vm4097_vm1, %v4002_v19  ;;  %v4186_v19 = vpack.c.bf16 %v7356_v13, %v7356_v13 }
 0x5c6   : > { %4234 = vrot.lane.b32.xlu1 %v9558_v49, %s7910_s22  ;;  %4232 = vrot.lane.b32.xlu0 %v9560_v31, %s7910_s22 }
 0x5c7   : > { %4236 = vrot.lane.b32.xlu2 %v9564_v54, %s7910_s22 }
 0x5c8   : > { %v3825_v32 = vpop.permute.xlu1 %3824  ;;  %v3823_v34 = vpop.permute.xlu0 %3822 }
 0x5c9   : > { %3896 = vst.msk [vmem:[#allocation2 + $0x64] sm:$0xf] %vm3870_vm0, %v3825_v32  ;;  %v4008_v2 = vpop.permute.xlu2 %4007  ;;  %v7358_v32 = vld [vmem:[%s7976_s25 + $0x1e0] sm:$0xff] }
 0x5ca   : > { %3895 = vst.msk [vmem:[#allocation2 + $0x60] sm:$0xf] %vm3870_vm0, %v3823_v34  ;;  %v7357_v34 = vld [vmem:[%s7976_s25 + $0x1d8] sm:$0xff] }
 0x5cb   : > { %4101 = vst.msk [vmem:[#allocation2 + $0xc] sm:$0xf] %vm4097_vm1, %v4008_v2 }
 0x5ce   : > { %4240 = vrot.lane.b32.xlu1 %v9576_v63, %s7910_s22  ;;  %4238 = vrot.lane.b32.xlu0 %v9578_v56, %s7910_s22 }
 0x5cf   : > { %4242 = vrot.lane.b32.xlu2 %v9582_v8, %s7910_s22 }
 0x5d0   : > { %v3831_v49 = vpop.permute.xlu1 %3830  ;;  %v3829_v31 = vpop.permute.xlu0 %3828 }
 0x5d1   : > { %3899 = vst.msk [vmem:[#allocation2 + $0x70] sm:$0xf] %vm3870_vm0, %v3831_v49  ;;  %v4014_v54 = vpop.permute.xlu2 %4013 }
 0x5d2   : > { %3898 = vst.msk [vmem:[#allocation2 + $0x6c] sm:$0xf] %vm3870_vm0, %v3829_v31  ;;  %v4188_v31 = vpack.c.bf16 %v7358_v32, %v7358_v32 }
 0x5d3   : > { %4104 = vst.msk [vmem:[#allocation2 + $0x18] sm:$0xf] %vm4097_vm1, %v4014_v54  ;;  %v4187_v54 = vpack.c.bf16 %v7357_v34, %v7357_v34 }
 0x5d6   : > { %4246 = vrot.lane.b32.xlu1 %v9594_v30, %s7910_s22  ;;  %4244 = vrot.lane.b32.xlu0 %v9596_v37, %s7910_s22 }
 0x5d7   : > { %4248 = vrot.lane.b32.xlu2 %v9600_v39, %s7910_s22 }
 0x5d8   : > { %v3837_v63 = vpop.permute.xlu1 %3836  ;;  %v3835_v56 = vpop.permute.xlu0 %3834 }
 0x5d9   : > { %3902 = vst.msk [vmem:[#allocation2 + $0x7c] sm:$0xf] %vm3870_vm0, %v3837_v63  ;;  %v4020_v8 = vpop.permute.xlu2 %4019 }
 0x5da   : > { %3901 = vst.msk [vmem:[#allocation2 + $0x78] sm:$0xf] %vm3870_vm0, %v3835_v56  ;;  %v7359_v56 = vld [vmem:[%s7976_s25 + $0x1e8] sm:$0xff] }
 0x5db   : > { %4107 = vst.msk [vmem:[#allocation2 + $0x24] sm:$0xf] %vm4097_vm1, %v4020_v8  ;;  %v4189_v8 = vpack.c.bf16 %v7359_v56, %v7359_v56 }
 0x5de   : > { %4252 = vrot.lane.b32.xlu1 %v9612_v61, %s7910_s22  ;;  %4250 = vrot.lane.b32.xlu0 %v9614_v62, %s7910_s22  ;;  %v7352_v61 = vld [vmem:[%s7976_s25 + $0x1b0] sm:$0xff]  ;;  %v7351_v62 = vld [vmem:[%s7976_s25 + $0x1a8] sm:$0xff] }
 0x5df   : > { %4254 = vrot.lane.b32.xlu2 %v9618_v36, %s7910_s22  ;;  %v4182_v1 = vpack.c.bf16 %v7352_v61, %v7352_v61  ;;  %v4181_v57 = vpack.c.bf16 %v7351_v62, %v7351_v62 }
 0x5e0   : > { %v4006_v30 = vpop.permute.xlu1 %4005  ;;  %v4004_v37 = vpop.permute.xlu0 %4003 }
 0x5e1   : > { %4100 = vst.msk [vmem:[#allocation2 + $0x8] sm:$0xf] %vm4097_vm1, %v4006_v30  ;;  %v4026_v39 = vpop.permute.xlu2 %4025  ;;  %v7361_v30 = vld [vmem:[%s7976_s25 + $0x1f8] sm:$0xff] }
 0x5e2   : > { %4099 = vst.msk [vmem:[#allocation2 + $0x4] sm:$0xf] %vm4097_vm1, %v4004_v37  ;;  %v7360_v37 = vld [vmem:[%s7976_s25 + $0x1f0] sm:$0xff]  ;;  %v4191_v62 = vpack.c.bf16 %v7361_v30, %v7361_v30 }
 0x5e3   : > { %4110 = vst.msk [vmem:[#allocation2 + $0x30] sm:$0xf] %vm4097_vm1, %v4026_v39  ;;  %v7389_v30 = vld [vmem:[%s7976_s25 + $0x1d1] sm:$0xff] }
 0x5e6   : > { %4258 = vrot.lane.b32.xlu1 %v9630_v28, %s7910_s22  ;;  %4256 = vrot.lane.b32.xlu0 %v9632_v33, %s7910_s22  ;;  %v7353_v28 = vld [vmem:[%s7976_s25 + $0x1b8] sm:$0xff] }
 0x5e7   : > { %4260 = vrot.lane.b32.xlu2 %v9636_v44, %s7910_s22  ;;  %v4183_v33 = vpack.c.bf16 %v7353_v28, %v7353_v28  ;;  %v7354_v44 = vld [vmem:[%s7976_s25 + $0x1c0] sm:$0xff]  ;;  %v7363_v28 = vld [vmem:[%s7976_s25 + $0x208] sm:$0xff] }
 0x5e8   : > { %v4012_v38 = vpop.permute.xlu1 %4011  ;;  %v4010_v36 = vpop.permute.xlu0 %4009  ;;  %v4184_v12 = vpack.c.bf16 %v7354_v44, %v7354_v44 }
 0x5e9   : > { %4103 = vst.msk [vmem:[#allocation2 + $0x14] sm:$0xf] %vm4097_vm1, %v4012_v38  ;;  %v4032_v42 = vpop.permute.xlu2 %4031  ;;  %v4190_v38 = vpack.c.bf16 %v7360_v37, %v7360_v37  ;;  %v7388_v37 = vld [vmem:[%s7976_s25 + $0x1c9] sm:$0xff] }
 0x5ea   : > { %4102 = vst.msk [vmem:[#allocation2 + $0x10] sm:$0xf] %vm4097_vm1, %v4010_v36 }
 0x5eb   : > { %4113 = vst.msk [vmem:[#allocation2 + $0x3c] sm:$0xf] %vm4097_vm1, %v4032_v42  ;;  %v7364_v42 = vld [vmem:[%s7976_s25 + $0x210] sm:$0xff] }
 0x5ec   : > { %v4194_v44 = vpack.c.bf16 %v7364_v42, %v7364_v42  ;;  %v7392_v42 = vld [vmem:[%s7976_s25 + $0x1e9] sm:$0xff] }
 0x5ee   : > { %4264 = vrot.lane.b32.xlu1 %v4182_v1, %s7910_s22  ;;  %4262 = vrot.lane.b32.xlu0 %v4181_v57, %s7910_s22  ;;  %v7362_v1 = vld [vmem:[%s7976_s25 + $0x200] sm:$0xff] }
 0x5ef   : > { %4266 = vrot.lane.b32.xlu2 %v4183_v33, %s7910_s22  ;;  %v4192_v57 = vpack.c.bf16 %v7362_v1, %v7362_v1  ;;  %v7390_v1 = vld [vmem:[%s7976_s25 + $0x1d9] sm:$0xff] }
 0x5f0   : > { %v4018_v41 = vpop.permute.xlu1 %4017  ;;  %v4016_v55 = vpop.permute.xlu0 %4015 }
 0x5f1   : > { %4106 = vst.msk [vmem:[#allocation2 + $0x20] sm:$0xf] %vm4097_vm1, %v4018_v41  ;;  %v4038_v26 = vpop.permute.xlu2 %4037  ;;  %v4193_v41 = vpack.c.bf16 %v7363_v28, %v7363_v28  ;;  %v7391_v28 = vld [vmem:[%s7976_s25 + $0x1e1] sm:$0xff] }
 0x5f2   : > { %4105 = vst.msk [vmem:[#allocation2 + $0x1c] sm:$0xf] %vm4097_vm1, %v4016_v55 }
 0x5f3   : > { %4116 = vst.msk [vmem:[#allocation2 + $0x48] sm:$0xf] %vm4097_vm1, %v4038_v26 }
 0x5f6   : > { %4270 = vrot.lane.b32.xlu1 %v4185_v23, %s7910_s22  ;;  %4268 = vrot.lane.b32.xlu0 %v4184_v12, %s7910_s22  ;;  %v7365_v23 = vld [vmem:[%s7976_s25 + $0x218] sm:$0xff] }
 0x5f7   : > { %4272 = vrot.lane.b32.xlu2 %v4186_v19, %s7910_s22  ;;  %v4195_v12 = vpack.c.bf16 %v7365_v23, %v7365_v23  ;;  %v7393_v23 = vld [vmem:[%s7976_s25 + $0x1f1] sm:$0xff] }
 0x5f8   : > { %v4024_v2 = vpop.permute.xlu1 %4023  ;;  %v4022_v49 = vpop.permute.xlu0 %4021 }
 0x5f9   : > { %4109 = vst.msk [vmem:[#allocation2 + $0x2c] sm:$0xf] %vm4097_vm1, %v4024_v2  ;;  %v4044_v63 = vpop.permute.xlu2 %4043 }
 0x5fa   : > { %4108 = vst.msk [vmem:[#allocation2 + $0x28] sm:$0xf] %vm4097_vm1, %v4022_v49  ;;  %v7384_v49 = vld [vmem:[%s7976_s25 + $0x1a9] sm:$0xff] }
 0x5fb   : > { %4119 = vst.msk [vmem:[#allocation2 + $0x54] sm:$0xf] %vm4097_vm1, %v4044_v63 }
 0x5fe   : > { %4276 = vrot.lane.b32.xlu1 %v4188_v31, %s7910_s22  ;;  %4274 = vrot.lane.b32.xlu0 %v4187_v54, %s7910_s22  ;;  %v4408_v31 = vpack.c.bf16 %v7384_v49, %v7384_v49 }
 0x5ff   : > { %4278 = vrot.lane.b32.xlu2 %v4189_v8, %s7910_s22 }
 0x600   : > { %v4030_v39 = vpop.permute.xlu1 %4029  ;;  %v4028_v61 = vpop.permute.xlu0 %4027 }
 0x601   : > { %4112 = vst.msk [vmem:[#allocation2 + $0x38] sm:$0xf] %vm4097_vm1, %v4030_v39  ;;  %v4050_v36 = vpop.permute.xlu2 %4049 }
 0x602   : > { %4111 = vst.msk [vmem:[#allocation2 + $0x34] sm:$0xf] %vm4097_vm1, %v4028_v61 }
 0x603   : > { %4122 = vst.msk [vmem:[#allocation2 + $0x60] sm:$0xf] %vm4097_vm1, %v4050_v36 }
 0x606   : > { %4282 = vrot.lane.b32.xlu1 %v4191_v62, %s7910_s22  ;;  %4280 = vrot.lane.b32.xlu0 %v4190_v38, %s7910_s22  ;;  %v4413_v62 = vpack.c.bf16 %v7389_v30, %v7389_v30  ;;  %v4412_v38 = vpack.c.bf16 %v7388_v37, %v7388_v37  ;;  %v7421_v30 = vld [vmem:[%s7976_s25 + $0x1ca] sm:$0xff]  ;;  %v7423_v37 = vld [vmem:[%s7976_s25 + $0x1da] sm:$0xff] }
 0x607   : > { %4284 = vrot.lane.b32.xlu2 %v4192_v57, %s7910_s22  ;;  %v4414_v57 = vpack.c.bf16 %v7390_v1, %v7390_v1 }
 0x608   : > { %v4036_v33 = vpop.permute.xlu1 %4035  ;;  %v4034_v52 = vpop.permute.xlu0 %4033 }
 0x609   : > { %4115 = vst.msk [vmem:[#allocation2 + $0x44] sm:$0xf] %vm4097_vm1, %v4036_v33  ;;  %v4056_v55 = vpop.permute.xlu2 %4055 }
 0x60a   : > { %4114 = vst.msk [vmem:[#allocation2 + $0x40] sm:$0xf] %vm4097_vm1, %v4034_v52 }
 0x60b   : > { %4125 = vst.msk [vmem:[#allocation2 + $0x6c] sm:$0xf] %vm4097_vm1, %v4056_v55 }
 0x60e   : > { %4288 = vrot.lane.b32.xlu1 %v4194_v44, %s7910_s22  ;;  %4286 = vrot.lane.b32.xlu0 %v4193_v41, %s7910_s22  ;;  %v4416_v44 = vpack.c.bf16 %v7392_v42, %v7392_v42  ;;  %v4415_v41 = vpack.c.bf16 %v7391_v28, %v7391_v28  ;;  %v7426_v28 = vld [vmem:[%s7976_s25 + $0x1f2] sm:$0xff] }
 0x60f   : > { %4290 = vrot.lane.b32.xlu2 %v4195_v12, %s7910_s22  ;;  %v4417_v12 = vpack.c.bf16 %v7393_v23, %v7393_v23 }
 0x610   : > { %v4042_v26 = vpop.permute.xlu1 %4041  ;;  %v4040_v13 = vpop.permute.xlu0 %4039 }
 0x611   : > { %4118 = vst.msk [vmem:[#allocation2 + $0x50] sm:$0xf] %vm4097_vm1, %v4042_v26  ;;  %v4062_v19 = vpop.permute.xlu2 %4061  ;;  %v7395_v26 = vld [vmem:[%s7976_s25 + $0x201] sm:$0xff] }
 0x612   : > { %4117 = vst.msk [vmem:[#allocation2 + $0x4c] sm:$0xf] %vm4097_vm1, %v4040_v13  ;;  %v7394_v13 = vld [vmem:[%s7976_s25 + $0x1f9] sm:$0xff] }
 0x613   : > { %4128 = vst.msk [vmem:[#allocation2 + $0x78] sm:$0xf] %vm4097_vm1, %v4062_v19 }
 0x616   : > { %4457 = vrot.lane.b32.xlu1 %v9693_v59, %s7911_s23  ;;  %4455 = vrot.lane.b32.xlu0 %v9695_v60, %s7911_s23 }
 0x617   : > { %4459 = vrot.lane.b32.xlu2 %v9699_v46, %s7911_s23 }
 0x618   : > { %v4048_v32 = vpop.permute.xlu1 %4047  ;;  %v4046_v34 = vpop.permute.xlu0 %4045 }
 0x619   : > { %4121 = vst.msk [vmem:[#allocation2 + $0x5c] sm:$0xf] %vm4097_vm1, %v4048_v32  ;;  %v4231_v2 = vpop.permute.xlu2 %4230 }
 0x61a   : > { %4120 = vst.msk [vmem:[#allocation2 + $0x58] sm:$0xf] %vm4097_vm1, %v4046_v34  ;;  %v4419_v34 = vpack.c.bf16 %v7395_v26, %v7395_v26 }
 0x61b   : > { %4326 = vst.msk [vmem:[#allocation2 + $0x4] sm:$0xf] %vm4324_vm2, %v4231_v2  ;;  %v4418_v2 = vpack.c.bf16 %v7394_v13, %v7394_v13  ;;  %v7429_v13 = vld [vmem:[%s7976_s25 + $0x20a] sm:$0xff] }
 0x61e   : > { %4463 = vrot.lane.b32.xlu1 %v9711_v15, %s7911_s23  ;;  %4461 = vrot.lane.b32.xlu0 %v9713_v27, %s7911_s23 }
 0x61f   : > { %4465 = vrot.lane.b32.xlu2 %v9717_v43, %s7911_s23 }
 0x620   : > { %v4054_v59 = vpop.permute.xlu1 %4053  ;;  %v4052_v60 = vpop.permute.xlu0 %4051 }
 0x621   : > { %4124 = vst.msk [vmem:[#allocation2 + $0x68] sm:$0xf] %vm4097_vm1, %v4054_v59  ;;  %v4237_v46 = vpop.permute.xlu2 %4236 }
 0x622   : > { %4123 = vst.msk [vmem:[#allocation2 + $0x64] sm:$0xf] %vm4097_vm1, %v4052_v60  ;;  %v7396_v60 = vld [vmem:[%s7976_s25 + $0x209] sm:$0xff] }
 0x623   : > { %4329 = vst.msk [vmem:[#allocation2 + $0x10] sm:$0xf] %vm4324_vm2, %v4237_v46  ;;  %v4420_v46 = vpack.c.bf16 %v7396_v60, %v7396_v60 }
 0x626   : > { %4469 = vrot.lane.b32.xlu1 %v9729_v14, %s7911_s23  ;;  %4467 = vrot.lane.b32.xlu0 %v9731_v35, %s7911_s23 }
 0x627   : > { %4471 = vrot.lane.b32.xlu2 %v9735_v58, %s7911_s23 }
 0x628   : > { %v4060_v15 = vpop.permute.xlu1 %4059  ;;  %v4058_v27 = vpop.permute.xlu0 %4057 }
 0x629   : > { %4127 = vst.msk [vmem:[#allocation2 + $0x74] sm:$0xf] %vm4097_vm1, %v4060_v15  ;;  %v4243_v43 = vpop.permute.xlu2 %4242  ;;  %v7398_v15 = vld [vmem:[%s7976_s25 + $0x219] sm:$0xff] }
 0x62a   : > { %4126 = vst.msk [vmem:[#allocation2 + $0x70] sm:$0xf] %vm4097_vm1, %v4058_v27  ;;  %v7397_v27 = vld [vmem:[%s7976_s25 + $0x211] sm:$0xff] }
 0x62b   : > { %4332 = vst.msk [vmem:[#allocation2 + $0x1c] sm:$0xf] %vm4324_vm2, %v4243_v43 }
 0x62e   : > { %4475 = vrot.lane.b32.xlu1 %v9747_v9, %s7911_s23  ;;  %4473 = vrot.lane.b32.xlu0 %v9749_v20, %s7911_s23 }
 0x62f   : > { %4477 = vrot.lane.b32.xlu2 %v9753_v17, %s7911_s23 }
 0x630   : > { %v4229_v14 = vpop.permute.xlu1 %4228  ;;  %v4064_v35 = vpop.permute.xlu0 %4063 }
 0x631   : > { %4325 = vst.msk [vmem:[#allocation2] sm:$0xf] %vm4324_vm2, %v4229_v14  ;;  %v4249_v58 = vpop.permute.xlu2 %4248 }
 0x632   : > { %4129 = vst.msk [vmem:[#allocation2 + $0x7c] sm:$0xf] %vm4097_vm1, %v4064_v35  ;;  %v4422_v35 = vpack.c.bf16 %v7398_v15, %v7398_v15 }
 0x633   : > { %4335 = vst.msk [vmem:[#allocation2 + $0x28] sm:$0xf] %vm4324_vm2, %v4249_v58  ;;  %v4421_v58 = vpack.c.bf16 %v7397_v27, %v7397_v27  ;;  %v7433_v27 = vld [vmem:[%s7976_s25 + $0x12c] sm:$0xff] }
 0x636   : > { %4481 = vrot.lane.b32.xlu1 %v9765_v53, %s7911_s23  ;;  %4479 = vrot.lane.b32.xlu0 %v9767_v11, %s7911_s23  ;;  %v7386_v53 = vld [vmem:[%s7976_s25 + $0x1b9] sm:$0xff]  ;;  %v7385_v11 = vld [vmem:[%s7976_s25 + $0x1b1] sm:$0xff] }
 0x637   : > { %4483 = vrot.lane.b32.xlu2 %v9771_v40, %s7911_s23  ;;  %v4410_v63 = vpack.c.bf16 %v7386_v53, %v7386_v53  ;;  %v4409_v56 = vpack.c.bf16 %v7385_v11, %v7385_v11 }
 0x638   : > { %v4235_v9 = vpop.permute.xlu1 %4234  ;;  %v4233_v20 = vpop.permute.xlu0 %4232 }
 0x639   : > { %4328 = vst.msk [vmem:[#allocation2 + $0xc] sm:$0xf] %vm4324_vm2, %v4235_v9  ;;  %v4255_v17 = vpop.permute.xlu2 %4254 }
 0x63a   : > { %4327 = vst.msk [vmem:[#allocation2 + $0x8] sm:$0xf] %vm4324_vm2, %v4233_v20 }
 0x63b   : > { %4338 = vst.msk [vmem:[#allocation2 + $0x34] sm:$0xf] %vm4324_vm2, %v4255_v17 }
 0x63e   : > { %4487 = vrot.lane.b32.xlu1 %v9783_v47, %s7911_s23  ;;  %4485 = vrot.lane.b32.xlu0 %v9785_v51, %s7911_s23  ;;  %v7387_v47 = vld [vmem:[%s7976_s25 + $0x1c1] sm:$0xff] }
 0x63f   : > { %4489 = vrot.lane.b32.xlu2 %v4408_v31, %s7911_s23  ;;  %v4411_v51 = vpack.c.bf16 %v7387_v47, %v7387_v47 }
 0x640   : > { %v4241_v40 = vpop.permute.xlu1 %4240  ;;  %v4239_v54 = vpop.permute.xlu0 %4238 }
 0x641   : > { %4331 = vst.msk [vmem:[#allocation2 + $0x18] sm:$0xf] %vm4324_vm2, %v4241_v40  ;;  %v4261_v8 = vpop.permute.xlu2 %4260 }
 0x642   : > { %4330 = vst.msk [vmem:[#allocation2 + $0x14] sm:$0xf] %vm4324_vm2, %v4239_v54  ;;  %v7418_v54 = vld [vmem:[%s7976_s25 + $0x1b2] sm:$0xff] }
 0x643   : > { %4341 = vst.msk [vmem:[#allocation2 + $0x40] sm:$0xf] %vm4324_vm2, %v4261_v8 }
 0x646   : > { %4493 = vrot.lane.b32.xlu1 %v4410_v63, %s7911_s23  ;;  %4491 = vrot.lane.b32.xlu0 %v4409_v56, %s7911_s23 }
 0x647   : > { %4495 = vrot.lane.b32.xlu2 %v4411_v51, %s7911_s23 }
 0x648   : > { %v4247_v39 = vpop.permute.xlu1 %4246  ;;  %v4245_v61 = vpop.permute.xlu0 %4244 }
 0x649   : > { %4334 = vst.msk [vmem:[#allocation2 + $0x24] sm:$0xf] %vm4324_vm2, %v4247_v39  ;;  %v4267_v36 = vpop.permute.xlu2 %4266  ;;  %v7422_v39 = vld [vmem:[%s7976_s25 + $0x1d2] sm:$0xff] }
 0x64a   : > { %4333 = vst.msk [vmem:[#allocation2 + $0x20] sm:$0xf] %vm4324_vm2, %v4245_v61 }
 0x64b   : > { %4344 = vst.msk [vmem:[#allocation2 + $0x4c] sm:$0xf] %vm4324_vm2, %v4267_v36  ;;  %v4640_v36 = vpack.c.bf16 %v7422_v39, %v7422_v39 }
 0x64e   : > { %4499 = vrot.lane.b32.xlu1 %v4413_v62, %s7911_s23  ;;  %4497 = vrot.lane.b32.xlu0 %v4412_v38, %s7911_s23  ;;  %v4641_v38 = vpack.c.bf16 %v7423_v37, %v7423_v37  ;;  %v7444_v37 = vld [vmem:[%s7976_s25 + $0x184] sm:$0xff] }
 0x64f   : > { %4501 = vrot.lane.b32.xlu2 %v4414_v57, %s7911_s23  ;;  %v7424_v57 = vld [vmem:[%s7976_s25 + $0x1e2] sm:$0xff] }
 0x650   : > { %v4253_v33 = vpop.permute.xlu1 %4252  ;;  %v4251_v52 = vpop.permute.xlu0 %4250  ;;  %v4642_v42 = vpack.c.bf16 %v7424_v57, %v7424_v57 }
 0x651   : > { %4337 = vst.msk [vmem:[#allocation2 + $0x30] sm:$0xf] %vm4324_vm2, %v4253_v33  ;;  %v4273_v55 = vpop.permute.xlu2 %4272  ;;  %v7425_v33 = vld [vmem:[%s7976_s25 + $0x1ea] sm:$0xff] }
 0x652   : > { %4336 = vst.msk [vmem:[#allocation2 + $0x2c] sm:$0xf] %vm4324_vm2, %v4251_v52 }
 0x653   : > { %4347 = vst.msk [vmem:[#allocation2 + $0x58] sm:$0xf] %vm4324_vm2, %v4273_v55  ;;  %v4643_v55 = vpack.c.bf16 %v7425_v33, %v7425_v33 }
 0x656   : > { %4505 = vrot.lane.b32.xlu1 %v4416_v44, %s7911_s23  ;;  %4503 = vrot.lane.b32.xlu0 %v4415_v41, %s7911_s23  ;;  %v4644_v41 = vpack.c.bf16 %v7426_v28, %v7426_v28  ;;  %v7447_v28 = vld [vmem:[%s7976_s25 + $0x19c] sm:$0xff] }
 0x657   : > { %4507 = vrot.lane.b32.xlu2 %v4417_v12, %s7911_s23  ;;  %v7427_v12 = vld [vmem:[%s7976_s25 + $0x1fa] sm:$0xff] }
 0x658   : > { %v4259_v19 = vpop.permute.xlu1 %4258  ;;  %v4257_v32 = vpop.permute.xlu0 %4256  ;;  %v4645_v26 = vpack.c.bf16 %v7427_v12, %v7427_v12 }
 0x659   : > { %4340 = vst.msk [vmem:[#allocation2 + $0x3c] sm:$0xf] %vm4324_vm2, %v4259_v19  ;;  %v4279_v59 = vpop.permute.xlu2 %4278  ;;  %v7428_v19 = vld [vmem:[%s7976_s25 + $0x202] sm:$0xff] }
 0x65a   : > { %4339 = vst.msk [vmem:[#allocation2 + $0x38] sm:$0xf] %vm4324_vm2, %v4257_v32 }
 0x65b   : > { %4350 = vst.msk [vmem:[#allocation2 + $0x64] sm:$0xf] %vm4324_vm2, %v4279_v59  ;;  %v4646_v59 = vpack.c.bf16 %v7428_v19, %v7428_v19 }
 0x65e   : > { %4511 = vrot.lane.b32.xlu1 %v4419_v34, %s7911_s23  ;;  %4509 = vrot.lane.b32.xlu0 %v4418_v2, %s7911_s23  ;;  %v4647_v2 = vpack.c.bf16 %v7429_v13, %v7429_v13  ;;  %v7450_v13 = vld [vmem:[%s7976_s25 + $0x1b4] sm:$0xff] }
 0x65f   : > { %4513 = vrot.lane.b32.xlu2 %v4420_v46, %s7911_s23  ;;  %v7430_v46 = vld [vmem:[%s7976_s25 + $0x212] sm:$0xff] }
 0x660   : > { %v4265_v43 = vpop.permute.xlu1 %4264  ;;  %v4263_v14 = vpop.permute.xlu0 %4262  ;;  %v4648_v15 = vpack.c.bf16 %v7430_v46, %v7430_v46 }
 0x661   : > { %4343 = vst.msk [vmem:[#allocation2 + $0x48] sm:$0xf] %vm4324_vm2, %v4265_v43  ;;  %v4285_v9 = vpop.permute.xlu2 %4284  ;;  %v7431_v43 = vld [vmem:[%s7976_s25 + $0x21a] sm:$0xff] }
 0x662   : > { %4342 = vst.msk [vmem:[#allocation2 + $0x44] sm:$0xf] %vm4324_vm2, %v4263_v14 }
 0x663   : > { %4353 = vst.msk [vmem:[#allocation2 + $0x70] sm:$0xf] %vm4324_vm2, %v4285_v9  ;;  %v4649_v9 = vpack.c.bf16 %v7431_v43, %v7431_v43 }
 0x666   : > { %4517 = vrot.lane.b32.xlu1 %v4422_v35, %s7911_s23  ;;  %4515 = vrot.lane.b32.xlu0 %v4421_v58, %s7911_s23  ;;  %v4845_v58 = vpack.c.bf16 %v7433_v27, %v7433_v27  ;;  %v7453_v27 = vld [vmem:[%s7976_s25 + $0x1cc] sm:$0xff] }
 0x667   : > { %4682 = vrot.lane.b32.xlu2 %v9836_v3, %s7912_s24 }
 0x668   : > { %v4271_v20 = vpop.permute.xlu1 %4270  ;;  %v4269_v17 = vpop.permute.xlu0 %4268 }
 0x669   : > { %4346 = vst.msk [vmem:[#allocation2 + $0x54] sm:$0xf] %vm4324_vm2, %v4271_v20  ;;  %v4291_v49 = vpop.permute.xlu2 %4290 }
 0x66a   : > { %4345 = vst.msk [vmem:[#allocation2 + $0x50] sm:$0xf] %vm4324_vm2, %v4269_v17  ;;  %v7434_v17 = vld [vmem:[%s7976_s25 + $0x134] sm:$0xff] }
 0x66b   : > { %4356 = vst.msk [vmem:[#allocation2 + $0x7c] sm:$0xf] %vm4324_vm2, %v4291_v49  ;;  %v4846_v49 = vpack.c.bf16 %v7434_v17, %v7434_v17 }
 0x66e   : > { %4686 = vrot.lane.b32.xlu1 %v9846_v48, %s7912_s24  ;;  %4684 = vrot.lane.b32.xlu0 %v9848_v50, %s7912_s24 }
 0x66f   : > { %4688 = vrot.lane.b32.xlu2 %v9852_v24, %s7912_s24 }
 0x670   : > { %v4277_v31 = vpop.permute.xlu1 %4276  ;;  %v4275_v53 = vpop.permute.xlu0 %4274 }
 0x671   : > { %4349 = vst.msk [vmem:[#allocation2 + $0x60] sm:$0xf] %vm4324_vm2, %v4277_v31  ;;  %v4460_v3 = vpop.permute.xlu2 %4459  ;;  %v7436_v31 = vld [vmem:[%s7976_s25 + $0x144] sm:$0xff] }
 0x672   : > { %4348 = vst.msk [vmem:[#allocation2 + $0x5c] sm:$0xf] %vm4324_vm2, %v4275_v53  ;;  %v7435_v53 = vld [vmem:[%s7976_s25 + $0x13c] sm:$0xff] }
 0x673   : > { %4554 = vst.msk [vmem:[#allocation2 + $0x8] sm:$0xf] %vm4551_vm3, %v4460_v3 }
 0x676   : > { %4692 = vrot.lane.b32.xlu1 %v9864_v45, %s7912_s24  ;;  %4690 = vrot.lane.b32.xlu0 %v9866_v7, %s7912_s24 }
 0x677   : > { %4694 = vrot.lane.b32.xlu2 %v9870_v6, %s7912_s24 }
 0x678   : > { %v4283_v48 = vpop.permute.xlu1 %4282  ;;  %v4281_v50 = vpop.permute.xlu0 %4280 }
 0x679   : > { %4352 = vst.msk [vmem:[#allocation2 + $0x6c] sm:$0xf] %vm4324_vm2, %v4283_v48  ;;  %v4466_v24 = vpop.permute.xlu2 %4465 }
 0x67a   : > { %4351 = vst.msk [vmem:[#allocation2 + $0x68] sm:$0xf] %vm4324_vm2, %v4281_v50  ;;  %v4848_v50 = vpack.c.bf16 %v7436_v31, %v7436_v31  ;;  %v7456_v31 = vld [vmem:[%s7976_s25 + $0x1e4] sm:$0xff] }
 0x67b   : > { %4557 = vst.msk [vmem:[#allocation2 + $0x14] sm:$0xf] %vm4551_vm3, %v4466_v24  ;;  %v4847_v24 = vpack.c.bf16 %v7435_v53, %v7435_v53 }
 0x67e   : > { %4698 = vrot.lane.b32.xlu1 %v9882_v10, %s7912_s24  ;;  %4696 = vrot.lane.b32.xlu0 %v9884_v16, %s7912_s24 }
 0x67f   : > { %4700 = vrot.lane.b32.xlu2 %v9888_v22, %s7912_s24 }
 0x680   : > { %v4289_v45 = vpop.permute.xlu1 %4288  ;;  %v4287_v7 = vpop.permute.xlu0 %4286 }
 0x681   : > { %4355 = vst.msk [vmem:[#allocation2 + $0x78] sm:$0xf] %vm4324_vm2, %v4289_v45  ;;  %v4472_v6 = vpop.permute.xlu2 %4471 }
 0x682   : > { %4354 = vst.msk [vmem:[#allocation2 + $0x74] sm:$0xf] %vm4324_vm2, %v4287_v7  ;;  %v7437_v7 = vld [vmem:[%s7976_s25 + $0x14c] sm:$0xff] }
 0x683   : > { %4560 = vst.msk [vmem:[#allocation2 + $0x20] sm:$0xf] %vm4551_vm3, %v4472_v6  ;;  %v4849_v6 = vpack.c.bf16 %v7437_v7, %v7437_v7 }
 0x686   : > { %4704 = vrot.lane.b32.xlu1 %v9900_v18, %s7912_s24  ;;  %4702 = vrot.lane.b32.xlu0 %v9902_v21, %s7912_s24  ;;  %v7417_v18 = vld [vmem:[%s7976_s25 + $0x1aa] sm:$0xff] }
 0x687   : > { %4706 = vrot.lane.b32.xlu2 %v9906_v25, %s7912_s24  ;;  %v4635_v25 = vpack.c.bf16 %v7417_v18, %v7417_v18 }
 0x688   : > { %v4458_v10 = vpop.permute.xlu1 %4457  ;;  %v4456_v16 = vpop.permute.xlu0 %4455 }
 0x689   : > { %4553 = vst.msk [vmem:[#allocation2 + $0x4] sm:$0xf] %vm4551_vm3, %v4458_v10  ;;  %v4478_v22 = vpop.permute.xlu2 %4477  ;;  %v7439_v10 = vld [vmem:[%s7976_s25 + $0x15c] sm:$0xff] }
 0x68a   : > { %4552 = vst.msk [vmem:[#allocation2] sm:$0xf] %vm4551_vm3, %v4456_v16  ;;  %v7438_v16 = vld [vmem:[%s7976_s25 + $0x154] sm:$0xff] }
 0x68b   : > { %4563 = vst.msk [vmem:[#allocation2 + $0x2c] sm:$0xf] %vm4551_vm3, %v4478_v22 }
 0x68e   : > { %4710 = vrot.lane.b32.xlu1 %v9918_v5, %s7912_s24  ;;  %4708 = vrot.lane.b32.xlu0 %v9920_v29, %s7912_s24  ;;  %v4636_v5 = vpack.c.bf16 %v7418_v54, %v7418_v54  ;;  %v7420_v29 = vld [vmem:[%s7976_s25 + $0x1c2] sm:$0xff] }
 0x68f   : > { %4712 = vrot.lane.b32.xlu2 %v9924_v4, %s7912_s24  ;;  %v7419_v4 = vld [vmem:[%s7976_s25 + $0x1ba] sm:$0xff]  ;;  %v4638_v8 = vpack.c.bf16 %v7420_v29, %v7420_v29  ;;  %v7441_v29 = vld [vmem:[%s7976_s25 + $0x16c] sm:$0xff] }
 0x690   : > { %v4464_v21 = vpop.permute.xlu1 %4463  ;;  %v4462_v11 = vpop.permute.xlu0 %4461  ;;  %v4637_v47 = vpack.c.bf16 %v7419_v4, %v7419_v4 }
 0x691   : > { %4556 = vst.msk [vmem:[#allocation2 + $0x10] sm:$0xf] %vm4551_vm3, %v4464_v21  ;;  %v4484_v40 = vpop.permute.xlu2 %4483  ;;  %v4851_v21 = vpack.c.bf16 %v7439_v10, %v7439_v10  ;;  %v7459_v10 = vld [vmem:[%s7976_s25 + $0x1fc] sm:$0xff] }
 0x692   : > { %4555 = vst.msk [vmem:[#allocation2 + $0xc] sm:$0xf] %vm4551_vm3, %v4462_v11  ;;  %v4850_v11 = vpack.c.bf16 %v7438_v16, %v7438_v16 }
 0x693   : > { %4566 = vst.msk [vmem:[#allocation2 + $0x38] sm:$0xf] %vm4551_vm3, %v4484_v40  ;;  %v7440_v40 = vld [vmem:[%s7976_s25 + $0x164] sm:$0xff] }
 0x694   : > { %v4852_v54 = vpack.c.bf16 %v7440_v40, %v7440_v40 }
 0x696   : > { %4716 = vrot.lane.b32.xlu1 %v4635_v25, %s7912_s24  ;;  %4714 = vrot.lane.b32.xlu0 %v9935_v0, %s7912_s24  ;;  %v4639_v0 = vpack.c.bf16 %v7421_v30, %v7421_v30 }
 0x697   : > { %4718 = vrot.lane.b32.xlu2 %v4636_v5, %s7912_s24  ;;  %v7442_v5 = vld [vmem:[%s7976_s25 + $0x174] sm:$0xff] }
 0x698   : > { %v4470_v63 = vpop.permute.xlu1 %4469  ;;  %v4468_v56 = vpop.permute.xlu0 %4467 }
 0x699   : > { %4559 = vst.msk [vmem:[#allocation2 + $0x1c] sm:$0xf] %vm4551_vm3, %v4470_v63  ;;  %v4490_v51 = vpop.permute.xlu2 %4489 }
 0x69a   : > { %4558 = vst.msk [vmem:[#allocation2 + $0x18] sm:$0xf] %vm4551_vm3, %v4468_v56  ;;  %v4854_v56 = vpack.c.bf16 %v7442_v5, %v7442_v5  ;;  %v7462_v5 = vld [vmem:[%s7976_s25 + $0x214] sm:$0xff] }
 0x69b   : > { %4569 = vst.msk [vmem:[#allocation2 + $0x44] sm:$0xf] %vm4551_vm3, %v4490_v51  ;;  %v7443_v51 = vld [vmem:[%s7976_s25 + $0x17c] sm:$0xff] }
 0x69c   : > { %v4855_v30 = vpack.c.bf16 %v7443_v51, %v7443_v51 }
 0x69e   : > { %4722 = vrot.lane.b32.xlu1 %v4638_v8, %s7912_s24  ;;  %4720 = vrot.lane.b32.xlu0 %v4637_v47, %s7912_s24  ;;  %v4853_v8 = vpack.c.bf16 %v7441_v29, %v7441_v29 }
 0x69f   : > { %4724 = vrot.lane.b32.xlu2 %v4639_v0, %s7912_s24  ;;  %v7445_v0 = vld [vmem:[%s7976_s25 + $0x18c] sm:$0xff] }
 0x6a0   : > { %v4476_v61 = vpop.permute.xlu1 %4475  ;;  %v4474_v62 = vpop.permute.xlu0 %4473 }
 0x6a1   : > { %4562 = vst.msk [vmem:[#allocation2 + $0x28] sm:$0xf] %vm4551_vm3, %v4476_v61  ;;  %v4496_v1 = vpop.permute.xlu2 %4495 }
 0x6a2   : > { %4561 = vst.msk [vmem:[#allocation2 + $0x24] sm:$0xf] %vm4551_vm3, %v4474_v62  ;;  %v4857_v62 = vpack.c.bf16 %v7445_v0, %v7445_v0  ;;  %v7466_v0 = vld [vmem:[%s7976_s25 + $0x12d] sm:$0xff] }
 0x6a3   : > { %4572 = vst.msk [vmem:[#allocation2 + $0x50] sm:$0xf] %vm4551_vm3, %v4496_v1  ;;  %v7446_v1 = vld [vmem:[%s7976_s25 + $0x194] sm:$0xff] }
 0x6a4   : > { %v4858_v57 = vpack.c.bf16 %v7446_v1, %v7446_v1 }
 0x6a6   : > { %4728 = vrot.lane.b32.xlu1 %v4641_v38, %s7912_s24  ;;  %4726 = vrot.lane.b32.xlu0 %v4640_v36, %s7912_s24  ;;  %v4856_v38 = vpack.c.bf16 %v7444_v37, %v7444_v37 }
 0x6a7   : > { %4730 = vrot.lane.b32.xlu2 %v4642_v42, %s7912_s24  ;;  %v7448_v42 = vld [vmem:[%s7976_s25 + $0x1a4] sm:$0xff] }
 0x6a8   : > { %v4482_v52 = vpop.permute.xlu1 %4481  ;;  %v4480_v44 = vpop.permute.xlu0 %4479 }
 0x6a9   : > { %4565 = vst.msk [vmem:[#allocation2 + $0x34] sm:$0xf] %vm4551_vm3, %v4482_v52  ;;  %v4502_v23 = vpop.permute.xlu2 %4501 }
 0x6aa   : > { %4564 = vst.msk [vmem:[#allocation2 + $0x30] sm:$0xf] %vm4551_vm3, %v4480_v44  ;;  %v4860_v44 = vpack.c.bf16 %v7448_v42, %v7448_v42  ;;  %v7469_v42 = vld [vmem:[%s7976_s25 + $0x145] sm:$0xff] }
 0x6ab   : > { %4575 = vst.msk [vmem:[#allocation2 + $0x5c] sm:$0xf] %vm4551_vm3, %v4502_v23  ;;  %v7449_v23 = vld [vmem:[%s7976_s25 + $0x1ac] sm:$0xff] }
 0x6ac   : > { %v4861_v12 = vpack.c.bf16 %v7449_v23, %v7449_v23 }
 0x6ae   : > { %4734 = vrot.lane.b32.xlu1 %v4644_v41, %s7912_s24  ;;  %4732 = vrot.lane.b32.xlu0 %v4643_v55, %s7912_s24  ;;  %v4859_v41 = vpack.c.bf16 %v7447_v28, %v7447_v28 }
 0x6af   : > { %4736 = vrot.lane.b32.xlu2 %v4645_v26, %s7912_s24  ;;  %v7451_v26 = vld [vmem:[%s7976_s25 + $0x1bc] sm:$0xff] }
 0x6b0   : > { %v4488_v32 = vpop.permute.xlu1 %4487  ;;  %v4486_v34 = vpop.permute.xlu0 %4485 }
 0x6b1   : > { %4568 = vst.msk [vmem:[#allocation2 + $0x40] sm:$0xf] %vm4551_vm3, %v4488_v32  ;;  %v4508_v60 = vpop.permute.xlu2 %4507 }
 0x6b2   : > { %4567 = vst.msk [vmem:[#allocation2 + $0x3c] sm:$0xf] %vm4551_vm3, %v4486_v34  ;;  %v4863_v34 = vpack.c.bf16 %v7451_v26, %v7451_v26  ;;  %v7472_v26 = vld [vmem:[%s7976_s25 + $0x15d] sm:$0xff] }
 0x6b3   : > { %4578 = vst.msk [vmem:[#allocation2 + $0x68] sm:$0xf] %vm4551_vm3, %v4508_v60  ;;  %v7452_v60 = vld [vmem:[%s7976_s25 + $0x1c4] sm:$0xff] }
 0x6b4   : > { %v4864_v46 = vpack.c.bf16 %v7452_v60, %v7452_v60 }
 0x6b6   : > { %4740 = vrot.lane.b32.xlu1 %v4647_v2, %s7912_s24  ;;  %4738 = vrot.lane.b32.xlu0 %v4646_v59, %s7912_s24  ;;  %v4862_v2 = vpack.c.bf16 %v7450_v13, %v7450_v13 }
 0x6b7   : > { %4742 = vrot.lane.b32.xlu2 %v4648_v15, %s7912_s24  ;;  %v7454_v15 = vld [vmem:[%s7976_s25 + $0x1d4] sm:$0xff] }
 0x6b8   : > { %v4494_v14 = vpop.permute.xlu1 %4493  ;;  %v4492_v35 = vpop.permute.xlu0 %4491 }
 0x6b9   : > { %4571 = vst.msk [vmem:[#allocation2 + $0x4c] sm:$0xf] %vm4551_vm3, %v4494_v14  ;;  %v4514_v20 = vpop.permute.xlu2 %4513 }
 0x6ba   : > { %4570 = vst.msk [vmem:[#allocation2 + $0x48] sm:$0xf] %vm4551_vm3, %v4492_v35  ;;  %v4866_v35 = vpack.c.bf16 %v7454_v15, %v7454_v15  ;;  %v7475_v15 = vld [vmem:[%s7976_s25 + $0x175] sm:$0xff] }
 0x6bb   : > { %4581 = vst.msk [vmem:[#allocation2 + $0x74] sm:$0xf] %vm4551_vm3, %v4514_v20  ;;  %v7455_v20 = vld [vmem:[%s7976_s25 + $0x1dc] sm:$0xff] }
 0x6bc   : > { %v4867_v17 = vpack.c.bf16 %v7455_v20, %v7455_v20 }
 0x6be   : > { %4909 = vrot.lane.b32.xlu1 %v4845_v58, %s7913_s26  ;;  %4744 = vrot.lane.b32.xlu0 %v4649_v9, %s7912_s24  ;;  %v4865_v58 = vpack.c.bf16 %v7453_v27, %v7453_v27 }
 0x6bf   : > { %4911 = vrot.lane.b32.xlu2 %v4846_v49, %s7913_s26  ;;  %v7457_v49 = vld [vmem:[%s7976_s25 + $0x1ec] sm:$0xff] }
 0x6c0   : > { %v4500_v3 = vpop.permute.xlu1 %4499  ;;  %v4498_v48 = vpop.permute.xlu0 %4497 }
 0x6c1   : > { %4574 = vst.msk [vmem:[#allocation2 + $0x58] sm:$0xf] %vm4551_vm3, %v4500_v3  ;;  %v4683_v45 = vpop.permute.xlu2 %4682 }
 0x6c2   : > { %4573 = vst.msk [vmem:[#allocation2 + $0x54] sm:$0xf] %vm4551_vm3, %v4498_v48  ;;  %v4869_v48 = vpack.c.bf16 %v7457_v49, %v7457_v49  ;;  %v7478_v49 = vld [vmem:[%s7976_s25 + $0x18d] sm:$0xff] }
 0x6c3   : > { %4779 = vst.msk [vmem:[#allocation2] sm:$0xf] %vm4778_vm4, %v4683_v45  ;;  %v7458_v45 = vld [vmem:[%s7976_s25 + $0x1f4] sm:$0xff] }
 0x6c4   : > { %v4870_v7 = vpack.c.bf16 %v7458_v45, %v7458_v45 }
 0x6c6   : > { %4915 = vrot.lane.b32.xlu1 %v4848_v50, %s7913_s26  ;;  %4913 = vrot.lane.b32.xlu0 %v4847_v24, %s7913_s26  ;;  %v4868_v50 = vpack.c.bf16 %v7456_v31, %v7456_v31 }
 0x6c7   : > { %4917 = vrot.lane.b32.xlu2 %v4849_v6, %s7913_s26  ;;  %v7460_v6 = vld [vmem:[%s7976_s25 + $0x204] sm:$0xff] }
 0x6c8   : > { %v4506_v22 = vpop.permute.xlu1 %4505  ;;  %v4504_v18 = vpop.permute.xlu0 %4503 }
 0x6c9   : > { %4577 = vst.msk [vmem:[#allocation2 + $0x64] sm:$0xf] %vm4551_vm3, %v4506_v22  ;;  %v4689_v25 = vpop.permute.xlu2 %4688 }
 0x6ca   : > { %4576 = vst.msk [vmem:[#allocation2 + $0x60] sm:$0xf] %vm4551_vm3, %v4504_v18  ;;  %v4872_v18 = vpack.c.bf16 %v7460_v6, %v7460_v6  ;;  %v7481_v6 = vld [vmem:[%s7976_s25 + $0x1a5] sm:$0xff] }
 0x6cb   : > { %4782 = vst.msk [vmem:[#allocation2 + $0xc] sm:$0xf] %vm4778_vm4, %v4689_v25  ;;  %v7461_v25 = vld [vmem:[%s7976_s25 + $0x20c] sm:$0xff] }
 0x6cc   : > { %v4873_v40 = vpack.c.bf16 %v7461_v25, %v7461_v25 }
 0x6ce   : > { %4921 = vrot.lane.b32.xlu1 %v4851_v21, %s7913_s26  ;;  %4919 = vrot.lane.b32.xlu0 %v4850_v11, %s7913_s26  ;;  %v4871_v21 = vpack.c.bf16 %v7459_v10, %v7459_v10 }
 0x6cf   : > { %4923 = vrot.lane.b32.xlu2 %v4852_v54, %s7913_s26  ;;  %v7463_v54 = vld [vmem:[%s7976_s25 + $0x21c] sm:$0xff] }
 0x6d0   : > { %v4512_v4 = vpop.permute.xlu1 %4511  ;;  %v4510_v63 = vpop.permute.xlu0 %4509 }
 0x6d1   : > { %4580 = vst.msk [vmem:[#allocation2 + $0x70] sm:$0xf] %vm4551_vm3, %v4512_v4  ;;  %v4695_v47 = vpop.permute.xlu2 %4694 }
 0x6d2   : > { %4579 = vst.msk [vmem:[#allocation2 + $0x6c] sm:$0xf] %vm4551_vm3, %v4510_v63  ;;  %v4875_v63 = vpack.c.bf16 %v7463_v54, %v7463_v54  ;;  %v7484_v54 = vld [vmem:[%s7976_s25 + $0x1bd] sm:$0xff] }
 0x6d3   : > { %4785 = vst.msk [vmem:[#allocation2 + $0x18] sm:$0xf] %vm4778_vm4, %v4695_v47  ;;  %v7464_v47 = vld [vmem:[%s7976_s25 + $0x224] sm:$0xff] }
 0x6d4   : > { %v4876_v51 = vpack.c.bf16 %v7464_v47, %v7464_v47 }
 0x6d6   : > { %4927 = vrot.lane.b32.xlu1 %v4854_v56, %s7913_s26  ;;  %4925 = vrot.lane.b32.xlu0 %v4853_v8, %s7913_s26  ;;  %v4874_v56 = vpack.c.bf16 %v7462_v5, %v7462_v5 }
 0x6d7   : > { %4929 = vrot.lane.b32.xlu2 %v4855_v30, %s7913_s26  ;;  %v7467_v30 = vld [vmem:[%s7976_s25 + $0x135] sm:$0xff] }
 0x6d8   : > { %v4518_v39 = vpop.permute.xlu1 %4517  ;;  %v4516_v61 = vpop.permute.xlu0 %4515 }
 0x6d9   : > { %4583 = vst.msk [vmem:[#allocation2 + $0x7c] sm:$0xf] %vm4551_vm3, %v4518_v39  ;;  %v4701_v36 = vpop.permute.xlu2 %4700 }
 0x6da   : > { %4582 = vst.msk [vmem:[#allocation2 + $0x78] sm:$0xf] %vm4551_vm3, %v4516_v61  ;;  %v5073_v61 = vpack.c.bf16 %v7467_v30, %v7467_v30  ;;  %v7487_v30 = vld [vmem:[%s7976_s25 + $0x1d5] sm:$0xff] }
 0x6db   : > { %4788 = vst.msk [vmem:[#allocation2 + $0x24] sm:$0xf] %vm4778_vm4, %v4701_v36  ;;  %v7468_v36 = vld [vmem:[%s7976_s25 + $0x13d] sm:$0xff] }
 0x6dc   : > { %v5074_v1 = vpack.c.bf16 %v7468_v36, %v7468_v36 }
 0x6de   : > { %4933 = vrot.lane.b32.xlu1 %v4857_v62, %s7913_s26  ;;  %4931 = vrot.lane.b32.xlu0 %v4856_v38, %s7913_s26  ;;  %v5072_v62 = vpack.c.bf16 %v7466_v0, %v7466_v0 }
 0x6df   : > { %4935 = vrot.lane.b32.xlu2 %v4858_v57, %s7913_s26  ;;  %v7470_v57 = vld [vmem:[%s7976_s25 + $0x14d] sm:$0xff] }
 0x6e0   : > { %v4687_v33 = vpop.permute.xlu1 %4686  ;;  %v4685_v52 = vpop.permute.xlu0 %4684 }
 0x6e1   : > { %4781 = vst.msk [vmem:[#allocation2 + $0x8] sm:$0xf] %vm4778_vm4, %v4687_v33  ;;  %v4707_v55 = vpop.permute.xlu2 %4706 }
 0x6e2   : > { %4780 = vst.msk [vmem:[#allocation2 + $0x4] sm:$0xf] %vm4778_vm4, %v4685_v52  ;;  %v5076_v52 = vpack.c.bf16 %v7470_v57, %v7470_v57  ;;  %v7490_v57 = vld [vmem:[%s7976_s25 + $0x1ed] sm:$0xff] }
 0x6e3   : > { %4791 = vst.msk [vmem:[#allocation2 + $0x30] sm:$0xf] %vm4778_vm4, %v4707_v55  ;;  %v7471_v55 = vld [vmem:[%s7976_s25 + $0x155] sm:$0xff] }
 0x6e4   : > { %v5077_v23 = vpack.c.bf16 %v7471_v55, %v7471_v55 }
 0x6e6   : > { %4939 = vrot.lane.b32.xlu1 %v4860_v44, %s7913_s26  ;;  %4937 = vrot.lane.b32.xlu0 %v4859_v41, %s7913_s26  ;;  %v5075_v44 = vpack.c.bf16 %v7469_v42, %v7469_v42 }
 0x6e7   : > { %4941 = vrot.lane.b32.xlu2 %v4861_v12, %s7913_s26  ;;  %v7473_v12 = vld [vmem:[%s7976_s25 + $0x165] sm:$0xff] }
 0x6e8   : > { %v4693_v19 = vpop.permute.xlu1 %4692  ;;  %v4691_v32 = vpop.permute.xlu0 %4690 }
 0x6e9   : > { %4784 = vst.msk [vmem:[#allocation2 + $0x14] sm:$0xf] %vm4778_vm4, %v4693_v19  ;;  %v4713_v59 = vpop.permute.xlu2 %4712 }
 0x6ea   : > { %4783 = vst.msk [vmem:[#allocation2 + $0x10] sm:$0xf] %vm4778_vm4, %v4691_v32  ;;  %v5079_v32 = vpack.c.bf16 %v7473_v12, %v7473_v12  ;;  %v7493_v12 = vld [vmem:[%s7976_s25 + $0x205] sm:$0xff] }
 0x6eb   : > { %4794 = vst.msk [vmem:[#allocation2 + $0x3c] sm:$0xf] %vm4778_vm4, %v4713_v59  ;;  %v7474_v59 = vld [vmem:[%s7976_s25 + $0x16d] sm:$0xff] }
 0x6ec   : > { %v5080_v60 = vpack.c.bf16 %v7474_v59, %v7474_v59 }
 0x6ee   : > { %4945 = vrot.lane.b32.xlu1 %v4863_v34, %s7913_s26  ;;  %4943 = vrot.lane.b32.xlu0 %v4862_v2, %s7913_s26  ;;  %v5078_v34 = vpack.c.bf16 %v7472_v26, %v7472_v26 }
 0x6ef   : > { %4947 = vrot.lane.b32.xlu2 %v4864_v46, %s7913_s26  ;;  %v7476_v46 = vld [vmem:[%s7976_s25 + $0x17d] sm:$0xff] }
 0x6f0   : > { %v4699_v43 = vpop.permute.xlu1 %4698  ;;  %v4697_v14 = vpop.permute.xlu0 %4696 }
 0x6f1   : > { %4787 = vst.msk [vmem:[#allocation2 + $0x20] sm:$0xf] %vm4778_vm4, %v4699_v43  ;;  %v4719_v9 = vpop.permute.xlu2 %4718 }
 0x6f2   : > { %4786 = vst.msk [vmem:[#allocation2 + $0x1c] sm:$0xf] %vm4778_vm4, %v4697_v14  ;;  %v5082_v14 = vpack.c.bf16 %v7476_v46, %v7476_v46  ;;  %v7496_v46 = vld [vmem:[%s7976_s25 + $0x21d] sm:$0xff] }
 0x6f3   : > { %4797 = vst.msk [vmem:[#allocation2 + $0x48] sm:$0xf] %vm4778_vm4, %v4719_v9  ;;  %v7477_v9 = vld [vmem:[%s7976_s25 + $0x185] sm:$0xff] }
 0x6f4   : > { %v5083_v20 = vpack.c.bf16 %v7477_v9, %v7477_v9 }
 0x6f6   : > { %4951 = vrot.lane.b32.xlu1 %v4866_v35, %s7913_s26  ;;  %4949 = vrot.lane.b32.xlu0 %v4865_v58, %s7913_s26  ;;  %v5081_v35 = vpack.c.bf16 %v7475_v15, %v7475_v15 }
 0x6f7   : > { %4953 = vrot.lane.b32.xlu2 %v4867_v17, %s7913_s26  ;;  %v7479_v17 = vld [vmem:[%s7976_s25 + $0x195] sm:$0xff] }
 0x6f8   : > { %v4705_v53 = vpop.permute.xlu1 %4704  ;;  %v4703_v3 = vpop.permute.xlu0 %4702 }
 0x6f9   : > { %4790 = vst.msk [vmem:[#allocation2 + $0x2c] sm:$0xf] %vm4778_vm4, %v4705_v53  ;;  %v4725_v24 = vpop.permute.xlu2 %4724 }
 0x6fa   : > { %4789 = vst.msk [vmem:[#allocation2 + $0x28] sm:$0xf] %vm4778_vm4, %v4703_v3  ;;  %v5085_v3 = vpack.c.bf16 %v7479_v17, %v7479_v17  ;;  %v7500_v17 = vld [vmem:[%s7976_s25 + $0x136] sm:$0xff] }
 0x6fb   : > { %4800 = vst.msk [vmem:[#allocation2 + $0x54] sm:$0xf] %vm4778_vm4, %v4725_v24  ;;  %v7480_v24 = vld [vmem:[%s7976_s25 + $0x19d] sm:$0xff] }
 0x6fc   : > { %v5086_v45 = vpack.c.bf16 %v7480_v24, %v7480_v24 }
 0x6fe   : > { %4957 = vrot.lane.b32.xlu1 %v4869_v48, %s7913_s26  ;;  %4955 = vrot.lane.b32.xlu0 %v4868_v50, %s7913_s26  ;;  %v5084_v48 = vpack.c.bf16 %v7478_v49, %v7478_v49 }
 0x6ff   : > { %4959 = vrot.lane.b32.xlu2 %v4870_v7, %s7913_s26  ;;  %v7482_v7 = vld [vmem:[%s7976_s25 + $0x1ad] sm:$0xff] }
 0x700   : > { %v4711_v16 = vpop.permute.xlu1 %4710  ;;  %v4709_v22 = vpop.permute.xlu0 %4708 }
 0x701   : > { %4793 = vst.msk [vmem:[#allocation2 + $0x38] sm:$0xf] %vm4778_vm4, %v4711_v16  ;;  %v4731_v11 = vpop.permute.xlu2 %4730 }
 0x702   : > { %4792 = vst.msk [vmem:[#allocation2 + $0x34] sm:$0xf] %vm4778_vm4, %v4709_v22  ;;  %v5088_v22 = vpack.c.bf16 %v7482_v7, %v7482_v7  ;;  %v7503_v7 = vld [vmem:[%s7976_s25 + $0x14e] sm:$0xff] }
 0x703   : > { %4803 = vst.msk [vmem:[#allocation2 + $0x60] sm:$0xf] %vm4778_vm4, %v4731_v11  ;;  %v7483_v11 = vld [vmem:[%s7976_s25 + $0x1b5] sm:$0xff] }
 0x704   : > { %v5089_v25 = vpack.c.bf16 %v7483_v11, %v7483_v11 }
 0x706   : > { %4963 = vrot.lane.b32.xlu1 %v4872_v18, %s7913_s26  ;;  %4961 = vrot.lane.b32.xlu0 %v4871_v21, %s7913_s26  ;;  %v5087_v18 = vpack.c.bf16 %v7481_v6, %v7481_v6 }
 0x707   : > { %4965 = vrot.lane.b32.xlu2 %v4873_v40, %s7913_s26  ;;  %v7485_v40 = vld [vmem:[%s7976_s25 + $0x1c5] sm:$0xff] }
 0x708   : > { %v4717_v29 = vpop.permute.xlu1 %4716  ;;  %v4715_v4 = vpop.permute.xlu0 %4714 }
 0x709   : > { %4796 = vst.msk [vmem:[#allocation2 + $0x44] sm:$0xf] %vm4778_vm4, %v4717_v29  ;;  %v4737_v8 = vpop.permute.xlu2 %4736 }
 0x70a   : > { %4795 = vst.msk [vmem:[#allocation2 + $0x40] sm:$0xf] %vm4778_vm4, %v4715_v4  ;;  %v5091_v4 = vpack.c.bf16 %v7485_v40, %v7485_v40  ;;  %v7506_v40 = vld [vmem:[%s7976_s25 + $0x166] sm:$0xff] }
 0x70b   : > { %4806 = vst.msk [vmem:[#allocation2 + $0x6c] sm:$0xf] %vm4778_vm4, %v4737_v8  ;;  %v7486_v8 = vld [vmem:[%s7976_s25 + $0x1cd] sm:$0xff] }
 0x70c   : > { %v5092_v47 = vpack.c.bf16 %v7486_v8, %v7486_v8 }
 0x70e   : > { %4969 = vrot.lane.b32.xlu1 %v4875_v63, %s7913_s26  ;;  %4967 = vrot.lane.b32.xlu0 %v4874_v56, %s7913_s26  ;;  %v5090_v63 = vpack.c.bf16 %v7484_v54, %v7484_v54 }
 0x70f   : > { %4971 = vrot.lane.b32.xlu2 %v4876_v51, %s7913_s26  ;;  %v7488_v51 = vld [vmem:[%s7976_s25 + $0x1dd] sm:$0xff] }
 0x710   : > { %v4723_v37 = vpop.permute.xlu1 %4722  ;;  %v4721_v39 = vpop.permute.xlu0 %4720 }
 0x711   : > { %4799 = vst.msk [vmem:[#allocation2 + $0x50] sm:$0xf] %vm4778_vm4, %v4723_v37  ;;  %v4743_v38 = vpop.permute.xlu2 %4742 }
 0x712   : > { %4798 = vst.msk [vmem:[#allocation2 + $0x4c] sm:$0xf] %vm4778_vm4, %v4721_v39  ;;  %v5094_v39 = vpack.c.bf16 %v7488_v51, %v7488_v51  ;;  %v7509_v51 = vld [vmem:[%s7976_s25 + $0x17e] sm:$0xff] }
 0x713   : > { %4809 = vst.msk [vmem:[#allocation2 + $0x78] sm:$0xf] %vm4778_vm4, %v4743_v38  ;;  %v7489_v38 = vld [vmem:[%s7976_s25 + $0x1e5] sm:$0xff] }
 0x714   : > { %v5095_v36 = vpack.c.bf16 %v7489_v38, %v7489_v38 }
 0x716   : > { %5138 = vrot.lane.b32.xlu1 %v5073_v61, %s7914_s27  ;;  %5136 = vrot.lane.b32.xlu0 %v5072_v62, %s7914_s27  ;;  %v5093_v61 = vpack.c.bf16 %v7487_v30, %v7487_v30 }
 0x717   : > { %5140 = vrot.lane.b32.xlu2 %v5074_v1, %s7914_s27  ;;  %v7491_v1 = vld [vmem:[%s7976_s25 + $0x1f5] sm:$0xff] }
 0x718   : > { %v4729_v28 = vpop.permute.xlu1 %4728  ;;  %v4727_v33 = vpop.permute.xlu0 %4726 }
 0x719   : > { %4802 = vst.msk [vmem:[#allocation2 + $0x5c] sm:$0xf] %vm4778_vm4, %v4729_v28  ;;  %v4912_v41 = vpop.permute.xlu2 %4911 }
 0x71a   : > { %4801 = vst.msk [vmem:[#allocation2 + $0x58] sm:$0xf] %vm4778_vm4, %v4727_v33  ;;  %v5097_v33 = vpack.c.bf16 %v7491_v1, %v7491_v1  ;;  %v7512_v1 = vld [vmem:[%s7976_s25 + $0x196] sm:$0xff] }
 0x71b   : > { %5007 = vst.msk [vmem:[#allocation2 + $0x4] sm:$0xf] %vm5005_vm5, %v4912_v41  ;;  %v7492_v41 = vld [vmem:[%s7976_s25 + $0x1fd] sm:$0xff] }
 0x71c   : > { %v5098_v55 = vpack.c.bf16 %v7492_v41, %v7492_v41 }
 0x71e   : > { %5144 = vrot.lane.b32.xlu1 %v5076_v52, %s7914_s27  ;;  %5142 = vrot.lane.b32.xlu0 %v5075_v44, %s7914_s27  ;;  %v5096_v52 = vpack.c.bf16 %v7490_v57, %v7490_v57 }
 0x71f   : > { %5146 = vrot.lane.b32.xlu2 %v5077_v23, %s7914_s27  ;;  %v7494_v23 = vld [vmem:[%s7976_s25 + $0x20d] sm:$0xff] }
 0x720   : > { %v4735_v13 = vpop.permute.xlu1 %4734  ;;  %v4733_v19 = vpop.permute.xlu0 %4732 }
 0x721   : > { %4805 = vst.msk [vmem:[#allocation2 + $0x68] sm:$0xf] %vm4778_vm4, %v4735_v13  ;;  %v4918_v2 = vpop.permute.xlu2 %4917 }
 0x722   : > { %4804 = vst.msk [vmem:[#allocation2 + $0x64] sm:$0xf] %vm4778_vm4, %v4733_v19  ;;  %v5100_v19 = vpack.c.bf16 %v7494_v23, %v7494_v23  ;;  %v7515_v23 = vld [vmem:[%s7976_s25 + $0x1ae] sm:$0xff] }
 0x723   : > { %5010 = vst.msk [vmem:[#allocation2 + $0x10] sm:$0xf] %vm5005_vm5, %v4918_v2  ;;  %v7495_v2 = vld [vmem:[%s7976_s25 + $0x215] sm:$0xff] }
 0x724   : > { %v5101_v59 = vpack.c.bf16 %v7495_v2, %v7495_v2 }
 0x726   : > { %5150 = vrot.lane.b32.xlu1 %v5079_v32, %s7914_s27  ;;  %5148 = vrot.lane.b32.xlu0 %v5078_v34, %s7914_s27  ;;  %v5099_v32 = vpack.c.bf16 %v7493_v12, %v7493_v12 }
 0x727   : > { %5152 = vrot.lane.b32.xlu2 %v5080_v60, %s7914_s27  ;;  %v7497_v60 = vld [vmem:[%s7976_s25 + $0x225] sm:$0xff] }
 0x728   : > { %v4741_v27 = vpop.permute.xlu1 %4740  ;;  %v4739_v43 = vpop.permute.xlu0 %4738 }
 0x729   : > { %4808 = vst.msk [vmem:[#allocation2 + $0x74] sm:$0xf] %vm4778_vm4, %v4741_v27  ;;  %v4924_v58 = vpop.permute.xlu2 %4923 }
 0x72a   : > { %4807 = vst.msk [vmem:[#allocation2 + $0x70] sm:$0xf] %vm4778_vm4, %v4739_v43  ;;  %v5103_v43 = vpack.c.bf16 %v7497_v60, %v7497_v60  ;;  %v7518_v60 = vld [vmem:[%s7976_s25 + $0x1c6] sm:$0xff] }
 0x72b   : > { %5013 = vst.msk [vmem:[#allocation2 + $0x1c] sm:$0xf] %vm5005_vm5, %v4924_v58  ;;  %v7499_v58 = vld [vmem:[%s7976_s25 + $0x12e] sm:$0xff] }
 0x72c   : > { %v5299_v9 = vpack.c.bf16 %v7499_v58, %v7499_v58 }
 0x72e   : > { %5156 = vrot.lane.b32.xlu1 %v5082_v14, %s7914_s27  ;;  %5154 = vrot.lane.b32.xlu0 %v5081_v35, %s7914_s27  ;;  %v5102_v14 = vpack.c.bf16 %v7496_v46, %v7496_v46 }
 0x72f   : > { %5158 = vrot.lane.b32.xlu2 %v5083_v20, %s7914_s27  ;;  %v7501_v20 = vld [vmem:[%s7976_s25 + $0x13e] sm:$0xff] }
 0x730   : > { %v4910_v31 = vpop.permute.xlu1 %4909  ;;  %v4745_v53 = vpop.permute.xlu0 %4744 }
 0x731   : > { %5006 = vst.msk [vmem:[#allocation2] sm:$0xf] %vm5005_vm5, %v4910_v31  ;;  %v4930_v50 = vpop.permute.xlu2 %4929 }
 0x732   : > { %4810 = vst.msk [vmem:[#allocation2 + $0x7c] sm:$0xf] %vm4778_vm4, %v4745_v53  ;;  %v5301_v53 = vpack.c.bf16 %v7501_v20, %v7501_v20  ;;  %v7521_v20 = vld [vmem:[%s7976_s25 + $0x1de] sm:$0xff] }
 0x733   : > { %5016 = vst.msk [vmem:[#allocation2 + $0x28] sm:$0xf] %vm5005_vm5, %v4930_v50  ;;  %v7502_v50 = vld [vmem:[%s7976_s25 + $0x146] sm:$0xff] }
 0x734   : > { %v5302_v24 = vpack.c.bf16 %v7502_v50, %v7502_v50 }
 0x736   : > { %5162 = vrot.lane.b32.xlu1 %v5085_v3, %s7914_s27  ;;  %5160 = vrot.lane.b32.xlu0 %v5084_v48, %s7914_s27  ;;  %v5300_v3 = vpack.c.bf16 %v7500_v17, %v7500_v17 }
 0x737   : > { %5164 = vrot.lane.b32.xlu2 %v5086_v45, %s7914_s27  ;;  %v7504_v45 = vld [vmem:[%s7976_s25 + $0x156] sm:$0xff] }
 0x738   : > { %v4916_v10 = vpop.permute.xlu1 %4915  ;;  %v4914_v16 = vpop.permute.xlu0 %4913 }
 0x739   : > { %5009 = vst.msk [vmem:[#allocation2 + $0xc] sm:$0xf] %vm5005_vm5, %v4916_v10  ;;  %v4936_v21 = vpop.permute.xlu2 %4935 }
 0x73a   : > { %5008 = vst.msk [vmem:[#allocation2 + $0x8] sm:$0xf] %vm5005_vm5, %v4914_v16  ;;  %v5304_v16 = vpack.c.bf16 %v7504_v45, %v7504_v45  ;;  %v7524_v45 = vld [vmem:[%s7976_s25 + $0x1f6] sm:$0xff] }
 0x73b   : > { %5019 = vst.msk [vmem:[#allocation2 + $0x34] sm:$0xf] %vm5005_vm5, %v4936_v21  ;;  %v7505_v21 = vld [vmem:[%s7976_s25 + $0x15e] sm:$0xff] }
 0x73c   : > { %v5305_v11 = vpack.c.bf16 %v7505_v21, %v7505_v21 }
 0x73e   : > { %5168 = vrot.lane.b32.xlu1 %v5088_v22, %s7914_s27  ;;  %5166 = vrot.lane.b32.xlu0 %v5087_v18, %s7914_s27  ;;  %v5303_v22 = vpack.c.bf16 %v7503_v7, %v7503_v7 }
 0x73f   : > { %5170 = vrot.lane.b32.xlu2 %v5089_v25, %s7914_s27  ;;  %v7507_v25 = vld [vmem:[%s7976_s25 + $0x16e] sm:$0xff] }
 0x740   : > { %v4922_v5 = vpop.permute.xlu1 %4921  ;;  %v4920_v29 = vpop.permute.xlu0 %4919 }
 0x741   : > { %5012 = vst.msk [vmem:[#allocation2 + $0x18] sm:$0xf] %vm5005_vm5, %v4922_v5  ;;  %v4942_v56 = vpop.permute.xlu2 %4941 }
 0x742   : > { %5011 = vst.msk [vmem:[#allocation2 + $0x14] sm:$0xf] %vm5005_vm5, %v4920_v29  ;;  %v5307_v29 = vpack.c.bf16 %v7507_v25, %v7507_v25  ;;  %v7527_v25 = vld [vmem:[%s7976_s25 + $0x20e] sm:$0xff] }
 0x743   : > { %5022 = vst.msk [vmem:[#allocation2 + $0x40] sm:$0xf] %vm5005_vm5, %v4942_v56  ;;  %v7508_v56 = vld [vmem:[%s7976_s25 + $0x176] sm:$0xff] }
 0x744   : > { %v5308_v8 = vpack.c.bf16 %v7508_v56, %v7508_v56 }
 0x746   : > { %5174 = vrot.lane.b32.xlu1 %v5091_v4, %s7914_s27  ;;  %5172 = vrot.lane.b32.xlu0 %v5090_v63, %s7914_s27  ;;  %v5306_v4 = vpack.c.bf16 %v7506_v40, %v7506_v40 }
 0x747   : > { %5176 = vrot.lane.b32.xlu2 %v5092_v47, %s7914_s27  ;;  %v7510_v47 = vld [vmem:[%s7976_s25 + $0x186] sm:$0xff] }
 0x748   : > { %v4928_v0 = vpop.permute.xlu1 %4927  ;;  %v4926_v37 = vpop.permute.xlu0 %4925 }
 0x749   : > { %5015 = vst.msk [vmem:[#allocation2 + $0x24] sm:$0xf] %vm5005_vm5, %v4928_v0  ;;  %v4948_v62 = vpop.permute.xlu2 %4947 }
 0x74a   : > { %5014 = vst.msk [vmem:[#allocation2 + $0x20] sm:$0xf] %vm5005_vm5, %v4926_v37  ;;  %v5310_v37 = vpack.c.bf16 %v7510_v47, %v7510_v47  ;;  %v7530_v47 = vld [vmem:[%s7976_s25 + $0x226] sm:$0xff] }
 0x74b   : > { %5025 = vst.msk [vmem:[#allocation2 + $0x4c] sm:$0xf] %vm5005_vm5, %v4948_v62  ;;  %v7511_v62 = vld [vmem:[%s7976_s25 + $0x18e] sm:$0xff] }
 0x74c   : > { %v5311_v38 = vpack.c.bf16 %v7511_v62, %v7511_v62 }
 0x74e   : > { %5180 = vrot.lane.b32.xlu1 %v5094_v39, %s7914_s27  ;;  %5178 = vrot.lane.b32.xlu0 %v5093_v61, %s7914_s27  ;;  %v5309_v39 = vpack.c.bf16 %v7509_v51, %v7509_v51 }
 0x74f   : > { %5182 = vrot.lane.b32.xlu2 %v5095_v36, %s7914_s27  ;;  %v7513_v36 = vld [vmem:[%s7976_s25 + $0x19e] sm:$0xff] }
 0x750   : > { %v4934_v42 = vpop.permute.xlu1 %4933  ;;  %v4932_v28 = vpop.permute.xlu0 %4931 }
 0x751   : > { %5018 = vst.msk [vmem:[#allocation2 + $0x30] sm:$0xf] %vm5005_vm5, %v4934_v42  ;;  %v4954_v44 = vpop.permute.xlu2 %4953 }
 0x752   : > { %5017 = vst.msk [vmem:[#allocation2 + $0x2c] sm:$0xf] %vm5005_vm5, %v4932_v28  ;;  %v5313_v28 = vpack.c.bf16 %v7513_v36, %v7513_v36  ;;  %v7565_v36 = vld [vmem:[%s7976_s25 + $0x139] sm:$0xff] }
 0x753   : > { %5028 = vst.msk [vmem:[#allocation2 + $0x58] sm:$0xf] %vm5005_vm5, %v4954_v44  ;;  %v7514_v44 = vld [vmem:[%s7976_s25 + $0x1a6] sm:$0xff] }
 0x754   : > { %v5314_v41 = vpack.c.bf16 %v7514_v44, %v7514_v44 }
 0x756   : > { %5186 = vrot.lane.b32.xlu1 %v5097_v33, %s7914_s27  ;;  %5184 = vrot.lane.b32.xlu0 %v5096_v52, %s7914_s27  ;;  %v5312_v33 = vpack.c.bf16 %v7512_v1, %v7512_v1 }
 0x757   : > { %5188 = vrot.lane.b32.xlu2 %v5098_v55, %s7914_s27  ;;  %v7516_v55 = vld [vmem:[%s7976_s25 + $0x1b6] sm:$0xff] }
 0x758   : > { %v4940_v26 = vpop.permute.xlu1 %4939  ;;  %v4938_v13 = vpop.permute.xlu0 %4937 }
 0x759   : > { %5021 = vst.msk [vmem:[#allocation2 + $0x3c] sm:$0xf] %vm5005_vm5, %v4940_v26  ;;  %v4960_v34 = vpop.permute.xlu2 %4959 }
 0x75a   : > { %5020 = vst.msk [vmem:[#allocation2 + $0x38] sm:$0xf] %vm5005_vm5, %v4938_v13  ;;  %v5316_v13 = vpack.c.bf16 %v7516_v55, %v7516_v55  ;;  %v7599_v55 = vld [vmem:[%s7976_s25 + $0x142] sm:$0xff] }
 0x75b   : > { %5031 = vst.msk [vmem:[#allocation2 + $0x64] sm:$0xf] %vm5005_vm5, %v4960_v34  ;;  %v7517_v34 = vld [vmem:[%s7976_s25 + $0x1be] sm:$0xff] }
 0x75c   : > { %v5317_v2 = vpack.c.bf16 %v7517_v34, %v7517_v34 }
 0x75e   : > { %5192 = vrot.lane.b32.xlu1 %v5100_v19, %s7914_s27  ;;  %5190 = vrot.lane.b32.xlu0 %v5099_v32, %s7914_s27  ;;  %v5315_v19 = vpack.c.bf16 %v7515_v23, %v7515_v23 }
 0x75f   : > { %5194 = vrot.lane.b32.xlu2 %v5101_v59, %s7914_s27  ;;  %v7519_v59 = vld [vmem:[%s7976_s25 + $0x1ce] sm:$0xff] }
 0x760   : > { %v4946_v15 = vpop.permute.xlu1 %4945  ;;  %v4944_v27 = vpop.permute.xlu0 %4943 }
 0x761   : > { %5024 = vst.msk [vmem:[#allocation2 + $0x48] sm:$0xf] %vm5005_vm5, %v4946_v15  ;;  %v4966_v35 = vpop.permute.xlu2 %4965 }
 0x762   : > { %5023 = vst.msk [vmem:[#allocation2 + $0x44] sm:$0xf] %vm5005_vm5, %v4944_v27  ;;  %v5319_v27 = vpack.c.bf16 %v7519_v59, %v7519_v59  ;;  %v7540_v59 = vld [vmem:[%s7976_s25 + $0x178] sm:$0xff] }
 0x763   : > { %5034 = vst.msk [vmem:[#allocation2 + $0x70] sm:$0xf] %vm5005_vm5, %v4966_v35  ;;  %v7520_v35 = vld [vmem:[%s7976_s25 + $0x1d6] sm:$0xff] }
 0x764   : > { %v5320_v58 = vpack.c.bf16 %v7520_v35, %v7520_v35 }
 0x766   : > { %5198 = vrot.lane.b32.xlu1 %v5103_v43, %s7914_s27  ;;  %5196 = vrot.lane.b32.xlu0 %v5102_v14, %s7914_s27  ;;  %v5318_v43 = vpack.c.bf16 %v7518_v60, %v7518_v60 }
 0x767   : > { %5363 = vrot.lane.b32.xlu2 %v5299_v9, %s7915_s28  ;;  %v7522_v9 = vld [vmem:[%s7976_s25 + $0x1e6] sm:$0xff] }
 0x768   : > { %v4952_v49 = vpop.permute.xlu1 %4951  ;;  %v4950_v31 = vpop.permute.xlu0 %4949 }
 0x769   : > { %5027 = vst.msk [vmem:[#allocation2 + $0x54] sm:$0xf] %vm5005_vm5, %v4952_v49  ;;  %v4972_v48 = vpop.permute.xlu2 %4971 }
 0x76a   : > { %5026 = vst.msk [vmem:[#allocation2 + $0x50] sm:$0xf] %vm5005_vm5, %v4950_v31  ;;  %v5322_v31 = vpack.c.bf16 %v7522_v9, %v7522_v9  ;;  %v7568_v9 = vld [vmem:[%s7976_s25 + $0x151] sm:$0xff] }
 0x76b   : > { %5037 = vst.msk [vmem:[#allocation2 + $0x7c] sm:$0xf] %vm5005_vm5, %v4972_v48  ;;  %v7523_v48 = vld [vmem:[%s7976_s25 + $0x1ee] sm:$0xff] }
 0x76c   : > { %v5323_v50 = vpack.c.bf16 %v7523_v48, %v7523_v48 }
 0x76e   : > { %5367 = vrot.lane.b32.xlu1 %v5301_v53, %s7915_s28  ;;  %5365 = vrot.lane.b32.xlu0 %v5300_v3, %s7915_s28  ;;  %v5321_v53 = vpack.c.bf16 %v7521_v20, %v7521_v20 }
 0x76f   : > { %5369 = vrot.lane.b32.xlu2 %v5302_v24, %s7915_s28  ;;  %v7525_v24 = vld [vmem:[%s7976_s25 + $0x1fe] sm:$0xff] }
 0x770   : > { %v4958_v6 = vpop.permute.xlu1 %4957  ;;  %v4956_v10 = vpop.permute.xlu0 %4955 }
 0x771   : > { %5030 = vst.msk [vmem:[#allocation2 + $0x60] sm:$0xf] %vm5005_vm5, %v4958_v6  ;;  %v5141_v18 = vpop.permute.xlu2 %5140 }
 0x772   : > { %5029 = vst.msk [vmem:[#allocation2 + $0x5c] sm:$0xf] %vm5005_vm5, %v4956_v10  ;;  %v5325_v10 = vpack.c.bf16 %v7525_v24, %v7525_v24  ;;  %v7600_v24 = vld [vmem:[%s7976_s25 + $0x14a] sm:$0xff] }
 0x773   : > { %5235 = vst.msk [vmem:[#allocation2 + $0x8] sm:$0xf] %vm5232_vm6, %v5141_v18  ;;  %v7526_v18 = vld [vmem:[%s7976_s25 + $0x206] sm:$0xff] }
 0x774   : > { %v5326_v21 = vpack.c.bf16 %v7526_v18, %v7526_v18 }
 0x776   : > { %5373 = vrot.lane.b32.xlu1 %v5304_v16, %s7915_s28  ;;  %5371 = vrot.lane.b32.xlu0 %v5303_v22, %s7915_s28  ;;  %v5324_v16 = vpack.c.bf16 %v7524_v45, %v7524_v45 }
 0x777   : > { %5375 = vrot.lane.b32.xlu2 %v5305_v11, %s7915_s28  ;;  %v7528_v11 = vld [vmem:[%s7976_s25 + $0x216] sm:$0xff] }
 0x778   : > { %v4964_v54 = vpop.permute.xlu1 %4963  ;;  %v4962_v5 = vpop.permute.xlu0 %4961 }
 0x779   : > { %5033 = vst.msk [vmem:[#allocation2 + $0x6c] sm:$0xf] %vm5005_vm5, %v4964_v54  ;;  %v5147_v63 = vpop.permute.xlu2 %5146 }
 0x77a   : > { %5032 = vst.msk [vmem:[#allocation2 + $0x68] sm:$0xf] %vm5005_vm5, %v4962_v5  ;;  %v5328_v5 = vpack.c.bf16 %v7528_v11, %v7528_v11  ;;  %v7607_v11 = vld [vmem:[%s7976_s25 + $0x182] sm:$0xff] }
 0x77b   : > { %5238 = vst.msk [vmem:[#allocation2 + $0x14] sm:$0xf] %vm5232_vm6, %v5147_v63  ;;  %v7529_v63 = vld [vmem:[%s7976_s25 + $0x21e] sm:$0xff] }
 0x77c   : > { %v5329_v56 = vpack.c.bf16 %v7529_v63, %v7529_v63 }
 0x77e   : > { %5379 = vrot.lane.b32.xlu1 %v5307_v29, %s7915_s28  ;;  %5377 = vrot.lane.b32.xlu0 %v5306_v4, %s7915_s28  ;;  %v5327_v29 = vpack.c.bf16 %v7527_v25, %v7527_v25 }
 0x77f   : > { %5381 = vrot.lane.b32.xlu2 %v5308_v8, %s7915_s28  ;;  %v7532_v8 = vld [vmem:[%s7976_s25 + $0x138] sm:$0xff] }
 0x780   : > { %v4970_v30 = vpop.permute.xlu1 %4969  ;;  %v4968_v0 = vpop.permute.xlu0 %4967 }
 0x781   : > { %5036 = vst.msk [vmem:[#allocation2 + $0x78] sm:$0xf] %vm5005_vm5, %v4970_v30  ;;  %v5153_v61 = vpop.permute.xlu2 %5152 }
 0x782   : > { %5035 = vst.msk [vmem:[#allocation2 + $0x74] sm:$0xf] %vm5005_vm5, %v4968_v0  ;;  %v5526_v0 = vpack.c.bf16 %v7532_v8, %v7532_v8  ;;  %v7581_v8 = vld [vmem:[%s7976_s25 + $0x1b9] sm:$0xff] }
 0x783   : > { %5241 = vst.msk [vmem:[#allocation2 + $0x20] sm:$0xf] %vm5232_vm6, %v5153_v61  ;;  %v7533_v61 = vld [vmem:[%s7976_s25 + $0x140] sm:$0xff] }
 0x784   : > { %v5527_v62 = vpack.c.bf16 %v7533_v61, %v7533_v61 }
 0x786   : > { %5385 = vrot.lane.b32.xlu1 %v5310_v37, %s7915_s28  ;;  %5383 = vrot.lane.b32.xlu0 %v5309_v39, %s7915_s28  ;;  %v5330_v37 = vpack.c.bf16 %v7530_v47, %v7530_v47 }
 0x787   : > { %5387 = vrot.lane.b32.xlu2 %v5311_v38, %s7915_s28  ;;  %v7566_v38 = vld [vmem:[%s7976_s25 + $0x141] sm:$0xff] }
 0x788   : > { %v5139_v57 = vpop.permute.xlu1 %5138  ;;  %v5137_v42 = vpop.permute.xlu0 %5136 }
 0x789   : > { %5234 = vst.msk [vmem:[#allocation2 + $0x4] sm:$0xf] %vm5232_vm6, %v5139_v57  ;;  %v5159_v52 = vpop.permute.xlu2 %5158 }
 0x78a   : > { %5233 = vst.msk [vmem:[#allocation2] sm:$0xf] %vm5232_vm6, %v5137_v42  ;;  %v5754_v42 = vpack.c.bf16 %v7566_v38, %v7566_v38  ;;  %v7615_v38 = vld [vmem:[%s7976_s25 + $0x1c2] sm:$0xff] }
 0x78b   : > { %5244 = vst.msk [vmem:[#allocation2 + $0x2c] sm:$0xf] %vm5232_vm6, %v5159_v52  ;;  %v7598_v52 = vld [vmem:[%s7976_s25 + $0x13a] sm:$0xff] }
 0x78c   : > { %v5980_v44 = vpack.c.bf16 %v7598_v52, %v7598_v52 }
 0x78e   : > { %5391 = vrot.lane.b32.xlu1 %v5313_v28, %s7915_s28  ;;  %5389 = vrot.lane.b32.xlu0 %v5312_v33, %s7915_s28  ;;  %v5753_v28 = vpack.c.bf16 %v7565_v36, %v7565_v36 }
 0x78f   : > { %5393 = vrot.lane.b32.xlu2 %v5314_v41, %s7915_s28  ;;  %v7534_v41 = vld [vmem:[%s7976_s25 + $0x148] sm:$0xff] }
 0x790   : > { %v5145_v12 = vpop.permute.xlu1 %5144  ;;  %v5143_v26 = vpop.permute.xlu0 %5142 }
 0x791   : > { %5237 = vst.msk [vmem:[#allocation2 + $0x10] sm:$0xf] %vm5232_vm6, %v5145_v12  ;;  %v5165_v32 = vpop.permute.xlu2 %5164 }
 0x792   : > { %5236 = vst.msk [vmem:[#allocation2 + $0xc] sm:$0xf] %vm5232_vm6, %v5143_v26  ;;  %v5528_v26 = vpack.c.bf16 %v7534_v41, %v7534_v41  ;;  %v7542_v41 = vld [vmem:[%s7976_s25 + $0x188] sm:$0xff] }
 0x793   : > { %5247 = vst.msk [vmem:[#allocation2 + $0x38] sm:$0xf] %vm5232_vm6, %v5165_v32  ;;  %v7535_v32 = vld [vmem:[%s7976_s25 + $0x150] sm:$0xff] }
 0x794   : > { %v5529_v34 = vpack.c.bf16 %v7535_v32, %v7535_v32 }
 0x796   : > { %5397 = vrot.lane.b32.xlu1 %v5316_v13, %s7915_s28  ;;  %5395 = vrot.lane.b32.xlu0 %v5315_v19, %s7915_s28  ;;  %v5981_v13 = vpack.c.bf16 %v7599_v55, %v7599_v55 }
 0x797   : > { %5399 = vrot.lane.b32.xlu2 %v5317_v2, %s7915_s28  ;;  %v7541_v2 = vld [vmem:[%s7976_s25 + $0x180] sm:$0xff] }
 0x798   : > { %v5151_v46 = vpop.permute.xlu1 %5150  ;;  %v5149_v15 = vpop.permute.xlu0 %5148 }
 0x799   : > { %5240 = vst.msk [vmem:[#allocation2 + $0x1c] sm:$0xf] %vm5232_vm6, %v5151_v46  ;;  %v5171_v14 = vpop.permute.xlu2 %5170 }
 0x79a   : > { %5239 = vst.msk [vmem:[#allocation2 + $0x18] sm:$0xf] %vm5232_vm6, %v5149_v15  ;;  %v5535_v15 = vpack.c.bf16 %v7541_v2, %v7541_v2  ;;  %v7570_v2 = vld [vmem:[%s7976_s25 + $0x161] sm:$0xff] }
 0x79b   : > { %5250 = vst.msk [vmem:[#allocation2 + $0x44] sm:$0xf] %vm5232_vm6, %v5171_v14  ;;  %v7567_v14 = vld [vmem:[%s7976_s25 + $0x149] sm:$0xff] }
 0x79c   : > { %v5755_v35 = vpack.c.bf16 %v7567_v14, %v7567_v14 }
 0x79e   : > { %5403 = vrot.lane.b32.xlu1 %v5319_v27, %s7915_s28  ;;  %5401 = vrot.lane.b32.xlu0 %v5318_v43, %s7915_s28  ;;  %v5534_v27 = vpack.c.bf16 %v7540_v59, %v7540_v59 }
 0x79f   : > { %5405 = vrot.lane.b32.xlu2 %v5320_v58, %s7915_s28  ;;  %v7573_v58 = vld [vmem:[%s7976_s25 + $0x179] sm:$0xff] }
 0x7a0   : > { %v5157_v17 = vpop.permute.xlu1 %5156  ;;  %v5155_v49 = vpop.permute.xlu0 %5154 }
 0x7a1   : > { %5243 = vst.msk [vmem:[#allocation2 + $0x28] sm:$0xf] %vm5232_vm6, %v5157_v17  ;;  %v5177_v3 = vpop.permute.xlu2 %5176 }
 0x7a2   : > { %5242 = vst.msk [vmem:[#allocation2 + $0x24] sm:$0xf] %vm5232_vm6, %v5155_v49  ;;  %v5761_v49 = vpack.c.bf16 %v7573_v58, %v7573_v58  ;;  %v7763_v58 = vld [vmem:[%s10904_s1 + $0x30] sm:$0x30] }
 0x7a3   : > { %5253 = vst.msk [vmem:[#allocation2 + $0x50] sm:$0xf] %vm5232_vm6, %v5177_v3  ;;  %v7574_v3 = vld [vmem:[%s7976_s25 + $0x181] sm:$0xff] }
 0x7a4   : > { %v5762_v48 = vpack.c.bf16 %v7574_v3, %v7574_v3 }
 0x7a6   : > { %5409 = vrot.lane.b32.xlu1 %v5322_v31, %s7915_s28  ;;  %5407 = vrot.lane.b32.xlu0 %v5321_v53, %s7915_s28  ;;  %v5756_v31 = vpack.c.bf16 %v7568_v9, %v7568_v9 }
 0x7a7   : > { %5411 = vrot.lane.b32.xlu2 %v5323_v50, %s7915_s28  ;;  %v7601_v50 = vld [vmem:[%s7976_s25 + $0x152] sm:$0xff] }
 0x7a8   : > { %v5163_v7 = vpop.permute.xlu1 %5162  ;;  %v5161_v6 = vpop.permute.xlu0 %5160 }
 0x7a9   : > { %5246 = vst.msk [vmem:[#allocation2 + $0x34] sm:$0xf] %vm5232_vm6, %v5163_v7  ;;  %v5183_v22 = vpop.permute.xlu2 %5182 }
 0x7aa   : > { %5245 = vst.msk [vmem:[#allocation2 + $0x30] sm:$0xf] %vm5232_vm6, %v5161_v6  ;;  %v5983_v6 = vpack.c.bf16 %v7601_v50, %v7601_v50 }
 0x7ab   : > { %5256 = vst.msk [vmem:[#allocation2 + $0x5c] sm:$0xf] %vm5232_vm6, %v5183_v22  ;;  %v7606_v22 = vld [vmem:[%s7976_s25 + $0x17a] sm:$0xff] }
 0x7ac   : > { %v5988_v18 = vpack.c.bf16 %v7606_v22, %v7606_v22 }
 0x7ae   : > { %5415 = vrot.lane.b32.xlu1 %v5325_v10, %s7915_s28  ;;  %5413 = vrot.lane.b32.xlu0 %v5324_v16, %s7915_s28  ;;  %v5982_v10 = vpack.c.bf16 %v7600_v24, %v7600_v24  ;;  %v7762_v24 = vld [vmem:[%s10904_s1 + $0x28] sm:$0xff] }
 0x7af   : > { %5417 = vrot.lane.b32.xlu2 %v5326_v21, %s7915_s28  ;;  %v7548_v21 = vld [vmem:[%s7976_s25 + $0x1b8] sm:$0xff] }
 0x7b0   : > { %v5169_v40 = vpop.permute.xlu1 %5168  ;;  %v5167_v54 = vpop.permute.xlu0 %5166 }
 0x7b1   : > { %5249 = vst.msk [vmem:[#allocation2 + $0x40] sm:$0xf] %vm5232_vm6, %v5169_v40  ;;  %v5189_v4 = vpop.permute.xlu2 %5188 }
 0x7b2   : > { %5248 = vst.msk [vmem:[#allocation2 + $0x3c] sm:$0xf] %vm5232_vm6, %v5167_v54  ;;  %v5542_v54 = vpack.c.bf16 %v7548_v21, %v7548_v21 }
 0x7b3   : > { %5259 = vst.msk [vmem:[#allocation2 + $0x68] sm:$0xf] %vm5232_vm6, %v5189_v4  ;;  %v7549_v4 = vld [vmem:[%s7976_s25 + $0x1c0] sm:$0xff] }
 0x7b4   : > { %v5543_v63 = vpack.c.bf16 %v7549_v4, %v7549_v4  ;;  %v7557_v4 = vld [vmem:[%s7976_s25 + $0x200] sm:$0xff] }
 0x7b6   : > { %5421 = vrot.lane.b32.xlu1 %v5328_v5, %s7915_s28  ;;  %5419 = vrot.lane.b32.xlu0 %v5327_v29, %s7915_s28  ;;  %v5989_v5 = vpack.c.bf16 %v7607_v11, %v7607_v11 }
 0x7b7   : > { %5423 = vrot.lane.b32.xlu2 %v5329_v56, %s7915_s28  ;;  %v7582_v56 = vld [vmem:[%s7976_s25 + $0x1c1] sm:$0xff] }
 0x7b8   : > { %v5175_v51 = vpop.permute.xlu1 %5174  ;;  %v5173_v30 = vpop.permute.xlu0 %5172 }
 0x7b9   : > { %5252 = vst.msk [vmem:[#allocation2 + $0x4c] sm:$0xf] %vm5232_vm6, %v5175_v51  ;;  %v5195_v39 = vpop.permute.xlu2 %5194 }
 0x7ba   : > { %5251 = vst.msk [vmem:[#allocation2 + $0x48] sm:$0xf] %vm5232_vm6, %v5173_v30  ;;  %v5770_v30 = vpack.c.bf16 %v7582_v56, %v7582_v56 }
 0x7bb   : > { %5262 = vst.msk [vmem:[#allocation2 + $0x74] sm:$0xf] %vm5232_vm6, %v5195_v39  ;;  %v7614_v39 = vld [vmem:[%s7976_s25 + $0x1ba] sm:$0xff] }
 0x7bc   : > { %v5996_v61 = vpack.c.bf16 %v7614_v39, %v7614_v39 }
 0x7be   : > { %5590 = vrot.lane.b32.xlu1 %v5526_v0, %s7916_s29  ;;  %5425 = vrot.lane.b32.xlu0 %v5330_v37, %s7915_s28  ;;  %v5769_v0 = vpack.c.bf16 %v7581_v8, %v7581_v8 }
 0x7bf   : > { %5592 = vrot.lane.b32.xlu2 %v5527_v62, %s7916_s29  ;;  %v7536_v62 = vld [vmem:[%s7976_s25 + $0x158] sm:$0xff] }
 0x7c0   : > { %v5181_v1 = vpop.permute.xlu1 %5180  ;;  %v5179_v57 = vpop.permute.xlu0 %5178 }
 0x7c1   : > { %5255 = vst.msk [vmem:[#allocation2 + $0x58] sm:$0xf] %vm5232_vm6, %v5181_v1  ;;  %v5364_v33 = vpop.permute.xlu2 %5363 }
 0x7c2   : > { %5254 = vst.msk [vmem:[#allocation2 + $0x54] sm:$0xf] %vm5232_vm6, %v5179_v57  ;;  %v5530_v57 = vpack.c.bf16 %v7536_v62, %v7536_v62  ;;  %v7589_v62 = vld [vmem:[%s7976_s25 + $0x1f9] sm:$0xff] }
 0x7c3   : > { %5460 = vst.msk [vmem:[#allocation2] sm:$0xf] %vm5459_vm7, %v5364_v33  ;;  %v7537_v33 = vld [vmem:[%s7976_s25 + $0x160] sm:$0xff] }
 0x7c4   : > { %v5531_v52 = vpack.c.bf16 %v7537_v33, %v7537_v33  ;;  %v7590_v33 = vld [vmem:[%s7976_s25 + $0x201] sm:$0xff] }
 0x7c6   : > { %5819 = vrot.lane.b32.xlu1 %v5754_v42, %s7917_s30  ;;  %5817 = vrot.lane.b32.xlu0 %v5753_v28, %s7917_s30  ;;  %v5997_v42 = vpack.c.bf16 %v7615_v38, %v7615_v38  ;;  %v7584_v38 = vld [vmem:[%s7976_s25 + $0x1d1] sm:$0xff] }
 0x7c7   : > { %6044 = vrot.lane.b32.xlu2 %v5980_v44, %s7918_s3  ;;  %v7543_v44 = vld [vmem:[%s7976_s25 + $0x190] sm:$0xff] }
 0x7c8   : > { %v5187_v23 = vpop.permute.xlu1 %5186  ;;  %v5185_v12 = vpop.permute.xlu0 %5184 }
 0x7c9   : > { %5258 = vst.msk [vmem:[#allocation2 + $0x64] sm:$0xf] %vm5232_vm6, %v5187_v23  ;;  %v5370_v19 = vpop.permute.xlu2 %5369 }
 0x7ca   : > { %5257 = vst.msk [vmem:[#allocation2 + $0x60] sm:$0xf] %vm5232_vm6, %v5185_v12  ;;  %v5537_v12 = vpack.c.bf16 %v7543_v44, %v7543_v44  ;;  %v7617_v44 = vld [vmem:[%s7976_s25 + $0x1d2] sm:$0xff] }
 0x7cb   : > { %5463 = vst.msk [vmem:[#allocation2 + $0xc] sm:$0xf] %vm5459_vm7, %v5370_v19  ;;  %v7569_v19 = vld [vmem:[%s7976_s25 + $0x159] sm:$0xff] }
 0x7cc   : > { %v5757_v32 = vpack.c.bf16 %v7569_v19, %v7569_v19  ;;  %v7622_v19 = vld [vmem:[%s7976_s25 + $0x1fa] sm:$0xff] }
 0x7ce   : > { %5594 = vrot.lane.b32.xlu1 %v5528_v26, %s7916_s29  ;;  %6046 = vrot.lane.b32.xlu0 %v5981_v13, %s7918_s3  ;;  %v5536_v26 = vpack.c.bf16 %v7542_v41, %v7542_v41  ;;  %v7616_v41 = vld [vmem:[%s7976_s25 + $0x1ca] sm:$0xff] }
 0x7cf   : > { %5596 = vrot.lane.b32.xlu2 %v5529_v34, %s7916_s29  ;;  %v7575_v34 = vld [vmem:[%s7976_s25 + $0x189] sm:$0xff] }
 0x7d0   : > { %v5193_v60 = vpop.permute.xlu1 %5192  ;;  %v5191_v46 = vpop.permute.xlu0 %5190 }
 0x7d1   : > { %5261 = vst.msk [vmem:[#allocation2 + $0x70] sm:$0xf] %vm5232_vm6, %v5193_v60  ;;  %v5376_v43 = vpop.permute.xlu2 %5375 }
 0x7d2   : > { %5260 = vst.msk [vmem:[#allocation2 + $0x6c] sm:$0xf] %vm5232_vm6, %v5191_v46  ;;  %v5763_v46 = vpack.c.bf16 %v7575_v34, %v7575_v34  ;;  %v7538_v34 = vld [vmem:[%s7976_s25 + $0x168] sm:$0xff] }
 0x7d3   : > { %5466 = vst.msk [vmem:[#allocation2 + $0x18] sm:$0xf] %vm5459_vm7, %v5376_v43  ;;  %v7576_v43 = vld [vmem:[%s7976_s25 + $0x191] sm:$0xff] }
 0x7d4   : > { %v5764_v14 = vpack.c.bf16 %v7576_v43, %v7576_v43  ;;  %v7539_v43 = vld [vmem:[%s7976_s25 + $0x170] sm:$0xff] }
 0x7d6   : > { %5608 = vrot.lane.b32.xlu1 %v5535_v15, %s7916_s29  ;;  %5606 = vrot.lane.b32.xlu0 %v5534_v27, %s7916_s29  ;;  %v5758_v15 = vpack.c.bf16 %v7570_v2, %v7570_v2  ;;  %v7623_v2 = vld [vmem:[%s7976_s25 + $0x202] sm:$0xff] }
 0x7d7   : > { %5821 = vrot.lane.b32.xlu2 %v5755_v35, %s7917_s30  ;;  %v7720_v35 = vld [vmem:[%s10904_s1 + $0x30] sm:$0xf] }
 0x7d8   : > { %v5199_v20 = vpop.permute.xlu1 %5198  ;;  %v5197_v17 = vpop.permute.xlu0 %5196  ;;  %v7721_v9 = vor.u32 %v7763_v58, %v7720_v35  ;;  %v7545_v35 = vld [vmem:[%s7976_s25 + $0x1a0] sm:$0xff]  ;;  %v7544_v58 = vld [vmem:[%s7976_s25 + $0x198] sm:$0xff] }
 0x7d9   : > { %5264 = vst.msk [vmem:[#allocation2 + $0x7c] sm:$0xf] %vm5232_vm6, %v5199_v20  ;;  %v5382_v53 = vpop.permute.xlu2 %5381  ;;  %v7603_v20 = vld [vmem:[%s7976_s25 + $0x162] sm:$0xff] }
 0x7da   : > { %5263 = vst.msk [vmem:[#allocation2 + $0x78] sm:$0xf] %vm5232_vm6, %v5197_v17  ;;  %v7602_v17 = vld [vmem:[%s7976_s25 + $0x15a] sm:$0xff]  ;;  %v5985_v3 = vpack.c.bf16 %v7603_v20, %v7603_v20 }
 0x7db   : > { %5469 = vst.msk [vmem:[#allocation2 + $0x24] sm:$0xf] %vm5459_vm7, %v5382_v53 }
 0x7de   : > { %5833 = vrot.lane.b32.xlu1 %v5761_v49, %s7917_s30  ;;  %5823 = vrot.lane.b32.xlu0 %v5756_v31, %s7917_s30  ;;  %v6391_v49 = vsel %vm6389_vm8, %v7721_v9, 0 }
 0x7df   : > { %5835 = vrot.lane.b32.xlu2 %v5762_v48, %s7917_s30  ;;  %6394 = vmatpush.bf16.msra.mxu0 %v6391_v49  ;;  %v5984_v48 = vpack.c.bf16 %v7602_v17, %v7602_v17  ;;  %v5539_v17 = vpack.c.bf16 %v7545_v35, %v7545_v35  ;;  %v7624_v35 = vld [vmem:[%s7976_s25 + $0x20a] sm:$0xff] }
 0x7e0   : > { %v5368_v45 = vpop.permute.xlu1 %5367  ;;  %v5366_v7 = vpop.permute.xlu0 %5365  ;;  %7764 = vmatpush.bf16.msra.mxu1 %v6391_v49  ;;  %7765 = vmatpush.bf16.msra.mxu2 %v6391_v49 }
 0x7e1   : > { %5462 = vst.msk [vmem:[#allocation2 + $0x8] sm:$0xf] %vm5459_vm7, %v5368_v45  ;;  %v5388_v16 = vpop.permute.xlu2 %5387  ;;  %v7608_v45 = vld [vmem:[%s7976_s25 + $0x18a] sm:$0xff]  ;;  %7766 = vmatpush.bf16.msra.mxu3 %v6391_v49  ;;  %v5538_v49 = vpack.c.bf16 %v7544_v58, %v7544_v58  ;;  %v6006_v58 = vpack.c.bf16 %v7624_v35, %v7624_v35 }
 0x7e2   : > { %5461 = vst.msk [vmem:[#allocation2 + $0x4] sm:$0xf] %vm5459_vm7, %v5366_v7  ;;  %v5990_v7 = vpack.c.bf16 %v7608_v45, %v7608_v45 }
 0x7e3   : > { %5472 = vst.msk [vmem:[#allocation2 + $0x30] sm:$0xf] %vm5459_vm7, %v5388_v16  ;;  %6395 = vmatpush.bf16.msra.mxu0 %v7762_v24  ;;  %v7609_v16 = vld [vmem:[%s7976_s25 + $0x192] sm:$0xff] }
 0x7e4   : > { %7767 = vmatpush.bf16.msra.mxu1 %v7762_v24  ;;  %7768 = vmatpush.bf16.msra.mxu2 %v7762_v24  ;;  %v5991_v11 = vpack.c.bf16 %v7609_v16, %v7609_v16 }
 0x7e5   : > { %7769 = vmatpush.bf16.msra.mxu3 %v7762_v24 }
 0x7e6   : > { %6050 = vrot.lane.b32.xlu1 %v5983_v6, %s7918_s3  ;;  %6048 = vrot.lane.b32.xlu0 %v5982_v10, %s7918_s3  ;;  %v7761_v6 = vld [vmem:[%s10904_s1 + $0x20] sm:$0xff]  ;;  %v7550_v10 = vld [vmem:[%s7976_s25 + $0x1c8] sm:$0xff] }
 0x7e7   : > { %6060 = vrot.lane.b32.xlu2 %v5988_v18, %s7918_s3  ;;  %6396 = vmatpush.bf16.msra.mxu0 %v7761_v6  ;;  %v5544_v21 = vpack.c.bf16 %v7550_v10, %v7550_v10 }
 0x7e8   : > { %v5374_v25 = vpop.permute.xlu1 %5373  ;;  %v5372_v40 = vpop.permute.xlu0 %5371  ;;  %7770 = vmatpush.bf16.msra.mxu1 %v7761_v6  ;;  %7771 = vmatpush.bf16.msra.mxu2 %v7761_v6 }
 0x7e9   : > { %5465 = vst.msk [vmem:[#allocation2 + $0x14] sm:$0xf] %vm5459_vm7, %v5374_v25  ;;  %v5394_v29 = vpop.permute.xlu2 %5393  ;;  %7772 = vmatpush.bf16.msra.mxu3 %v7761_v6 }
 0x7ea   : > { %5464 = vst.msk [vmem:[#allocation2 + $0x10] sm:$0xf] %vm5459_vm7, %v5372_v40  ;;  %v7760_v40 = vld [vmem:[%s10904_s1 + $0x18] sm:$0xff] }
 0x7eb   : > { %5475 = vst.msk [vmem:[#allocation2 + $0x3c] sm:$0xf] %vm5459_vm7, %v5394_v29  ;;  %6397 = vmatpush.bf16.msra.mxu0 %v7760_v40  ;;  %v7759_v29 = vld [vmem:[%s10904_s1 + $0x10] sm:$0xff] }
 0x7ec   : > { %7773 = vmatpush.bf16.msra.mxu1 %v7760_v40  ;;  %7774 = vmatpush.bf16.msra.mxu2 %v7760_v40 }
 0x7ed   : > { %7775 = vmatpush.bf16.msra.mxu3 %v7760_v40 }
 0x7ee   : > { %5622 = vrot.lane.b32.xlu1 %v5542_v54, %s7916_s29  ;;  %6062 = vrot.lane.b32.xlu0 %v5989_v5, %s7918_s3  ;;  %v7551_v54 = vld [vmem:[%s7976_s25 + $0x1d0] sm:$0xff] }
 0x7ef   : > { %5624 = vrot.lane.b32.xlu2 %v5543_v63, %s7916_s29  ;;  %v5545_v5 = vpack.c.bf16 %v7551_v54, %v7551_v54  ;;  %v7556_v63 = vld [vmem:[%s7976_s25 + $0x1f8] sm:$0xff]  ;;  %6398 = vmatpush.bf16.msra.mxu0 %v7759_v29 }
 0x7f0   : > { %v5380_v47 = vpop.permute.xlu1 %5379  ;;  %v5378_v51 = vpop.permute.xlu0 %5377  ;;  %7776 = vmatpush.bf16.msra.mxu1 %v7759_v29  ;;  %7777 = vmatpush.bf16.msra.mxu2 %v7759_v29 }
 0x7f1   : > { %5468 = vst.msk [vmem:[#allocation2 + $0x20] sm:$0xf] %vm5459_vm7, %v5380_v47  ;;  %v5400_v37 = vpop.permute.xlu2 %5399  ;;  %v5551_v47 = vpack.c.bf16 %v7557_v4, %v7557_v4  ;;  %7778 = vmatpush.bf16.msra.mxu3 %v7759_v29  ;;  %v7610_v4 = vld [vmem:[%s7976_s25 + $0x19a] sm:$0xff] }
 0x7f2   : > { %5467 = vst.msk [vmem:[#allocation2 + $0x1c] sm:$0xf] %vm5459_vm7, %v5378_v51  ;;  %v5550_v51 = vpack.c.bf16 %v7556_v63, %v7556_v63  ;;  %v5992_v63 = vpack.c.bf16 %v7610_v4, %v7610_v4 }
 0x7f3   : > { %5478 = vst.msk [vmem:[#allocation2 + $0x48] sm:$0xf] %vm5459_vm7, %v5400_v37  ;;  %v7583_v37 = vld [vmem:[%s7976_s25 + $0x1c9] sm:$0xff] }
 0x7f4   : > { %v5771_v39 = vpack.c.bf16 %v7583_v37, %v7583_v37 }
 0x7f6   : > { %5851 = vrot.lane.b32.xlu1 %v5770_v30, %s7917_s30  ;;  %5849 = vrot.lane.b32.xlu0 %v5769_v0, %s7917_s30  ;;  %v7758_v0 = vld [vmem:[%s10904_s1 + $0x8] sm:$0xff] }
 0x7f7   : > { %6076 = vrot.lane.b32.xlu2 %v5996_v61, %s7918_s3  ;;  %6399 = vmatpush.bf16.msra.mxu0 %v7758_v0  ;;  %v7757_v61 = vld [vmem:[%s10904_s1] sm:$0xff] }
 0x7f8   : > { %v5386_v36 = vpop.permute.xlu1 %5385  ;;  %v5384_v1 = vpop.permute.xlu0 %5383  ;;  %7779 = vmatpush.bf16.msra.mxu1 %v7758_v0  ;;  %7780 = vmatpush.bf16.msra.mxu2 %v7758_v0 }
 0x7f9   : > { %5471 = vst.msk [vmem:[#allocation2 + $0x2c] sm:$0xf] %vm5459_vm7, %v5386_v36  ;;  %v5406_v28 = vpop.permute.xlu2 %5405  ;;  %7781 = vmatpush.bf16.msra.mxu3 %v7758_v0 }
 0x7fa   : > { %5470 = vst.msk [vmem:[#allocation2 + $0x28] sm:$0xf] %vm5459_vm7, %v5384_v1 }
 0x7fb   : > { %5481 = vst.msk [vmem:[#allocation2 + $0x54] sm:$0xf] %vm5459_vm7, %v5406_v28  ;;  %6400 = vmatpush.bf16.msra.mxu0 %v7757_v61 }
 0x7fc   : > { %7782 = vmatpush.bf16.msra.mxu1 %v7757_v61  ;;  %7783 = vmatpush.bf16.msra.mxu2 %v7757_v61 }
 0x7fd   : > { %7784 = vmatpush.bf16.msra.mxu3 %v7757_v61 }
 0x7fe   : > { %5598 = vrot.lane.b32.xlu1 %v5530_v57, %s7916_s29  ;;  %6078 = vrot.lane.b32.xlu0 %v5997_v42, %s7918_s3  ;;  %v5777_v57 = vpack.c.bf16 %v7589_v62, %v7589_v62  ;;  %v5772_v42 = vpack.c.bf16 %v7584_v38, %v7584_v38  ;;  %v7559_v62 = vld [vmem:[%s7976_s25 + $0x210] sm:$0xff]  ;;  %v7558_v38 = vld [vmem:[%s7976_s25 + $0x208] sm:$0xff] }
 0x7ff   : > { %5600 = vrot.lane.b32.xlu2 %v5531_v52, %s7916_s29  ;;  %v5778_v52 = vpack.c.bf16 %v7590_v33, %v7590_v33 }
 0x800   : > { %v5392_v55 = vpop.permute.xlu1 %5391  ;;  %v5390_v23 = vpop.permute.xlu0 %5389 }
 0x801   : > { %5474 = vst.msk [vmem:[#allocation2 + $0x38] sm:$0xf] %vm5459_vm7, %v5392_v55  ;;  %v5412_v13 = vpop.permute.xlu2 %5411 }
 0x802   : > { %5473 = vst.msk [vmem:[#allocation2 + $0x34] sm:$0xf] %vm5459_vm7, %v5390_v23 }
 0x803   : > { %5484 = vst.msk [vmem:[#allocation2 + $0x60] sm:$0xf] %vm5459_vm7, %v5412_v13 }
 0x806   : > { %5612 = vrot.lane.b32.xlu1 %v5537_v12, %s7916_s29  ;;  %5610 = vrot.lane.b32.xlu0 %v5536_v26, %s7916_s29  ;;  %v5999_v12 = vpack.c.bf16 %v7617_v44, %v7617_v44  ;;  %v5998_v26 = vpack.c.bf16 %v7616_v41, %v7616_v41  ;;  %v7591_v41 = vld [vmem:[%s7976_s25 + $0x209] sm:$0xff] }
 0x807   : > { %5825 = vrot.lane.b32.xlu2 %v5757_v32, %s7917_s30  ;;  %v6004_v32 = vpack.c.bf16 %v7622_v19, %v7622_v19 }
 0x808   : > { %v5398_v59 = vpop.permute.xlu1 %5397  ;;  %v5396_v60 = vpop.permute.xlu0 %5395 }
 0x809   : > { %5477 = vst.msk [vmem:[#allocation2 + $0x44] sm:$0xf] %vm5459_vm7, %v5398_v59  ;;  %v5418_v27 = vpop.permute.xlu2 %5417 }
 0x80a   : > { %5476 = vst.msk [vmem:[#allocation2 + $0x40] sm:$0xf] %vm5459_vm7, %v5396_v60 }
 0x80b   : > { %5487 = vst.msk [vmem:[#allocation2 + $0x6c] sm:$0xf] %vm5459_vm7, %v5418_v27 }
 0x80e   : > { %5837 = vrot.lane.b32.xlu1 %v5763_v46, %s7917_s30  ;;  %5827 = vrot.lane.b32.xlu0 %v5758_v15, %s7917_s30  ;;  %v5532_v46 = vpack.c.bf16 %v7538_v34, %v7538_v34  ;;  %v6005_v15 = vpack.c.bf16 %v7623_v2, %v7623_v2  ;;  %v7592_v34 = vld [vmem:[%s7976_s25 + $0x211] sm:$0xff] }
 0x80f   : > { %5839 = vrot.lane.b32.xlu2 %v5764_v14, %s7917_s30  ;;  %v5533_v14 = vpack.c.bf16 %v7539_v43, %v7539_v43  ;;  %v5780_v2 = vpack.c.bf16 %v7592_v34, %v7592_v34 }
 0x810   : > { %v5404_v31 = vpop.permute.xlu1 %5403  ;;  %v5402_v53 = vpop.permute.xlu0 %5401 }
 0x811   : > { %5480 = vst.msk [vmem:[#allocation2 + $0x50] sm:$0xf] %vm5459_vm7, %v5404_v31  ;;  %v5424_v50 = vpop.permute.xlu2 %5423 }
 0x812   : > { %5479 = vst.msk [vmem:[#allocation2 + $0x4c] sm:$0xf] %vm5459_vm7, %v5402_v53  ;;  %v7571_v53 = vld [vmem:[%s7976_s25 + $0x169] sm:$0xff] }
 0x813   : > { %5490 = vst.msk [vmem:[#allocation2 + $0x78] sm:$0xf] %vm5459_vm7, %v5424_v50  ;;  %v7572_v50 = vld [vmem:[%s7976_s25 + $0x171] sm:$0xff] }
 0x814   : > { %v5760_v10 = vpack.c.bf16 %v7572_v50, %v7572_v50  ;;  %v7547_v50 = vld [vmem:[%s7976_s25 + $0x1b0] sm:$0xff] }
 0x816   : > { %6054 = vrot.lane.b32.xlu1 %v5985_v3, %s7918_s3  ;;  %6052 = vrot.lane.b32.xlu0 %v5984_v48, %s7918_s3  ;;  %v5759_v3 = vpack.c.bf16 %v7571_v53, %v7571_v53  ;;  %v7577_v48 = vld [vmem:[%s7976_s25 + $0x199] sm:$0xff] }
 0x817   : > { %6064 = vrot.lane.b32.xlu2 %v5990_v7, %s7918_s3  ;;  %v5765_v6 = vpack.c.bf16 %v7577_v48, %v7577_v48 }
 0x818   : > { %v5410_v22 = vpop.permute.xlu1 %5409  ;;  %v5408_v18 = vpop.permute.xlu0 %5407 }
 0x819   : > { %5483 = vst.msk [vmem:[#allocation2 + $0x5c] sm:$0xf] %vm5459_vm7, %v5410_v22  ;;  %v5593_v25 = vpop.permute.xlu2 %5592  ;;  %v7578_v22 = vld [vmem:[%s7976_s25 + $0x1a1] sm:$0xff] }
 0x81a   : > { %5482 = vst.msk [vmem:[#allocation2 + $0x58] sm:$0xf] %vm5459_vm7, %v5408_v18  ;;  %v5766_v18 = vpack.c.bf16 %v7578_v22, %v7578_v22 }
 0x81b   : > { %5688 = vst.msk [vmem:[#allocation2 + $0x4] sm:$0xf] %vm5686_vm9, %v5593_v25 }
 0x81e   : > { %5626 = vrot.lane.b32.xlu1 %v5544_v21, %s7916_s29  ;;  %6066 = vrot.lane.b32.xlu0 %v5991_v11, %s7918_s3  ;;  %v7605_v21 = vld [vmem:[%s7976_s25 + $0x172] sm:$0xff]  ;;  %v7604_v11 = vld [vmem:[%s7976_s25 + $0x16a] sm:$0xff] }
 0x81f   : > { %5628 = vrot.lane.b32.xlu2 %v5545_v5, %s7916_s29  ;;  %v5987_v54 = vpack.c.bf16 %v7605_v21, %v7605_v21  ;;  %v5986_v5 = vpack.c.bf16 %v7604_v11, %v7604_v11  ;;  %v7612_v21 = vld [vmem:[%s7976_s25 + $0x1aa] sm:$0xff] }
 0x820   : > { %v5416_v56 = vpop.permute.xlu1 %5415  ;;  %v5414_v8 = vpop.permute.xlu0 %5413  ;;  %v5994_v11 = vpack.c.bf16 %v7612_v21, %v7612_v21 }
 0x821   : > { %5486 = vst.msk [vmem:[#allocation2 + $0x68] sm:$0xf] %vm5459_vm7, %v5416_v56  ;;  %v6045_v30 = vpop.permute.xlu2 %6044  ;;  %v7552_v56 = vld [vmem:[%s7976_s25 + $0x1d8] sm:$0xff] }
 0x822   : > { %5485 = vst.msk [vmem:[#allocation2 + $0x64] sm:$0xf] %vm5459_vm7, %v5414_v8  ;;  %v7611_v8 = vld [vmem:[%s7976_s25 + $0x1a2] sm:$0xff] }
 0x823   : > { %v5993_v0 = vpack.c.bf16 %v7611_v8, %v7611_v8 }
 0x826   : > { %5640 = vrot.lane.b32.xlu1 %v5551_v47, %s7916_s29  ;;  %5638 = vrot.lane.b32.xlu0 %v5550_v51, %s7916_s29 }
 0x827   : > { %5853 = vrot.lane.b32.xlu2 %v5771_v39, %s7917_s30  ;;  %v7553_v39 = vld [vmem:[%s7976_s25 + $0x1e0] sm:$0xff] }
 0x828   : > { %v5422_v36 = vpop.permute.xlu1 %5421  ;;  %v5420_v1 = vpop.permute.xlu0 %5419  ;;  %v5547_v61 = vpack.c.bf16 %v7553_v39, %v7553_v39 }
 0x829   : > { %5489 = vst.msk [vmem:[#allocation2 + $0x74] sm:$0xf] %vm5459_vm7, %v5422_v36  ;;  %v5597_v28 = vpop.permute.xlu2 %5596 }
 0x82a   : > { %5488 = vst.msk [vmem:[#allocation2 + $0x70] sm:$0xf] %vm5459_vm7, %v5420_v1 }
 0x82b   : > { %5690 = vst.msk [vmem:[#allocation2 + $0xc] sm:$0xf] %vm5686_vm9, %v5597_v28  ;;  %v5552_v28 = vpack.c.bf16 %v7558_v38, %v7558_v38  ;;  %v7587_v38 = vld [vmem:[%s7976_s25 + $0x1e9] sm:$0xff] }
 0x82e   : > { %5865 = vrot.lane.b32.xlu1 %v5777_v57, %s7917_s30  ;;  %5855 = vrot.lane.b32.xlu0 %v5772_v42, %s7917_s30  ;;  %v5553_v42 = vpack.c.bf16 %v7559_v62, %v7559_v62 }
 0x82f   : > { %5867 = vrot.lane.b32.xlu2 %v5778_v52, %s7917_s30  ;;  %v7585_v52 = vld [vmem:[%s7976_s25 + $0x1d9] sm:$0xff] }
 0x830   : > { %v5591_v55 = vpop.permute.xlu1 %5590  ;;  %v5426_v23 = vpop.permute.xlu0 %5425  ;;  %v5773_v44 = vpack.c.bf16 %v7585_v52, %v7585_v52 }
 0x831   : > { %5687 = vst.msk [vmem:[#allocation2] sm:$0xf] %vm5686_vm9, %v5591_v55  ;;  %v5822_v13 = vpop.permute.xlu2 %5821  ;;  %v7586_v55 = vld [vmem:[%s7976_s25 + $0x1e1] sm:$0xff] }
 0x832   : > { %5491 = vst.msk [vmem:[#allocation2 + $0x7c] sm:$0xf] %vm5459_vm7, %v5426_v23  ;;  %v5774_v19 = vpack.c.bf16 %v7586_v55, %v7586_v55  ;;  %v7594_v55 = vld [vmem:[%s7976_s25 + $0x221] sm:$0xff] }
 0x836   : > { %6082 = vrot.lane.b32.xlu1 %v5999_v12, %s7918_s3  ;;  %6080 = vrot.lane.b32.xlu0 %v5998_v26, %s7918_s3 }
 0x837   : > { %6092 = vrot.lane.b32.xlu2 %v6004_v32, %s7918_s3 }
 0x838   : > { %v5820_v59 = vpop.permute.xlu1 %5819  ;;  %v5818_v60 = vpop.permute.xlu0 %5817 }
 0x839   : > { %5915 = vst.msk [vmem:[#allocation2 + $0x4] sm:$0xf] %vm5913_vm10, %v5820_v59  ;;  %v5836_v27 = vpop.permute.xlu2 %5835  ;;  %v7619_v59 = vld [vmem:[%s7976_s25 + $0x1e2] sm:$0xff] }
 0x83a   : > { %5914 = vst.msk [vmem:[#allocation2] sm:$0xf] %vm5913_vm10, %v5818_v60  ;;  %v7618_v60 = vld [vmem:[%s7976_s25 + $0x1da] sm:$0xff] }
 0x83b   : > { %6141 = vst.msk [vmem:[#allocation2] sm:$0xf] %vm6140_vm11, %v6045_v30  ;;  %v5546_v30 = vpack.c.bf16 %v7552_v56, %v7552_v56  ;;  %v6000_v43 = vpack.c.bf16 %v7618_v60, %v7618_v60  ;;  %v7555_v56 = vld [vmem:[%s7976_s25 + $0x1f0] sm:$0xff] }
 0x83c   : > { %v5549_v8 = vpack.c.bf16 %v7555_v56, %v7555_v56 }
 0x83e   : > { %5602 = vrot.lane.b32.xlu1 %v5532_v46, %s7916_s29  ;;  %6094 = vrot.lane.b32.xlu0 %v6005_v15, %s7918_s3 }
 0x83f   : > { %5604 = vrot.lane.b32.xlu2 %v5533_v14, %s7916_s29 }
 0x840   : > { %v5595_v9 = vpop.permute.xlu1 %5594  ;;  %v6047_v20 = vpop.permute.xlu0 %6046 }
 0x841   : > { %5689 = vst.msk [vmem:[#allocation2 + $0x8] sm:$0xf] %vm5686_vm9, %v5595_v9  ;;  %v6061_v31 = vpop.permute.xlu2 %6060  ;;  %v7546_v9 = vld [vmem:[%s7976_s25 + $0x1a8] sm:$0xff] }
 0x842   : > { %6142 = vst.msk [vmem:[#allocation2 + $0x4] sm:$0xf] %vm6140_vm11, %v6047_v20  ;;  %v7625_v20 = vld [vmem:[%s7976_s25 + $0x212] sm:$0xff]  ;;  %v5540_v53 = vpack.c.bf16 %v7546_v9, %v7546_v9 }
 0x843   : > { %5916 = vst.msk [vmem:[#allocation2 + $0x8] sm:$0xf] %vm5913_vm10, %v5822_v13  ;;  %v5779_v13 = vpack.c.bf16 %v7591_v41, %v7591_v41  ;;  %v7563_v9 = vld [vmem:[%s7976_s25 + $0x230] sm:$0xff] }
 0x846   : > { %5616 = vrot.lane.b32.xlu1 %v5539_v17, %s7916_s29  ;;  %5614 = vrot.lane.b32.xlu0 %v5538_v49, %s7916_s29 }
 0x847   : > { %5829 = vrot.lane.b32.xlu2 %v5759_v3, %s7917_s30  ;;  %v6007_v3 = vpack.c.bf16 %v7625_v20, %v7625_v20  ;;  %v5557_v20 = vpack.c.bf16 %v7563_v9, %v7563_v9 }
 0x848   : > { %v5609_v24 = vpop.permute.xlu1 %5608  ;;  %v5607_v45 = vpop.permute.xlu0 %5606 }
 0x849   : > { %5696 = vst.msk [vmem:[#allocation2 + $0x24] sm:$0xf] %vm5686_vm9, %v5609_v24  ;;  %v7741_v7 = vld [vmem:[#allocation2] sm:$0xff]  ;;  %v5625_v16 = vpop.permute.xlu2 %5624  ;;  %v5541_v24 = vpack.c.bf16 %v7547_v50, %v7547_v50 }
 0x84a   : > { %5695 = vst.msk [vmem:[#allocation2 + $0x20] sm:$0xf] %vm5686_vm9, %v5607_v45  ;;  %7722 = vmatmul.msk.bf16.vlgmr.msra.gmra.mxu0 %vm6340_vm12, %v7741_v7  ;;  %v7580_v45 = vld [vmem:[%s7976_s25 + $0x1b1] sm:$0xff]  ;;  %v7579_v7 = vld [vmem:[%s7976_s25 + $0x1a9] sm:$0xff] }
 0x84b   : > { %5923 = vst.msk [vmem:[#allocation2 + $0x24] sm:$0xf] %vm5913_vm10, %v5836_v27  ;;  %v6001_v27 = vpack.c.bf16 %v7619_v59, %v7619_v59  ;;  %v5767_v22 = vpack.c.bf16 %v7579_v7, %v7579_v7  ;;  %v7626_v59 = vld [vmem:[%s7976_s25 + $0x21a] sm:$0xff] }
 0x84c   : > { %5704 = vst.msk [vmem:[#allocation2 + $0x44] sm:$0xf] %vm5686_vm9, %v5625_v16  ;;  %v5768_v16 = vpack.c.bf16 %v7580_v45, %v7580_v45  ;;  %v6008_v60 = vpack.c.bf16 %v7626_v59, %v7626_v59  ;;  %v7628_v45 = vld [vmem:[%s7976_s25 + $0x22a] sm:$0xff] }
 0x84d   : > { %v6010_v7 = vpack.c.bf16 %v7628_v45, %v7628_v45 }
 0x84e   : > { %5841 = vrot.lane.b32.xlu1 %v5765_v6, %s7917_s30  ;;  %5831 = vrot.lane.b32.xlu0 %v5760_v10, %s7917_s30 }
 0x84f   : > { %5843 = vrot.lane.b32.xlu2 %v5766_v18, %s7917_s30 }
 0x850   : > { %v5834_v25 = vpop.permute.xlu1 %5833  ;;  %v5824_v40 = vpop.permute.xlu0 %5823 }
 0x851   : > { %5922 = vst.msk [vmem:[#allocation2 + $0x20] sm:$0xf] %vm5913_vm10, %v5834_v25  ;;  %v6077_v29 = vpop.permute.xlu2 %6076  ;;  %v7554_v25 = vld [vmem:[%s7976_s25 + $0x1e8] sm:$0xff] }
 0x852   : > { %5917 = vst.msk [vmem:[#allocation2 + $0xc] sm:$0xf] %vm5913_vm10, %v5824_v40  ;;  %v7613_v40 = vld [vmem:[%s7976_s25 + $0x1b2] sm:$0xff] }
 0x853   : > { %6149 = vst.msk [vmem:[#allocation2 + $0x20] sm:$0xf] %vm6140_vm11, %v6061_v31  ;;  %v5995_v4 = vpack.c.bf16 %v7613_v40, %v7613_v40 }
 0x856   : > { %6058 = vrot.lane.b32.xlu1 %v5987_v54, %s7918_s3  ;;  %6056 = vrot.lane.b32.xlu0 %v5986_v5, %s7918_s3 }
 0x857   : > { %6068 = vrot.lane.b32.xlu2 %v5992_v63, %s7918_s3 }
 0x858   : > { %v6051_v47 = vpop.permute.xlu1 %6050  ;;  %v6049_v51 = vpop.permute.xlu0 %6048 }
 0x859   : > { %6144 = vst.msk [vmem:[#allocation2 + $0xc] sm:$0xf] %vm6140_vm11, %v6051_v47  ;;  %v5601_v37 = vpop.permute.xlu2 %5600  ;;  %v7561_v47 = vld [vmem:[%s7976_s25 + $0x220] sm:$0xff] }
 0x85a   : > { %6143 = vst.msk [vmem:[#allocation2 + $0x8] sm:$0xf] %vm6140_vm11, %v6049_v51  ;;  %v7560_v51 = vld [vmem:[%s7976_s25 + $0x218] sm:$0xff]  ;;  %v5555_v39 = vpack.c.bf16 %v7561_v47, %v7561_v47 }
 0x85b   : > { %5692 = vst.msk [vmem:[#allocation2 + $0x14] sm:$0xf] %vm5686_vm9, %v5601_v37 }
 0x85e   : > { %5630 = vrot.lane.b32.xlu1 %v5546_v30, %s7916_s29  ;;  %6070 = vrot.lane.b32.xlu0 %v5993_v0, %s7918_s3 }
 0x85f   : > { %5632 = vrot.lane.b32.xlu2 %v5547_v61, %s7916_s29  ;;  %v5554_v61 = vpack.c.bf16 %v7560_v51, %v7560_v51 }
 0x860   : > { %v5623_v36 = vpop.permute.xlu1 %5622  ;;  %v6063_v1 = vpop.permute.xlu0 %6062 }
 0x861   : > { %5703 = vst.msk [vmem:[#allocation2 + $0x40] sm:$0xf] %vm5686_vm9, %v5623_v36  ;;  %v7742_v57 = vld [vmem:[#allocation2 + $0x8] sm:$0xff]  ;;  %v5826_v33 = vpop.permute.xlu2 %5825  ;;  %v5775_v36 = vpack.c.bf16 %v7587_v38, %v7587_v38 }
 0x862   : > { %6150 = vst.msk [vmem:[#allocation2 + $0x24] sm:$0xf] %vm6140_vm11, %v6063_v1  ;;  %7723 = vmatmul.msk.bf16.gmra.mxu0 %vm6340_vm12, %v7742_v57  ;;  %v7593_v1 = vld [vmem:[%s7976_s25 + $0x219] sm:$0xff]  ;;  %v7588_v57 = vld [vmem:[%s7976_s25 + $0x1f1] sm:$0xff] }
 0x863   : > { %v5781_v52 = vpack.c.bf16 %v7593_v1, %v7593_v1 }
 0x866   : > { %5644 = vrot.lane.b32.xlu1 %v5553_v42, %s7916_s29  ;;  %5642 = vrot.lane.b32.xlu0 %v5552_v28, %s7916_s29 }
 0x867   : > { %5857 = vrot.lane.b32.xlu2 %v5773_v44, %s7917_s30  ;;  %v5776_v44 = vpack.c.bf16 %v7588_v57, %v7588_v57 }
 0x868   : > { %v5852_v23 = vpop.permute.xlu1 %5851  ;;  %v5850_v12 = vpop.permute.xlu0 %5849 }
 0x869   : > { %5931 = vst.msk [vmem:[#allocation2 + $0x44] sm:$0xf] %vm5913_vm10, %v5852_v23  ;;  %v7745_v26 = vld [vmem:[#allocation2 + $0x20] sm:$0xff]  ;;  %v5840_v32 = vpop.permute.xlu2 %5839  ;;  %v5782_v23 = vpack.c.bf16 %v7594_v55, %v7594_v55 }
 0x86a   : > { %5930 = vst.msk [vmem:[#allocation2 + $0x40] sm:$0xf] %vm5913_vm10, %v5850_v12  ;;  %7726 = vmatmul.msk.bf16.vlgmr.msra.gmra.mxu1 %vm6340_vm12, %v7745_v26  ;;  %v7621_v12 = vld [vmem:[%s7976_s25 + $0x1f2] sm:$0xff]  ;;  %v7620_v26 = vld [vmem:[%s7976_s25 + $0x1ea] sm:$0xff] }
 0x86b   : > { %6157 = vst.msk [vmem:[#allocation2 + $0x40] sm:$0xf] %vm6140_vm11, %v6077_v29  ;;  %v5548_v29 = vpack.c.bf16 %v7554_v25, %v7554_v25  ;;  %v6002_v34 = vpack.c.bf16 %v7620_v26, %v7620_v26 }
 0x86e   : > { %5869 = vrot.lane.b32.xlu1 %v5779_v13, %s7917_s30  ;;  %5859 = vrot.lane.b32.xlu0 %v5774_v19, %s7917_s30 }
 0x86f   : > { %5871 = vrot.lane.b32.xlu2 %v5780_v2, %s7917_s30 }
 0x870   : > { %v5599_v46 = vpop.permute.xlu1 %5598  ;;  %v6079_v15 = vpop.permute.xlu0 %6078 }
 0x871   : > { %5691 = vst.msk [vmem:[#allocation2 + $0x10] sm:$0xf] %vm5686_vm9, %v5599_v46  ;;  %v6065_v14 = vpop.permute.xlu2 %6064  ;;  %v7627_v46 = vld [vmem:[%s7976_s25 + $0x222] sm:$0xff] }
 0x872   : > { %6158 = vst.msk [vmem:[#allocation2 + $0x44] sm:$0xf] %vm6140_vm11, %v6079_v15  ;;  %v7562_v15 = vld [vmem:[%s7976_s25 + $0x228] sm:$0xff] }
 0x873   : > { %5918 = vst.msk [vmem:[#allocation2 + $0x10] sm:$0xf] %vm5913_vm10, %v5826_v33  ;;  %v5556_v35 = vpack.c.bf16 %v7562_v15, %v7562_v15 }
 0x876   : > { %6086 = vrot.lane.b32.xlu1 %v6001_v27, %s7918_s3  ;;  %6084 = vrot.lane.b32.xlu0 %v6000_v43, %s7918_s3 }
 0x877   : > { %6096 = vrot.lane.b32.xlu2 %v6006_v58, %s7918_s3 }
 0x878   : > { %v5613_v17 = vpop.permute.xlu1 %5612  ;;  %v5611_v49 = vpop.permute.xlu0 %5610 }
 0x879   : > { %5698 = vst.msk [vmem:[#allocation2 + $0x2c] sm:$0xf] %vm5686_vm9, %v5613_v17  ;;  %v7749_v31 = vld [vmem:[#allocation2 + $0x40] sm:$0xff]  ;;  %v5629_v48 = vpop.permute.xlu2 %5628  ;;  %v7595_v17 = vld [vmem:[%s7976_s25 + $0x229] sm:$0xff] }
 0x87a   : > { %5697 = vst.msk [vmem:[#allocation2 + $0x28] sm:$0xf] %vm5686_vm9, %v5611_v49  ;;  %7730 = vmatmul.msk.bf16.vlgmr.msra.gmra.mxu2 %vm6340_vm12, %v7749_v31  ;;  %v7596_v49 = vld [vmem:[%s7976_s25 + $0x231] sm:$0xff] }
 0x87b   : > { %5925 = vst.msk [vmem:[#allocation2 + $0x2c] sm:$0xf] %vm5913_vm10, %v5840_v32  ;;  %v6003_v32 = vpack.c.bf16 %v7621_v12, %v7621_v12  ;;  %v5784_v50 = vpack.c.bf16 %v7596_v49, %v7596_v49 }
 0x87c   : > { %5706 = vst.msk [vmem:[#allocation2 + $0x4c] sm:$0xf] %vm5686_vm9, %v5629_v48  ;;  %v5783_v48 = vpack.c.bf16 %v7595_v17, %v7595_v17 }
 0x87e   : > { %5618 = vrot.lane.b32.xlu1 %v5540_v53, %s7916_s29  ;;  %6098 = vrot.lane.b32.xlu0 %v6007_v3, %s7918_s3 }
 0x87f   : > { %5620 = vrot.lane.b32.xlu2 %v5541_v24, %s7916_s29 }
 0x880   : > { %v5838_v6 = vpop.permute.xlu1 %5837  ;;  %v5828_v10 = vpop.permute.xlu0 %5827 }
 0x881   : > { %5924 = vst.msk [vmem:[#allocation2 + $0x28] sm:$0xf] %vm5913_vm10, %v5838_v6  ;;  %v5854_v18 = vpop.permute.xlu2 %5853  ;;  %v7629_v6 = vld [vmem:[%s7976_s25 + $0x232] sm:$0xff] }
 0x882   : > { %5919 = vst.msk [vmem:[#allocation2 + $0x14] sm:$0xf] %vm5913_vm10, %v5828_v10 }
 0x883   : > { %6151 = vst.msk [vmem:[#allocation2 + $0x28] sm:$0xf] %vm6140_vm11, %v6065_v14  ;;  %v6009_v14 = vpack.c.bf16 %v7627_v46, %v7627_v46 }
 0x886   : > { %5847 = vrot.lane.b32.xlu1 %v5768_v16, %s7917_s30  ;;  %5845 = vrot.lane.b32.xlu0 %v5767_v22, %s7917_s30 }
 0x887   : > { %6072 = vrot.lane.b32.xlu2 %v5994_v11, %s7918_s3 }
 0x888   : > { %v6055_v54 = vpop.permute.xlu1 %6054  ;;  %v6053_v5 = vpop.permute.xlu0 %6052 }
 0x889   : > { %6146 = vst.msk [vmem:[#allocation2 + $0x14] sm:$0xf] %vm6140_vm11, %v6055_v54  ;;  %v5868_v63 = vpop.permute.xlu2 %5867 }
 0x88a   : > { %6145 = vst.msk [vmem:[#allocation2 + $0x10] sm:$0xf] %vm6140_vm11, %v6053_v5 }
 0x88e   : > { %5634 = vrot.lane.b32.xlu1 %v5548_v29, %s7916_s29  ;;  %6074 = vrot.lane.b32.xlu0 %v5995_v4, %s7918_s3 }
 0x88f   : > { %5636 = vrot.lane.b32.xlu2 %v5549_v8, %s7916_s29 }
 0x890   : > { %v5627_v30 = vpop.permute.xlu1 %5626  ;;  %v6067_v0 = vpop.permute.xlu0 %6066 }
 0x891   : > { %5705 = vst.msk [vmem:[#allocation2 + $0x48] sm:$0xf] %vm5686_vm9, %v5627_v30  ;;  %v7743_v37 = vld [vmem:[#allocation2 + $0x10] sm:$0xff]  ;;  %v6093_v62 = vpop.permute.xlu2 %6092 }
 0x892   : > { %6152 = vst.msk [vmem:[#allocation2 + $0x2c] sm:$0xf] %vm6140_vm11, %v6067_v0  ;;  %7724 = vmatmul.msk.bf16.gmra.mxu0 %vm6340_vm12, %v7743_v37 }
 0x893   : > { %5932 = vst.msk [vmem:[#allocation2 + $0x48] sm:$0xf] %vm5913_vm10, %v5854_v18  ;;  %v6011_v18 = vpack.c.bf16 %v7629_v6, %v7629_v6 }
 0x896   : > { %5648 = vrot.lane.b32.xlu1 %v5555_v39, %s7916_s29  ;;  %5646 = vrot.lane.b32.xlu0 %v5554_v61, %s7916_s29 }
 0x897   : > { %5861 = vrot.lane.b32.xlu2 %v5775_v36, %s7917_s30 }
 0x898   : > { %v5641_v42 = vpop.permute.xlu1 %5640  ;;  %v5639_v28 = vpop.permute.xlu0 %5638 }
 0x899   : > { %5712 = vst.msk [vmem:[#allocation2 + $0x64] sm:$0xf] %vm5686_vm9, %v5641_v42  ;;  %v7746_v33 = vld [vmem:[#allocation2 + $0x28] sm:$0xff]  ;;  %v5605_v41 = vpop.permute.xlu2 %5604 }
 0x89a   : > { %5711 = vst.msk [vmem:[#allocation2 + $0x60] sm:$0xf] %vm5686_vm9, %v5639_v28  ;;  %7727 = vmatmul.msk.bf16.gmra.mxu1 %vm6340_vm12, %v7746_v33 }
 0x89b   : > { %5939 = vst.msk [vmem:[#allocation2 + $0x64] sm:$0xf] %vm5913_vm10, %v5868_v63 }
 0x89c   : > { %5694 = vst.msk [vmem:[#allocation2 + $0x1c] sm:$0xf] %vm5686_vm9, %v5605_v41 }
 0x89e   : > { %5873 = vrot.lane.b32.xlu1 %v5781_v52, %s7917_s30  ;;  %5863 = vrot.lane.b32.xlu0 %v5776_v44, %s7917_s30 }
 0x89f   : > { %5875 = vrot.lane.b32.xlu2 %v5782_v23, %s7917_s30 }
 0x8a0   : > { %v5866_v13 = vpop.permute.xlu1 %5865  ;;  %v5856_v19 = vpop.permute.xlu0 %5855 }
 0x8a1   : > { %5938 = vst.msk [vmem:[#allocation2 + $0x60] sm:$0xf] %vm5913_vm10, %v5866_v13  ;;  %v5830_v2 = vpop.permute.xlu2 %5829 }
 0x8a2   : > { %5933 = vst.msk [vmem:[#allocation2 + $0x4c] sm:$0xf] %vm5913_vm10, %v5856_v19 }
 0x8a3   : > { %6165 = vst.msk [vmem:[#allocation2 + $0x60] sm:$0xf] %vm6140_vm11, %v6093_v62 }
 0x8a6   : > { %6090 = vrot.lane.b32.xlu1 %v6003_v32, %s7918_s3  ;;  %6088 = vrot.lane.b32.xlu0 %v6002_v34, %s7918_s3 }
 0x8a7   : > { %6100 = vrot.lane.b32.xlu2 %v6008_v60, %s7918_s3 }
 0x8a8   : > { %v6083_v27 = vpop.permute.xlu1 %6082  ;;  %v6081_v43 = vpop.permute.xlu0 %6080 }
 0x8a9   : > { %6160 = vst.msk [vmem:[#allocation2 + $0x4c] sm:$0xf] %vm6140_vm11, %v6083_v27  ;;  %v5844_v58 = vpop.permute.xlu2 %5843 }
 0x8aa   : > { %6159 = vst.msk [vmem:[#allocation2 + $0x48] sm:$0xf] %vm6140_vm11, %v6081_v43 }
 0x8ae   : > { %6102 = vrot.lane.b32.xlu0 %v6009_v14, %s7918_s3  ;;  %5650 = vrot.lane.b32.xlu1 %v5556_v35, %s7916_s29 }
 0x8af   : > { %5652 = vrot.lane.b32.xlu2 %v5557_v20, %s7916_s29 }
 0x8b0   : > { %v5603_v31 = vpop.permute.xlu1 %5602  ;;  %v6095_v53 = vpop.permute.xlu0 %6094 }
 0x8b1   : > { %5693 = vst.msk [vmem:[#allocation2 + $0x18] sm:$0xf] %vm5686_vm9, %v5603_v31  ;;  %v7750_v3 = vld [vmem:[#allocation2 + $0x48] sm:$0xff]  ;;  %v6069_v24 = vpop.permute.xlu2 %6068 }
 0x8b2   : > { %6166 = vst.msk [vmem:[#allocation2 + $0x64] sm:$0xf] %vm6140_vm11, %v6095_v53  ;;  %7731 = vmatmul.msk.bf16.gmra.mxu2 %vm6340_vm12, %v7750_v3 }
 0x8b3   : > { %5920 = vst.msk [vmem:[#allocation2 + $0x18] sm:$0xf] %vm5913_vm10, %v5830_v2 }
 0x8b6   : > { %5877 = vrot.lane.b32.xlu0 %v5783_v48, %s7917_s30  ;;  %5879 = vrot.lane.b32.xlu1 %v5784_v50, %s7917_s30 }
 0x8b7   : > { %6104 = vrot.lane.b32.xlu2 %v6010_v7, %s7918_s3 }
 0x8b8   : > { %v5617_v10 = vpop.permute.xlu1 %5616  ;;  %v5615_v16 = vpop.permute.xlu0 %5614 }
 0x8b9   : > { %5700 = vst.msk [vmem:[#allocation2 + $0x34] sm:$0xf] %vm5686_vm9, %v5617_v10  ;;  %v7753_v22 = vld [vmem:[#allocation2 + $0x60] sm:$0xff]  ;;  %v5633_v21 = vpop.permute.xlu2 %5632 }
 0x8ba   : > { %5699 = vst.msk [vmem:[#allocation2 + $0x30] sm:$0xf] %vm5686_vm9, %v5615_v16  ;;  %7734 = vmatmul.msk.bf16.vlgmr.msra.gmra.mxu3 %vm6340_vm12, %v7753_v22 }
 0x8bb   : > { %5927 = vst.msk [vmem:[#allocation2 + $0x34] sm:$0xf] %vm5913_vm10, %v5844_v58 }
 0x8bc   : > { %5708 = vst.msk [vmem:[#allocation2 + $0x54] sm:$0xf] %vm5686_vm9, %v5633_v21 }
 0x8be   : > { %6106 = vrot.lane.b32.xlu0 %v6011_v18, %s7918_s3 }
 0x8c0   : > { %v5842_v11 = vpop.permute.xlu1 %5841  ;;  %v5832_v25 = vpop.permute.xlu0 %5831 }
 0x8c1   : > { %5926 = vst.msk [vmem:[#allocation2 + $0x30] sm:$0xf] %vm5913_vm10, %v5842_v11  ;;  %v5858_v40 = vpop.permute.xlu2 %5857 }
 0x8c2   : > { %5921 = vst.msk [vmem:[#allocation2 + $0x1c] sm:$0xf] %vm5913_vm10, %v5832_v25 }
 0x8c3   : > { %6153 = vst.msk [vmem:[#allocation2 + $0x30] sm:$0xf] %vm6140_vm11, %v6069_v24 }
 0x8c7   : > { %v6402_v20 = vpop.f32.mrf.mxu0 }
 0x8c8   : > { %v6059_v54 = vpop.permute.xlu1 %6058  ;;  %v6057_v5 = vpop.permute.xlu0 %6056  ;;  %v6482_v10 = vmul.f32 %v6402_v20, %v6402_v20 }
 0x8c9   : > { %6148 = vst.msk [vmem:[#allocation2 + $0x1c] sm:$0xf] %vm6140_vm11, %v6059_v54  ;;  %v5872_v29 = vpop.permute.xlu2 %5871 }
 0x8ca   : > { %6147 = vst.msk [vmem:[#allocation2 + $0x18] sm:$0xf] %vm6140_vm11, %v6057_v5 }
 0x8cf   : > { %v6404_v49 = vpop.f32.mrf.mxu0 }
 0x8d0   : > { %v5631_v4 = vpop.permute.xlu1 %5630  ;;  %v6071_v63 = vpop.permute.xlu0 %6070  ;;  %v6483_v6 = vmul.f32 %v6404_v49, %v6404_v49 }
 0x8d1   : > { %5707 = vst.msk [vmem:[#allocation2 + $0x50] sm:$0xf] %vm5686_vm9, %v5631_v4  ;;  %v7744_v56 = vld [vmem:[#allocation2 + $0x18] sm:$0xff]  ;;  %v6097_v8 = vpop.permute.xlu2 %6096 }
 0x8d2   : > { %6154 = vst.msk [vmem:[#allocation2 + $0x34] sm:$0xf] %vm6140_vm11, %v6071_v63  ;;  %7725 = vmatmul.msk.bf16.gmra.mxu0 %vm6340_vm12, %v7744_v56  ;;  %v6514_v22 = vadd.f32 %v6483_v6, %v6482_v10 }
 0x8d3   : > { %5934 = vst.msk [vmem:[#allocation2 + $0x50] sm:$0xf] %vm5913_vm10, %v5858_v40 }
 0x8d8   : > { %v5645_v47 = vpop.permute.xlu1 %5644  ;;  %v5643_v51 = vpop.permute.xlu0 %5642 }
 0x8d9   : > { %5714 = vst.msk [vmem:[#allocation2 + $0x6c] sm:$0xf] %vm5686_vm9, %v5645_v47  ;;  %v7747_v30 = vld [vmem:[#allocation2 + $0x30] sm:$0xff]  ;;  %v5621_v0 = vpop.permute.xlu2 %5620 }
 0x8da   : > { %5713 = vst.msk [vmem:[#allocation2 + $0x68] sm:$0xf] %vm5686_vm9, %v5643_v51  ;;  %7728 = vmatmul.msk.bf16.gmra.mxu1 %vm6340_vm12, %v7747_v30 }
 0x8db   : > { %5941 = vst.msk [vmem:[#allocation2 + $0x6c] sm:$0xf] %vm5913_vm10, %v5872_v29 }
 0x8dc   : > { %5702 = vst.msk [vmem:[#allocation2 + $0x3c] sm:$0xf] %vm5686_vm9, %v5621_v0 }
 0x8df   : > { %v6407_v31 = vpop.f32.mrf.mxu0 }
 0x8e0   : > { %v5870_v37 = vpop.permute.xlu1 %5869  ;;  %v5860_v39 = vpop.permute.xlu0 %5859  ;;  %v6484_v16 = vmul.f32 %v6407_v31, %v6407_v31 }
 0x8e1   : > { %5940 = vst.msk [vmem:[#allocation2 + $0x68] sm:$0xf] %vm5913_vm10, %v5870_v37  ;;  %v6073_v61 = vpop.permute.xlu2 %6072 }
 0x8e2   : > { %5935 = vst.msk [vmem:[#allocation2 + $0x54] sm:$0xf] %vm5913_vm10, %v5860_v39  ;;  %v6515_v11 = vadd.f32 %v6514_v22, %v6484_v16 }
 0x8e3   : > { %6167 = vst.msk [vmem:[#allocation2 + $0x68] sm:$0xf] %vm6140_vm11, %v6097_v8 }
 0x8e7   : > { %v6409_v53 = vpop.f32.mrf.mxu0  ;;  %v6422_v3 = vpop.f32.mrf.mxu1 }
 0x8e8   : > { %v6087_v62 = vpop.permute.xlu1 %6086  ;;  %v6085_v38 = vpop.permute.xlu0 %6084  ;;  %v6485_v18 = vmul.f32 %v6409_v53, %v6409_v53  ;;  %v6490_v37 = vmul.f32 %v6422_v3, %v6422_v3 }
 0x8e9   : > { %6162 = vst.msk [vmem:[#allocation2 + $0x54] sm:$0xf] %vm6140_vm11, %v6087_v62  ;;  %v5637_v36 = vpop.permute.xlu2 %5636 }
 0x8ea   : > { %6161 = vst.msk [vmem:[#allocation2 + $0x50] sm:$0xf] %vm6140_vm11, %v6085_v38  ;;  %v6516_v54 = vadd.f32 %v6515_v11, %v6485_v18 }
 0x8eb   : > { %5710 = vst.msk [vmem:[#allocation2 + $0x5c] sm:$0xf] %vm5686_vm9, %v5637_v36 }
 0x8ef   : > { %v6424_v50 = vpop.f32.mrf.mxu1 }
 0x8f0   : > { %v5619_v1 = vpop.permute.xlu1 %5618  ;;  %v6099_v57 = vpop.permute.xlu0 %6098 }
 0x8f1   : > { %5701 = vst.msk [vmem:[#allocation2 + $0x38] sm:$0xf] %vm5686_vm9, %v5619_v1  ;;  %v7751_v42 = vld [vmem:[#allocation2 + $0x50] sm:$0xff]  ;;  %v5862_v28 = vpop.permute.xlu2 %5861 }
 0x8f2   : > { %6168 = vst.msk [vmem:[#allocation2 + $0x6c] sm:$0xf] %vm6140_vm11, %v6099_v57  ;;  %7732 = vmatmul.msk.bf16.gmra.mxu2 %vm6340_vm12, %v7751_v42 }
 0x8f8   : > { %v5848_v33 = vpop.permute.xlu1 %5847  ;;  %v5846_v52 = vpop.permute.xlu0 %5845 }
 0x8f9   : > { %5929 = vst.msk [vmem:[#allocation2 + $0x3c] sm:$0xf] %vm5913_vm10, %v5848_v33  ;;  %v7754_v44 = vld [vmem:[#allocation2 + $0x68] sm:$0xff]  ;;  %v5876_v41 = vpop.permute.xlu2 %5875 }
 0x8fa   : > { %5928 = vst.msk [vmem:[#allocation2 + $0x38] sm:$0xf] %vm5913_vm10, %v5846_v52  ;;  %7735 = vmatmul.msk.bf16.gmra.mxu3 %vm6340_vm12, %v7754_v44 }
 0x8fb   : > { %6155 = vst.msk [vmem:[#allocation2 + $0x38] sm:$0xf] %vm6140_vm11, %v6073_v61  ;;  %v6491_v61 = vmul.f32 %v6424_v50, %v6424_v50 }
 0x8fd   : > { %v6442_v40 = vpop.f32.mrf.mxu2 }
 0x900   : > { %v5635_v55 = vpop.permute.xlu1 %5634  ;;  %v6075_v23 = vpop.permute.xlu0 %6074 }
 0x901   : > { %5709 = vst.msk [vmem:[#allocation2 + $0x58] sm:$0xf] %vm5686_vm9, %v5635_v55  ;;  %v6101_v12 = vpop.permute.xlu2 %6100 }
 0x902   : > { %6156 = vst.msk [vmem:[#allocation2 + $0x3c] sm:$0xf] %vm6140_vm11, %v6075_v23 }
 0x903   : > { %5936 = vst.msk [vmem:[#allocation2 + $0x58] sm:$0xf] %vm5913_vm10, %v5862_v28 }
 0x905   : > { %v6444_v0 = vpop.f32.mrf.mxu2 }
 0x908   : > { %v5649_v26 = vpop.permute.xlu1 %5648  ;;  %v5647_v13 = vpop.permute.xlu0 %5646 }
 0x909   : > { %5716 = vst.msk [vmem:[#allocation2 + $0x74] sm:$0xf] %vm5686_vm9, %v5649_v26  ;;  %v7748_v19 = vld [vmem:[#allocation2 + $0x38] sm:$0xff]  ;;  %v5653_v32 = vpop.permute.xlu2 %5652 }
 0x90a   : > { %5715 = vst.msk [vmem:[#allocation2 + $0x70] sm:$0xf] %vm5686_vm9, %v5647_v13  ;;  %7729 = vmatmul.msk.bf16.gmra.mxu1 %vm6340_vm12, %v7748_v19 }
 0x90b   : > { %5943 = vst.msk [vmem:[#allocation2 + $0x74] sm:$0xf] %vm5913_vm10, %v5876_v41 }
 0x90c   : > { %5718 = vst.msk [vmem:[#allocation2 + $0x7c] sm:$0xf] %vm5686_vm9, %v5653_v32 }
 0x90f   : > { %v6412_v48 = vpop.f32.mrf.mxu0 }
 0x910   : > { %v5874_v34 = vpop.permute.xlu1 %5873  ;;  %v5864_v2 = vpop.permute.xlu0 %5863  ;;  %v6486_v25 = vmul.f32 %v6412_v48, %v6412_v48 }
 0x911   : > { %5942 = vst.msk [vmem:[#allocation2 + $0x70] sm:$0xf] %vm5913_vm10, %v5874_v34  ;;  %v6105_v43 = vpop.permute.xlu2 %6104 }
 0x912   : > { %5937 = vst.msk [vmem:[#allocation2 + $0x5c] sm:$0xf] %vm5913_vm10, %v5864_v2  ;;  %v6517_v4 = vadd.f32 %v6516_v54, %v6486_v25 }
 0x913   : > { %6169 = vst.msk [vmem:[#allocation2 + $0x70] sm:$0xf] %vm6140_vm11, %v6101_v12 }
 0x917   : > { %v6414_v24 = vpop.f32.mrf.mxu0  ;;  %v6427_v45 = vpop.f32.mrf.mxu1 }
 0x918   : > { %v6091_v59 = vpop.permute.xlu1 %6090  ;;  %v6089_v60 = vpop.permute.xlu0 %6088  ;;  %v6487_v5 = vmul.f32 %v6414_v24, %v6414_v24  ;;  %v6492_v1 = vmul.f32 %v6427_v45, %v6427_v45 }
 0x919   : > { %6164 = vst.msk [vmem:[#allocation2 + $0x5c] sm:$0xf] %vm6140_vm11, %v6091_v59 }
 0x91a   : > { %6163 = vst.msk [vmem:[#allocation2 + $0x58] sm:$0xf] %vm6140_vm11, %v6089_v60  ;;  %v6518_v56 = vadd.f32 %v6517_v4, %v6487_v5  ;;  %v6498_v60 = vmul.f32 %v6442_v40, %v6442_v40 }
 0x91f   : > { %v6429_v21 = vpop.f32.mrf.mxu1 }
 0x920   : > { %v6103_v46 = vpop.permute.xlu0 %6102  ;;  %v5651_v15 = vpop.permute.xlu1 %5650  ;;  %v6493_v42 = vmul.f32 %v6429_v21, %v6429_v21 }
 0x921   : > { %6170 = vst.msk [vmem:[#allocation2 + $0x74] sm:$0xf] %vm6140_vm11, %v6103_v46  ;;  %v7752_v27 = vld [vmem:[#allocation2 + $0x58] sm:$0xff] }
 0x922   : > { %5717 = vst.msk [vmem:[#allocation2 + $0x78] sm:$0xf] %vm5686_vm9, %v5651_v15  ;;  %7733 = vmatmul.msk.bf16.gmra.mxu2 %vm6340_vm12, %v7752_v27  ;;  %v6499_v15 = vmul.f32 %v6444_v0, %v6444_v0 }
 0x928   : > { %v5878_v14 = vpop.permute.xlu0 %5877  ;;  %v7755_v35 = vld [vmem:[#allocation2 + $0x70] sm:$0xff]  ;;  %v5880_v58 = vpop.permute.xlu1 %5879 }
 0x929   : > { %5944 = vst.msk [vmem:[#allocation2 + $0x78] sm:$0xf] %vm5913_vm10, %v5878_v14  ;;  %7736 = vmatmul.msk.bf16.gmra.mxu3 %vm6340_vm12, %v7755_v35 }
 0x92a   : > { %5945 = vst.msk [vmem:[#allocation2 + $0x7c] sm:$0xf] %vm5913_vm10, %v5880_v58 }
 0x92b   : > { %6171 = vst.msk [vmem:[#allocation2 + $0x78] sm:$0xf] %vm6140_vm11, %v6105_v43 }
 0x930   : > { %v6107_v9 = vpop.permute.xlu0 %6106 }
 0x931   : > { %6172 = vst.msk [vmem:[#allocation2 + $0x7c] sm:$0xf] %vm6140_vm11, %v6107_v9 }
 0x935   : > { %v6447_v36 = vpop.f32.mrf.mxu2 }
 0x936   : > { %v6500_v35 = vmul.f32 %v6447_v36, %v6447_v36 }
 0x938   : > { %v7756_v17 = vld [vmem:[#allocation2 + $0x78] sm:$0xff] }
 0x939   : > { %7737 = vmatmul.msk.bf16.gmra.mxu3 %vm6340_vm12, %v7756_v17 }
 0x93d   : > { %v6462_v33 = vpop.f32.mrf.mxu3  ;;  %v6449_v41 = vpop.f32.mrf.mxu2 }
 0x93e   : > { %v6501_v9 = vmul.f32 %v6449_v41, %v6449_v41  ;;  %v6506_v10 = vmul.f32 %v6462_v33, %v6462_v33 }
 0x945   : > { %v6464_v32 = vpop.f32.mrf.mxu3 }
 0x946   : > { %v6507_v22 = vmul.f32 %v6464_v32, %v6464_v32 }
 0x94f   : > { %v6417_v7 = vpop.f32.mrf.mxu0 }
 0x950   : > { %v6488_v63 = vmul.f32 %v6417_v7, %v6417_v7 }
 0x952   : > { %v6519_v51 = vadd.f32 %v6518_v56, %v6488_v63 }
 0x957   : > { %v6419_v29 = vpop.f32.mrf.mxu0  ;;  %v6432_v47 = vpop.f32.mrf.mxu1 }
 0x958   : > { %v6489_v8 = vmul.f32 %v6419_v29, %v6419_v29  ;;  %v6494_v44 = vmul.f32 %v6432_v47, %v6432_v47 }
 0x95a   : > { %v6520_v30 = vadd.f32 %v6519_v51, %v6489_v8 }
 0x95c   : > { %v6521_v39 = vadd.f32 %v6520_v30, %v6490_v37 }
 0x95e   : > { %v6522_v38 = vadd.f32 %v6521_v39, %v6491_v61 }
 0x95f   : > { %v6434_v62 = vpop.f32.mrf.mxu1 }
 0x960   : > { %v6523_v57 = vadd.f32 %v6522_v38, %v6492_v1  ;;  %v6495_v23 = vmul.f32 %v6434_v62, %v6434_v62 }
 0x962   : > { %v6524_v52 = vadd.f32 %v6523_v57, %v6493_v42 }
 0x964   : > { %v6525_v55 = vadd.f32 %v6524_v52, %v6494_v44 }
 0x966   : > { %v6526_v13 = vadd.f32 %v6525_v55, %v6495_v23 }
 0x975   : > { %v6452_v2 = vpop.f32.mrf.mxu2 }
 0x976   : > { %v6502_v31 = vmul.f32 %v6452_v2, %v6452_v2 }
 0x97d   : > { %v6467_v27 = vpop.f32.mrf.mxu3  ;;  %v6454_v14 = vpop.f32.mrf.mxu2 }
 0x97e   : > { %v6503_v3 = vmul.f32 %v6454_v14, %v6454_v14  ;;  %v6508_v25 = vmul.f32 %v6467_v27, %v6467_v27 }
 0x985   : > { %v6469_v20 = vpop.f32.mrf.mxu3 }
 0x986   : > { %v6509_v54 = vmul.f32 %v6469_v20, %v6469_v20 }
 0x987   : > { %v6437_v28 = vpop.f32.mrf.mxu1 }
 0x988   : > { %v6496_v12 = vmul.f32 %v6437_v28, %v6437_v28 }
 0x98a   : > { %v6527_v34 = vadd.f32 %v6526_v13, %v6496_v12 }
 0x98f   : > { %v6439_v26 = vpop.f32.mrf.mxu1 }
 0x990   : > { %v6497_v19 = vmul.f32 %v6439_v26, %v6439_v26 }
 0x992   : > { %v6528_v59 = vadd.f32 %v6527_v34, %v6497_v19 }
 0x994   : > { %v6529_v46 = vadd.f32 %v6528_v59, %v6498_v60 }
 0x996   : > { %v6530_v43 = vadd.f32 %v6529_v46, %v6499_v15 }
 0x998   : > { %v6531_v58 = vadd.f32 %v6530_v43, %v6500_v35 }
 0x99a   : > { %v6532_v17 = vadd.f32 %v6531_v58, %v6501_v9 }
 0x99c   : > { %v6533_v53 = vadd.f32 %v6532_v17, %v6502_v31 }
 0x99e   : > { %v6534_v50 = vadd.f32 %v6533_v53, %v6503_v3 }
 0x9a5   : > { %v6457_v49 = vpop.f32.mrf.mxu2 }
 0x9a6   : > { %v6504_v48 = vmul.f32 %v6457_v49, %v6457_v49 }
 0x9a8   : > { %v6535_v7 = vadd.f32 %v6534_v50, %v6504_v48 }
 0x9ac   : > { %v6472_v24 = vpop.f32.mrf.mxu3 }
 0x9ad   : > { %v6459_v45 = vpop.f32.mrf.mxu2  ;;  %v6510_v4 = vmul.f32 %v6472_v24, %v6472_v24 }
 0x9ae   : > { %v6505_v6 = vmul.f32 %v6459_v45, %v6459_v45 }
 0x9b0   : > { %v6536_v16 = vadd.f32 %v6535_v7, %v6505_v6 }
 0x9b2   : > { %v6537_v18 = vadd.f32 %v6536_v16, %v6506_v10 }
 0x9b4   : > { %v6538_v21 = vadd.f32 %v6537_v18, %v6507_v22  ;;  %v6474_v11 = vpop.f32.mrf.mxu3 }
 0x9b5   : > { %v6511_v56 = vmul.f32 %v6474_v11, %v6474_v11 }
 0x9b6   : > { %v6539_v40 = vadd.f32 %v6538_v21, %v6508_v25 }
 0x9b8   : > { %v6540_v5 = vadd.f32 %v6539_v40, %v6509_v54 }
 0x9ba   : > { %v6541_v63 = vadd.f32 %v6540_v5, %v6510_v4 }
 0x9bc   : > { %v6477_v29 = vpop.f32.mrf.mxu3  ;;  %v6542_v47 = vadd.f32 %v6541_v63, %v6511_v56 }
 0x9bd   : > { %v6512_v8 = vmul.f32 %v6477_v29, %v6477_v29 }
 0x9bf   : > { %v6543_v30 = vadd.f32 %v6542_v47, %v6512_v8 }
 0x9c3   : > { %6548 = sbr.rel (%p7738_p6) target bundleno = 2506 (0x9ca), region = 32 }
 0x9c4   : > { %v6479_v51 = vpop.f32.mrf.mxu3 }
 0x9c5   : > { %v6513_v0 = vmul.f32 %v6479_v51, %v6479_v51 }
 0x9c7   : > { %v6544_v37 = vadd.f32 %v6543_v30, %v6513_v0 }
 0x9c8   : > { %v7919_v39 = vmov 0.0  }
 0x9c9   : > { %6549 = vst [vmem:[%s7971_s21] sm:$0xff] %v7919_v39 }
 0x9ca PF:  {}
 0x9d0   : > { %v6550_v61 = vld [vmem:[%s7971_s21] sm:$0xff] }
 0x9d1   : > { %v6551_v62 = vadd.f32 %v6550_v61, %v6544_v37 }
 0x9d3   : > { %6552 = vst [vmem:[%s7971_s21] sm:$0xff] %v6551_v62 }
 0x9d4 PF: > { %s12_s13 = sadd.s32 1, %s7891_s13   ;;  %s10906_s9 = smov %s7883_s11 }
 0x9d5   : > { %p9_p7 = scmp.ge.s32.totalorder %s12_s13, 14   ;;  %s10907_s10 = smov %s7887_s12 }
 0x9d6   : > { %s10908_s11 = smov %s10911_s14  ;;  %s10909_s12 = smov %s10915_s15 }
 0x9d7   :  { %11 = sbr.rel (!%p9_p7) target bundleno = 3 (0x3), region = 89 }

</bundles_post_ra>
